<compile_context>
chip_gen: v5e
topology: v5e:2x2
jax: 0.10.0
libtpu: 0.0.40
codegen_flags: <defaults>
</compile_context>

<pallas_src>
import functools

import jax
import jax.numpy as jnp
import numpy as np
from jax import lax
from jax.experimental import pallas as pl
from jax.experimental.pallas import tpu as pltpu


def _round_up(x, m):
    return (x + m - 1) // m * m


def _vmem_limit_bytes():
    """Scoped-VMEM limit: ~80% of physical capacity (queried at trace time)."""
    try:
        cap = int(pltpu.get_tpu_info().vmem_capacity_bytes)
    except Exception:          # query unavailable -> v7x-safe fallback (64 MiB phys)
        cap = 64 * 1024 * 1024
    cap = max(cap, 16 * 1024 * 1024)
    return int(cap * 0.8)


# ---------------------------------------------------------------------------
# Pallas kernel: one fused sep-conv stage for one (batch, row-tile) grid cell.
# Inputs (has_halo=True):
#   xm_ref : (th,  Wo+1, 4*Cin)  main rows of the padded space-to-depth tensor
#   xh_ref : (1,   Wo+1, 4*Cin)  one halo row (row th of the window)
# Inputs (has_halo=False, single row tile):
#   xm_ref : (Ho+1, Wo+1, 4*Cin) full padded s2d slab for this batch element
# Always:
#   w_ref  : (16*Cin, Cout_p)    combined depthwise*pointwise weight
#   b_ref  : (1, Cout_p)         combined bias (f32)
#   out_ref: (th, Wo, Cout_p)    lane-dense output block (Cout_p % 128 == 0)
# ---------------------------------------------------------------------------
def sep_stage_kernel(*refs, th, wo, cin4, has_halo, fuse_taps, apply_leaky):
    if has_halo:
        xm_ref, xh_ref, w_ref, b_ref, out_ref = refs
        top = xm_ref[...]                                   # rows [0, th)
        if th > 1:                                          # rows [1, th+1)
            bot = jnp.concatenate([top[1:th], xh_ref[...]], axis=0)
        else:
            bot = xh_ref[...]
    else:
        xm_ref, w_ref, b_ref, out_ref = refs
        full = xm_ref[...]
        top = full[0:th]
        bot = full[1:th + 1]

    # The 2x2 stride-1 neighborhood of the s2d tensor == the 16 taps of the
    # 4x4 stride-2 depthwise conv.  Pure in-VMEM data movement.
    s00 = top[:, 0:wo, :]
    s01 = top[:, 1:wo + 1, :]
    s10 = bot[:, 0:wo, :]
    s11 = bot[:, 1:wo + 1, :]
    rows = th * wo

    if fuse_taps:
        # Tiny 4*Cin (stage 1): fuse the 4 taps on the lane axis so the MXU gets
        # K = 16*Cin in a single dot.
        p = jnp.concatenate([s00, s01, s10, s11], axis=-1).reshape(rows, 4 * cin4)
        y = jnp.dot(p, w_ref[...], preferred_element_type=jnp.float32)
    else:
        # 4 accumulating MXU dots: no 4x-wide concat buffer, ~4x lower VMEM peak.
        y = jnp.dot(s00.reshape(rows, cin4), w_ref[0 * cin4:1 * cin4, :],
                    preferred_element_type=jnp.float32)
        y = y + jnp.dot(s01.reshape(rows, cin4), w_ref[1 * cin4:2 * cin4, :],
                        preferred_element_type=jnp.float32)
        y = y + jnp.dot(s10.reshape(rows, cin4), w_ref[2 * cin4:3 * cin4, :],
                        preferred_element_type=jnp.float32)
        y = y + jnp.dot(s11.reshape(rows, cin4), w_ref[3 * cin4:4 * cin4, :],
                        preferred_element_type=jnp.float32)

    y = y + b_ref[...]                                      # f32 bias
    if apply_leaky:
        y = jnp.where(y >= 0.0, y, 0.2 * y)                 # LeakyReLU(0.2), f32

    out_ref[...] = y.reshape(th, wo, -1).astype(out_ref.dtype)


# ---------------------------------------------------------------------------
# Row-tile picker: largest divisor of Ho whose full working set (padded vreg
# layout, double buffers, accumulator, temporaries) fits the per-tile budget.
# ---------------------------------------------------------------------------
def _pick_row_tile(Ho, Wo, cin4, cout_p, isz, *, budget_bytes, max_rows=None):
    lane_in = _round_up(cin4, 128)
    sub_in = _round_up(Wo + 1, 8)
    sub_out = _round_up(Wo, 8)
    lane_patch = _round_up(4 * cin4, 128)

    def tile_bytes(th):
        main = th * sub_in * lane_in * isz          # input block (VMEM-padded)
        halo = sub_in * lane_in * isz
        outb = th * sub_out * cout_p * isz          # output block
        acc = th * Wo * cout_p * 4                  # f32 accumulator value
        tmp = main + 2 * th * sub_out * lane_patch * isz  # shifted rows + patch slices
        return 2 * (main + halo + outb) + acc + tmp

    divisors = [d for d in range(1, Ho + 1) if Ho % d == 0]
    cands = [d for d in divisors if max_rows is None or d <= max_rows] or [1]
    fitting = [d for d in cands if tile_bytes(d) <= budget_bytes]
    # Smallest aligned tile if nothing fits the soft budget (hard limit has headroom).
    return max(fitting) if fitting else min(cands)


# ---------------------------------------------------------------------------
# Fold depthwise into pointwise (tiny, XLA-side), with channel padding:
#   patch column order is (q=dh*2+dw, ph, pw, c) with kh=2*dh+ph, kw=2*dw+pw.
# ---------------------------------------------------------------------------
def _fold_weights(w_dw, b_dw, w_pw, b_pw, cin_act, cout_p, compute_dtype):
    cin = w_pw.shape[0]
    if cin_act > cin:  # padded input channels from the previous stage -> zero rows
        w_dw = jnp.pad(w_dw, ((0, 0), (0, 0), (0, cin_act - cin)))
        b_dw = jnp.pad(b_dw, ((0, cin_act - cin),))
        w_pw = jnp.pad(w_pw, ((0, cin_act - cin), (0, 0)))
    cout = w_pw.shape[1]
    if cout_p > cout:  # lane-dense stores: zero output columns
        w_pw = jnp.pad(w_pw, ((0, 0), (0, cout_p - cout)))
        b_pw = jnp.pad(b_pw, ((0, cout_p - cout),))
    D = w_dw.reshape(2, 2, 2, 2, cin_act).transpose(0, 2, 1, 3, 4).reshape(16 * cin_act, 1)
    w_comb = (D * jnp.tile(w_pw, (16, 1))).astype(compute_dtype)          # (16*Cin, Cout_p)
    b_comb = (b_dw @ w_pw + b_pw).astype(jnp.float32).reshape(1, cout_p)  # (1, Cout_p)
    return w_comb, b_comb


# ---------------------------------------------------------------------------
# One fused stage: pad + space-to-depth (one XLA copy), then a Pallas call with
# a (B, row-tile) parallel grid, main+halo BlockSpecs, lane-dense output.
# ---------------------------------------------------------------------------
def sep_stage(x, w_dw, b_dw, w_pw, b_pw, *, apply_leaky, compute_dtype,
              vmem_limit, max_rows_per_tile):
    B, H, W, Cact = x.shape
    assert H % 2 == 0 and W % 2 == 0, (
        "DiscriminatorSEP stages assume even spatial dims (k=4, s=2, p=1).")
    Ho, Wo = H // 2, W // 2
    Cout = w_pw.shape[1]
    Cout_p = _round_up(max(Cout, 1), 128)        # lane-dense stores / aligned next stage
    cin4 = 4 * Cact
    fuse_taps = cin4 < 128                       # concat path only when 4*Cin is tiny
    isz = jnp.dtype(compute_dtype).itemsize

    w_comb, b_comb = _fold_weights(w_dw, b_dw, w_pw, b_pw, Cact, Cout_p, compute_dtype)

    # Pad + space-to-depth: one volume-preserving relayout (fuses in XLA).
    xc = x.astype(compute_dtype)
    xp = jnp.pad(xc, ((0, 0), (1, 1), (1, 1), (0, 0)))
    xs = xp.reshape(B, Ho + 1, 2, Wo + 1, 2, Cact)
    xs = xs.transpose(0, 1, 3, 2, 4, 5).reshape(B, Ho + 1, Wo + 1, cin4)

    # Accurate per-tile VMEM budget (weights, bias and headroom subtracted).
    w_bytes = 16 * Cact * Cout_p * isz + Cout_p * 4
    budget = max(int(vmem_limit * 0.85) - 2 * w_bytes - (2 << 20), 1 << 20)
    th = _pick_row_tile(Ho, Wo, cin4, Cout_p, isz, budget_bytes=budget,
                        max_rows=max_rows_per_tile)
    n_th = Ho // th
    has_halo = n_th > 1

    kernel = functools.partial(sep_stage_kernel, th=th, wo=Wo, cin4=cin4,
                               has_halo=has_halo, fuse_taps=fuse_taps,
                               apply_leaky=apply_leaky)

    w_spec = pl.BlockSpec((16 * Cact, Cout_p), lambda b, t: (0, 0))
    b_spec = pl.BlockSpec((1, Cout_p), lambda b, t: (0, 0))
    out_spec = pl.BlockSpec((None, th, Wo, Cout_p), lambda b, t: (b, t, 0, 0))

    if has_halo:
        # Same array twice: th-row main window + 1-row halo window (overlap is
        # only the halo row -> ~1x HBM read, fully auto-pipelined).
        in_specs = [
            pl.BlockSpec((None, th, Wo + 1, cin4), lambda b, t: (b, t, 0, 0)),
            pl.BlockSpec((None, 1, Wo + 1, cin4), lambda b, t: (b, t * th + th, 0, 0)),
            w_spec, b_spec,
        ]
        operands = (xs, xs, w_comb, b_comb)
    else:
        in_specs = [
            pl.BlockSpec((None, Ho + 1, Wo + 1, cin4), lambda b, t: (b, 0, 0, 0)),
            w_spec, b_spec,
        ]
        operands = (xs, w_comb, b_comb)

    out = pl.pallas_call(
        kernel,
        out_shape=jax.ShapeDtypeStruct((B, Ho, Wo, Cout_p), compute_dtype),
        grid=(B, n_th),
        in_specs=in_specs,
        out_specs=out_spec,
        compiler_params=pltpu.CompilerParams(
            dimension_semantics=("parallel", "parallel"),
            vmem_limit_bytes=int(vmem_limit)),
    )(*operands)
    return out


# ---------------------------------------------------------------------------
# Full DiscriminatorSEP forward (5 fused stages; no LeakyReLU after the last).
# ---------------------------------------------------------------------------
def discriminator_sep(x_nhwc, params, *, compute_dtype=jnp.float32,
                      max_rows_per_tile=None, vmem_limit_bytes=None):
    vmem_limit = vmem_limit_bytes if vmem_limit_bytes is not None else _vmem_limit_bytes()
    n = len(params)
    y = x_nhwc
    for i, (w_dw, b_dw, w_pw, b_pw) in enumerate(params):
        y = sep_stage(y, w_dw, b_dw, w_pw, b_pw, apply_leaky=(i < n - 1),
                      compute_dtype=compute_dtype, vmem_limit=vmem_limit,
                      max_rows_per_tile=max_rows_per_tile)
    cout_last = params[-1][2].shape[1]
    return y[..., :cout_last].astype(jnp.float32)   # strip lane-padding channels


def init_params(key, num_classes, ndf):
    chans = [(num_classes, ndf), (ndf, ndf * 2), (ndf * 2, ndf * 4),
             (ndf * 4, ndf * 8), (ndf * 8, 1)]
    params = []
    for cin, cout in chans:
        key, k1, k2, k3, k4 = jax.random.split(key, 5)
        w_dw = jax.random.normal(k1, (4, 4, cin), jnp.float32) / 4.0          # fan_in=16
        b_dw = 0.05 * jax.random.normal(k2, (cin,), jnp.float32)
        w_pw = jax.random.normal(k3, (cin, cout), jnp.float32) / jnp.sqrt(cin)
        b_pw = 0.05 * jax.random.normal(k4, (cout,), jnp.float32)
        params.append((w_dw, b_dw, w_pw, b_pw))
    return params


# ---------------------------------------------------------------------------
# Pure-JAX reference (lax.conv) for correctness checking.
# ---------------------------------------------------------------------------
def ref_forward(x_nhwc, params):
    n = len(params)
    y = x_nhwc
    for i, (w_dw, b_dw, w_pw, b_pw) in enumerate(params):
        cin, cout = w_pw.shape
        y = lax.conv_general_dilated(
            y, w_dw[:, :, None, :], (2, 2), ((1, 1), (1, 1)),
            dimension_numbers=("NHWC", "HWIO", "NHWC"),
            feature_group_count=cin,
            precision=lax.Precision.HIGHEST) + b_dw.reshape(1, 1, 1, cin)
        y = lax.conv_general_dilated(
            y, w_pw.reshape(1, 1, cin, cout), (1, 1), ((0, 0), (0, 0)),
            dimension_numbers=("NHWC", "HWIO", "NHWC"),
            precision=lax.Precision.HIGHEST) + b_pw.reshape(1, 1, 1, cout)
        if i < n - 1:
            y = jnp.where(y >= 0, y, 0.2 * y)
    return y


if __name__ == "__main__":
    B, num_classes, H, W = 2, 4, 32, 32     # 5 stride-2 stages: 32 -> 1
    ndf = 8                                 # small synthetic size (PyTorch default 64)

    key = jax.random.PRNGKey(0)
    x_nchw = jax.random.normal(key, (B, num_classes, H, W), jnp.float32)
    x_nhwc = jnp.transpose(x_nchw, (0, 2, 3, 1))   # NHWC: channels on the lane axis

    params = init_params(jax.random.PRNGKey(1), num_classes, ndf)
    ref = jax.block_until_ready(ref_forward(x_nhwc, params))

    vmem_limit = _vmem_limit_bytes()        # queried eagerly (outside jit)

    # f32 path, forcing small row tiles so the halo (multi-tile) kernel variant
    # is exercised on stage 1 and the single-tile variant on stages 2-5.
    fwd_f32 = jax.jit(functools.partial(
        discriminator_sep, compute_dtype=jnp.float32, max_rows_per_tile=8,
        vmem_limit_bytes=vmem_limit))
    out_f32 = jax.block_until_ready(fwd_f32(x_nhwc, params))      # (B, 1, 1, 1)
    np.testing.assert_allclose(np.asarray(out_f32), np.asarray(ref),
                               rtol=5e-3, atol=5e-3)

    # Default tiling (budget-driven, whole-image row tiles at this small size).
    fwd_def = jax.jit(functools.partial(
        discriminator_sep, compute_dtype=jnp.float32, vmem_limit_bytes=vmem_limit))
    out_def = jax.block_until_ready(fwd_def(x_nhwc, params))
    np.testing.assert_allclose(np.asarray(out_def), np.asarray(ref),
                               rtol=5e-3, atol=5e-3)

    # bf16 MXU-operand path (elementwise epilogue stays f32 in-kernel).
    # Tolerance justification: bf16 eps = 2^-8 (~4e-3); five chained stages with
    # folded dw*pw products and contractions up to K=2048 give a worst-case
    # relative error of a few percent on an O(1)-magnitude output, so 0.2/0.25
    # is ~10x the expected error yet still catches structural bugs (wrong
    # taps/weights perturb the result by O(1)).
    fwd_bf16 = jax.jit(functools.partial(
        discriminator_sep, compute_dtype=jnp.bfloat16, max_rows_per_tile=8,
        vmem_limit_bytes=vmem_limit))
    out_bf16 = jax.block_until_ready(fwd_bf16(x_nhwc, params))
    np.testing.assert_allclose(np.asarray(out_bf16), np.asarray(ref),
                               rtol=0.2, atol=0.25)

    print("KERNEL_OK")
</pallas_src>

<mosaic_0001>
module attributes {stable_mosaic.version = 11 : i64} {
  func.func @sep_stage_kernel(%arg0: i32, %arg1: i32, %arg2: memref<1x8x17x16xf32, #tpu.memory_space<vmem>>, %arg3: memref<1x1x17x16xf32, #tpu.memory_space<vmem>>, %arg4: memref<64x128xf32, #tpu.memory_space<vmem>>, %arg5: memref<1x128xf32, #tpu.memory_space<vmem>>, %arg6: memref<1x8x16x128xf32, #tpu.memory_space<vmem>>) attributes {dimension_semantics = [#tpu.dimension_semantics<parallel>, #tpu.dimension_semantics<parallel>], iteration_bounds = array<i64: 2, 2>, scalar_prefetch = 0 : i64, scratch_operands = 0 : i64, tpu.core_type = #tpu.core_type<tc>, window_params = [{transform_indices = @transform_0, window_bounds = array<i64: 1, 8, 17, 16>}, {transform_indices = @transform_1, window_bounds = array<i64: 1, 1, 17, 16>}, {pipeline_mode = #tpu.pipeline_mode<synchronous>, transform_indices = @transform_2, window_bounds = array<i64: 64, 128>}, {pipeline_mode = #tpu.pipeline_mode<synchronous>, transform_indices = @transform_3, window_bounds = array<i64: 1, 128>}, {transform_indices = @transform_4, window_bounds = array<i64: 1, 8, 16, 128>}]} {
    %c0 = arith.constant 0 : index
    %c0_0 = arith.constant 0 : index
    %c0_1 = arith.constant 0 : index
    %c0_2 = arith.constant 0 : index
    %0 = vector.load %arg2[%c0, %c0_0, %c0_1, %c0_2] : memref<1x8x17x16xf32, #tpu.memory_space<vmem>>, vector<1x8x17x16xf32>
    %1 = vector.shape_cast %0 : vector<1x8x17x16xf32> to vector<8x17x16xf32>
    %2 = vector.extract_strided_slice %1 {offsets = [1, 0, 0], sizes = [7, 17, 16], strides = [1, 1, 1]} : vector<8x17x16xf32> to vector<7x17x16xf32>
    %c0_3 = arith.constant 0 : index
    %c0_4 = arith.constant 0 : index
    %c0_5 = arith.constant 0 : index
    %c0_6 = arith.constant 0 : index
    %3 = vector.load %arg3[%c0_3, %c0_4, %c0_5, %c0_6] : memref<1x1x17x16xf32, #tpu.memory_space<vmem>>, vector<1x1x17x16xf32>
    %4 = vector.shape_cast %3 : vector<1x1x17x16xf32> to vector<1x17x16xf32>
    %5 = tpu.concatenate %2, %4 in 0 : vector<7x17x16xf32>, vector<1x17x16xf32> -> vector<8x17x16xf32>
    %6 = vector.extract_strided_slice %1 {offsets = [0, 0, 0], sizes = [8, 16, 16], strides = [1, 1, 1]} : vector<8x17x16xf32> to vector<8x16x16xf32>
    %7 = vector.extract_strided_slice %1 {offsets = [0, 1, 0], sizes = [8, 16, 16], strides = [1, 1, 1]} : vector<8x17x16xf32> to vector<8x16x16xf32>
    %8 = vector.extract_strided_slice %5 {offsets = [0, 0, 0], sizes = [8, 16, 16], strides = [1, 1, 1]} : vector<8x17x16xf32> to vector<8x16x16xf32>
    %9 = vector.extract_strided_slice %5 {offsets = [0, 1, 0], sizes = [8, 16, 16], strides = [1, 1, 1]} : vector<8x17x16xf32> to vector<8x16x16xf32>
    %10 = tpu.concatenate %6, %7, %8, %9 in 2 : vector<8x16x16xf32>, vector<8x16x16xf32>, vector<8x16x16xf32>, vector<8x16x16xf32> -> vector<8x16x64xf32>
    %11 = vector.shape_cast %10 : vector<8x16x64xf32> to vector<128x64xf32>
    %c0_7 = arith.constant 0 : index
    %c0_8 = arith.constant 0 : index
    %12 = vector.load %arg4[%c0_7, %c0_8] : memref<64x128xf32, #tpu.memory_space<vmem>>, vector<64x128xf32>
    %cst = arith.constant dense<0.000000e+00> : vector<128x128xf32>
    %13 = tpu.matmul %11, %12, %cst {dimension_numbers = #tpu.dot_dimension_numbers<[1], [0], [0], [1], [0, 0, 1, 1], [], []>} : vector<128x64xf32>, vector<64x128xf32>, vector<128x128xf32> -> vector<128x128xf32>
    %c0_9 = arith.constant 0 : index
    %c0_10 = arith.constant 0 : index
    %14 = vector.load %arg5[%c0_9, %c0_10] : memref<1x128xf32, #tpu.memory_space<vmem>>, vector<1x128xf32>
    %15 = vector.broadcast %14 : vector<1x128xf32> to vector<128x128xf32>
    %16 = arith.addf %13, %15 : vector<128x128xf32>
    %cst_11 = arith.constant 0.000000e+00 : f32
    %17 = vector.broadcast %cst_11 : f32 to vector<128x128xf32>
    %18 = arith.cmpf oge, %16, %17 : vector<128x128xf32>
    %cst_12 = arith.constant 2.000000e-01 : f32
    %19 = vector.broadcast %cst_12 : f32 to vector<128x128xf32>
    %20 = arith.mulf %19, %16 : vector<128x128xf32>
    %21 = arith.select %18, %16, %20 : vector<128x128xi1>, vector<128x128xf32>
    %22 = vector.shape_cast %21 : vector<128x128xf32> to vector<8x16x128xf32>
    %c0_13 = arith.constant 0 : index
    %c0_14 = arith.constant 0 : index
    %c0_15 = arith.constant 0 : index
    %c0_16 = arith.constant 0 : index
    %23 = vector.load %arg6[%c0_13, %c0_14, %c0_15, %c0_16] : memref<1x8x16x128xf32, #tpu.memory_space<vmem>>, vector<1x8x16x128xf32>
    %24 = vector.shape_cast %23 : vector<1x8x16x128xf32> to vector<8x16x128xf32>
    %25 = vector.shape_cast %22 : vector<8x16x128xf32> to vector<1x8x16x128xf32>
    tpu.vector_store %arg6[%c0_13, %c0_14, %c0_15, %c0_16], %25 {strides = array<i32>} : memref<1x8x16x128xf32, #tpu.memory_space<vmem>>, vector<1x8x16x128xf32>,
    return
  }
  func.func @transform_0(%arg0: i32, %arg1: i32) -> (i32, i32, i32, i32) {
    %c0_i32 = arith.constant 0 : i32
    %c0_i32_0 = arith.constant 0 : i32
    %c0_i32_1 = arith.constant 0 : i32
    return %arg0, %arg1, %c0_i32, %c0_i32_0 : i32, i32, i32, i32
  }
  func.func @transform_1(%arg0: i32, %arg1: i32) -> (i32, i32, i32, i32) {
    %c8_i32 = arith.constant 8 : i32
    %0 = arith.muli %arg1, %c8_i32 : i32
    %c8_i32_0 = arith.constant 8 : i32
    %1 = arith.addi %0, %c8_i32_0 : i32
    %c0_i32 = arith.constant 0 : i32
    %c0_i32_1 = arith.constant 0 : i32
    %c0_i32_2 = arith.constant 0 : i32
    return %arg0, %1, %c0_i32, %c0_i32_1 : i32, i32, i32, i32
  }
  func.func @transform_2(%arg0: i32, %arg1: i32) -> (i32, i32) {
    %c0_i32 = arith.constant 0 : i32
    %c0_i32_0 = arith.constant 0 : i32
    %c0_i32_1 = arith.constant 0 : i32
    return %c0_i32, %c0_i32_0 : i32, i32
  }
  func.func @transform_3(%arg0: i32, %arg1: i32) -> (i32, i32) {
    %c0_i32 = arith.constant 0 : i32
    %c0_i32_0 = arith.constant 0 : i32
    %c0_i32_1 = arith.constant 0 : i32
    return %c0_i32, %c0_i32_0 : i32, i32
  }
  func.func @transform_4(%arg0: i32, %arg1: i32) -> (i32, i32, i32, i32) {
    %c0_i32 = arith.constant 0 : i32
    %c0_i32_0 = arith.constant 0 : i32
    %c0_i32_1 = arith.constant 0 : i32
    return %arg0, %arg1, %c0_i32, %c0_i32_0 : i32, i32, i32, i32
  }
}

module attributes {stable_mosaic.version = 11 : i64} {
  func.func @sep_stage_kernel(%arg0: i32, %arg1: i32, %arg2: memref<1x9x9x512xf32, #tpu.memory_space<vmem>>, %arg3: memref<2048x128xf32, #tpu.memory_space<vmem>>, %arg4: memref<1x128xf32, #tpu.memory_space<vmem>>, %arg5: memref<1x8x8x128xf32, #tpu.memory_space<vmem>>) attributes {dimension_semantics = [#tpu.dimension_semantics<parallel>, #tpu.dimension_semantics<parallel>], iteration_bounds = array<i64: 2, 1>, scalar_prefetch = 0 : i64, scratch_operands = 0 : i64, tpu.core_type = #tpu.core_type<tc>, window_params = [{transform_indices = @transform_0, window_bounds = array<i64: 1, 9, 9, 512>}, {pipeline_mode = #tpu.pipeline_mode<synchronous>, transform_indices = @transform_1, window_bounds = array<i64: 2048, 128>}, {pipeline_mode = #tpu.pipeline_mode<synchronous>, transform_indices = @transform_2, window_bounds = array<i64: 1, 128>}, {transform_indices = @transform_3, window_bounds = array<i64: 1, 8, 8, 128>}]} {
    %c0 = arith.constant 0 : index
    %c0_0 = arith.constant 0 : index
    %c0_1 = arith.constant 0 : index
    %c0_2 = arith.constant 0 : index
    %0 = vector.load %arg2[%c0, %c0_0, %c0_1, %c0_2] : memref<1x9x9x512xf32, #tpu.memory_space<vmem>>, vector<1x9x9x512xf32>
    %1 = vector.shape_cast %0 : vector<1x9x9x512xf32> to vector<9x9x512xf32>
    %2 = vector.extract_strided_slice %1 {offsets = [0, 0, 0], sizes = [8, 9, 512], strides = [1, 1, 1]} : vector<9x9x512xf32> to vector<8x9x512xf32>
    %3 = vector.extract_strided_slice %1 {offsets = [1, 0, 0], sizes = [8, 9, 512], strides = [1, 1, 1]} : vector<9x9x512xf32> to vector<8x9x512xf32>
    %4 = vector.extract_strided_slice %2 {offsets = [0, 0, 0], sizes = [8, 8, 512], strides = [1, 1, 1]} : vector<8x9x512xf32> to vector<8x8x512xf32>
    %5 = vector.extract_strided_slice %2 {offsets = [0, 1, 0], sizes = [8, 8, 512], strides = [1, 1, 1]} : vector<8x9x512xf32> to vector<8x8x512xf32>
    %6 = vector.extract_strided_slice %3 {offsets = [0, 0, 0], sizes = [8, 8, 512], strides = [1, 1, 1]} : vector<8x9x512xf32> to vector<8x8x512xf32>
    %7 = vector.extract_strided_slice %3 {offsets = [0, 1, 0], sizes = [8, 8, 512], strides = [1, 1, 1]} : vector<8x9x512xf32> to vector<8x8x512xf32>
    %8 = vector.shape_cast %4 : vector<8x8x512xf32> to vector<64x512xf32>
    %c0_3 = arith.constant 0 : index
    %c0_4 = arith.constant 0 : index
    %9 = vector.load %arg3[%c0_3, %c0_4] : memref<2048x128xf32, #tpu.memory_space<vmem>>, vector<512x128xf32>
    %cst = arith.constant dense<0.000000e+00> : vector<64x128xf32>
    %10 = tpu.matmul %8, %9, %cst {dimension_numbers = #tpu.dot_dimension_numbers<[1], [0], [0], [1], [0, 0, 1, 1], [], []>} : vector<64x512xf32>, vector<512x128xf32>, vector<64x128xf32> -> vector<64x128xf32>
    %11 = vector.shape_cast %5 : vector<8x8x512xf32> to vector<64x512xf32>
    %c512 = arith.constant 512 : index
    %c0_5 = arith.constant 0 : index
    %12 = vector.load %arg3[%c512, %c0_5] : memref<2048x128xf32, #tpu.memory_space<vmem>>, vector<512x128xf32>
    %cst_6 = arith.constant dense<0.000000e+00> : vector<64x128xf32>
    %13 = tpu.matmul %11, %12, %cst_6 {dimension_numbers = #tpu.dot_dimension_numbers<[1], [0], [0], [1], [0, 0, 1, 1], [], []>} : vector<64x512xf32>, vector<512x128xf32>, vector<64x128xf32> -> vector<64x128xf32>
    %14 = arith.addf %10, %13 : vector<64x128xf32>
    %15 = vector.shape_cast %6 : vector<8x8x512xf32> to vector<64x512xf32>
    %c1024 = arith.constant 1024 : index
    %c0_7 = arith.constant 0 : index
    %16 = vector.load %arg3[%c1024, %c0_7] : memref<2048x128xf32, #tpu.memory_space<vmem>>, vector<512x128xf32>
    %cst_8 = arith.constant dense<0.000000e+00> : vector<64x128xf32>
    %17 = tpu.matmul %15, %16, %cst_8 {dimension_numbers = #tpu.dot_dimension_numbers<[1], [0], [0], [1], [0, 0, 1, 1], [], []>} : vector<64x512xf32>, vector<512x128xf32>, vector<64x128xf32> -> vector<64x128xf32>
    %18 = arith.addf %14, %17 : vector<64x128xf32>
    %19 = vector.shape_cast %7 : vector<8x8x512xf32> to vector<64x512xf32>
    %c1536 = arith.constant 1536 : index
    %c0_9 = arith.constant 0 : index
    %20 = vector.load %arg3[%c1536, %c0_9] : memref<2048x128xf32, #tpu.memory_space<vmem>>, vector<512x128xf32>
    %cst_10 = arith.constant dense<0.000000e+00> : vector<64x128xf32>
    %21 = tpu.matmul %19, %20, %cst_10 {dimension_numbers = #tpu.dot_dimension_numbers<[1], [0], [0], [1], [0, 0, 1, 1], [], []>} : vector<64x512xf32>, vector<512x128xf32>, vector<64x128xf32> -> vector<64x128xf32>
    %22 = arith.addf %18, %21 : vector<64x128xf32>
    %c0_11 = arith.constant 0 : index
    %c0_12 = arith.constant 0 : index
    %23 = vector.load %arg4[%c0_11, %c0_12] : memref<1x128xf32, #tpu.memory_space<vmem>>, vector<1x128xf32>
    %24 = vector.broadcast %23 : vector<1x128xf32> to vector<64x128xf32>
    %25 = arith.addf %22, %24 : vector<64x128xf32>
    %cst_13 = arith.constant 0.000000e+00 : f32
    %26 = vector.broadcast %cst_13 : f32 to vector<64x128xf32>
    %27 = arith.cmpf oge, %25, %26 : vector<64x128xf32>
    %cst_14 = arith.constant 2.000000e-01 : f32
    %28 = vector.broadcast %cst_14 : f32 to vector<64x128xf32>
    %29 = arith.mulf %28, %25 : vector<64x128xf32>
    %30 = arith.select %27, %25, %29 : vector<64x128xi1>, vector<64x128xf32>
    %31 = vector.shape_cast %30 : vector<64x128xf32> to vector<8x8x128xf32>
    %c0_15 = arith.constant 0 : index
    %c0_16 = arith.constant 0 : index
    %c0_17 = arith.constant 0 : index
    %c0_18 = arith.constant 0 : index
    %32 = vector.load %arg5[%c0_15, %c0_16, %c0_17, %c0_18] : memref<1x8x8x128xf32, #tpu.memory_space<vmem>>, vector<1x8x8x128xf32>
    %33 = vector.shape_cast %32 : vector<1x8x8x128xf32> to vector<8x8x128xf32>
    %34 = vector.shape_cast %31 : vector<8x8x128xf32> to vector<1x8x8x128xf32>
    tpu.vector_store %arg5[%c0_15, %c0_16, %c0_17, %c0_18], %34 {strides = array<i32>} : memref<1x8x8x128xf32, #tpu.memory_space<vmem>>, vector<1x8x8x128xf32>,
    return
  }
  func.func @transform_0(%arg0: i32, %arg1: i32) -> (i32, i32, i32, i32) {
    %c0_i32 = arith.constant 0 : i32
    %c0_i32_0 = arith.constant 0 : i32
    %c0_i32_1 = arith.constant 0 : i32
    %c0_i32_2 = arith.constant 0 : i32
    return %arg0, %c0_i32, %c0_i32_0, %c0_i32_1 : i32, i32, i32, i32
  }
  func.func @transform_1(%arg0: i32, %arg1: i32) -> (i32, i32) {
    %c0_i32 = arith.constant 0 : i32
    %c0_i32_0 = arith.constant 0 : i32
    %c0_i32_1 = arith.constant 0 : i32
    return %c0_i32, %c0_i32_0 : i32, i32
  }
  func.func @transform_2(%arg0: i32, %arg1: i32) -> (i32, i32) {
    %c0_i32 = arith.constant 0 : i32
    %c0_i32_0 = arith.constant 0 : i32
    %c0_i32_1 = arith.constant 0 : i32
    return %c0_i32, %c0_i32_0 : i32, i32
  }
  func.func @transform_3(%arg0: i32, %arg1: i32) -> (i32, i32, i32, i32) {
    %c0_i32 = arith.constant 0 : i32
    %c0_i32_0 = arith.constant 0 : i32
    %c0_i32_1 = arith.constant 0 : i32
    return %arg0, %arg1, %c0_i32, %c0_i32_0 : i32, i32, i32, i32
  }
}

module attributes {stable_mosaic.version = 11 : i64} {
  func.func @sep_stage_kernel(%arg0: i32, %arg1: i32, %arg2: memref<1x5x5x512xf32, #tpu.memory_space<vmem>>, %arg3: memref<2048x128xf32, #tpu.memory_space<vmem>>, %arg4: memref<1x128xf32, #tpu.memory_space<vmem>>, %arg5: memref<1x4x4x128xf32, #tpu.memory_space<vmem>>) attributes {dimension_semantics = [#tpu.dimension_semantics<parallel>, #tpu.dimension_semantics<parallel>], iteration_bounds = array<i64: 2, 1>, scalar_prefetch = 0 : i64, scratch_operands = 0 : i64, tpu.core_type = #tpu.core_type<tc>, window_params = [{transform_indices = @transform_0, window_bounds = array<i64: 1, 5, 5, 512>}, {pipeline_mode = #tpu.pipeline_mode<synchronous>, transform_indices = @transform_1, window_bounds = array<i64: 2048, 128>}, {pipeline_mode = #tpu.pipeline_mode<synchronous>, transform_indices = @transform_2, window_bounds = array<i64: 1, 128>}, {transform_indices = @transform_3, window_bounds = array<i64: 1, 4, 4, 128>}]} {
    %c0 = arith.constant 0 : index
    %c0_0 = arith.constant 0 : index
    %c0_1 = arith.constant 0 : index
    %c0_2 = arith.constant 0 : index
    %0 = vector.load %arg2[%c0, %c0_0, %c0_1, %c0_2] : memref<1x5x5x512xf32, #tpu.memory_space<vmem>>, vector<1x5x5x512xf32>
    %1 = vector.shape_cast %0 : vector<1x5x5x512xf32> to vector<5x5x512xf32>
    %2 = vector.extract_strided_slice %1 {offsets = [0, 0, 0], sizes = [4, 5, 512], strides = [1, 1, 1]} : vector<5x5x512xf32> to vector<4x5x512xf32>
    %3 = vector.extract_strided_slice %1 {offsets = [1, 0, 0], sizes = [4, 5, 512], strides = [1, 1, 1]} : vector<5x5x512xf32> to vector<4x5x512xf32>
    %4 = vector.extract_strided_slice %2 {offsets = [0, 0, 0], sizes = [4, 4, 512], strides = [1, 1, 1]} : vector<4x5x512xf32> to vector<4x4x512xf32>
    %5 = vector.extract_strided_slice %2 {offsets = [0, 1, 0], sizes = [4, 4, 512], strides = [1, 1, 1]} : vector<4x5x512xf32> to vector<4x4x512xf32>
    %6 = vector.extract_strided_slice %3 {offsets = [0, 0, 0], sizes = [4, 4, 512], strides = [1, 1, 1]} : vector<4x5x512xf32> to vector<4x4x512xf32>
    %7 = vector.extract_strided_slice %3 {offsets = [0, 1, 0], sizes = [4, 4, 512], strides = [1, 1, 1]} : vector<4x5x512xf32> to vector<4x4x512xf32>
    %8 = vector.shape_cast %4 : vector<4x4x512xf32> to vector<16x512xf32>
    %c0_3 = arith.constant 0 : index
    %c0_4 = arith.constant 0 : index
    %9 = vector.load %arg3[%c0_3, %c0_4] : memref<2048x128xf32, #tpu.memory_space<vmem>>, vector<512x128xf32>
    %cst = arith.constant dense<0.000000e+00> : vector<16x128xf32>
    %10 = tpu.matmul %8, %9, %cst {dimension_numbers = #tpu.dot_dimension_numbers<[1], [0], [0], [1], [0, 0, 1, 1], [], []>} : vector<16x512xf32>, vector<512x128xf32>, vector<16x128xf32> -> vector<16x128xf32>
    %11 = vector.shape_cast %5 : vector<4x4x512xf32> to vector<16x512xf32>
    %c512 = arith.constant 512 : index
    %c0_5 = arith.constant 0 : index
    %12 = vector.load %arg3[%c512, %c0_5] : memref<2048x128xf32, #tpu.memory_space<vmem>>, vector<512x128xf32>
    %cst_6 = arith.constant dense<0.000000e+00> : vector<16x128xf32>
    %13 = tpu.matmul %11, %12, %cst_6 {dimension_numbers = #tpu.dot_dimension_numbers<[1], [0], [0], [1], [0, 0, 1, 1], [], []>} : vector<16x512xf32>, vector<512x128xf32>, vector<16x128xf32> -> vector<16x128xf32>
    %14 = arith.addf %10, %13 : vector<16x128xf32>
    %15 = vector.shape_cast %6 : vector<4x4x512xf32> to vector<16x512xf32>
    %c1024 = arith.constant 1024 : index
    %c0_7 = arith.constant 0 : index
    %16 = vector.load %arg3[%c1024, %c0_7] : memref<2048x128xf32, #tpu.memory_space<vmem>>, vector<512x128xf32>
    %cst_8 = arith.constant dense<0.000000e+00> : vector<16x128xf32>
    %17 = tpu.matmul %15, %16, %cst_8 {dimension_numbers = #tpu.dot_dimension_numbers<[1], [0], [0], [1], [0, 0, 1, 1], [], []>} : vector<16x512xf32>, vector<512x128xf32>, vector<16x128xf32> -> vector<16x128xf32>
    %18 = arith.addf %14, %17 : vector<16x128xf32>
    %19 = vector.shape_cast %7 : vector<4x4x512xf32> to vector<16x512xf32>
    %c1536 = arith.constant 1536 : index
    %c0_9 = arith.constant 0 : index
    %20 = vector.load %arg3[%c1536, %c0_9] : memref<2048x128xf32, #tpu.memory_space<vmem>>, vector<512x128xf32>
    %cst_10 = arith.constant dense<0.000000e+00> : vector<16x128xf32>
    %21 = tpu.matmul %19, %20, %cst_10 {dimension_numbers = #tpu.dot_dimension_numbers<[1], [0], [0], [1], [0, 0, 1, 1], [], []>} : vector<16x512xf32>, vector<512x128xf32>, vector<16x128xf32> -> vector<16x128xf32>
    %22 = arith.addf %18, %21 : vector<16x128xf32>
    %c0_11 = arith.constant 0 : index
    %c0_12 = arith.constant 0 : index
    %23 = vector.load %arg4[%c0_11, %c0_12] : memref<1x128xf32, #tpu.memory_space<vmem>>, vector<1x128xf32>
    %24 = vector.broadcast %23 : vector<1x128xf32> to vector<16x128xf32>
    %25 = arith.addf %22, %24 : vector<16x128xf32>
    %cst_13 = arith.constant 0.000000e+00 : f32
    %26 = vector.broadcast %cst_13 : f32 to vector<16x128xf32>
    %27 = arith.cmpf oge, %25, %26 : vector<16x128xf32>
    %cst_14 = arith.constant 2.000000e-01 : f32
    %28 = vector.broadcast %cst_14 : f32 to vector<16x128xf32>
    %29 = arith.mulf %28, %25 : vector<16x128xf32>
    %30 = arith.select %27, %25, %29 : vector<16x128xi1>, vector<16x128xf32>
    %31 = vector.shape_cast %30 : vector<16x128xf32> to vector<4x4x128xf32>
    %c0_15 = arith.constant 0 : index
    %c0_16 = arith.constant 0 : index
    %c0_17 = arith.constant 0 : index
    %c0_18 = arith.constant 0 : index
    %32 = vector.load %arg5[%c0_15, %c0_16, %c0_17, %c0_18] : memref<1x4x4x128xf32, #tpu.memory_space<vmem>>, vector<1x4x4x128xf32>
    %33 = vector.shape_cast %32 : vector<1x4x4x128xf32> to vector<4x4x128xf32>
    %34 = vector.shape_cast %31 : vector<4x4x128xf32> to vector<1x4x4x128xf32>
    tpu.vector_store %arg5[%c0_15, %c0_16, %c0_17, %c0_18], %34 {strides = array<i32>} : memref<1x4x4x128xf32, #tpu.memory_space<vmem>>, vector<1x4x4x128xf32>,
    return
  }
  func.func @transform_0(%arg0: i32, %arg1: i32) -> (i32, i32, i32, i32) {
    %c0_i32 = arith.constant 0 : i32
    %c0_i32_0 = arith.constant 0 : i32
    %c0_i32_1 = arith.constant 0 : i32
    %c0_i32_2 = arith.constant 0 : i32
    return %arg0, %c0_i32, %c0_i32_0, %c0_i32_1 : i32, i32, i32, i32
  }
  func.func @transform_1(%arg0: i32, %arg1: i32) -> (i32, i32) {
    %c0_i32 = arith.constant 0 : i32
    %c0_i32_0 = arith.constant 0 : i32
    %c0_i32_1 = arith.constant 0 : i32
    return %c0_i32, %c0_i32_0 : i32, i32
  }
  func.func @transform_2(%arg0: i32, %arg1: i32) -> (i32, i32) {
    %c0_i32 = arith.constant 0 : i32
    %c0_i32_0 = arith.constant 0 : i32
    %c0_i32_1 = arith.constant 0 : i32
    return %c0_i32, %c0_i32_0 : i32, i32
  }
  func.func @transform_3(%arg0: i32, %arg1: i32) -> (i32, i32, i32, i32) {
    %c0_i32 = arith.constant 0 : i32
    %c0_i32_0 = arith.constant 0 : i32
    %c0_i32_1 = arith.constant 0 : i32
    return %arg0, %arg1, %c0_i32, %c0_i32_0 : i32, i32, i32, i32
  }
}

module attributes {stable_mosaic.version = 11 : i64} {
  func.func @sep_stage_kernel(%arg0: i32, %arg1: i32, %arg2: memref<1x3x3x512xf32, #tpu.memory_space<vmem>>, %arg3: memref<2048x128xf32, #tpu.memory_space<vmem>>, %arg4: memref<1x128xf32, #tpu.memory_space<vmem>>, %arg5: memref<1x2x2x128xf32, #tpu.memory_space<vmem>>) attributes {dimension_semantics = [#tpu.dimension_semantics<parallel>, #tpu.dimension_semantics<parallel>], iteration_bounds = array<i64: 2, 1>, scalar_prefetch = 0 : i64, scratch_operands = 0 : i64, tpu.core_type = #tpu.core_type<tc>, window_params = [{transform_indices = @transform_0, window_bounds = array<i64: 1, 3, 3, 512>}, {pipeline_mode = #tpu.pipeline_mode<synchronous>, transform_indices = @transform_1, window_bounds = array<i64: 2048, 128>}, {pipeline_mode = #tpu.pipeline_mode<synchronous>, transform_indices = @transform_2, window_bounds = array<i64: 1, 128>}, {transform_indices = @transform_3, window_bounds = array<i64: 1, 2, 2, 128>}]} {
    %c0 = arith.constant 0 : index
    %c0_0 = arith.constant 0 : index
    %c0_1 = arith.constant 0 : index
    %c0_2 = arith.constant 0 : index
    %0 = vector.load %arg2[%c0, %c0_0, %c0_1, %c0_2] : memref<1x3x3x512xf32, #tpu.memory_space<vmem>>, vector<1x3x3x512xf32>
    %1 = vector.shape_cast %0 : vector<1x3x3x512xf32> to vector<3x3x512xf32>
    %2 = vector.extract_strided_slice %1 {offsets = [0, 0, 0], sizes = [2, 3, 512], strides = [1, 1, 1]} : vector<3x3x512xf32> to vector<2x3x512xf32>
    %3 = vector.extract_strided_slice %1 {offsets = [1, 0, 0], sizes = [2, 3, 512], strides = [1, 1, 1]} : vector<3x3x512xf32> to vector<2x3x512xf32>
    %4 = vector.extract_strided_slice %2 {offsets = [0, 0, 0], sizes = [2, 2, 512], strides = [1, 1, 1]} : vector<2x3x512xf32> to vector<2x2x512xf32>
    %5 = vector.extract_strided_slice %2 {offsets = [0, 1, 0], sizes = [2, 2, 512], strides = [1, 1, 1]} : vector<2x3x512xf32> to vector<2x2x512xf32>
    %6 = vector.extract_strided_slice %3 {offsets = [0, 0, 0], sizes = [2, 2, 512], strides = [1, 1, 1]} : vector<2x3x512xf32> to vector<2x2x512xf32>
    %7 = vector.extract_strided_slice %3 {offsets = [0, 1, 0], sizes = [2, 2, 512], strides = [1, 1, 1]} : vector<2x3x512xf32> to vector<2x2x512xf32>
    %8 = vector.shape_cast %4 : vector<2x2x512xf32> to vector<4x512xf32>
    %c0_3 = arith.constant 0 : index
    %c0_4 = arith.constant 0 : index
    %9 = vector.load %arg3[%c0_3, %c0_4] : memref<2048x128xf32, #tpu.memory_space<vmem>>, vector<512x128xf32>
    %cst = arith.constant dense<0.000000e+00> : vector<4x128xf32>
    %10 = tpu.matmul %8, %9, %cst {dimension_numbers = #tpu.dot_dimension_numbers<[1], [0], [0], [1], [0, 0, 1, 1], [], []>} : vector<4x512xf32>, vector<512x128xf32>, vector<4x128xf32> -> vector<4x128xf32>
    %11 = vector.shape_cast %5 : vector<2x2x512xf32> to vector<4x512xf32>
    %c512 = arith.constant 512 : index
    %c0_5 = arith.constant 0 : index
    %12 = vector.load %arg3[%c512, %c0_5] : memref<2048x128xf32, #tpu.memory_space<vmem>>, vector<512x128xf32>
    %cst_6 = arith.constant dense<0.000000e+00> : vector<4x128xf32>
    %13 = tpu.matmul %11, %12, %cst_6 {dimension_numbers = #tpu.dot_dimension_numbers<[1], [0], [0], [1], [0, 0, 1, 1], [], []>} : vector<4x512xf32>, vector<512x128xf32>, vector<4x128xf32> -> vector<4x128xf32>
    %14 = arith.addf %10, %13 : vector<4x128xf32>
    %15 = vector.shape_cast %6 : vector<2x2x512xf32> to vector<4x512xf32>
    %c1024 = arith.constant 1024 : index
    %c0_7 = arith.constant 0 : index
    %16 = vector.load %arg3[%c1024, %c0_7] : memref<2048x128xf32, #tpu.memory_space<vmem>>, vector<512x128xf32>
    %cst_8 = arith.constant dense<0.000000e+00> : vector<4x128xf32>
    %17 = tpu.matmul %15, %16, %cst_8 {dimension_numbers = #tpu.dot_dimension_numbers<[1], [0], [0], [1], [0, 0, 1, 1], [], []>} : vector<4x512xf32>, vector<512x128xf32>, vector<4x128xf32> -> vector<4x128xf32>
    %18 = arith.addf %14, %17 : vector<4x128xf32>
    %19 = vector.shape_cast %7 : vector<2x2x512xf32> to vector<4x512xf32>
    %c1536 = arith.constant 1536 : index
    %c0_9 = arith.constant 0 : index
    %20 = vector.load %arg3[%c1536, %c0_9] : memref<2048x128xf32, #tpu.memory_space<vmem>>, vector<512x128xf32>
    %cst_10 = arith.constant dense<0.000000e+00> : vector<4x128xf32>
    %21 = tpu.matmul %19, %20, %cst_10 {dimension_numbers = #tpu.dot_dimension_numbers<[1], [0], [0], [1], [0, 0, 1, 1], [], []>} : vector<4x512xf32>, vector<512x128xf32>, vector<4x128xf32> -> vector<4x128xf32>
    %22 = arith.addf %18, %21 : vector<4x128xf32>
    %c0_11 = arith.constant 0 : index
    %c0_12 = arith.constant 0 : index
    %23 = vector.load %arg4[%c0_11, %c0_12] : memref<1x128xf32, #tpu.memory_space<vmem>>, vector<1x128xf32>
    %24 = vector.broadcast %23 : vector<1x128xf32> to vector<4x128xf32>
    %25 = arith.addf %22, %24 : vector<4x128xf32>
    %cst_13 = arith.constant 0.000000e+00 : f32
    %26 = vector.broadcast %cst_13 : f32 to vector<4x128xf32>
    %27 = arith.cmpf oge, %25, %26 : vector<4x128xf32>
    %cst_14 = arith.constant 2.000000e-01 : f32
    %28 = vector.broadcast %cst_14 : f32 to vector<4x128xf32>
    %29 = arith.mulf %28, %25 : vector<4x128xf32>
    %30 = arith.select %27, %25, %29 : vector<4x128xi1>, vector<4x128xf32>
    %31 = vector.shape_cast %30 : vector<4x128xf32> to vector<2x2x128xf32>
    %c0_15 = arith.constant 0 : index
    %c0_16 = arith.constant 0 : index
    %c0_17 = arith.constant 0 : index
    %c0_18 = arith.constant 0 : index
    %32 = vector.load %arg5[%c0_15, %c0_16, %c0_17, %c0_18] : memref<1x2x2x128xf32, #tpu.memory_space<vmem>>, vector<1x2x2x128xf32>
    %33 = vector.shape_cast %32 : vector<1x2x2x128xf32> to vector<2x2x128xf32>
    %34 = vector.shape_cast %31 : vector<2x2x128xf32> to vector<1x2x2x128xf32>
    tpu.vector_store %arg5[%c0_15, %c0_16, %c0_17, %c0_18], %34 {strides = array<i32>} : memref<1x2x2x128xf32, #tpu.memory_space<vmem>>, vector<1x2x2x128xf32>,
    return
  }
  func.func @transform_0(%arg0: i32, %arg1: i32) -> (i32, i32, i32, i32) {
    %c0_i32 = arith.constant 0 : i32
    %c0_i32_0 = arith.constant 0 : i32
    %c0_i32_1 = arith.constant 0 : i32
    %c0_i32_2 = arith.constant 0 : i32
    return %arg0, %c0_i32, %c0_i32_0, %c0_i32_1 : i32, i32, i32, i32
  }
  func.func @transform_1(%arg0: i32, %arg1: i32) -> (i32, i32) {
    %c0_i32 = arith.constant 0 : i32
    %c0_i32_0 = arith.constant 0 : i32
    %c0_i32_1 = arith.constant 0 : i32
    return %c0_i32, %c0_i32_0 : i32, i32
  }
  func.func @transform_2(%arg0: i32, %arg1: i32) -> (i32, i32) {
    %c0_i32 = arith.constant 0 : i32
    %c0_i32_0 = arith.constant 0 : i32
    %c0_i32_1 = arith.constant 0 : i32
    return %c0_i32, %c0_i32_0 : i32, i32
  }
  func.func @transform_3(%arg0: i32, %arg1: i32) -> (i32, i32, i32, i32) {
    %c0_i32 = arith.constant 0 : i32
    %c0_i32_0 = arith.constant 0 : i32
    %c0_i32_1 = arith.constant 0 : i32
    return %arg0, %arg1, %c0_i32, %c0_i32_0 : i32, i32, i32, i32
  }
}

module attributes {stable_mosaic.version = 11 : i64} {
  func.func @sep_stage_kernel(%arg0: i32, %arg1: i32, %arg2: memref<1x2x2x512xf32, #tpu.memory_space<vmem>>, %arg3: memref<2048x128xf32, #tpu.memory_space<vmem>>, %arg4: memref<1x128xf32, #tpu.memory_space<vmem>>, %arg5: memref<1x1x1x128xf32, #tpu.memory_space<vmem>>) attributes {dimension_semantics = [#tpu.dimension_semantics<parallel>, #tpu.dimension_semantics<parallel>], iteration_bounds = array<i64: 2, 1>, scalar_prefetch = 0 : i64, scratch_operands = 0 : i64, tpu.core_type = #tpu.core_type<tc>, window_params = [{transform_indices = @transform_0, window_bounds = array<i64: 1, 2, 2, 512>}, {pipeline_mode = #tpu.pipeline_mode<synchronous>, transform_indices = @transform_1, window_bounds = array<i64: 2048, 128>}, {pipeline_mode = #tpu.pipeline_mode<synchronous>, transform_indices = @transform_2, window_bounds = array<i64: 1, 128>}, {transform_indices = @transform_3, window_bounds = array<i64: 1, 1, 1, 128>}]} {
    %c0 = arith.constant 0 : index
    %c0_0 = arith.constant 0 : index
    %c0_1 = arith.constant 0 : index
    %c0_2 = arith.constant 0 : index
    %0 = vector.load %arg2[%c0, %c0_0, %c0_1, %c0_2] : memref<1x2x2x512xf32, #tpu.memory_space<vmem>>, vector<1x2x2x512xf32>
    %1 = vector.shape_cast %0 : vector<1x2x2x512xf32> to vector<2x2x512xf32>
    %2 = vector.extract_strided_slice %1 {offsets = [0, 0, 0], sizes = [1, 2, 512], strides = [1, 1, 1]} : vector<2x2x512xf32> to vector<1x2x512xf32>
    %3 = vector.extract_strided_slice %1 {offsets = [1, 0, 0], sizes = [1, 2, 512], strides = [1, 1, 1]} : vector<2x2x512xf32> to vector<1x2x512xf32>
    %4 = vector.extract_strided_slice %2 {offsets = [0, 0, 0], sizes = [1, 1, 512], strides = [1, 1, 1]} : vector<1x2x512xf32> to vector<1x1x512xf32>
    %5 = vector.extract_strided_slice %2 {offsets = [0, 1, 0], sizes = [1, 1, 512], strides = [1, 1, 1]} : vector<1x2x512xf32> to vector<1x1x512xf32>
    %6 = vector.extract_strided_slice %3 {offsets = [0, 0, 0], sizes = [1, 1, 512], strides = [1, 1, 1]} : vector<1x2x512xf32> to vector<1x1x512xf32>
    %7 = vector.extract_strided_slice %3 {offsets = [0, 1, 0], sizes = [1, 1, 512], strides = [1, 1, 1]} : vector<1x2x512xf32> to vector<1x1x512xf32>
    %8 = vector.shape_cast %4 : vector<1x1x512xf32> to vector<1x512xf32>
    %c0_3 = arith.constant 0 : index
    %c0_4 = arith.constant 0 : index
    %9 = vector.load %arg3[%c0_3, %c0_4] : memref<2048x128xf32, #tpu.memory_space<vmem>>, vector<512x128xf32>
    %cst = arith.constant dense<0.000000e+00> : vector<1x128xf32>
    %10 = tpu.matmul %8, %9, %cst {dimension_numbers = #tpu.dot_dimension_numbers<[1], [0], [0], [1], [0, 0, 1, 1], [], []>} : vector<1x512xf32>, vector<512x128xf32>, vector<1x128xf32> -> vector<1x128xf32>
    %11 = vector.shape_cast %5 : vector<1x1x512xf32> to vector<1x512xf32>
    %c512 = arith.constant 512 : index
    %c0_5 = arith.constant 0 : index
    %12 = vector.load %arg3[%c512, %c0_5] : memref<2048x128xf32, #tpu.memory_space<vmem>>, vector<512x128xf32>
    %cst_6 = arith.constant dense<0.000000e+00> : vector<1x128xf32>
    %13 = tpu.matmul %11, %12, %cst_6 {dimension_numbers = #tpu.dot_dimension_numbers<[1], [0], [0], [1], [0, 0, 1, 1], [], []>} : vector<1x512xf32>, vector<512x128xf32>, vector<1x128xf32> -> vector<1x128xf32>
    %14 = arith.addf %10, %13 : vector<1x128xf32>
    %15 = vector.shape_cast %6 : vector<1x1x512xf32> to vector<1x512xf32>
    %c1024 = arith.constant 1024 : index
    %c0_7 = arith.constant 0 : index
    %16 = vector.load %arg3[%c1024, %c0_7] : memref<2048x128xf32, #tpu.memory_space<vmem>>, vector<512x128xf32>
    %cst_8 = arith.constant dense<0.000000e+00> : vector<1x128xf32>
    %17 = tpu.matmul %15, %16, %cst_8 {dimension_numbers = #tpu.dot_dimension_numbers<[1], [0], [0], [1], [0, 0, 1, 1], [], []>} : vector<1x512xf32>, vector<512x128xf32>, vector<1x128xf32> -> vector<1x128xf32>
    %18 = arith.addf %14, %17 : vector<1x128xf32>
    %19 = vector.shape_cast %7 : vector<1x1x512xf32> to vector<1x512xf32>
    %c1536 = arith.constant 1536 : index
    %c0_9 = arith.constant 0 : index
    %20 = vector.load %arg3[%c1536, %c0_9] : memref<2048x128xf32, #tpu.memory_space<vmem>>, vector<512x128xf32>
    %cst_10 = arith.constant dense<0.000000e+00> : vector<1x128xf32>
    %21 = tpu.matmul %19, %20, %cst_10 {dimension_numbers = #tpu.dot_dimension_numbers<[1], [0], [0], [1], [0, 0, 1, 1], [], []>} : vector<1x512xf32>, vector<512x128xf32>, vector<1x128xf32> -> vector<1x128xf32>
    %22 = arith.addf %18, %21 : vector<1x128xf32>
    %c0_11 = arith.constant 0 : index
    %c0_12 = arith.constant 0 : index
    %23 = vector.load %arg4[%c0_11, %c0_12] : memref<1x128xf32, #tpu.memory_space<vmem>>, vector<1x128xf32>
    %24 = arith.addf %22, %23 : vector<1x128xf32>
    %25 = vector.shape_cast %24 : vector<1x128xf32> to vector<1x1x128xf32>
    %c0_13 = arith.constant 0 : index
    %c0_14 = arith.constant 0 : index
    %c0_15 = arith.constant 0 : index
    %c0_16 = arith.constant 0 : index
    %26 = vector.load %arg5[%c0_13, %c0_14, %c0_15, %c0_16] : memref<1x1x1x128xf32, #tpu.memory_space<vmem>>, vector<1x1x1x128xf32>
    %27 = vector.shape_cast %26 : vector<1x1x1x128xf32> to vector<1x1x128xf32>
    %28 = vector.shape_cast %25 : vector<1x1x128xf32> to vector<1x1x1x128xf32>
    tpu.vector_store %arg5[%c0_13, %c0_14, %c0_15, %c0_16], %28 {strides = array<i32>} : memref<1x1x1x128xf32, #tpu.memory_space<vmem>>, vector<1x1x1x128xf32>,
    return
  }
  func.func @transform_0(%arg0: i32, %arg1: i32) -> (i32, i32, i32, i32) {
    %c0_i32 = arith.constant 0 : i32
    %c0_i32_0 = arith.constant 0 : i32
    %c0_i32_1 = arith.constant 0 : i32
    %c0_i32_2 = arith.constant 0 : i32
    return %arg0, %c0_i32, %c0_i32_0, %c0_i32_1 : i32, i32, i32, i32
  }
  func.func @transform_1(%arg0: i32, %arg1: i32) -> (i32, i32) {
    %c0_i32 = arith.constant 0 : i32
    %c0_i32_0 = arith.constant 0 : i32
    %c0_i32_1 = arith.constant 0 : i32
    return %c0_i32, %c0_i32_0 : i32, i32
  }
  func.func @transform_2(%arg0: i32, %arg1: i32) -> (i32, i32) {
    %c0_i32 = arith.constant 0 : i32
    %c0_i32_0 = arith.constant 0 : i32
    %c0_i32_1 = arith.constant 0 : i32
    return %c0_i32, %c0_i32_0 : i32, i32
  }
  func.func @transform_3(%arg0: i32, %arg1: i32) -> (i32, i32, i32, i32) {
    %c0_i32 = arith.constant 0 : i32
    %c0_i32_0 = arith.constant 0 : i32
    %c0_i32_1 = arith.constant 0 : i32
    return %arg0, %arg1, %c0_i32, %c0_i32_0 : i32, i32, i32, i32
  }
}

</mosaic_0001>

<bundles_post_ra>
// kernel: mul.21
= control target key start
LH: loop header
LB: loop body
LE: loop exit
PB: predicated region body
PF: predicated region fallthrough
CT: control target
= control target key end

     0   :  { %s155_s20 = smov 60   ;;  %s156_s21 = smov 52   ;;  %vm35_vm0 = vcmask 31744   ;;  %vm41_vm1 = vcmask 523744   ;;  %vm47_vm2 = vcmask 490944   ;;  %vm53_vm3 = vcmask 458144   ;;  %s207_s0 = inlined_call_operand.vmem [shape: f32[2,2,2,2,4], index: 0, kind: input, shape index: {}]   ;;  %s208_s1 = inlined_call_operand.vmem [shape: f32[64], index: 1, kind: output, shape index: {}]  }
   0x1   :  { %v133_v0 = vld [vmem:[%s207_s0 + $0xe] sm:$0x3]  ;;  %v134_v1 = vld [vmem:[%s207_s0 + $0xc] sm:$0x3]  ;;  %v136_v2 = vld [vmem:[%s207_s0 + $0x8] sm:$0x3] }
   0x2   :  { %7 = vst [vmem:[#allocation1 + $0x38] sm:$0x3] %v133_v0  ;;  %v137_v3 = vld [vmem:[%s207_s0 + $0x6] sm:$0x3]  ;;  %v138_v4 = vld [vmem:[%s207_s0 + $0x4] sm:$0x3] }
   0x3   :  { %11 = vst [vmem:[#allocation1 + $0x30] sm:$0x3] %v134_v1  ;;  %v135_v5 = vld [vmem:[%s207_s0 + $0xa] sm:$0x3]  ;;  %v139_v6 = vld [vmem:[%s207_s0 + $0x2] sm:$0x3] }
   0x4   :  { %19 = vst [vmem:[#allocation1 + $0x20] sm:$0x3] %v136_v2  ;;  %v32_v9 = vld [vmem:[%s207_s0] sm:$0x3]  ;;  %s157_s0 = smov 44   ;;  %s158_s24 = smov 56  }
   0x5   :  { %23 = vst [vmem:[#allocation1 + $0x18] sm:$0x3] %v137_v3  ;;  %s159_s25 = smov 48   ;;  %s160_s26 = smov 40   ;;  %vm59_vm4 = vcmask 425344   ;;  %vm65_vm5 = vcmask 392544  }
   0x6   :  { %27 = vst [vmem:[#allocation1 + $0x10] sm:$0x3] %v138_v4  ;;  %s161_s27 = smov 36   ;;  %s162_s28 = smov 32   ;;  %vm71_vm6 = vcmask 359744   ;;  %vm77_vm7 = vcmask 326944  }
   0x7   :  { %15 = vst [vmem:[#allocation1 + $0x28] sm:$0x3] %v135_v5  ;;  %s163_s29 = smov 28   ;;  %s164_s30 = smov 24   ;;  %vm83_vm8 = vcmask 294144   ;;  %vm89_vm9 = vcmask 261344  }
   0x8   :  { %31 = vst [vmem:[#allocation1 + $0x8] sm:$0x3] %v139_v6  ;;  %s165_s2 = smov 20   ;;  %s166_s3 = smov 16   ;;  %vm95_vm10 = vcmask 228544   ;;  %vm101_vm11 = vcmask 195744  }
   0x9   :  { %v38_v7 = vld [vmem:[#allocation1 + $0x39] sm:$0x1]   ;;  %33 = vst [vmem:[#allocation1] sm:$0x3] %v32_v9  ;;  %v44_v11 = vld [vmem:[#allocation1 + $0x38] sm:$0x1]  }
   0xa   :  { %39 = vrot.lane.b32.xlu0 %v38_v7, %s155_s20  ;;  %v50_v8 = vld [vmem:[#allocation1 + $0x31] sm:$0x1]   ;;  %v56_v12 = vld [vmem:[#allocation1 + $0x30] sm:$0x1]   ;;  %s167_s4 = smov 12   ;;  %s168_s5 = smov 8  }
   0xb   :  { %51 = vrot.lane.b32.xlu1 %v50_v8, %s156_s21  ;;  %v74_v15 = vld [vmem:[#allocation1 + $0x21] sm:$0x1]   ;;  %v80_v16 = vld [vmem:[#allocation1 + $0x20] sm:$0x1]   ;;  %s169_s6 = smov 4   ;;  %vm107_vm12 = vcmask 162944  }
   0xc   :  { %v86_v17 = vld [vmem:[#allocation1 + $0x19] sm:$0x1]   ;;  %v92_v18 = vld [vmem:[#allocation1 + $0x18] sm:$0x1]   ;;  %vm113_vm13 = vcmask 130144   ;;  %vm119_vm14 = vcmask 97344  }
   0xd   :  { %v98_v19 = vld [vmem:[#allocation1 + $0x11] sm:$0x1]   ;;  %v104_v20 = vld [vmem:[#allocation1 + $0x10] sm:$0x1]   ;;  %vm125_vm15 = vcmask 64544  }
   0xe   :  { %v62_v10 = vld [vmem:[#allocation1 + $0x29] sm:$0x1]   ;;  %v68_v14 = vld [vmem:[#allocation1 + $0x28] sm:$0x1]  }
   0xf   :  { %63 = vrot.lane.b32.xlu2 %v62_v10, %s157_s0  ;;  %v110_v21 = vld [vmem:[#allocation1 + $0x9] sm:$0x1]   ;;  %v116_v22 = vld [vmem:[#allocation1 + $0x8] sm:$0x1]  }
  0x10   :  { %v34_v13 = vld [vmem:[#allocation1] sm:$0x1]   ;;  %v122_v23 = vld [vmem:[#allocation1 + $0x1] sm:$0x1]  }
  0x11   :  { %36 = vst.msk [vmem:[#allocation0] sm:$0x1] %vm35_vm0, %v34_v13  }
  0x12   :  { %45 = vrot.lane.b32.xlu0 %v44_v11, %s158_s24 }
  0x13   :  { %57 = vrot.lane.b32.xlu1 %v56_v12, %s159_s25 }
  0x17   :  { %69 = vrot.lane.b32.xlu2 %v68_v14, %s160_s26 }
  0x1a   :  { %75 = vrot.lane.b32.xlu0 %v74_v15, %s161_s27 }
  0x1b   :  { %81 = vrot.lane.b32.xlu1 %v80_v16, %s162_s28 }
  0x1f   :  { %87 = vrot.lane.b32.xlu2 %v86_v17, %s163_s29 }
  0x22   :  { %93 = vrot.lane.b32.xlu0 %v92_v18, %s164_s30 }
  0x23   :  { %99 = vrot.lane.b32.xlu1 %v98_v19, %s165_s2 }
  0x27   :  { %105 = vrot.lane.b32.xlu2 %v104_v20, %s166_s3 }
  0x2a   :  { %111 = vrot.lane.b32.xlu0 %v110_v21, %s167_s4 }
  0x2b   :  { %117 = vrot.lane.b32.xlu1 %v116_v22, %s168_s5 }
  0x2f   :  { %123 = vrot.lane.b32.xlu2 %v122_v23, %s169_s6 }
  0x69   :  { %v64_v24 = vpop.permute.xlu2 %63  }
  0x71   :  { %v70_v25 = vpop.permute.xlu2 %69  }
  0x79   :  { %v88_v26 = vpop.permute.xlu2 %87  }
  0x7c   :  { %v40_v27 = vpop.permute.xlu0 %39  }
  0x7d   :  { %42 = vst.msk [vmem:[#allocation0] sm:$0x1] %vm41_vm1, %v40_v27   ;;  %v52_v28 = vpop.permute.xlu1 %51  }
  0x81   :  { %v106_v29 = vpop.permute.xlu2 %105  }
  0x84   :  { %v46_v30 = vpop.permute.xlu0 %45  }
  0x85   :  { %48 = vst.msk [vmem:[#allocation0] sm:$0x1] %vm47_vm2, %v46_v30   ;;  %v58_v31 = vpop.permute.xlu1 %57  }
  0x86   :  { %54 = vst.msk [vmem:[#allocation0] sm:$0x1] %vm53_vm3, %v52_v28  }
  0x87   :  { %60 = vst.msk [vmem:[#allocation0] sm:$0x1] %vm59_vm4, %v58_v31  }
  0x88   :  { %66 = vst.msk [vmem:[#allocation0] sm:$0x1] %vm65_vm5, %v64_v24  }
  0x89   :  { %72 = vst.msk [vmem:[#allocation0] sm:$0x1] %vm71_vm6, %v70_v25   ;;  %v124_v32 = vpop.permute.xlu2 %123  }
  0x8c   :  { %v76_v33 = vpop.permute.xlu0 %75  }
  0x8d   :  { %78 = vst.msk [vmem:[#allocation0] sm:$0x1] %vm77_vm7, %v76_v33   ;;  %v82_v34 = vpop.permute.xlu1 %81  }
  0x8e   :  { %84 = vst.msk [vmem:[#allocation0] sm:$0x1] %vm83_vm8, %v82_v34  }
  0x8f   :  { %90 = vst.msk [vmem:[#allocation0] sm:$0x1] %vm89_vm9, %v88_v26  }
  0x94   :  { %v94_v35 = vpop.permute.xlu0 %93  }
  0x95   :  { %96 = vst.msk [vmem:[#allocation0] sm:$0x1] %vm95_vm10, %v94_v35   ;;  %v100_v36 = vpop.permute.xlu1 %99  }
  0x96   :  { %102 = vst.msk [vmem:[#allocation0] sm:$0x1] %vm101_vm11, %v100_v36  }
  0x97   :  { %108 = vst.msk [vmem:[#allocation0] sm:$0x1] %vm107_vm12, %v106_v29  }
  0x9c   :  { %v112_v37 = vpop.permute.xlu0 %111  }
  0x9d   :  { %114 = vst.msk [vmem:[#allocation0] sm:$0x1] %vm113_vm13, %v112_v37   ;;  %v118_v38 = vpop.permute.xlu1 %117  }
  0x9e   :  { %120 = vst.msk [vmem:[#allocation0] sm:$0x1] %vm119_vm14, %v118_v38  }
  0x9f   :  { %126 = vst.msk [vmem:[#allocation0] sm:$0x1] %vm125_vm15, %v124_v32  }
  0xa6   :  { %v129_v39 = vld [vmem:[#allocation0] sm:$0x1] }
  0xa7   :  { %132 = vst [vmem:[%s208_s1] sm:$0x1] %v129_v39 }

// kernel: discriminator_sep.5
= control target key start
LH: loop header
LB: loop body
LE: loop exit
PB: predicated region body
PF: predicated region fallthrough
CT: control target
= control target key end

     0   :  { %s1092_s15 = smov 0   ;;  %s1094_s16 = smov 0   ;;  %s1519_s0 = inlined_call_operand.vmem [shape: f32[2,17,17,16], index: 0, kind: input, shape index: {}, may-alias: {0,1}]   ;;  %s1520_s1 = inlined_call_operand.vmem [shape: f32[2,17,17,16], index: 1, kind: input, shape index: {}, may-alias: {0,1}]   ;;  %s1521_s2 = inlined_call_operand.vmem [shape: f32[64,128], index: 2, kind: input, shape index: {}]   ;;  %s1522_s3 = inlined_call_operand.vmem [shape: f32[1,128], index: 3, kind: input, shape index: {}]   ;;  %s1523_s4 = inlined_call_operand.vmem [shape: f32[2,16,16,128], index: 4, kind: output, shape index: {}]  }
   0x1   :  { %s1096_s17 = smov 0   ;;  %s1098_s18 = smov 0  }
   0x2   :  { %s1100_s19 = smov 0  }
   0x3 LB: > { %s23_s20 = sadd.s32 1, %s1054_s17  ;;  %s26_s21 = sadd.s32 1, %s1058_s18  ;;  %s1062_s19 = sphi %s1100_s19, %s14_s19   ;;  %s1058_s18 = sphi %s1098_s18, %s1527_s18   ;;  %s1054_s17 = sphi %s1096_s17, %s1526_s17   ;;  %s1050_s16 = sphi %s1094_s16, %s1525_s16   ;;  %s1046_s15 = sphi %s1092_s15, %s1524_s15  }
   0x4   : > { %p24_p0 = scmp.ge.s32.totalorder %s23_s20, 2  ;;  %p926_p1 = scmp.ge.s32.totalorder %s1062_s19, 1 }
   0x5   : > { %p218_p2 = scmp.lt.s32.totalorder %s1062_s19, 5 }
   0x6   : > { %s1529_s20 = smov (%p24_p0, %s23_s20), 0  ;;  %s1531_s21 = smov (!%p24_p0, %s26_s21), %s1058_s18 }
   0x7   : > { %p219_p3 = pnand %p926_p1, %p218_p2  ;;  %p28_p4 = scmp.ge.s32.totalorder %s1531_s21, 2 }
   0x8   : > { %s1122_s22 = sshll.u32 (!%p219_p3), %s1046_s15, 3  ;;  %p276_p5 = scmp.lt.s32.totalorder (!%p219_p3), %s1050_s16, 1 }
   0x9   : > { %s1533_s21 = smov (%p28_p4, %s1531_s21), 0  ;;  %222 = sbr.rel (%p219_p3) target bundleno = 395 (0x18b), region = 36 }
   0xa   : > { %p278_p6 = scmp.lt.s32.totalorder (!%p219_p3), %s1122_s22, 16  ;;  %s1064_s5 = smov (!%p219_p3), 32  }
   0xb   : > { %s1065_s6 = smov (!%p219_p3), 16   ;;  %s1066_s7 = smov (!%p219_p3), 48  }
   0xc   : > { %s292_s8 = sadd.s32 (!%p219_p3), 8, %s1122_s22  ;;  %p307_p8 = scmp.lt.s32.totalorder (!%p219_p3), %s1122_s22, 15 }
   0xd   : > { %p295_p7 = scmp.lt.s32.totalorder (!%p219_p3), %s292_s8, 16 }
   0xe   : > { %s1535_s16 = smov (!%p276_p5, %s1050_s16), 1  ;;  %vm366_vm0 = vcmask 1046528   ;;  %vm559_vm1 = vcmask 130048   ;;  %vm576_vm2 = vcmask 261120   ;;  %vm593_vm3 = vcmask 392192  }
   0xf   : > { %s279_s23 = scalar_select %p278_p6, %s1122_s22, 16  ;;  %vm622_vm4 = vcmask 523264  }
  0x10   : > { %s978_s24 = smul.u32 51, %s1535_s16  ;;  %s1537_s8 = smov (!%p295_p7, %s292_s8), 16 }
  0x11   : > { %s977_s25 = smul.u32 3, %s279_s23  ;;  %s1539_s22 = smov (!%p307_p8, %s1122_s22), 15 }
  0x12   : > { %s979_s9 = smul.u32 3, %s1537_s8 }
  0x13   : > { %s282_s26 = sadd.s32 %s978_s24, %s977_s25 }
  0x14   : > { %s928_s27 = sshll.u32 %s282_s26, 3  ;;  %s299_s10 = sadd.s32 %s979_s9, %s978_s24 }
  0x15   : > { %s1134_s30 = scalar_lea.vmem %s1519_s0, %s928_s27  ;;  %s930_s11 = sshll.u32 %s299_s10, 3 }
  0x16   : > { %v1137_v0 = vld [vmem:[%s1134_s30 + $0x78] sm:$0xff]  ;;  %v1140_v1 = vld [vmem:[%s1134_s30 + $0x60] sm:$0xff]  ;;  %v1143_v2 = vld [vmem:[%s1134_s30 + $0x68] sm:$0xff]  ;;  %s1304_s14 = scalar_lea.vmem %s1520_s1, %s930_s11 }
  0x17   : > { %473 = vrot.lane.b32.xlu1 %v1137_v0, %s1064_s5  ;;  %v387_v3 = vrot.slane %v1140_v1, 1  ;;  %v388_v4 = vrot.slane %v1143_v2, 1  ;;  %v392_v5 = vrot.slane %v1137_v0, 1  ;;  %v1151_v6 = vld [vmem:[%s1134_s30 + $0x90] sm:$0xff]  ;;  %v1154_v7 = vld [vmem:[%s1134_s30 + $0x98] sm:$0xff]  ;;  %v1160_v9 = vld [vmem:[%s1134_s30 + $0x80] sm:$0xff] }
  0x18   : > { %v393_v10 = vrot.slane %v1160_v9, 1  ;;  %v397_v11 = vrot.slane %v1151_v6, 1  ;;  %v398_v12 = vrot.slane %v1154_v7, 1  ;;  %v1168_v13 = vld [vmem:[%s1134_s30 + $0xb0] sm:$0xff]  ;;  %v1171_v14 = vld [vmem:[%s1134_s30 + $0xa8] sm:$0xff]  ;;  %v1180_v17 = vld [vmem:[%s1134_s30 + $0x38] sm:$0xff] }
  0x19   : > { %v1157_v8 = vsel %vm366_vm0, %v387_v3, %v388_v4  ;;  %v1177_v16 = vld [vmem:[%s1134_s30 + $0x30] sm:$0xff]  ;;  %v402_v18 = vrot.slane %v1171_v14, 1  ;;  %v403_v19 = vrot.slane %v1168_v13, 1  ;;  %v378_v22 = vrot.slane %v1180_v17, 1  ;;  %v1194_v23 = vld [vmem:[%s1134_s30] sm:$0xff]  ;;  %v1197_v24 = vld [vmem:[%s1134_s30 + $0x8] sm:$0xff] }
  0x1a   : > { %423 = vrot.lane.b32.xlu0 %v1157_v8, %s1065_s6  ;;  %v1174_v15 = vsel %vm366_vm0, %v392_v5, %v393_v10  ;;  %v1189_v20 = vsel %vm366_vm0, %v397_v11, %v398_v12  ;;  %v377_v21 = vrot.slane %v1177_v16, 1  ;;  %v367_v26 = vrot.slane %v1194_v23, 1  ;;  %v329_v29 = vld [vmem:[%s1134_s30 + $0x70] sm:$0x1]  ;;  %v335_v32 = vld [vmem:[%s1134_s30 + $0xa0] sm:$0x1] }
  0x1b   : > { %527 = vrot.lane.b32.xlu2 %v1174_v15, %s1066_s7  ;;  %v404_v25 = vsel %vm366_vm0, %v402_v18, %v403_v19  ;;  %v368_v27 = vrot.slane %v1197_v24, 1  ;;  %v390_v31 = vrot.slane %v329_v29, 1  ;;  %v1218_v34 = vld [vmem:[%s1134_s30 + $0x18] sm:$0xff]  ;;  %v1221_v35 = vld [vmem:[%s1134_s30 + $0x50] sm:$0xff]  ;;  %v400_v36 = vrot.slane %v335_v32, 1  ;;  %v1228_v37 = vld [vmem:[%s1134_s30 + $0x48] sm:$0xff] }
  0x1c   : > { %v1205_v28 = vsel %vm366_vm0, %v377_v21, %v378_v22  ;;  %v382_v38 = vrot.slane %v1228_v37, 1  ;;  %v383_v39 = vrot.slane %v1221_v35, 1  ;;  %v1233_v40 = vld [vmem:[%s1134_s30 + $0x20] sm:$0xff]  ;;  %v372_v42 = vrot.slane %v1218_v34, 1  ;;  %v332_v45 = vld [vmem:[%s1134_s30 + $0x88] sm:$0x1] }
  0x1d   : > { %v369_v30 = vsel %vm366_vm0, %v367_v26, %v368_v27  ;;  %v1215_v33 = vsel %vm366_vm0, %v388_v4, %v390_v31  ;;  %v1238_v41 = vsel %vm366_vm0, %v398_v12, %v400_v36  ;;  %v373_v43 = vrot.slane %v1233_v40, 1  ;;  %v338_v48 = vld [vmem:[%s1134_s30 + $0xb8] sm:$0x1]  ;;  %v323_v50 = vld [vmem:[%s1134_s30 + $0x40] sm:$0x1]  ;;  %v1307_v3 = vld [vmem:[%s1304_s14 + $0x8] sm:$0xff] }
  0x1e   : > { %v1243_v44 = vsel %vm366_vm0, %v382_v38, %v383_v39  ;;  %v395_v47 = vrot.slane %v332_v45, 1  ;;  %v405_v51 = vrot.slane %v338_v48, 1  ;;  %v380_v52 = vrot.slane %v323_v50, 1  ;;  %v317_v53 = vld [vmem:[%s1134_s30 + $0x10] sm:$0x1]  ;;  %v339_v4 = vld [vmem:[%s1304_s14] sm:$0xff] }
  0x1f   : > { %481 = vrot.lane.b32.xlu1 %v1171_v14, %s1064_s5  ;;  %v1251_v46 = vsel %vm366_vm0, %v372_v42, %v373_v43  ;;  %v370_v55 = vrot.slane %v317_v53, 1  ;;  %v326_v58 = vld [vmem:[%s1134_s30 + $0x58] sm:$0x1]  ;;  %v320_v60 = vld [vmem:[%s1134_s30 + $0x28] sm:$0x1]  ;;  %v506_v5 = vrot.slane %v339_v4, 1 }
  0x20   : > { %v1257_v49 = vsel %vm366_vm0, %v393_v10, %v395_v47  ;;  %v1268_v54 = vsel %vm366_vm0, %v403_v19, %v405_v51  ;;  %v1271_v56 = vsel %vm366_vm0, %v378_v22, %v380_v52  ;;  %v385_v59 = vrot.slane %v326_v58, 1  ;;  %v617_v11 = vld [vmem:[%s1521_s2 + $0x38] sm:$0xff]  ;;  %v615_v18 = vld [vmem:[%s1521_s2 + $0x28] sm:$0xff]  ;;  %v614_v19 = vld [vmem:[%s1521_s2 + $0x20] sm:$0xff] }
  0x21   : > { %v371_v57 = vsel %vm366_vm0, %v368_v27, %v370_v55  ;;  %v375_v61 = vrot.slane %v320_v60, 1  ;;  %v507_v10 = vrot.slane %v1307_v3, 1  ;;  %954 = vmatpush.msra.mxu2 %v617_v11  ;;  %955 = vmatpush.msra.mxu3 %v617_v11  ;;  %v612_v21 = vld [vmem:[%s1521_s2 + $0x10] sm:$0xff]  ;;  %v611_v22 = vld [vmem:[%s1521_s2 + $0x8] sm:$0xff] }
  0x22   : > { %431 = vrot.lane.b32.xlu0 %v1189_v20, %s1065_s6  ;;  %v1289_v62 = vsel %vm366_vm0, %v383_v39, %v385_v59  ;;  %953 = vmatpush.msra.mxu1 %v617_v11  ;;  %v341_v27 = vld [vmem:[%s1304_s14 + $0x10] sm:$0x1] }
  0x23   : > { %535 = vrot.lane.b32.xlu2 %v404_v25, %s1066_s7  ;;  %v1297_v63 = vsel %vm366_vm0, %v373_v43, %v375_v61  ;;  %679 = vmatpush.msra.mxu0 %v617_v11  ;;  %v508_v12 = vsel %vm366_vm0, %v506_v5, %v507_v10  ;;  %v509_v29 = vrot.slane %v341_v27, 1 }
  0x25   : > { %v510_v31 = vsel %vm366_vm0, %v507_v10, %v509_v29 }
  0x27   : > { %415 = vrot.lane.b32.xlu1 %v1205_v28, %s1065_s6 }
  0x2a   : > { %407 = vrot.lane.b32.xlu0 %v369_v30, %s1065_s6 }
  0x2b   : > { %457 = vrot.lane.b32.xlu2 %v1218_v34, %s1064_s5 }
  0x2f   : > { %425 = vrot.lane.b32.xlu1 %v1215_v33, %s1065_s6 }
  0x32   : > { %465 = vrot.lane.b32.xlu0 %v1228_v37, %s1064_s5 }
  0x33   : > { %433 = vrot.lane.b32.xlu2 %v1238_v41, %s1065_s6 }
  0x37   : > { %519 = vrot.lane.b32.xlu1 %v1243_v44, %s1066_s7 }
  0x3a   : > { %511 = vrot.lane.b32.xlu0 %v1251_v46, %s1066_s7 }
  0x3b   : > { %475 = vrot.lane.b32.xlu2 %v1160_v9, %s1064_s5 }
  0x3f   : > { %529 = vrot.lane.b32.xlu1 %v1257_v49, %s1066_s7 }
  0x42   : > { %483 = vrot.lane.b32.xlu0 %v1168_v13, %s1064_s5 }
  0x43   : > { %537 = vrot.lane.b32.xlu2 %v1268_v54, %s1066_s7 }
  0x47   : > { %417 = vrot.lane.b32.xlu1 %v1271_v56, %s1065_s6 }
  0x4a   : > { %409 = vrot.lane.b32.xlu0 %v371_v57, %s1065_s6 }
  0x4b   : > { %459 = vrot.lane.b32.xlu2 %v1233_v40, %s1064_s5 }
  0x4f   : > { %427 = vrot.lane.b32.xlu1 %v1174_v15, %s1065_s6  ;;  %v616_v15 = vld [vmem:[%s1521_s2 + $0x30] sm:$0xff] }
  0x50   : > { %957 = vmatpush.msra.mxu2 %v616_v15  ;;  %958 = vmatpush.msra.mxu3 %v616_v15 }
  0x51   : > { %956 = vmatpush.msra.mxu1 %v616_v15  ;;  %680 = vmatpush.msra.mxu0 %v616_v15 }
  0x52   : > { %467 = vrot.lane.b32.xlu0 %v1221_v35, %s1064_s5  ;;  %960 = vmatpush.msra.mxu2 %v615_v18 }
  0x53   : > { %435 = vrot.lane.b32.xlu2 %v404_v25, %s1065_s6  ;;  %961 = vmatpush.msra.mxu3 %v615_v18  ;;  %v610_v25 = vld [vmem:[%s1521_s2] sm:$0xff] }
  0x54   : > { %959 = vmatpush.msra.mxu1 %v615_v18  ;;  %963 = vmatpush.msra.mxu2 %v614_v19 }
  0x55   : > { %964 = vmatpush.msra.mxu3 %v614_v19  ;;  %681 = vmatpush.msra.mxu0 %v615_v18 }
  0x56   : > { %962 = vmatpush.msra.mxu1 %v614_v19 }
  0x57   : > { %521 = vrot.lane.b32.xlu1 %v1289_v62, %s1066_s7  ;;  %682 = vmatpush.msra.mxu0 %v614_v19 }
  0x5a   : > { %513 = vrot.lane.b32.xlu0 %v1297_v63, %s1066_s7 }
  0x5b   : > { %477 = vrot.lane.b32.xlu2 %v1151_v6, %s1064_s5 }
  0x5f   : > { %531 = vrot.lane.b32.xlu1 %v1189_v20, %s1066_s7  ;;  %v613_v20 = vld [vmem:[%s1521_s2 + $0x18] sm:$0xff] }
  0x60   : > { %966 = vmatpush.msra.mxu2 %v613_v20  ;;  %967 = vmatpush.msra.mxu3 %v613_v20 }
  0x61   : > { %965 = vmatpush.msra.mxu1 %v613_v20  ;;  %683 = vmatpush.msra.mxu0 %v613_v20 }
  0x62   : > { %485 = vrot.lane.b32.xlu0 %v339_v4, %s1064_s5  ;;  %969 = vmatpush.msra.mxu2 %v612_v21 }
  0x63   : > { %539 = vrot.lane.b32.xlu2 %v508_v12, %s1066_s7  ;;  %970 = vmatpush.msra.mxu3 %v612_v21 }
  0x64   : > { %972 = vmatpush.msra.mxu2 %v611_v22  ;;  %968 = vmatpush.msra.mxu1 %v612_v21 }
  0x65   : > { %973 = vmatpush.msra.mxu3 %v611_v22  ;;  %684 = vmatpush.msra.mxu0 %v612_v21 }
  0x66   : > { %975 = vmatpush.msra.mxu2 %v610_v25  ;;  %971 = vmatpush.msra.mxu1 %v611_v22 }
  0x67   : > { %419 = vrot.lane.b32.xlu1 %v1243_v44, %s1065_s6  ;;  %976 = vmatpush.msra.mxu3 %v610_v25 }
  0x68   : > { %974 = vmatpush.msra.mxu1 %v610_v25  ;;  %685 = vmatpush.msra.mxu0 %v611_v22 }
  0x6a   : > { %411 = vrot.lane.b32.xlu0 %v1251_v46, %s1065_s6  ;;  %686 = vmatpush.msra.mxu0 %v610_v25 }
  0x6b   : > { %461 = vrot.lane.b32.xlu2 %v1177_v16, %s1064_s5 }
  0x6f   : > { %429 = vrot.lane.b32.xlu1 %v1257_v49, %s1065_s6 }
  0x72   : > { %469 = vrot.lane.b32.xlu0 %v1140_v1, %s1064_s5 }
  0x73   : > { %437 = vrot.lane.b32.xlu2 %v1268_v54, %s1065_s6 }
  0x75   : > { %v528_v26 = vpop.permute.xlu2 %527 }
  0x77   : > { %523 = vrot.lane.b32.xlu1 %v1157_v8, %s1066_s7 }
  0x7a   : > { %515 = vrot.lane.b32.xlu0 %v1205_v28, %s1066_s7 }
  0x7b   : > { %479 = vrot.lane.b32.xlu2 %v1154_v7, %s1064_s5 }
  0x7d   : > { %v536_v30 = vpop.permute.xlu2 %535 }
  0x7f   : > { %533 = vrot.lane.b32.xlu1 %v1238_v41, %s1066_s7 }
  0x82   : > { %487 = vrot.lane.b32.xlu0 %v1307_v3, %s1064_s5 }
  0x83   : > { %541 = vrot.lane.b32.xlu2 %v510_v31, %s1066_s7 }
  0x85   : > { %v458_v8 = vpop.permute.xlu2 %457 }
  0x87   : > { %421 = vrot.lane.b32.xlu1 %v1289_v62, %s1065_s6 }
  0x89   : > { %v474_v28 = vpop.permute.xlu1 %473 }
  0x8a   : > { %413 = vrot.lane.b32.xlu0 %v1297_v63, %s1065_s6  ;;  %s933_s6 = sshll.u32 %s1535_s16, 5 }
  0x8b   : > { %463 = vrot.lane.b32.xlu2 %v1180_v17, %s1064_s5 }
  0x8c   : > { %v424_v32 = vpop.permute.xlu0 %423 }
  0x8d   : > { %v568_v36 = vsel %vm559_vm1, %v1140_v1, %v424_v32  ;;  %v434_v41 = vpop.permute.xlu2 %433 }
  0x8e   : > { %v585_v38 = vsel %vm576_vm2, %v568_v36, %v474_v28  ;;  %v573_v61 = vsel %vm559_vm1, %v1154_v7, %v434_v41 }
  0x8f   : > { %517 = vrot.lane.b32.xlu1 %v1271_v56, %s1066_s7  ;;  %v602_v39 = vsel %vm593_vm3, %v585_v38, %v528_v26 }
  0x90   : > { %943 = vmatmul.msk.f32.vlgmr.msra.gmra.mxu2 %vm622_vm4, %v602_v39 }
  0x91   : > { %v482_v42 = vpop.permute.xlu1 %481 }
  0x92   : > { %471 = vrot.lane.b32.xlu0 %v1143_v2, %s1064_s5  ;;  %s932_s5 = sshll.u32 %s1539_s22, 1 }
  0x93   : > { %525 = vrot.lane.b32.xlu2 %v1215_v33, %s1066_s7  ;;  %s311_s7 = sadd.s32 %s933_s6, %s932_s5 }
  0x94   : > { %v432_v43 = vpop.permute.xlu0 %431  ;;  %s934_s24 = sshll.u32 %s311_s7, 3 }
  0x95   : > { %v572_v1 = vsel %vm559_vm1, %v1151_v6, %v432_v43  ;;  %v476_v46 = vpop.permute.xlu2 %475  ;;  %s1471_s27 = scalar_lea.vmem %s1523_s4, %s934_s24 }
  0x96   : > { %v589_v44 = vsel %vm576_vm2, %v572_v1, %v482_v42 }
  0x97   : > { %v606_v45 = vsel %vm593_vm3, %v589_v44, %v536_v30 }
  0x98   : > { %947 = vmatmul.msk.f32.vlgmr.msra.gmra.mxu3 %vm622_vm4, %v606_v45 }
  0x99   : > { %v416_v47 = vpop.permute.xlu1 %415 }
  0x9a   : > { %v564_v52 = vsel %vm559_vm1, %v1177_v16, %v416_v47 }
  0x9c   : > { %v408_v48 = vpop.permute.xlu0 %407 }
  0x9d   : > { %v538_v50 = vpop.permute.xlu2 %537  ;;  %v560_v6 = vsel %vm559_vm1, %v1194_v23, %v408_v48 }
  0x9e   : > { %v577_v57 = vsel %vm576_vm2, %v560_v6, %v458_v8 }
  0xa1   : > { %v426_v49 = vpop.permute.xlu1 %425 }
  0xa2   : > { %v569_v59 = vsel %vm559_vm1, %v1143_v2, %v426_v49 }
  0xa3   : > { %v586_v16 = vsel %vm576_vm2, %v569_v59, %v476_v46 }
  0xa4   : > { %v466_v51 = vpop.permute.xlu0 %465 }
  0xa5   : > { %v581_v33 = vsel %vm576_vm2, %v564_v52, %v466_v51  ;;  %v460_v55 = vpop.permute.xlu2 %459 }
  0xa9   : > { %v520_v53 = vpop.permute.xlu1 %519 }
  0xaa   : > { %v598_v54 = vsel %vm593_vm3, %v581_v33, %v520_v53 }
  0xab   : > { %939 = vmatmul.msk.f32.vlgmr.msra.gmra.mxu1 %vm622_vm4, %v598_v54 }
  0xac   : > { %v512_v56 = vpop.permute.xlu0 %511 }
  0xad   : > { %v594_v58 = vsel %vm593_vm3, %v577_v57, %v512_v56  ;;  %v436_v3 = vpop.permute.xlu2 %435 }
  0xae   : > { %935 = vmatmul.msk.f32.vlgmr.msra.gmra.mxu0 %vm622_vm4, %v594_v58  ;;  %v574_v31 = vsel %vm559_vm1, %v1171_v14, %v436_v3 }
  0xb1   : > { %v530_v23 = vpop.permute.xlu1 %529 }
  0xb2   : > { %v603_v60 = vsel %vm593_vm3, %v586_v16, %v530_v23 }
  0xb3   : > { %944 = vmatmul.msk.f32.gmra.mxu2 %vm622_vm4, %v603_v60 }
  0xb4   : > { %v484_v62 = vpop.permute.xlu0 %483 }
  0xb5   : > { %v590_v63 = vsel %vm576_vm2, %v573_v61, %v484_v62  ;;  %v478_v10 = vpop.permute.xlu2 %477 }
  0xb6   : > { %v607_v4 = vsel %vm593_vm3, %v590_v63, %v538_v50 }
  0xb7   : > { %948 = vmatmul.msk.f32.gmra.mxu3 %vm622_vm4, %v607_v4 }
  0xb9   : > { %v418_v2 = vpop.permute.xlu1 %417 }
  0xba   : > { %v565_v15 = vsel %vm559_vm1, %v1180_v17, %v418_v2 }
  0xbc   : > { %v410_v5 = vpop.permute.xlu0 %409 }
  0xbd   : > { %v561_v18 = vsel %vm559_vm1, %v1197_v24, %v410_v5  ;;  %v540_v20 = vpop.permute.xlu2 %539 }
  0xbe   : > { %v578_v25 = vsel %vm576_vm2, %v561_v18, %v460_v55 }
  0xc1   : > { %v428_v11 = vpop.permute.xlu1 %427 }
  0xc2   : > { %v570_v27 = vsel %vm559_vm1, %v1137_v0, %v428_v11 }
  0xc3   : > { %v587_v17 = vsel %vm576_vm2, %v570_v27, %v478_v10 }
  0xc4   : > { %v468_v12 = vpop.permute.xlu0 %467 }
  0xc5   : > { %v582_v7 = vsel %vm576_vm2, %v565_v15, %v468_v12  ;;  %v462_v30 = vpop.permute.xlu2 %461 }
  0xc9   : > { %v522_v19 = vpop.permute.xlu1 %521 }
  0xca   : > { %v599_v21 = vsel %vm593_vm3, %v582_v7, %v522_v19 }
  0xcb   : > { %940 = vmatmul.msk.f32.gmra.mxu1 %vm622_vm4, %v599_v21 }
  0xcc   : > { %v514_v22 = vpop.permute.xlu0 %513 }
  0xcd   : > { %v595_v26 = vsel %vm593_vm3, %v578_v25, %v514_v22  ;;  %v438_v38 = vpop.permute.xlu2 %437 }
  0xce   : > { %936 = vmatmul.msk.f32.gmra.mxu0 %vm622_vm4, %v595_v26  ;;  %v575_v52 = vsel %vm559_vm1, %v1168_v13, %v438_v38 }
  0xd1   : > { %v532_v24 = vpop.permute.xlu1 %531 }
  0xd2   : > { %v604_v29 = vsel %vm593_vm3, %v587_v17, %v532_v24 }
  0xd3   : > { %945 = vmatmul.msk.f32.gmra.mxu2 %vm622_vm4, %v604_v29 }
  0xd4   : > { %v486_v8 = vpop.permute.xlu0 %485 }
  0xd5   : > { %v591_v28 = vsel %vm576_vm2, %v574_v31, %v486_v8  ;;  %v480_v42 = vpop.permute.xlu2 %479 }
  0xd6   : > { %v608_v32 = vsel %vm593_vm3, %v591_v28, %v540_v20 }
  0xd7   : > { %949 = vmatmul.msk.f32.gmra.mxu3 %vm622_vm4, %v608_v32 }
  0xd9   : > { %v420_v0 = vpop.permute.xlu1 %419 }
  0xda   : > { %v566_v43 = vsel %vm559_vm1, %v1228_v37, %v420_v0 }
  0xdc   : > { %v412_v36 = vpop.permute.xlu0 %411 }
  0xdd   : > { %v562_v1 = vsel %vm559_vm1, %v1218_v34, %v412_v36  ;;  %v542_v37 = vpop.permute.xlu2 %541 }
  0xde   : > { %v579_v47 = vsel %vm576_vm2, %v562_v1, %v462_v30 }
  0xe1   : > { %v430_v39 = vpop.permute.xlu1 %429 }
  0xe2   : > { %v571_v49 = vsel %vm559_vm1, %v1160_v9, %v430_v39 }
  0xe3   : > { %v588_v34 = vsel %vm576_vm2, %v571_v49, %v480_v42 }
  0xe4   : > { %v470_v41 = vpop.permute.xlu0 %469 }
  0xe5   : > { %v583_v14 = vsel %vm576_vm2, %v566_v43, %v470_v41  ;;  %v464_v54 = vpop.permute.xlu2 %463 }
  0xe9   : > { %v524_v44 = vpop.permute.xlu1 %523 }
  0xea   : > { %v600_v45 = vsel %vm593_vm3, %v583_v14, %v524_v44 }
  0xeb   : > { %941 = vmatmul.msk.f32.gmra.mxu1 %vm622_vm4, %v600_v45 }
  0xec   : > { %v516_v46 = vpop.permute.xlu0 %515 }
  0xed   : > { %v596_v48 = vsel %vm593_vm3, %v579_v47, %v516_v46  ;;  %v526_v59 = vpop.permute.xlu2 %525 }
  0xee   : > { %937 = vmatmul.msk.f32.gmra.mxu0 %vm622_vm4, %v596_v48 }
  0xf1   : > { %v534_v50 = vpop.permute.xlu1 %533 }
  0xf2   : > { %v605_v51 = vsel %vm593_vm3, %v588_v34, %v534_v50 }
  0xf3   : > { %946 = vmatmul.msk.f32.gmra.mxu2 %vm622_vm4, %v605_v51 }
  0xf4   : > { %v488_v6 = vpop.permute.xlu0 %487 }
  0xf5   : > { %v592_v33 = vsel %vm576_vm2, %v575_v52, %v488_v6 }
  0xf6   : > { %v609_v53 = vsel %vm593_vm3, %v592_v33, %v542_v37 }
  0xf7   : > { %950 = vmatmul.msk.f32.gmra.mxu3 %vm622_vm4, %v609_v53 }
  0xf9   : > { %v422_v9 = vpop.permute.xlu1 %421 }
  0xfa   : > { %v567_v16 = vsel %vm559_vm1, %v1221_v35, %v422_v9 }
  0xfc   : > { %v414_v55 = vpop.permute.xlu0 %413 }
  0xfd   : > { %v563_v56 = vsel %vm559_vm1, %v1233_v40, %v414_v55  ;;  %v1465_v40 = vld [vmem:[%s1522_s3] ss:$0 sm:$0xff] }
  0xfe   : > { %v580_v57 = vsel %vm576_vm2, %v563_v56, %v464_v54 }
 0x101   : > { %v518_v58 = vpop.permute.xlu1 %517 }
 0x102   : > { %v597_v13 = vsel %vm593_vm3, %v580_v57, %v518_v58 }
 0x103   : > { %938 = vmatmul.msk.f32.gmra.mxu0 %vm622_vm4, %v597_v13 }
 0x104   : > { %v472_v23 = vpop.permute.xlu0 %471 }
 0x105   : > { %v584_v60 = vsel %vm576_vm2, %v567_v16, %v472_v23 }
 0x106   : > { %v601_v61 = vsel %vm593_vm3, %v584_v60, %v526_v59 }
 0x107   : > { %942 = vmatmul.msk.f32.gmra.mxu1 %vm622_vm4, %v601_v61 }
 0x113   : > { %v712_v62 = vpop.f32.mrf.mxu2 }
 0x114   : > { %v713_v35 = vadd.f32 %v1465_v40, %v712_v62 }
 0x116   : > { %vm744_vm5 = vcmp.ge.f32.partialorder %v713_v35, 0.0  ;;  %v760_v63 = vmul.f32 0.2, %v713_v35 }
 0x118   : > { %v776_v3 = vsel %vm744_vm5, %v713_v35, %v760_v63 }
 0x119   : > { %792 = vst [vmem:[%s1471_s27 + $0x40] sm:$0xff] %v776_v3 }
 0x11b   : > { %v724_v4 = vpop.f32.mrf.mxu3 }
 0x11c   : > { %v725_v2 = vadd.f32 %v1465_v40, %v724_v4 }
 0x11e   : > { %vm748_vm6 = vcmp.ge.f32.partialorder %v725_v2, 0.0  ;;  %v764_v5 = vmul.f32 0.2, %v725_v2 }
 0x120   : > { %v780_v10 = vsel %vm748_vm6, %v725_v2, %v764_v5 }
 0x121   : > { %796 = vst [vmem:[%s1471_s27 + $0x60] sm:$0xff] %v780_v10 }
 0x128   : > { %v700_v11 = vpop.f32.mrf.mxu1 }
 0x129   : > { %v701_v12 = vadd.f32 %v1465_v40, %v700_v11 }
 0x12b   : > { %vm740_vm7 = vcmp.ge.f32.partialorder %v701_v12, 0.0  ;;  %v756_v15 = vmul.f32 0.2, %v701_v12  ;;  %v688_v18 = vpop.f32.mrf.mxu0 }
 0x12c   : > { %v689_v7 = vadd.f32 %v1465_v40, %v688_v18 }
 0x12d   : > { %v772_v19 = vsel %vm740_vm7, %v701_v12, %v756_v15 }
 0x12e   : > { %788 = vst [vmem:[%s1471_s27 + $0x20] sm:$0xff] %v772_v19  ;;  %vm736_vm8 = vcmp.ge.f32.partialorder %v689_v7, 0.0  ;;  %v752_v20 = vmul.f32 0.2, %v689_v7 }
 0x130   : > { %v768_v21 = vsel %vm736_vm8, %v689_v7, %v752_v20 }
 0x131   : > { %784 = vst [vmem:[%s1471_s27] sm:$0xff] %v768_v21 }
 0x136   : > { %v715_v22 = vpop.f32.mrf.mxu2 }
 0x137   : > { %v716_v25 = vadd.f32 %v1465_v40, %v715_v22 }
 0x139   : > { %vm745_vm9 = vcmp.ge.f32.partialorder %v716_v25, 0.0  ;;  %v761_v26 = vmul.f32 0.2, %v716_v25 }
 0x13a   : > { %v727_v27 = vpop.f32.mrf.mxu3 }
 0x13b   : > { %v777_v17 = vsel %vm745_vm9, %v716_v25, %v761_v26  ;;  %v728_v24 = vadd.f32 %v1465_v40, %v727_v27 }
 0x13c   : > { %793 = vst [vmem:[%s1471_s27 + $0x48] sm:$0xff] %v777_v17 }
 0x13d   : > { %vm749_vm10 = vcmp.ge.f32.partialorder %v728_v24, 0.0  ;;  %v765_v29 = vmul.f32 0.2, %v728_v24 }
 0x13f   : > { %v781_v30 = vsel %vm749_vm10, %v728_v24, %v765_v29 }
 0x140   : > { %797 = vst [vmem:[%s1471_s27 + $0x68] sm:$0xff] %v781_v30 }
 0x148   : > { %v703_v31 = vpop.f32.mrf.mxu1 }
 0x149   : > { %v704_v8 = vadd.f32 %v1465_v40, %v703_v31 }
 0x14b   : > { %vm741_vm11 = vcmp.ge.f32.partialorder %v704_v8, 0.0  ;;  %v757_v28 = vmul.f32 0.2, %v704_v8  ;;  %v691_v32 = vpop.f32.mrf.mxu0 }
 0x14c   : > { %v692_v0 = vadd.f32 %v1465_v40, %v691_v32 }
 0x14d   : > { %v773_v36 = vsel %vm741_vm11, %v704_v8, %v757_v28 }
 0x14e   : > { %789 = vst [vmem:[%s1471_s27 + $0x28] sm:$0xff] %v773_v36  ;;  %vm737_vm12 = vcmp.ge.f32.partialorder %v692_v0, 0.0  ;;  %v753_v38 = vmul.f32 0.2, %v692_v0 }
 0x150   : > { %v769_v39 = vsel %vm737_vm12, %v692_v0, %v753_v38 }
 0x151   : > { %785 = vst [vmem:[%s1471_s27 + $0x8] sm:$0xff] %v769_v39 }
 0x156   : > { %v718_v41 = vpop.f32.mrf.mxu2 }
 0x157   : > { %v719_v42 = vadd.f32 %v1465_v40, %v718_v41 }
 0x159   : > { %vm746_vm13 = vcmp.ge.f32.partialorder %v719_v42, 0.0  ;;  %v762_v43 = vmul.f32 0.2, %v719_v42 }
 0x15a   : > { %v730_v1 = vpop.f32.mrf.mxu3 }
 0x15b   : > { %v778_v14 = vsel %vm746_vm13, %v719_v42, %v762_v43  ;;  %v731_v44 = vadd.f32 %v1465_v40, %v730_v1 }
 0x15c   : > { %794 = vst [vmem:[%s1471_s27 + $0x50] sm:$0xff] %v778_v14 }
 0x15d   : > { %vm750_vm14 = vcmp.ge.f32.partialorder %v731_v44, 0.0  ;;  %v766_v45 = vmul.f32 0.2, %v731_v44 }
 0x15f   : > { %v782_v46 = vsel %vm750_vm14, %v731_v44, %v766_v45 }
 0x160   : > { %798 = vst [vmem:[%s1471_s27 + $0x70] sm:$0xff] %v782_v46 }
 0x168   : > { %v706_v47 = vpop.f32.mrf.mxu1 }
 0x169   : > { %v707_v48 = vadd.f32 %v1465_v40, %v706_v47 }
 0x16b   : > { %vm742_vm15 = vcmp.ge.f32.partialorder %v707_v48, 0.0  ;;  %v758_v49 = vmul.f32 0.2, %v707_v48  ;;  %v694_v37 = vpop.f32.mrf.mxu0 }
 0x16c   : > { %v695_v34 = vadd.f32 %v1465_v40, %v694_v37 }
 0x16d   : > { %v774_v50 = vsel %vm742_vm15, %v707_v48, %v758_v49 }
 0x16e   : > { %790 = vst [vmem:[%s1471_s27 + $0x30] sm:$0xff] %v774_v50  ;;  %vm738_vm0 = vcmp.ge.f32.partialorder %v695_v34, 0.0  ;;  %v754_v51 = vmul.f32 0.2, %v695_v34 }
 0x170   : > { %v770_v52 = vsel %vm738_vm0, %v695_v34, %v754_v51 }
 0x171   : > { %786 = vst [vmem:[%s1471_s27 + $0x10] sm:$0xff] %v770_v52 }
 0x176   : > { %v721_v6 = vpop.f32.mrf.mxu2 }
 0x177   : > { %v722_v33 = vadd.f32 %v1465_v40, %v721_v6 }
 0x179   : > { %vm747_vm1 = vcmp.ge.f32.partialorder %v722_v33, 0.0  ;;  %v763_v53 = vmul.f32 0.2, %v722_v33 }
 0x17a   : > { %v733_v9 = vpop.f32.mrf.mxu3 }
 0x17b   : > { %v779_v54 = vsel %vm747_vm1, %v722_v33, %v763_v53  ;;  %v734_v55 = vadd.f32 %v1465_v40, %v733_v9 }
 0x17c   : > { %795 = vst [vmem:[%s1471_s27 + $0x58] sm:$0xff] %v779_v54 }
 0x17d   : > { %vm751_vm2 = vcmp.ge.f32.partialorder %v734_v55, 0.0  ;;  %v767_v56 = vmul.f32 0.2, %v734_v55 }
 0x17f   : > { %v783_v57 = vsel %vm751_vm2, %v734_v55, %v767_v56 }
 0x180   : > { %799 = vst [vmem:[%s1471_s27 + $0x78] sm:$0xff] %v783_v57  ;;  %v697_v58 = vpop.f32.mrf.mxu0 }
 0x181   : > { %v698_v13 = vadd.f32 %v1465_v40, %v697_v58 }
 0x183   : > { %vm739_vm3 = vcmp.ge.f32.partialorder %v698_v13, 0.0  ;;  %v755_v59 = vmul.f32 0.2, %v698_v13 }
 0x184   : > { %v709_v16 = vpop.f32.mrf.mxu1 }
 0x185   : > { %v771_v23 = vsel %vm739_vm3, %v698_v13, %v755_v59  ;;  %v710_v60 = vadd.f32 %v1465_v40, %v709_v16 }
 0x186   : > { %787 = vst [vmem:[%s1471_s27 + $0x18] sm:$0xff] %v771_v23 }
 0x187   : > { %vm743_vm4 = vcmp.ge.f32.partialorder %v710_v60, 0.0  ;;  %v759_v61 = vmul.f32 0.2, %v710_v60 }
 0x189   : > { %v775_v62 = vsel %vm743_vm4, %v710_v60, %v759_v61 }
 0x18a   : > { %791 = vst [vmem:[%s1471_s27 + $0x38] sm:$0xff] %v775_v62 }
 0x18b PF: > { %s14_s19 = sadd.s32 1, %s1062_s19   ;;  %s1524_s15 = smov %s1054_s17 }
 0x18c   : > { %p11_p9 = scmp.ge.s32.totalorder %s14_s19, 6   ;;  %s1525_s16 = smov %s1058_s18 }
 0x18d   : > { %s1526_s17 = smov %s1529_s20  ;;  %s1527_s18 = smov %s1533_s21 }
 0x18e   :  { %13 = sbr.rel (!%p11_p9) target bundleno = 3 (0x3), region = 69 }

// kernel: discriminator_sep.6
= control target key start
LH: loop header
LB: loop body
LE: loop exit
PB: predicated region body
PF: predicated region fallthrough
CT: control target
= control target key end

     0   :  { %s1622_s12 = smov 0   ;;  %s1624_s13 = smov 0   ;;  %s2952_s0 = inlined_call_operand.vmem [shape: f32[2,9,9,512], index: 0, kind: input, shape index: {}]   ;;  %s2953_s1 = inlined_call_operand.vmem [shape: f32[2048,128], index: 1, kind: input, shape index: {}]   ;;  %s2954_s2 = inlined_call_operand.vmem [shape: f32[1,128], index: 2, kind: input, shape index: {}]   ;;  %s2955_s3 = inlined_call_operand.vmem [shape: f32[2,8,8,128], index: 3, kind: output, shape index: {}]  }
   0x1   :  { %s1626_s14 = smov 0  }
   0x2 LB: > { %s25_s15 = sadd.s32 1, %s1596_s13  ;;  %p1540_p0 = scmp.ge.s32.totalorder %s1600_s14, 1  ;;  %s1600_s14 = sphi %s1626_s14, %s13_s14   ;;  %s1596_s13 = sphi %s1624_s13, %s2990_s13   ;;  %s1592_s12 = sphi %s1622_s12, %s2989_s12  }
   0x3   : > { %p27_p1 = scmp.ge.s32.totalorder %s25_s15, 2  ;;  %p151_p2 = scmp.lt.s32.totalorder %s1600_s14, 3 }
   0x5   : > { %s2992_s15 = smov (%p27_p1, %s25_s15), 0  ;;  %p152_p3 = pnand %p1540_p0, %p151_p2 }
   0x7   : > { %155 = sbr.rel (%p152_p3) target bundleno = 438 (0x1b6), region = 32 }
   0xc   : > { %v538_v0 = vld [vmem:[%s2953_s1 + $0x278] sm:$0xff]  ;;  %v537_v2 = vld [vmem:[%s2953_s1 + $0x270] sm:$0xff]  ;;  %v536_v6 = vld [vmem:[%s2953_s1 + $0x268] sm:$0xff]  ;;  %p179_p4 = scmp.lt.s32.totalorder %s1592_s12, 1  ;;  %vm394_vm0 = vcmask 1046528  }
   0xd   : > { %v570_v1 = vld [vmem:[%s2953_s1 + $0x378] sm:$0xff]  ;;  %587 = vmatpush.msra.mxu0 %v538_v0  ;;  %v569_v4 = vld [vmem:[%s2953_s1 + $0x370] sm:$0xff]  ;;  %v568_v8 = vld [vmem:[%s2953_s1 + $0x368] sm:$0xff] }
   0xe   : > { %669 = vmatpush.msra.mxu2 %v570_v1  ;;  %v554_v3 = vld [vmem:[%s2953_s1 + $0x2f8] sm:$0xff]  ;;  %v553_v7 = vld [vmem:[%s2953_s1 + $0x2f0] sm:$0xff]  ;;  %v552_v10 = vld [vmem:[%s2953_s1 + $0x2e8] sm:$0xff]  ;;  %s2994_s12 = smov (!%p179_p4, %s1592_s12), 1 }
   0xf   : > { %v586_v5 = vld [vmem:[%s2953_s1 + $0x3f8] sm:$0xff]  ;;  %628 = vmatpush.msra.mxu1 %v554_v3  ;;  %588 = vmatpush.msra.mxu0 %v537_v2  ;;  %v585_v9 = vld [vmem:[%s2953_s1 + $0x3f0] sm:$0xff]  ;;  %v535_v11 = vld [vmem:[%s2953_s1 + $0x260] sm:$0xff]  ;;  %s1547_s11 = smul.u32 576, %s2994_s12  ;;  %s1546_s23 = sshll.u32 %s2994_s12, 6 }
  0x10   : > { %710 = vmatpush.msra.mxu3 %v586_v5  ;;  %670 = vmatpush.msra.mxu2 %v569_v4  ;;  %v567_v12 = vld [vmem:[%s2953_s1 + $0x360] sm:$0xff]  ;;  %v584_v13 = vld [vmem:[%s2953_s1 + $0x3e8] sm:$0xff]  ;;  %v534_v16 = vld [vmem:[%s2953_s1 + $0x258] sm:$0xff]  ;;  %s2901_s26 = scalar_lea.vmem %s2955_s3, %s1546_s23 }
  0x11   : > { %629 = vmatpush.msra.mxu1 %v553_v7  ;;  %589 = vmatpush.msra.mxu0 %v536_v6  ;;  %v551_v14 = vld [vmem:[%s2953_s1 + $0x2e0] sm:$0xff]  ;;  %v566_v17 = vld [vmem:[%s2953_s1 + $0x358] sm:$0xff]  ;;  %v533_v20 = vld [vmem:[%s2953_s1 + $0x250] sm:$0xff]  ;;  %s1781_s9 = scalar_lea.vmem %s2952_s0, %s1547_s11 }
  0x12   : > { %711 = vmatpush.msra.mxu3 %v585_v9  ;;  %671 = vmatpush.msra.mxu2 %v568_v8  ;;  %v583_v15 = vld [vmem:[%s2953_s1 + $0x3e0] sm:$0xff]  ;;  %v550_v18 = vld [vmem:[%s2953_s1 + $0x2d8] sm:$0xff]  ;;  %v565_v21 = vld [vmem:[%s2953_s1 + $0x350] sm:$0xff] }
  0x13   : > { %630 = vmatpush.msra.mxu1 %v552_v10  ;;  %590 = vmatpush.msra.mxu0 %v535_v11  ;;  %v582_v19 = vld [vmem:[%s2953_s1 + $0x3d8] sm:$0xff]  ;;  %v549_v22 = vld [vmem:[%s2953_s1 + $0x2d0] sm:$0xff]  ;;  %v532_v24 = vld [vmem:[%s2953_s1 + $0x248] sm:$0xff] }
  0x14   : > { %712 = vmatpush.msra.mxu3 %v584_v13  ;;  %672 = vmatpush.msra.mxu2 %v567_v12  ;;  %v581_v23 = vld [vmem:[%s2953_s1 + $0x3d0] sm:$0xff]  ;;  %v564_v25 = vld [vmem:[%s2953_s1 + $0x348] sm:$0xff]  ;;  %v531_v28 = vld [vmem:[%s2953_s1 + $0x240] sm:$0xff] }
  0x15   : > { %631 = vmatpush.msra.mxu1 %v551_v14  ;;  %591 = vmatpush.msra.mxu0 %v534_v16  ;;  %v548_v26 = vld [vmem:[%s2953_s1 + $0x2c8] sm:$0xff]  ;;  %v563_v29 = vld [vmem:[%s2953_s1 + $0x340] sm:$0xff]  ;;  %v530_v32 = vld [vmem:[%s2953_s1 + $0x238] sm:$0xff] }
  0x16   : > { %713 = vmatpush.msra.mxu3 %v583_v15  ;;  %673 = vmatpush.msra.mxu2 %v566_v17  ;;  %v580_v27 = vld [vmem:[%s2953_s1 + $0x3c8] sm:$0xff]  ;;  %v547_v30 = vld [vmem:[%s2953_s1 + $0x2c0] sm:$0xff]  ;;  %v562_v33 = vld [vmem:[%s2953_s1 + $0x338] sm:$0xff] }
  0x17   : > { %632 = vmatpush.msra.mxu1 %v550_v18  ;;  %592 = vmatpush.msra.mxu0 %v533_v20  ;;  %v579_v31 = vld [vmem:[%s2953_s1 + $0x3c0] sm:$0xff]  ;;  %v546_v34 = vld [vmem:[%s2953_s1 + $0x2b8] sm:$0xff]  ;;  %v529_v36 = vld [vmem:[%s2953_s1 + $0x230] sm:$0xff] }
  0x18   : > { %714 = vmatpush.msra.mxu3 %v582_v19  ;;  %674 = vmatpush.msra.mxu2 %v565_v21  ;;  %v578_v35 = vld [vmem:[%s2953_s1 + $0x3b8] sm:$0xff]  ;;  %v561_v37 = vld [vmem:[%s2953_s1 + $0x330] sm:$0xff]  ;;  %v528_v40 = vld [vmem:[%s2953_s1 + $0x228] sm:$0xff] }
  0x19   : > { %633 = vmatpush.msra.mxu1 %v549_v22  ;;  %593 = vmatpush.msra.mxu0 %v532_v24  ;;  %v545_v38 = vld [vmem:[%s2953_s1 + $0x2b0] sm:$0xff]  ;;  %v560_v41 = vld [vmem:[%s2953_s1 + $0x328] sm:$0xff]  ;;  %v527_v42 = vld [vmem:[%s2953_s1 + $0x220] sm:$0xff] }
  0x1a   : > { %715 = vmatpush.msra.mxu3 %v581_v23  ;;  %675 = vmatpush.msra.mxu2 %v564_v25  ;;  %v577_v39 = vld [vmem:[%s2953_s1 + $0x3b0] sm:$0xff]  ;;  %v544_v43 = vld [vmem:[%s2953_s1 + $0x2a8] sm:$0xff]  ;;  %v559_v44 = vld [vmem:[%s2953_s1 + $0x320] sm:$0xff] }
  0x1b   : > { %634 = vmatpush.msra.mxu1 %v548_v26  ;;  %594 = vmatpush.msra.mxu0 %v531_v28  ;;  %v576_v45 = vld [vmem:[%s2953_s1 + $0x3a8] sm:$0xff]  ;;  %v526_v46 = vld [vmem:[%s2953_s1 + $0x218] sm:$0xff]  ;;  %v543_v47 = vld [vmem:[%s2953_s1 + $0x2a0] sm:$0xff] }
  0x1c   : > { %716 = vmatpush.msra.mxu3 %v580_v27  ;;  %676 = vmatpush.msra.mxu2 %v563_v29  ;;  %v558_v48 = vld [vmem:[%s2953_s1 + $0x318] sm:$0xff]  ;;  %v575_v49 = vld [vmem:[%s2953_s1 + $0x3a0] sm:$0xff]  ;;  %v525_v52 = vld [vmem:[%s2953_s1 + $0x210] sm:$0xff] }
  0x1d   : > { %635 = vmatpush.msra.mxu1 %v547_v30  ;;  %595 = vmatpush.msra.mxu0 %v530_v32  ;;  %v542_v50 = vld [vmem:[%s2953_s1 + $0x298] sm:$0xff]  ;;  %v1808_v51 = vld [vmem:[%s1781_s9] sm:$0xff]  ;;  %v1815_v54 = vld [vmem:[%s1781_s9 + $0x10] sm:$0xff] }
  0x1e   : > { %717 = vmatpush.msra.mxu3 %v579_v31  ;;  %677 = vmatpush.msra.mxu2 %v562_v33  ;;  %v198_v53 = vld [vmem:[%s1781_s9 + $0x20] sm:$0x1]  ;;  %v200_v55 = vld [vmem:[%s1781_s9 + $0x30] sm:$0x1]  ;;  %v574_v57 = vld [vmem:[%s2953_s1 + $0x398] sm:$0xff]  ;;  %v395_v60 = vrot.slane %v1808_v51, 1 }
  0x1f   : > { %636 = vmatpush.msra.mxu1 %v546_v34  ;;  %596 = vmatpush.msra.mxu0 %v529_v36  ;;  %v557_v56 = vld [vmem:[%s2953_s1 + $0x310] sm:$0xff]  ;;  %v1832_v61 = vld [vmem:[%s1781_s9 + $0x8] sm:$0xff]  ;;  %v396_v63 = vrot.slane %v198_v53, 1  ;;  %v401_v0 = vrot.slane %v1815_v54, 1  ;;  %v402_v1 = vrot.slane %v200_v55, 1  ;;  %v1837_v2 = vld [vmem:[%s1781_s9 + $0x18] sm:$0xff] }
  0x20   : > { %718 = vmatpush.msra.mxu3 %v578_v35  ;;  %678 = vmatpush.msra.mxu2 %v561_v37  ;;  %v541_v58 = vld [vmem:[%s2953_s1 + $0x290] sm:$0xff]  ;;  %v199_v62 = vld [vmem:[%s1781_s9 + $0x28] sm:$0x1]  ;;  %v201_v3 = vld [vmem:[%s1781_s9 + $0x38] sm:$0x1]  ;;  %v398_v8 = vrot.slane %v1832_v61, 1 }
  0x21   : > { %637 = vmatpush.msra.mxu1 %v545_v38  ;;  %597 = vmatpush.msra.mxu0 %v528_v40  ;;  %v573_v59 = vld [vmem:[%s2953_s1 + $0x390] sm:$0xff]  ;;  %v524_v4 = vld [vmem:[%s2953_s1 + $0x208] sm:$0xff]  ;;  %v399_v9 = vrot.slane %v199_v62, 1  ;;  %v523_v10 = vld [vmem:[%s2953_s1 + $0x200] sm:$0xff]  ;;  %v404_v12 = vrot.slane %v1837_v2, 1  ;;  %v405_v13 = vrot.slane %v201_v3, 1  ;;  %v397_v14 = vsel %vm394_vm0, %v395_v60, %v396_v63 }
  0x22   : > { %719 = vmatpush.msra.mxu3 %v577_v39  ;;  %679 = vmatpush.msra.mxu2 %v560_v41  ;;  %v556_v5 = vld [vmem:[%s2953_s1 + $0x308] sm:$0xff]  ;;  %v555_v11 = vld [vmem:[%s2953_s1 + $0x300] sm:$0xff]  ;;  %v403_v15 = vsel %vm394_vm0, %v401_v0, %v402_v1  ;;  %v313_v16 = vld [vmem:[%s2953_s1 + $0x178] sm:$0xff] }
  0x23   : > { %638 = vmatpush.msra.mxu1 %v544_v43  ;;  %598 = vmatpush.msra.mxu0 %v527_v42  ;;  %v540_v6 = vld [vmem:[%s2953_s1 + $0x288] sm:$0xff]  ;;  %v539_v17 = vld [vmem:[%s2953_s1 + $0x280] sm:$0xff]  ;;  %v1873_v20 = vld [vmem:[%s1781_s9 + $0x50] sm:$0xff]  ;;  %v400_v23 = vsel %vm394_vm0, %v398_v8, %v399_v9  ;;  %v406_v26 = vsel %vm394_vm0, %v404_v12, %v405_v13 }
  0x24   : > { %720 = vmatpush.msra.mxu3 %v576_v45  ;;  %680 = vmatpush.msra.mxu2 %v559_v44  ;;  %v572_v7 = vld [vmem:[%s2953_s1 + $0x388] sm:$0xff]  ;;  %v1869_v18 = vld [vmem:[%s1781_s9 + $0x40] sm:$0xff]  ;;  %v208_v21 = vld [vmem:[%s1781_s9 + $0x70] sm:$0x1]  ;;  %v413_v32 = vrot.slane %v1873_v20, 1 }
  0x25   : > { %639 = vmatpush.msra.mxu1 %v543_v47  ;;  %599 = vmatpush.msra.mxu0 %v526_v46  ;;  %v206_v19 = vld [vmem:[%s1781_s9 + $0x60] sm:$0x1]  ;;  %v329_v24 = vld [vmem:[%s2953_s1 + $0x1f8] sm:$0xff]  ;;  %v407_v28 = vrot.slane %v1869_v18, 1  ;;  %v1892_v29 = vld [vmem:[%s1781_s9 + $0x48] sm:$0xff]  ;;  %v414_v33 = vrot.slane %v208_v21, 1 }
  0x26   : > { %721 = vmatpush.msra.mxu3 %v575_v49  ;;  %681 = vmatpush.msra.mxu2 %v558_v48  ;;  %v571_v22 = vld [vmem:[%s2953_s1 + $0x380] sm:$0xff]  ;;  %v281_v25 = vld [vmem:[%s2953_s1 + $0x78] sm:$0xff]  ;;  %v207_v30 = vld [vmem:[%s1781_s9 + $0x68] sm:$0x1]  ;;  %v408_v31 = vrot.slane %v206_v19, 1  ;;  %v410_v40 = vrot.slane %v1892_v29, 1 }
  0x27   : > { %640 = vmatpush.msra.mxu1 %v542_v50  ;;  %600 = vmatpush.msra.mxu0 %v525_v52  ;;  %v297_v27 = vld [vmem:[%s2953_s1 + $0xf8] sm:$0xff]  ;;  %v312_v36 = vld [vmem:[%s2953_s1 + $0x170] sm:$0xff]  ;;  %v411_v41 = vrot.slane %v207_v30, 1  ;;  %v311_v42 = vld [vmem:[%s2953_s1 + $0x168] sm:$0xff]  ;;  %v1924_v47 = vsel %vm394_vm0, %v413_v32, %v414_v33 }
  0x28   : > { %722 = vmatpush.msra.mxu3 %v574_v57  ;;  %682 = vmatpush.msra.mxu2 %v557_v56  ;;  %v1897_v34 = vld [vmem:[%s1781_s9 + $0x58] sm:$0xff]  ;;  %v280_v37 = vld [vmem:[%s2953_s1 + $0x70] sm:$0xff]  ;;  %v279_v45 = vld [vmem:[%s2953_s1 + $0x68] sm:$0xff]  ;;  %v1921_v46 = vsel %vm394_vm0, %v407_v28, %v408_v31 }
  0x29   : > { %641 = vmatpush.msra.mxu1 %v541_v58  ;;  %601 = vmatpush.msra.mxu0 %v524_v4  ;;  %v209_v35 = vld [vmem:[%s1781_s9 + $0x78] sm:$0x1]  ;;  %v328_v38 = vld [vmem:[%s2953_s1 + $0x1f0] sm:$0xff]  ;;  %v416_v43 = vrot.slane %v1897_v34, 1  ;;  %v327_v48 = vld [vmem:[%s2953_s1 + $0x1e8] sm:$0xff]  ;;  %v1941_v56 = vsel %vm394_vm0, %v410_v40, %v411_v41 }
  0x2a   : > { %723 = vmatpush.msra.mxu3 %v573_v59  ;;  %683 = vmatpush.msra.mxu2 %v556_v5  ;;  %v296_v39 = vld [vmem:[%s2953_s1 + $0xf0] sm:$0xff]  ;;  %v417_v44 = vrot.slane %v209_v35, 1  ;;  %v1930_v49 = vld [vmem:[%s1781_s9 + $0x80] sm:$0xff]  ;;  %v295_v52 = vld [vmem:[%s2953_s1 + $0xe8] sm:$0xff] }
  0x2b   : > { %642 = vmatpush.msra.mxu1 %v540_v6  ;;  %602 = vmatpush.msra.mxu0 %v523_v10  ;;  %v214_v50 = vld [vmem:[%s1781_s9 + $0xa0] sm:$0x1]  ;;  %v1937_v53 = vld [vmem:[%s1781_s9 + $0x90] sm:$0xff]  ;;  %v419_v60 = vrot.slane %v1930_v49, 1  ;;  %v1959_v0 = vld [vmem:[%s1781_s9 + $0x88] sm:$0xff] }
  0x2c   : > { %724 = vmatpush.msra.mxu3 %v572_v7  ;;  %684 = vmatpush.msra.mxu2 %v555_v11  ;;  %v216_v55 = vld [vmem:[%s1781_s9 + $0xb0] sm:$0x1]  ;;  %v310_v57 = vld [vmem:[%s2953_s1 + $0x160] sm:$0xff]  ;;  %v1952_v59 = vsel %vm394_vm0, %v416_v43, %v417_v44  ;;  %v420_v62 = vrot.slane %v214_v50, 1  ;;  %v215_v1 = vld [vmem:[%s1781_s9 + $0xa8] sm:$0x1] }
  0x2d   : > { %603 = vmatmul.f32.vlgmr.msra.gmra.mxu0 %v397_v14  ;;  %685 = vmatmul.f32.vlgmr.msra.gmra.mxu2 %v403_v15  ;;  %v326_v58 = vld [vmem:[%s2953_s1 + $0x1e0] sm:$0xff]  ;;  %v425_v3 = vrot.slane %v1937_v53, 1  ;;  %v426_v4 = vrot.slane %v216_v55, 1  ;;  %v1967_v6 = vld [vmem:[%s1781_s9 + $0x98] sm:$0xff]  ;;  %v422_v10 = vrot.slane %v1959_v0, 1  ;;  %v423_v11 = vrot.slane %v215_v1, 1 }
  0x2e   : > { %833 = vmatpush.msrb.mxu2 %v313_v16  ;;  %643 = vmatpush.msra.mxu1 %v539_v17  ;;  %v278_v63 = vld [vmem:[%s2953_s1 + $0x60] sm:$0xff]  ;;  %v217_v7 = vld [vmem:[%s1781_s9 + $0xb8] sm:$0x1]  ;;  %v428_v14 = vrot.slane %v1967_v6, 1  ;;  %v308_v16 = vld [vmem:[%s2953_s1 + $0x150] sm:$0xff]  ;;  %v1993_v19 = vsel %vm394_vm0, %v419_v60, %v420_v62 }
  0x2f   : > { %725 = vmatpush.msra.mxu3 %v571_v22  ;;  %644 = vmatmul.f32.vlgmr.msra.gmra.mxu1 %v400_v23  ;;  %v294_v5 = vld [vmem:[%s2953_s1 + $0xe0] sm:$0xff]  ;;  %v309_v8 = vld [vmem:[%s2953_s1 + $0x158] sm:$0xff]  ;;  %v429_v15 = vrot.slane %v217_v7, 1  ;;  %v276_v17 = vld [vmem:[%s2953_s1 + $0x50] sm:$0xff]  ;;  %v1996_v21 = vsel %vm394_vm0, %v425_v3, %v426_v4  ;;  %v2013_v28 = vsel %vm394_vm0, %v422_v10, %v423_v11 }
  0x30   : > { %726 = vmatmul.f32.vlgmr.msra.gmra.mxu3 %v406_v26  ;;  %751 = vmatpush.msrb.mxu0 %v281_v25  ;;  %v277_v9 = vld [vmem:[%s2953_s1 + $0x58] sm:$0xff]  ;;  %v324_v22 = vld [vmem:[%s2953_s1 + $0x1d0] sm:$0xff]  ;;  %v2002_v23 = vld [vmem:[%s1781_s9 + $0xc0] sm:$0xff] }
  0x31   : > { %874 = vmatpush.msrb.mxu3 %v329_v24  ;;  %792 = vmatpush.msrb.mxu1 %v297_v27  ;;  %v325_v12 = vld [vmem:[%s2953_s1 + $0x1d8] sm:$0xff]  ;;  %v222_v24 = vld [vmem:[%s1781_s9 + $0xe0] sm:$0x1]  ;;  %v2006_v25 = vld [vmem:[%s1781_s9 + $0xd0] sm:$0xff]  ;;  %v2024_v32 = vsel %vm394_vm0, %v428_v14, %v429_v15  ;;  %v431_v33 = vrot.slane %v2002_v23, 1 }
  0x32   : > { %834 = vmatpush.msrb.mxu2 %v312_v36  ;;  %752 = vmatpush.msrb.mxu0 %v280_v37  ;;  %v293_v13 = vld [vmem:[%s2953_s1 + $0xd8] sm:$0xff]  ;;  %v224_v26 = vld [vmem:[%s1781_s9 + $0xf0] sm:$0x1]  ;;  %v307_v30 = vld [vmem:[%s2953_s1 + $0x148] sm:$0xff]  ;;  %v432_v35 = vrot.slane %v222_v24, 1 }
  0x33   : > { %875 = vmatpush.msrb.mxu3 %v328_v38  ;;  %793 = vmatpush.msrb.mxu1 %v296_v39  ;;  %v292_v27 = vld [vmem:[%s2953_s1 + $0xd0] sm:$0xff]  ;;  %v2019_v31 = vld [vmem:[%s1781_s9 + $0xc8] sm:$0xff]  ;;  %v2029_v37 = vld [vmem:[%s1781_s9 + $0xd8] sm:$0xff]  ;;  %v437_v39 = vrot.slane %v2006_v25, 1  ;;  %v438_v40 = vrot.slane %v224_v26, 1 }
  0x34   : > { %835 = vmatpush.msrb.mxu2 %v311_v42  ;;  %753 = vmatpush.msrb.mxu0 %v279_v45  ;;  %v223_v36 = vld [vmem:[%s1781_s9 + $0xe8] sm:$0x1]  ;;  %v225_v41 = vld [vmem:[%s1781_s9 + $0xf8] sm:$0x1]  ;;  %v306_v44 = vld [vmem:[%s2953_s1 + $0x140] sm:$0xff] }
  0x35   : > { %606 = vmatmul.f32.gmra.mxu0 %v1921_v46  ;;  %688 = vmatmul.f32.gmra.mxu2 %v1924_v47  ;;  %v275_v38 = vld [vmem:[%s2953_s1 + $0x48] sm:$0xff]  ;;  %v274_v45 = vld [vmem:[%s2953_s1 + $0x40] sm:$0xff]  ;;  %v435_v50 = vrot.slane %v223_v36, 1  ;;  %v305_v60 = vld [vmem:[%s2953_s1 + $0x138] sm:$0xff]  ;;  %v2068_v1 = vsel %vm394_vm0, %v437_v39, %v438_v40 }
  0x36   : > { %876 = vmatpush.msrb.mxu3 %v327_v48  ;;  %794 = vmatpush.msrb.mxu1 %v295_v52  ;;  %v323_v42 = vld [vmem:[%s2953_s1 + $0x1c8] sm:$0xff]  ;;  %v434_v48 = vrot.slane %v2019_v31, 1  ;;  %v322_v52 = vld [vmem:[%s2953_s1 + $0x1c0] sm:$0xff]  ;;  %v273_v62 = vld [vmem:[%s2953_s1 + $0x38] sm:$0xff] }
  0x37   : > { %647 = vmatmul.f32.gmra.mxu1 %v1941_v56  ;;  %836 = vmatpush.msrb.mxu2 %v310_v57  ;;  %v291_v43 = vld [vmem:[%s2953_s1 + $0xc8] sm:$0xff]  ;;  %v290_v55 = vld [vmem:[%s2953_s1 + $0xc0] sm:$0xff]  ;;  %v440_v57 = vrot.slane %v2029_v37, 1  ;;  %v232_v7 = vld [vmem:[%s1781_s9 + $0x130] sm:$0x1] }
  0x38   : > { %729 = vmatmul.f32.gmra.mxu3 %v1952_v59  ;;  %754 = vmatpush.msrb.mxu0 %v278_v63  ;;  %v2065_v63 = vsel %vm394_vm0, %v431_v33, %v432_v35  ;;  %v2071_v3 = vld [vmem:[%s1781_s9 + $0x100] sm:$0xff]  ;;  %v2085_v10 = vsel %vm394_vm0, %v434_v48, %v435_v50  ;;  %v2088_v11 = vld [vmem:[%s1781_s9 + $0x108] sm:$0xff]  ;;  %v450_v26 = vrot.slane %v232_v7, 1  ;;  %v288_v33 = vld [vmem:[%s2953_s1 + $0xb0] sm:$0xff] }
  0x39   : > { %877 = vmatpush.msrb.mxu3 %v326_v58  ;;  %795 = vmatpush.msrb.mxu1 %v294_v5  ;;  %v441_v58 = vrot.slane %v225_v41, 1  ;;  %v230_v4 = vld [vmem:[%s1781_s9 + $0x120] sm:$0x1]  ;;  %v2075_v5 = vld [vmem:[%s1781_s9 + $0x110] sm:$0xff]  ;;  %v443_v14 = vrot.slane %v2071_v3, 1  ;;  %v303_v35 = vld [vmem:[%s2953_s1 + $0x128] sm:$0xff] }
  0x3a   : > { %837 = vmatpush.msrb.mxu2 %v309_v8  ;;  %755 = vmatpush.msrb.mxu0 %v277_v9  ;;  %v321_v8 = vld [vmem:[%s2953_s1 + $0x1b8] sm:$0xff]  ;;  %v444_v15 = vrot.slane %v230_v4, 1  ;;  %v449_v24 = vrot.slane %v2075_v5, 1  ;;  %v271_v36 = vld [vmem:[%s2953_s1 + $0x28] sm:$0xff] }
  0x3b   : > { %878 = vmatpush.msrb.mxu3 %v325_v12  ;;  %796 = vmatpush.msrb.mxu1 %v293_v13  ;;  %v289_v9 = vld [vmem:[%s2953_s1 + $0xb8] sm:$0xff]  ;;  %v304_v12 = vld [vmem:[%s2953_s1 + $0x130] sm:$0xff]  ;;  %v2096_v13 = vsel %vm394_vm0, %v440_v57, %v441_v58  ;;  %v319_v40 = vld [vmem:[%s2953_s1 + $0x1a8] sm:$0xff] }
  0x3c   : > { %838 = vmatpush.msrb.mxu2 %v308_v16  ;;  %756 = vmatpush.msrb.mxu0 %v276_v17  ;;  %v231_v16 = vld [vmem:[%s1781_s9 + $0x128] sm:$0x1]  ;;  %v2101_v17 = vld [vmem:[%s1781_s9 + $0x118] sm:$0xff]  ;;  %v2137_v48 = vsel %vm394_vm0, %v443_v14, %v444_v15  ;;  %v2140_v50 = vsel %vm394_vm0, %v449_v24, %v450_v26  ;;  %v2147_v57 = vld [vmem:[%s1781_s9 + $0x150] sm:$0xff] }
  0x3d   : > { %609 = vmatmul.f32.gmra.mxu0 %v1993_v19  ;;  %691 = vmatmul.f32.gmra.mxu2 %v1996_v21  ;;  %v447_v39 = vrot.slane %v231_v16, 1  ;;  %v287_v41 = vld [vmem:[%s2953_s1 + $0xa8] sm:$0xff]  ;;  %2967 = vst [vmem:[#allocation2_spill] sm:$0xff] %v2137_v48  ;;  %v240_v58 = vld [vmem:[%s1781_s9 + $0x170] sm:$0x1]  ;;  %v2173_v16 = vld [vmem:[%s1781_s9 + $0x158] sm:$0xff] }
  0x3e   : > { %879 = vmatpush.msrb.mxu3 %v324_v22  ;;  %797 = vmatpush.msrb.mxu1 %v292_v27  ;;  %v272_v22 = vld [vmem:[%s2953_s1 + $0x30] sm:$0xff]  ;;  %v233_v27 = vld [vmem:[%s1781_s9 + $0x138] sm:$0x1]  ;;  %v2160_v7 = vld [vmem:[%s1781_s9 + $0x148] sm:$0xff]  ;;  %v461_v26 = vrot.slane %v2147_v57, 1 }
  0x3f   : > { %650 = vmatmul.f32.gmra.mxu1 %v2013_v28  ;;  %839 = vmatpush.msrb.mxu2 %v307_v30  ;;  %v320_v30 = vld [vmem:[%s2953_s1 + $0x1b0] sm:$0xff]  ;;  %v269_v24 = vld [vmem:[%s2953_s1 + $0x18] sm:$0xff] }
  0x40   : > { %732 = vmatmul.f32.gmra.mxu3 %v2024_v32  ;;  %757 = vmatpush.msrb.mxu0 %v275_v38  ;;  %v446_v38 = vrot.slane %v2088_v11, 1 }
  0x41   : > { %880 = vmatpush.msrb.mxu3 %v323_v42  ;;  %798 = vmatpush.msrb.mxu1 %v291_v43  ;;  %v452_v42 = vrot.slane %v2101_v17, 1  ;;  %v453_v43 = vrot.slane %v233_v27, 1  ;;  %v462_v27 = vrot.slane %v240_v58, 1 }
  0x42   : > { %840 = vmatpush.msrb.mxu2 %v306_v44  ;;  %758 = vmatpush.msrb.mxu0 %v274_v45  ;;  %v302_v44 = vld [vmem:[%s2953_s1 + $0x120] sm:$0xff]  ;;  %v2157_v4 = vsel %vm394_vm0, %v446_v38, %v447_v39  ;;  %v458_v38 = vrot.slane %v2160_v7, 1 }
  0x43   : > { %881 = vmatpush.msrb.mxu3 %v322_v52  ;;  %799 = vmatpush.msrb.mxu1 %v290_v55  ;;  %v270_v45 = vld [vmem:[%s2953_s1 + $0x20] sm:$0xff]  ;;  %2968 = vst [vmem:[#allocation3_spill] sm:$0xff] %v2157_v4  ;;  %v2212_v58 = vsel %vm394_vm0, %v461_v26, %v462_v27 }
  0x44   : > { %841 = vmatpush.msrb.mxu2 %v305_v60  ;;  %759 = vmatpush.msrb.mxu0 %v273_v62  ;;  %v2143_v52 = vld [vmem:[%s1781_s9 + $0x140] sm:$0xff]  ;;  %2971 = vst [vmem:[#allocation6_spill] sm:$0xff] %v2212_v58 }
  0x45   : > { %612 = vmatmul.f32.gmra.mxu0 %v2065_v63  ;;  %694 = vmatmul.f32.gmra.mxu2 %v2068_v1  ;;  %v238_v55 = vld [vmem:[%s1781_s9 + $0x160] sm:$0x1]  ;;  %v455_v14 = vrot.slane %v2143_v52, 1 }
  0x46   : > { %882 = vmatpush.msrb.mxu3 %v321_v8  ;;  %800 = vmatpush.msrb.mxu1 %v289_v9  ;;  %v318_v60 = vld [vmem:[%s2953_s1 + $0x1a0] sm:$0xff]  ;;  %v239_v8 = vld [vmem:[%s1781_s9 + $0x168] sm:$0x1]  ;;  %v301_v9 = vld [vmem:[%s2953_s1 + $0x118] sm:$0xff]  ;;  %v456_v15 = vrot.slane %v238_v55, 1 }
  0x47   : > { %653 = vmatmul.f32.gmra.mxu1 %v2085_v10  ;;  %842 = vmatpush.msrb.mxu2 %v304_v12  ;;  %v286_v62 = vld [vmem:[%s2953_s1 + $0xa0] sm:$0xff]  ;;  %v2169_v12 = vsel %vm394_vm0, %v452_v42, %v453_v43  ;;  %v459_v39 = vrot.slane %v239_v8, 1  ;;  %v464_v42 = vrot.slane %v2173_v16, 1  ;;  %v2219_v8 = vld [vmem:[%s1781_s9 + $0x190] sm:$0xff] }
  0x48   : > { %735 = vmatmul.f32.gmra.mxu3 %v2096_v13  ;;  %760 = vmatpush.msrb.mxu0 %v272_v22  ;;  %2969 = vst [vmem:[#allocation4_spill] sm:$0xff] %v2169_v12  ;;  %v241_v22 = vld [vmem:[%s1781_s9 + $0x178] sm:$0x1]  ;;  %v2209_v55 = vsel %vm394_vm0, %v455_v14, %v456_v15  ;;  %v315_v14 = vld [vmem:[%s2953_s1 + $0x188] sm:$0xff]  ;;  %v298_v26 = vld [vmem:[%s2953_s1 + $0x100] sm:$0xff] }
  0x49   : > { %883 = vmatpush.msrb.mxu3 %v320_v30  ;;  %801 = vmatpush.msrb.mxu1 %v288_v33  ;;  %v317_v30 = vld [vmem:[%s2953_s1 + $0x198] sm:$0xff]  ;;  %v465_v43 = vrot.slane %v241_v22, 1  ;;  %2970 = vst [vmem:[#allocation5_spill] sm:$0xff] %v2209_v55  ;;  %v283_v15 = vld [vmem:[%s2953_s1 + $0x88] sm:$0xff]  ;;  %v2229_v22 = vsel %vm394_vm0, %v458_v38, %v459_v39  ;;  %v266_v38 = vld [vmem:[%s2953_s1] sm:$0xff]  ;;  %v473_v39 = vrot.slane %v2219_v8, 1 }
  0x4a   : > { %843 = vmatpush.msrb.mxu2 %v303_v35  ;;  %761 = vmatpush.msrb.mxu0 %v271_v36  ;;  %v285_v33 = vld [vmem:[%s2953_s1 + $0x98] sm:$0xff]  ;;  %v300_v35 = vld [vmem:[%s2953_s1 + $0x110] sm:$0xff]  ;;  %2972 = vst [vmem:[#allocation7_spill] sm:$0xff] %v2229_v22 }
  0x4b   : > { %884 = vmatpush.msrb.mxu3 %v319_v40  ;;  %802 = vmatpush.msrb.mxu1 %v287_v41  ;;  %v268_v36 = vld [vmem:[%s2953_s1 + $0x10] sm:$0xff]  ;;  %v2240_v27 = vsel %vm394_vm0, %v464_v42, %v465_v43  ;;  %v314_v42 = vld [vmem:[%s2953_s1 + $0x180] sm:$0xff] }
  0x4c   : > { %844 = vmatpush.msrb.mxu2 %v302_v44  ;;  %762 = vmatpush.msrb.mxu0 %v270_v45  ;;  %v316_v40 = vld [vmem:[%s2953_s1 + $0x190] sm:$0xff]  ;;  %v299_v44 = vld [vmem:[%s2953_s1 + $0x108] sm:$0xff]  ;;  %2973 = vst [vmem:[#allocation8_spill] sm:$0xff] %v2240_v27  ;;  %v282_v43 = vld [vmem:[%s2953_s1 + $0x80] sm:$0xff] }
  0x4d   : > { %615 = vmatmul.f32.gmra.mxu0 %v2137_v48  ;;  %697 = vmatmul.f32.gmra.mxu2 %v2140_v50  ;;  %v284_v41 = vld [vmem:[%s2953_s1 + $0x90] sm:$0xff]  ;;  %v267_v45 = vld [vmem:[%s2953_s1 + $0x8] sm:$0xff] }
  0x4e   : > { %885 = vmatpush.msrb.mxu3 %v318_v60  ;;  %803 = vmatpush.msrb.mxu1 %v286_v62  ;;  %v2215_v60 = vld [vmem:[%s1781_s9 + $0x180] sm:$0xff] }
  0x4f   : > { %656 = vmatmul.f32.gmra.mxu1 %v2157_v4  ;;  %845 = vmatpush.msrb.mxu2 %v301_v9  ;;  %v246_v62 = vld [vmem:[%s1781_s9 + $0x1a0] sm:$0x1]  ;;  %v248_v9 = vld [vmem:[%s1781_s9 + $0x1b0] sm:$0x1]  ;;  %v257_v4 = vld [vmem:[%s1781_s9 + $0x1f8] sm:$0x1] }
  0x50   : > { %738 = vmatmul.f32.gmra.mxu3 %v2169_v12  ;;  %763 = vmatpush.msrb.mxu0 %v269_v24  ;;  %v2232_v24 = vld [vmem:[%s1781_s9 + $0x188] sm:$0xff] }
  0x51   : > { %886 = vmatpush.msrb.mxu3 %v317_v30  ;;  %804 = vmatpush.msrb.mxu1 %v285_v33  ;;  %v467_v30 = vrot.slane %v2215_v60, 1  ;;  %v468_v33 = vrot.slane %v246_v62, 1  ;;  %v470_v62 = vrot.slane %v2232_v24, 1 }
  0x52   : > { %846 = vmatpush.msrb.mxu2 %v300_v35  ;;  %764 = vmatpush.msrb.mxu0 %v268_v36  ;;  %v247_v35 = vld [vmem:[%s1781_s9 + $0x1a8] sm:$0x1]  ;;  %v2245_v36 = vld [vmem:[%s1781_s9 + $0x198] sm:$0xff] }
  0x53   : > { %887 = vmatpush.msrb.mxu3 %v316_v40  ;;  %805 = vmatpush.msrb.mxu1 %v284_v41  ;;  %v474_v40 = vrot.slane %v248_v9, 1  ;;  %v249_v41 = vld [vmem:[%s1781_s9 + $0x1b8] sm:$0x1]  ;;  %v471_v9 = vrot.slane %v247_v35, 1  ;;  %v961_v35 = vld [vmem:[%s2953_s1 + $0x570] sm:$0xff] }
  0x54   : > { %847 = vmatpush.msrb.mxu2 %v299_v44  ;;  %765 = vmatpush.msrb.mxu0 %v267_v45  ;;  %v962_v44 = vld [vmem:[%s2953_s1 + $0x578] sm:$0xff] }
  0x55   : > { %618 = vmatmul.f32.gmra.mxu0 %v2209_v55  ;;  %700 = vmatmul.f32.gmra.mxu2 %v2212_v58  ;;  %v978_v45 = vld [vmem:[%s2953_s1 + $0x5f8] sm:$0xff]  ;;  %v2284_v55 = vsel %vm394_vm0, %v473_v39, %v474_v40  ;;  %v2287_v58 = vld [vmem:[%s1781_s9 + $0x1c0] sm:$0xff]  ;;  %v2301_v39 = vsel %vm394_vm0, %v470_v62, %v471_v9  ;;  %v2304_v40 = vld [vmem:[%s1781_s9 + $0x1c8] sm:$0xff] }
  0x56   : > { %888 = vmatpush.msrb.mxu3 %v315_v14  ;;  %806 = vmatpush.msrb.mxu1 %v283_v15  ;;  %v930_v14 = vld [vmem:[%s2953_s1 + $0x478] sm:$0xff]  ;;  %2975 = vst [vmem:[#allocation10_spill] sm:$0xff] %v2284_v55  ;;  %v255_v62 = vld [vmem:[%s1781_s9 + $0x1e8] sm:$0x1] }
  0x57   : > { %659 = vmatmul.f32.gmra.mxu1 %v2229_v22  ;;  %848 = vmatpush.msrb.mxu2 %v298_v26  ;;  %v946_v15 = vld [vmem:[%s2953_s1 + $0x4f8] sm:$0xff]  ;;  %v476_v26 = vrot.slane %v2245_v36, 1  ;;  %v477_v22 = vrot.slane %v249_v41, 1  ;;  %v254_v41 = vld [vmem:[%s1781_s9 + $0x1e0] sm:$0x1]  ;;  %2976 = vst [vmem:[#allocation11_spill] sm:$0xff] %v2301_v39 }
  0x58   : > { %741 = vmatmul.f32.gmra.mxu3 %v2240_v27  ;;  %766 = vmatpush.msrb.mxu0 %v266_v38  ;;  %v977_v38 = vld [vmem:[%s2953_s1 + $0x5f0] sm:$0xff]  ;;  %v2281_v27 = vsel %vm394_vm0, %v467_v30, %v468_v33  ;;  %v2317_v9 = vld [vmem:[%s1781_s9 + $0x1d8] sm:$0xff] }
  0x59   : > { %889 = vmatpush.msrb.mxu3 %v314_v42  ;;  %807 = vmatpush.msrb.mxu1 %v282_v43  ;;  %2974 = vst [vmem:[#allocation9_spill] sm:$0xff] %v2281_v27  ;;  %v2291_v42 = vld [vmem:[%s1781_s9 + $0x1d0] sm:$0xff] }
  0x5a   : > { %1061 = vmatpush.msra.mxu2 %v962_v44  ;;  %v256_v43 = vld [vmem:[%s1781_s9 + $0x1f0] sm:$0x1]  ;;  %979 = vmatpush.msra.mxu0 %v930_v14  ;;  %v960_v44 = vld [vmem:[%s2953_s1 + $0x568] sm:$0xff]  ;;  %v479_v14 = vrot.slane %v2287_v58, 1 }
  0x5b   : > { %1102 = vmatpush.msra.mxu3 %v978_v45  ;;  %1020 = vmatpush.msra.mxu1 %v946_v15  ;;  %v929_v30 = vld [vmem:[%s2953_s1 + $0x470] sm:$0xff]  ;;  %v2312_v45 = vsel %vm394_vm0, %v476_v26, %v477_v22  ;;  %v480_v15 = vrot.slane %v254_v41, 1  ;;  %v486_v12 = vrot.slane %v256_v43, 1  ;;  %v976_v22 = vld [vmem:[%s2953_s1 + $0x5e8] sm:$0xff]  ;;  %v959_v41 = vld [vmem:[%s2953_s1 + $0x560] sm:$0xff] }
  0x5c   : > { %v945_v33 = vld [vmem:[%s2953_s1 + $0x4f0] sm:$0xff]  ;;  %1062 = vmatpush.msra.mxu2 %v961_v35  ;;  %2977 = vst [vmem:[#allocation12_spill] sm:$0xff] %v2312_v45  ;;  %v928_v35 = vld [vmem:[%s2953_s1 + $0x468] sm:$0xff]  ;;  %980 = vmatpush.msra.mxu0 %v929_v30  ;;  %v927_v43 = vld [vmem:[%s2953_s1 + $0x460] sm:$0xff]  ;;  %v482_v30 = vrot.slane %v2304_v40, 1 }
  0x5d   : > { %1103 = vmatpush.msra.mxu3 %v977_v38  ;;  %621 = vmatmul.f32.gmra.mxu0 %v2281_v27  ;;  %v485_v38 = vrot.slane %v2291_v42, 1  ;;  %v944_v26 = vld [vmem:[%s2953_s1 + $0x4e8] sm:$0xff]  ;;  %v975_v27 = vld [vmem:[%s2953_s1 + $0x5e0] sm:$0xff] }
  0x5e   : > { %703 = vmatmul.f32.gmra.mxu2 %v2284_v55  ;;  %1021 = vmatpush.msra.mxu1 %v945_v33  ;;  %v483_v33 = vrot.slane %v255_v62, 1  ;;  %v489_v55 = vrot.slane %v257_v4, 1  ;;  %v926_v62 = vld [vmem:[%s2953_s1 + $0x458] sm:$0xff] }
  0x5f   : > { %662 = vmatmul.f32.gmra.mxu1 %v2301_v39  ;;  %1063 = vmatpush.msra.mxu2 %v960_v44  ;;  %v943_v44 = vld [vmem:[%s2953_s1 + $0x4e0] sm:$0xff]  ;;  %v488_v39 = vrot.slane %v2317_v9, 1  ;;  %v2356_v48 = vsel %vm394_vm0, %v485_v38, %v486_v12  ;;  %v974_v4 = vld [vmem:[%s2953_s1 + $0x5d8] sm:$0xff]  ;;  %v957_v12 = vld [vmem:[%s2953_s1 + $0x550] sm:$0xff] }
  0x60   : > { %744 = vmatmul.f32.gmra.mxu3 %v2312_v45  ;;  %981 = vmatpush.msra.mxu0 %v928_v35  ;;  %v958_v45 = vld [vmem:[%s2953_s1 + $0x558] sm:$0xff]  ;;  %v2353_v35 = vsel %vm394_vm0, %v479_v14, %v480_v15  ;;  %v925_v14 = vld [vmem:[%s2953_s1 + $0x450] sm:$0xff]  ;;  %v924_v38 = vld [vmem:[%s2953_s1 + $0x448] sm:$0xff] }
  0x61   : > { %1104 = vmatpush.msra.mxu3 %v976_v22  ;;  %1022 = vmatpush.msra.mxu1 %v944_v26  ;;  %v942_v22 = vld [vmem:[%s2953_s1 + $0x4d8] sm:$0xff]  ;;  %v2365_v26 = vsel %vm394_vm0, %v482_v30, %v483_v33  ;;  %v941_v15 = vld [vmem:[%s2953_s1 + $0x4d0] sm:$0xff]  ;;  %v971_v30 = vld [vmem:[%s2953_s1 + $0x5c0] sm:$0xff] }
  0x62   : > { %1064 = vmatpush.msra.mxu2 %v959_v41  ;;  %982 = vmatpush.msra.mxu0 %v927_v43  ;;  %v940_v41 = vld [vmem:[%s2953_s1 + $0x4c8] sm:$0xff]  ;;  %v955_v43 = vld [vmem:[%s2953_s1 + $0x540] sm:$0xff] }
  0x63   : > { %1105 = vmatpush.msra.mxu3 %v975_v27  ;;  %1023 = vmatpush.msra.mxu1 %v943_v44  ;;  %v2373_v27 = vsel %vm394_vm0, %v488_v39, %v489_v55  ;;  %v956_v55 = vld [vmem:[%s2953_s1 + $0x548] sm:$0xff]  ;;  %v923_v33 = vld [vmem:[%s2953_s1 + $0x440] sm:$0xff] }
  0x64   : > { %1065 = vmatpush.msra.mxu2 %v958_v45  ;;  %983 = vmatpush.msra.mxu0 %v926_v62  ;;  %v973_v45 = vld [vmem:[%s2953_s1 + $0x5d0] sm:$0xff]  ;;  %v972_v39 = vld [vmem:[%s2953_s1 + $0x5c8] sm:$0xff]  ;;  %v939_v44 = vld [vmem:[%s2953_s1 + $0x4c0] sm:$0xff] }
  0x65   : > { %624 = vmatmul.f32.gmra.mxu0 %v2353_v35  ;;  %1106 = vmatpush.msra.mxu3 %v974_v4  ;;  %v954_v62 = vld [vmem:[%s2953_s1 + $0x538] sm:$0xff] }
  0x66   : > { %706 = vmatmul.f32.gmra.mxu2 %v2356_v48  ;;  %1024 = vmatpush.msra.mxu1 %v942_v22  ;;  %v938_v4 = vld [vmem:[%s2953_s1 + $0x4b8] sm:$0xff]  ;;  %v921_v22 = vld [vmem:[%s2953_s1 + $0x430] sm:$0xff] }
  0x67   : > { %665 = vmatmul.f32.gmra.mxu1 %v2365_v26  ;;  %1066 = vmatpush.msra.mxu2 %v957_v12  ;;  %v937_v12 = vld [vmem:[%s2953_s1 + $0x4b0] sm:$0xff] }
  0x68   : > { %747 = vmatmul.f32.gmra.mxu3 %v2373_v27  ;;  %984 = vmatpush.msra.mxu0 %v925_v14  ;;  %v952_v14 = vld [vmem:[%s2953_s1 + $0x528] sm:$0xff] }
  0x69   : > { %1107 = vmatpush.msra.mxu3 %v973_v45  ;;  %1025 = vmatpush.msra.mxu1 %v941_v15  ;;  %v936_v45 = vld [vmem:[%s2953_s1 + $0x4a8] sm:$0xff]  ;;  %v919_v15 = vld [vmem:[%s2953_s1 + $0x420] sm:$0xff] }
  0x6a   : > { %1067 = vmatpush.msra.mxu2 %v956_v55  ;;  %985 = vmatpush.msra.mxu0 %v924_v38  ;;  %v935_v55 = vld [vmem:[%s2953_s1 + $0x4a0] sm:$0xff]  ;;  %v918_v38 = vld [vmem:[%s2953_s1 + $0x418] sm:$0xff] }
  0x6b   : > { %1108 = vmatpush.msra.mxu3 %v972_v39  ;;  %1026 = vmatpush.msra.mxu1 %v940_v41  ;;  %v950_v39 = vld [vmem:[%s2953_s1 + $0x518] sm:$0xff] }
  0x6c   : > { %1068 = vmatpush.msra.mxu2 %v955_v43  ;;  %986 = vmatpush.msra.mxu0 %v923_v33  ;;  %v934_v41 = vld [vmem:[%s2953_s1 + $0x498] sm:$0xff]  ;;  %v949_v43 = vld [vmem:[%s2953_s1 + $0x510] sm:$0xff] }
  0x6d   : > { %767 = vmatmul.f32.vlgmr.msrb.gmra.mxu0 %v1808_v51  ;;  %1109 = vmatpush.msra.mxu3 %v971_v30  ;;  %v970_v51 = vld [vmem:[%s2953_s1 + $0x5b8] sm:$0xff]  ;;  %v965_v30 = vld [vmem:[%s2953_s1 + $0x590] sm:$0xff] }
  0x6e   : > { %849 = vmatmul.f32.vlgmr.msrb.gmra.mxu2 %v1815_v54  ;;  %1027 = vmatpush.msra.mxu1 %v939_v44  ;;  %v922_v54 = vld [vmem:[%s2953_s1 + $0x438] sm:$0xff]  ;;  %v917_v33 = vld [vmem:[%s2953_s1 + $0x410] sm:$0xff] }
  0x6f   : > { %808 = vmatmul.f32.vlgmr.msrb.gmra.mxu1 %v1832_v61  ;;  %1069 = vmatpush.msra.mxu2 %v954_v62  ;;  %v953_v61 = vld [vmem:[%s2953_s1 + $0x530] sm:$0xff]  ;;  %v948_v62 = vld [vmem:[%s2953_s1 + $0x508] sm:$0xff] }
  0x70   : > { %890 = vmatmul.f32.vlgmr.msrb.gmra.mxu3 %v1837_v2  ;;  %987 = vmatpush.msra.mxu0 %v922_v54  ;;  %v969_v2 = vld [vmem:[%s2953_s1 + $0x5b0] sm:$0xff]  ;;  %v916_v54 = vld [vmem:[%s2953_s1 + $0x408] sm:$0xff] }
  0x71   : > { %1110 = vmatpush.msra.mxu3 %v970_v51  ;;  %1028 = vmatpush.msra.mxu1 %v938_v4  ;;  %v933_v44 = vld [vmem:[%s2953_s1 + $0x490] sm:$0xff]  ;;  %v964_v51 = vld [vmem:[%s2953_s1 + $0x588] sm:$0xff] }
  0x72   : > { %1070 = vmatpush.msra.mxu2 %v953_v61  ;;  %988 = vmatpush.msra.mxu0 %v921_v22  ;;  %v932_v4 = vld [vmem:[%s2953_s1 + $0x488] sm:$0xff]  ;;  %v947_v61 = vld [vmem:[%s2953_s1 + $0x500] sm:$0xff] }
  0x73   : > { %1111 = vmatpush.msra.mxu3 %v969_v2  ;;  %1029 = vmatpush.msra.mxu1 %v937_v12  ;;  %v963_v2 = vld [vmem:[%s2953_s1 + $0x580] sm:$0xff] }
  0x74   : > { %1071 = vmatpush.msra.mxu2 %v952_v14  ;;  %v915_v22 = vld [vmem:[%s2953_s1 + $0x400] sm:$0xff]  ;;  %v1222_v14 = vld [vmem:[%s2953_s1 + $0x778] sm:$0xff] }
  0x75   : > { %770 = vmatmul.f32.gmra.mxu0 %v1869_v18  ;;  %v968_v18 = vld [vmem:[%s2953_s1 + $0x5a8] sm:$0xff]  ;;  %1030 = vmatpush.msra.mxu1 %v936_v45  ;;  %v931_v12 = vld [vmem:[%s2953_s1 + $0x480] sm:$0xff]  ;;  %v1206_v45 = vld [vmem:[%s2953_s1 + $0x6f8] sm:$0xff] }
  0x76   : > { %852 = vmatmul.f32.gmra.mxu2 %v1873_v20  ;;  %v920_v20 = vld [vmem:[%s2953_s1 + $0x428] sm:$0xff]  ;;  %1112 = vmatpush.msra.mxu3 %v968_v18  ;;  %v1238_v18 = vld [vmem:[%s2953_s1 + $0x7f8] sm:$0xff] }
  0x77   : > { %811 = vmatmul.f32.gmra.mxu1 %v1892_v29  ;;  %989 = vmatpush.msra.mxu0 %v920_v20  ;;  %v951_v29 = vld [vmem:[%s2953_s1 + $0x520] sm:$0xff]  ;;  %v1190_v20 = vld [vmem:[%s2953_s1 + $0x678] sm:$0xff] }
  0x78   : > { %893 = vmatmul.f32.gmra.mxu3 %v1897_v34  ;;  %v967_v34 = vld [vmem:[%s2953_s1 + $0x5a0] sm:$0xff]  ;;  %1072 = vmatpush.msra.mxu2 %v951_v29  ;;  %v1221_v29 = vld [vmem:[%s2953_s1 + $0x770] sm:$0xff] }
  0x79   : > { %1113 = vmatpush.msra.mxu3 %v967_v34  ;;  %990 = vmatpush.msra.mxu0 %v919_v15  ;;  %v1237_v34 = vld [vmem:[%s2953_s1 + $0x7f0] sm:$0xff] }
  0x7a   : > { %1031 = vmatpush.msra.mxu1 %v935_v55  ;;  %1073 = vmatpush.msra.mxu2 %v950_v39  ;;  %v1189_v15 = vld [vmem:[%s2953_s1 + $0x670] sm:$0xff]  ;;  %v1220_v39 = vld [vmem:[%s2953_s1 + $0x768] sm:$0xff] }
  0x7b   : > { %991 = vmatpush.msra.mxu0 %v918_v38  ;;  %v1205_v55 = vld [vmem:[%s2953_s1 + $0x6f0] sm:$0xff]  ;;  %v1188_v38 = vld [vmem:[%s2953_s1 + $0x668] sm:$0xff] }
  0x7c   : > { %1032 = vmatpush.msra.mxu1 %v934_v41  ;;  %1074 = vmatpush.msra.mxu2 %v949_v43  ;;  %v1204_v41 = vld [vmem:[%s2953_s1 + $0x6e8] sm:$0xff]  ;;  %v1219_v43 = vld [vmem:[%s2953_s1 + $0x760] sm:$0xff] }
  0x7d   : > { %773 = vmatmul.f32.gmra.mxu0 %v1930_v49  ;;  %v966_v49 = vld [vmem:[%s2953_s1 + $0x598] sm:$0xff] }
  0x7e   : > { %855 = vmatmul.f32.gmra.mxu2 %v1937_v53  ;;  %1114 = vmatpush.msra.mxu3 %v966_v49  ;;  %v1236_v49 = vld [vmem:[%s2953_s1 + $0x7e8] sm:$0xff] }
  0x7f   : > { %814 = vmatmul.f32.gmra.mxu1 %v1959_v0  ;;  %992 = vmatpush.msra.mxu0 %v917_v33  ;;  %v1187_v33 = vld [vmem:[%s2953_s1 + $0x660] sm:$0xff] }
  0x80   : > { %896 = vmatmul.f32.gmra.mxu3 %v1967_v6  ;;  %1033 = vmatpush.msra.mxu1 %v933_v44  ;;  %v1203_v44 = vld [vmem:[%s2953_s1 + $0x6e0] sm:$0xff] }
  0x81   : > { %1115 = vmatpush.msra.mxu3 %v965_v30  ;;  %1075 = vmatpush.msra.mxu2 %v948_v62  ;;  %v1235_v30 = vld [vmem:[%s2953_s1 + $0x7e0] sm:$0xff]  ;;  %v1218_v62 = vld [vmem:[%s2953_s1 + $0x758] sm:$0xff] }
  0x82   : > { %993 = vmatpush.msra.mxu0 %v916_v54  ;;  %1034 = vmatpush.msra.mxu1 %v932_v4  ;;  %v1186_v54 = vld [vmem:[%s2953_s1 + $0x658] sm:$0xff] }
  0x83   : > { %1116 = vmatpush.msra.mxu3 %v964_v51  ;;  %1076 = vmatpush.msra.mxu2 %v947_v61  ;;  %v1234_v51 = vld [vmem:[%s2953_s1 + $0x7d8] sm:$0xff]  ;;  %v1217_v61 = vld [vmem:[%s2953_s1 + $0x750] sm:$0xff] }
  0x84   : > { %994 = vmatpush.msra.mxu0 %v915_v22  ;;  %1035 = vmatpush.msra.mxu1 %v931_v12  ;;  %v1202_v4 = vld [vmem:[%s2953_s1 + $0x6d8] sm:$0xff]  ;;  %v1185_v22 = vld [vmem:[%s2953_s1 + $0x650] sm:$0xff] }
  0x85   : > { %776 = vmatmul.f32.gmra.mxu0 %v2002_v23  ;;  %1117 = vmatpush.msra.mxu3 %v963_v2  ;;  %v1233_v2 = vld [vmem:[%s2953_s1 + $0x7d0] sm:$0xff] }
  0x86   : > { %858 = vmatmul.f32.gmra.mxu2 %v2006_v25  ;;  %1239 = vmatpush.msrb.mxu0 %v1190_v20  ;;  %v1201_v12 = vld [vmem:[%s2953_s1 + $0x6d0] sm:$0xff]  ;;  %v1184_v20 = vld [vmem:[%s2953_s1 + $0x648] sm:$0xff] }
  0x87   : > { %817 = vmatmul.f32.gmra.mxu1 %v2019_v31  ;;  %1321 = vmatpush.msrb.mxu2 %v1222_v14  ;;  %v1216_v14 = vld [vmem:[%s2953_s1 + $0x748] sm:$0xff] }
  0x88   : > { %899 = vmatmul.f32.gmra.mxu3 %v2029_v37  ;;  %1280 = vmatpush.msrb.mxu1 %v1206_v45  ;;  %v1200_v45 = vld [vmem:[%s2953_s1 + $0x6c8] sm:$0xff] }
  0x89   : > { %1362 = vmatpush.msrb.mxu3 %v1238_v18  ;;  %1322 = vmatpush.msrb.mxu2 %v1221_v29  ;;  %v1232_v18 = vld [vmem:[%s2953_s1 + $0x7c8] sm:$0xff]  ;;  %v1215_v29 = vld [vmem:[%s2953_s1 + $0x740] sm:$0xff] }
  0x8a   : > { %1240 = vmatpush.msrb.mxu0 %v1189_v15  ;;  %1281 = vmatpush.msrb.mxu1 %v1205_v55  ;;  %v1231_v55 = vld [vmem:[%s2953_s1 + $0x7c0] sm:$0xff] }
  0x8b   : > { %1363 = vmatpush.msrb.mxu3 %v1237_v34  ;;  %1323 = vmatpush.msrb.mxu2 %v1220_v39 }
  0x8c   : > { %1241 = vmatpush.msrb.mxu0 %v1188_v38  ;;  %1282 = vmatpush.msrb.mxu1 %v1204_v41  ;;  %v1574_v38 = vld [vmem:[%s1781_s9 + $0x40] sm:$0xff] }
  0x8d   : > { %779 = vmatmul.f32.gmra.mxu0 %v2071_v3  ;;  %1364 = vmatpush.msrb.mxu3 %v1236_v49  ;;  %v1573_v49 = vld [vmem:[%s1781_s9 + $0x50] sm:$0xff]  ;;  %v1183_v41 = vld [vmem:[%s2953_s1 + $0x640] sm:$0xff] }
  0x8e   : > { %861 = vmatmul.f32.gmra.mxu2 %v2075_v5  ;;  %1242 = vmatpush.msrb.mxu0 %v1187_v33  ;;  %v1575_v33 = vld [vmem:[%s1781_s9 + $0x48] sm:$0xff] }
  0x8f   : > { %820 = vmatmul.f32.gmra.mxu1 %v2088_v11  ;;  %1324 = vmatpush.msrb.mxu2 %v1219_v43  ;;  %v1199_v43 = vld [vmem:[%s2953_s1 + $0x6c0] sm:$0xff] }
  0x90   : > { %902 = vmatmul.f32.gmra.mxu3 %v2101_v17  ;;  %1283 = vmatpush.msrb.mxu1 %v1203_v44  ;;  %v1576_v44 = vld [vmem:[%s1781_s9 + $0x58] sm:$0xff] }
  0x91   : > { %1365 = vmatpush.msrb.mxu3 %v1235_v30  ;;  %1325 = vmatpush.msrb.mxu2 %v1218_v62  ;;  %v1214_v30 = vld [vmem:[%s2953_s1 + $0x738] sm:$0xff] }
  0x92   : > { %1243 = vmatpush.msrb.mxu0 %v1186_v54  ;;  %1284 = vmatpush.msrb.mxu1 %v1202_v4  ;;  %v1182_v4 = vld [vmem:[%s2953_s1 + $0x638] sm:$0xff] }
  0x93   : > { %1366 = vmatpush.msrb.mxu3 %v1234_v51  ;;  %1326 = vmatpush.msrb.mxu2 %v1217_v61  ;;  %v1230_v51 = vld [vmem:[%s2953_s1 + $0x7b8] sm:$0xff] }
  0x94   : > { %1244 = vmatpush.msrb.mxu0 %v1185_v22  ;;  %1285 = vmatpush.msrb.mxu1 %v1201_v12  ;;  %v1198_v61 = vld [vmem:[%s2953_s1 + $0x6b8] sm:$0xff] }
  0x95   : > { %782 = vmatmul.f32.gmra.mxu0 %v2143_v52  ;;  %1367 = vmatpush.msrb.mxu3 %v1233_v2  ;;  %v1213_v2 = vld [vmem:[%s2953_s1 + $0x730] sm:$0xff] }
  0x96   : > { %864 = vmatmul.f32.gmra.mxu2 %v2147_v57  ;;  %1245 = vmatpush.msrb.mxu0 %v1184_v20  ;;  %v1229_v20 = vld [vmem:[%s2953_s1 + $0x7b0] sm:$0xff] }
  0x97   : > { %823 = vmatmul.f32.gmra.mxu1 %v2160_v7  ;;  %1327 = vmatpush.msrb.mxu2 %v1216_v14 }
  0x98   : > { %905 = vmatmul.f32.gmra.mxu3 %v2173_v16  ;;  %1286 = vmatpush.msrb.mxu1 %v1200_v45 }
  0x99   : > { %1368 = vmatpush.msrb.mxu3 %v1232_v18  ;;  %1328 = vmatpush.msrb.mxu2 %v1215_v29  ;;  %v1577_v29 = vld [vmem:[%s1781_s9 + $0x80] sm:$0xff] }
  0x9a   : > { %1246 = vmatpush.msrb.mxu0 %v1183_v41  ;;  %1287 = vmatpush.msrb.mxu1 %v1199_v43  ;;  %v1196_v41 = vld [vmem:[%s2953_s1 + $0x6a8] sm:$0xff] }
  0x9b   : > { %1369 = vmatpush.msrb.mxu3 %v1231_v55  ;;  %1329 = vmatpush.msrb.mxu2 %v1214_v30  ;;  %v1212_v55 = vld [vmem:[%s2953_s1 + $0x728] sm:$0xff] }
  0x9c   : > { %1247 = vmatpush.msrb.mxu0 %v1182_v4  ;;  %1288 = vmatpush.msrb.mxu1 %v1198_v61  ;;  %v1210_v4 = vld [vmem:[%s2953_s1 + $0x718] sm:$0xff] }
  0x9d   : > { %785 = vmatmul.f32.gmra.mxu0 %v2215_v60  ;;  %1370 = vmatpush.msrb.mxu3 %v1230_v51  ;;  %v1179_v51 = vld [vmem:[%s2953_s1 + $0x620] sm:$0xff] }
  0x9e   : > { %867 = vmatmul.f32.gmra.mxu2 %v2219_v8 }
  0x9f   : > { %826 = vmatmul.f32.gmra.mxu1 %v2232_v24  ;;  %1330 = vmatpush.msrb.mxu2 %v1213_v2  ;;  %v1178_v2 = vld [vmem:[%s2953_s1 + $0x618] sm:$0xff] }
  0xa0   : > { %908 = vmatmul.f32.gmra.mxu3 %v2245_v36 }
  0xa1   : > { %1371 = vmatpush.msrb.mxu3 %v1229_v20  ;;  %1331 = vmatpush.msrb.mxu2 %v1212_v55  ;;  %v1208_v55 = vld [vmem:[%s2953_s1 + $0x708] sm:$0xff] }
  0xa5   : > { %788 = vmatmul.f32.gmra.mxu0 %v2287_v58 }
  0xa6   : > { %870 = vmatmul.f32.gmra.mxu2 %v2291_v42 }
  0xa7   : > { %829 = vmatmul.f32.gmra.mxu1 %v2304_v40 }
  0xa8   : > { %911 = vmatmul.f32.gmra.mxu3 %v2317_v9 }
  0xaa   : > { %v604_v34 = vpop.f32.mrf.mxu0 }
  0xac   : > { %v645_v15 = vpop.f32.mrf.mxu1 }
  0xad   : > { %v646_v39 = vadd.f32 %v645_v15, %v604_v34  ;;  %995 = vmatmul.f32.vlgmr.msra.gmra.mxu0 %v1574_v38  ;;  %v1181_v34 = vld [vmem:[%s2953_s1 + $0x630] sm:$0xff]  ;;  %v1180_v38 = vld [vmem:[%s2953_s1 + $0x628] sm:$0xff] }
  0xae   : > { %1077 = vmatmul.f32.vlgmr.msra.gmra.mxu2 %v1573_v49  ;;  %v1197_v15 = vld [vmem:[%s2953_s1 + $0x6b0] sm:$0xff]  ;;  %1248 = vmatpush.msrb.mxu0 %v1181_v34 }
  0xaf   : > { %1036 = vmatmul.f32.vlgmr.msra.gmra.mxu1 %v1575_v33  ;;  %v1177_v34 = vld [vmem:[%s2953_s1 + $0x610] sm:$0xff] }
  0xb0   : > { %1118 = vmatmul.f32.vlgmr.msra.gmra.mxu3 %v1576_v44  ;;  %v686_v62 = vpop.f32.mrf.mxu2  ;;  %1289 = vmatpush.msrb.mxu1 %v1197_v15  ;;  %v1227_v44 = vld [vmem:[%s2953_s1 + $0x7a0] sm:$0xff]  ;;  %v1193_v15 = vld [vmem:[%s2953_s1 + $0x690] sm:$0xff] }
  0xb1   : > { %v687_v54 = vadd.f32 %v686_v62, %v646_v39  ;;  %v1228_v39 = vld [vmem:[%s2953_s1 + $0x7a8] sm:$0xff]  ;;  %1249 = vmatpush.msrb.mxu0 %v1180_v38 }
  0xb2   : > { %v607_v22 = vpop.f32.mrf.mxu0  ;;  %1372 = vmatpush.msrb.mxu3 %v1228_v39  ;;  %1290 = vmatpush.msrb.mxu1 %v1196_v41  ;;  %v1176_v39 = vld [vmem:[%s2953_s1 + $0x608] sm:$0xff] }
  0xb3   : > { %v727_v12 = vpop.f32.mrf.mxu3  ;;  %1250 = vmatpush.msrb.mxu0 %v1179_v51 }
  0xb4   : > { %v2653_v14 = vadd.f32 %v727_v12, %v687_v54  ;;  %v648_v18 = vpop.f32.mrf.mxu1  ;;  %v1195_v54 = vld [vmem:[%s2953_s1 + $0x6a0] sm:$0xff]  ;;  %1373 = vmatpush.msrb.mxu3 %v1227_v44 }
  0xb5   : > { %v649_v45 = vadd.f32 %v648_v18, %v607_v22  ;;  %998 = vmatmul.f32.gmra.mxu0 %v1577_v29  ;;  %1291 = vmatpush.msrb.mxu1 %v1195_v54  ;;  %v1194_v22 = vld [vmem:[%s2953_s1 + $0x698] sm:$0xff]  ;;  %v1191_v44 = vld [vmem:[%s2953_s1 + $0x680] sm:$0xff] }
  0xb6   : > { %1080 = vmatmul.f32.gmra.mxu2 %v1937_v53  ;;  %1251 = vmatpush.msrb.mxu0 %v1178_v2 }
  0xb7   : > { %1039 = vmatmul.f32.gmra.mxu1 %v1959_v0  ;;  %v1211_v0 = vld [vmem:[%s2953_s1 + $0x720] sm:$0xff] }
  0xb8   : > { %1121 = vmatmul.f32.gmra.mxu3 %v1967_v6  ;;  %v689_v53 = vpop.f32.mrf.mxu2  ;;  %1332 = vmatpush.msrb.mxu2 %v1211_v0 }
  0xb9   : > { %v690_v49 = vadd.f32 %v689_v53, %v649_v45  ;;  %1292 = vmatpush.msrb.mxu1 %v1194_v22  ;;  %v1225_v45 = vld [vmem:[%s2953_s1 + $0x790] sm:$0xff]  ;;  %1252 = vmatpush.msrb.mxu0 %v1177_v34 }
  0xba   : > { %v610_v6 = vpop.f32.mrf.mxu0  ;;  %1333 = vmatpush.msrb.mxu2 %v1210_v4 }
  0xbb   : > { %v730_v43 = vpop.f32.mrf.mxu3  ;;  %1293 = vmatpush.msrb.mxu1 %v1193_v15  ;;  %1253 = vmatpush.msrb.mxu0 %v1176_v39 }
  0xbc   : > { %v2683_v30 = vadd.f32 %v730_v43, %v690_v49  ;;  %v651_v33 = vpop.f32.mrf.mxu1 }
  0xbd   : > { %v652_v62 = vadd.f32 %v651_v33, %v610_v6  ;;  %1001 = vmatmul.f32.gmra.mxu0 %v2002_v23  ;;  %v1223_v6 = vld [vmem:[%s2953_s1 + $0x780] sm:$0xff] }
  0xbe   : > { %1083 = vmatmul.f32.gmra.mxu2 %v2006_v25  ;;  %v1226_v25 = vld [vmem:[%s2953_s1 + $0x798] sm:$0xff]  ;;  %v1175_v33 = vld [vmem:[%s2953_s1 + $0x600] sm:$0xff] }
  0xbf   : > { %1042 = vmatmul.f32.gmra.mxu1 %v2019_v31  ;;  %1374 = vmatpush.msrb.mxu3 %v1226_v25  ;;  %v1209_v31 = vld [vmem:[%s2953_s1 + $0x710] sm:$0xff] }
  0xc0   : > { %1124 = vmatmul.f32.gmra.mxu3 %v2029_v37  ;;  %v692_v23 = vpop.f32.mrf.mxu2  ;;  %1334 = vmatpush.msrb.mxu2 %v1209_v31 }
  0xc1   : > { %v693_v61 = vadd.f32 %v692_v23, %v652_v62  ;;  %1375 = vmatpush.msrb.mxu3 %v1225_v45  ;;  %1254 = vmatpush.msrb.mxu0 %v1175_v33 }
  0xc2   : > { %v613_v37 = vpop.f32.mrf.mxu0  ;;  %1335 = vmatpush.msrb.mxu2 %v1208_v55 }
  0xc3   : > { %v733_v12 = vpop.f32.mrf.mxu3 }
  0xc4   : > { %v2713_v18 = vadd.f32 %v733_v12, %v693_v61  ;;  %v654_v20 = vpop.f32.mrf.mxu1 }
  0xc5   : > { %v655_v29 = vadd.f32 %v654_v20, %v613_v37  ;;  %1004 = vmatmul.f32.gmra.mxu0 %v2071_v3  ;;  %v2774_v37 = vld [vmem:[%s1781_s9 + $0x200] sm:$0xff] }
  0xc6   : > { %1086 = vmatmul.f32.gmra.mxu2 %v2075_v5  ;;  %v1224_v5 = vld [vmem:[%s2953_s1 + $0x788] sm:$0xff] }
  0xc7   : > { %1045 = vmatmul.f32.gmra.mxu1 %v2088_v11  ;;  %1376 = vmatpush.msrb.mxu3 %v1224_v5  ;;  %v1192_v11 = vld [vmem:[%s2953_s1 + $0x688] sm:$0xff] }
  0xc8   : > { %1127 = vmatmul.f32.gmra.mxu3 %v2101_v17  ;;  %v695_v3 = vpop.f32.mrf.mxu2  ;;  %v1207_v17 = vld [vmem:[%s2953_s1 + $0x700] sm:$0xff]  ;;  %1294 = vmatpush.msrb.mxu1 %v1192_v11 }
  0xc9   : > { %v696_v53 = vadd.f32 %v695_v3, %v655_v29  ;;  %1336 = vmatpush.msrb.mxu2 %v1207_v17  ;;  %1377 = vmatpush.msrb.mxu3 %v1223_v6  ;;  %v2779_v29 = vld [vmem:[%s1781_s9 + $0x208] sm:$0xff] }
  0xca   : > { %v616_v49 = vpop.f32.mrf.mxu0  ;;  %1295 = vmatpush.msrb.mxu1 %v1191_v44 }
  0xcb   : > { %v736_v38 = vpop.f32.mrf.mxu3 }
  0xcc   : > { %v2743_v41 = vadd.f32 %v736_v38, %v696_v53  ;;  %v657_v0 = vpop.f32.mrf.mxu1 }
  0xcd   : > { %v658_v43 = vadd.f32 %v657_v0, %v616_v49  ;;  %1007 = vmatmul.f32.gmra.mxu0 %v2143_v52 }
  0xce   : > { %1089 = vmatmul.f32.gmra.mxu2 %v2147_v57 }
  0xcf   : > { %1048 = vmatmul.f32.gmra.mxu1 %v2160_v7 }
  0xd0   : > { %1130 = vmatmul.f32.gmra.mxu3 %v2173_v16  ;;  %v698_v62 = vpop.f32.mrf.mxu2 }
  0xd1   : > { %v699_v51 = vadd.f32 %v698_v62, %v658_v43 }
  0xd2   : > { %v619_v57 = vpop.f32.mrf.mxu0 }
  0xd3   : > { %v739_v54 = vpop.f32.mrf.mxu3 }
  0xd4   : > { %v2758_v52 = vadd.f32 %v739_v54, %v699_v51  ;;  %v660_v4 = vpop.f32.mrf.mxu1  ;;  %v2978_v54 = vld [vmem:[#allocation2_spill] sm:$0xff] }
  0xd5   : > { %v661_v23 = vadd.f32 %v660_v4, %v619_v57  ;;  %1010 = vmatmul.f32.gmra.mxu0 %v2215_v60 }
  0xd6   : > { %1092 = vmatmul.f32.gmra.mxu2 %v2219_v8 }
  0xd7   : > { %1051 = vmatmul.f32.gmra.mxu1 %v2232_v24 }
  0xd8   : > { %1133 = vmatmul.f32.gmra.mxu3 %v2245_v36  ;;  %v701_v7 = vpop.f32.mrf.mxu2  ;;  %v2771_v36 = vld [vmem:[%s1781_s9 + $0x210] sm:$0xff] }
  0xd9   : > { %v702_v16 = vadd.f32 %v701_v7, %v661_v23 }
  0xda   : > { %v622_v25 = vpop.f32.mrf.mxu0 }
  0xdb   : > { %v742_v61 = vpop.f32.mrf.mxu3 }
  0xdc   : > { %v2764_v2 = vadd.f32 %v742_v61, %v702_v16  ;;  %v663_v22 = vpop.f32.mrf.mxu1  ;;  %v2981_v61 = vld [vmem:[#allocation6_spill] sm:$0xff] }
  0xdd   : > { %v664_v31 = vadd.f32 %v663_v22, %v622_v25  ;;  %1013 = vmatmul.f32.gmra.mxu0 %v2287_v58  ;;  %v2783_v58 = vld [vmem:[%s1781_s9 + $0x218] sm:$0xff] }
  0xde   : > { %1095 = vmatmul.f32.gmra.mxu2 %v2291_v42  ;;  %v2982_v22 = vld [vmem:[#allocation5_spill] sm:$0xff] }
  0xdf   : > { %1054 = vmatmul.f32.gmra.mxu1 %v2304_v40 }
  0xe0   : > { %1136 = vmatmul.f32.gmra.mxu3 %v2317_v9 }
  0xe1   : > { %v704_v60 = vpop.f32.mrf.mxu2 }
  0xe2   : > { %v705_v8 = vadd.f32 %v704_v60, %v664_v31  ;;  %v625_v24 = vpop.f32.mrf.mxu0  ;;  %v2984_v31 = vld [vmem:[#allocation8_spill] sm:$0xff] }
  0xe3   : > { %v745_v12 = vpop.f32.mrf.mxu3 }
  0xe4   : > { %v2776_v20 = vadd.f32 %v745_v12, %v705_v8  ;;  %v666_v45 = vpop.f32.mrf.mxu1 }
  0xe5   : > { %v667_v42 = vadd.f32 %v666_v45, %v625_v24  ;;  %1016 = vmatmul.f32.gmra.mxu0 %v2774_v37 }
  0xe6   : > { %1098 = vmatmul.f32.gmra.mxu2 %v2771_v36 }
  0xe7   : > { %1057 = vmatmul.f32.gmra.mxu1 %v2779_v29 }
  0xe8   : > { %1139 = vmatmul.f32.gmra.mxu3 %v2783_v58 }
  0xe9   : > { %v707_v40 = vpop.f32.mrf.mxu2 }
  0xea   : > { %v708_v9 = vadd.f32 %v707_v40, %v667_v42  ;;  %v768_v34 = vpop.f32.mrf.mxu0 }
  0xeb   : > { %v748_v15 = vpop.f32.mrf.mxu3  ;;  %v769_v55 = vadd.f32 %v768_v34, %v2653_v14  ;;  %v2986_v34 = vld [vmem:[#allocation9_spill] sm:$0xff] }
  0xec   : > { %v2789_v3 = vadd.f32 %v748_v15, %v708_v9  ;;  %v809_v5 = vpop.f32.mrf.mxu1  ;;  %v2985_v9 = vld [vmem:[#allocation10_spill] sm:$0xff]  ;;  %v2987_v15 = vld [vmem:[#allocation11_spill] sm:$0xff] }
  0xed   : > { %v810_v53 = vadd.f32 %v809_v5, %v769_v55  ;;  %1255 = vmatmul.f32.vlgmr.msrb.gmra.mxu0 %v1921_v46  ;;  %v2988_v55 = vld [vmem:[#allocation12_spill] sm:$0xff] }
  0xee   : > { %1337 = vmatmul.f32.vlgmr.msrb.gmra.mxu2 %v1924_v47 }
  0xef   : > { %1296 = vmatmul.f32.vlgmr.msrb.gmra.mxu1 %v1941_v56 }
  0xf0   : > { %1378 = vmatmul.f32.vlgmr.msrb.gmra.mxu3 %v1952_v59 }
  0xf1   : > { %v850_v39 = vpop.f32.mrf.mxu2 }
  0xf2   : > { %v851_v49 = vadd.f32 %v850_v39, %v810_v53  ;;  %v771_v11 = vpop.f32.mrf.mxu0 }
  0xf3   : > { %v772_v17 = vadd.f32 %v771_v11, %v2683_v30  ;;  %v891_v38 = vpop.f32.mrf.mxu3  ;;  %v264_v11 = vld [vmem:[%s1781_s9 + $0x230] sm:$0x1] }
  0xf4   : > { %v2796_v0 = vadd.f32 %v891_v38, %v851_v49  ;;  %v812_v14 = vpop.f32.mrf.mxu1 }
  0xf5   : > { %v813_v6 = vadd.f32 %v812_v14, %v772_v17  ;;  %1258 = vmatmul.f32.gmra.mxu0 %v1993_v19  ;;  %v262_v17 = vld [vmem:[%s1781_s9 + $0x220] sm:$0x1] }
  0xf6   : > { %1340 = vmatmul.f32.gmra.mxu2 %v1996_v21 }
  0xf7   : > { %1299 = vmatmul.f32.gmra.mxu1 %v2013_v28 }
  0xf8   : > { %1381 = vmatmul.f32.gmra.mxu3 %v2024_v32 }
  0xf9   : > { %v853_v46 = vpop.f32.mrf.mxu2 }
  0xfa   : > { %v854_v47 = vadd.f32 %v853_v46, %v813_v6  ;;  %v774_v56 = vpop.f32.mrf.mxu0  ;;  %v263_v46 = vld [vmem:[%s1781_s9 + $0x228] sm:$0x1] }
  0xfb   : > { %v775_v59 = vadd.f32 %v774_v56, %v2713_v18  ;;  %v894_v43 = vpop.f32.mrf.mxu3  ;;  %v1159_v56 = vrot.slane %v2774_v37, 1 }
  0xfc   : > { %v2803_v30 = vadd.f32 %v894_v43, %v854_v47  ;;  %v815_v33 = vpop.f32.mrf.mxu1  ;;  %v1165_v47 = vrot.slane %v2771_v36, 1  ;;  %v265_v43 = vld [vmem:[%s1781_s9 + $0x238] sm:$0x1] }
  0xfd   : > { %v816_v44 = vadd.f32 %v815_v33, %v775_v59  ;;  %1261 = vmatmul.f32.gmra.mxu0 %v2065_v63  ;;  %v2980_v63 = vld [vmem:[#allocation4_spill] sm:$0xff]  ;;  %v1166_v59 = vrot.slane %v264_v11, 1  ;;  %v1160_v33 = vrot.slane %v262_v17, 1 }
  0xfe   : > { %1343 = vmatmul.f32.gmra.mxu2 %v2068_v1  ;;  %v2979_v1 = vld [vmem:[#allocation3_spill] sm:$0xff] }
  0xff   : > { %1302 = vmatmul.f32.gmra.mxu1 %v2085_v10  ;;  %v1167_v36 = vsel %vm394_vm0, %v1165_v47, %v1166_v59  ;;  %v1161_v37 = vsel %vm394_vm0, %v1159_v56, %v1160_v33 }
 0x100   : > { %1384 = vmatmul.f32.gmra.mxu3 %v2096_v13 }
 0x101   : > { %v856_v19 = vpop.f32.mrf.mxu2 }
 0x102   : > { %v857_v21 = vadd.f32 %v856_v19, %v816_v44  ;;  %v777_v28 = vpop.f32.mrf.mxu0  ;;  %v1163_v19 = vrot.slane %v263_v46, 1 }
 0x103   : > { %v778_v32 = vadd.f32 %v777_v28, %v2743_v41  ;;  %v897_v62 = vpop.f32.mrf.mxu3 }
 0x104   : > { %v2810_v18 = vadd.f32 %v897_v62, %v857_v21  ;;  %v818_v51 = vpop.f32.mrf.mxu1 }
 0x105   : > { %v819_v57 = vadd.f32 %v818_v51, %v778_v32  ;;  %1264 = vmatmul.f32.gmra.mxu0 %v2978_v54 }
 0x106   : > { %1346 = vmatmul.f32.gmra.mxu2 %v2140_v50  ;;  %v2983_v50 = vld [vmem:[#allocation7_spill] sm:$0xff] }
 0x107   : > { %1305 = vmatmul.f32.gmra.mxu1 %v2979_v1 }
 0x108   : > { %1387 = vmatmul.f32.gmra.mxu3 %v2980_v63 }
 0x109   : > { %v859_v10 = vpop.f32.mrf.mxu2 }
 0x10a   : > { %v860_v13 = vadd.f32 %v859_v10, %v819_v57  ;;  %v780_v4 = vpop.f32.mrf.mxu0 }
 0x10b   : > { %v781_v23 = vadd.f32 %v780_v4, %v2758_v52  ;;  %v900_v7 = vpop.f32.mrf.mxu3 }
 0x10c   : > { %v2817_v41 = vadd.f32 %v900_v7, %v860_v13  ;;  %v821_v16 = vpop.f32.mrf.mxu1 }
 0x10d   : > { %v822_v25 = vadd.f32 %v821_v16, %v781_v23  ;;  %1267 = vmatmul.f32.gmra.mxu0 %v2982_v22 }
 0x10e   : > { %1349 = vmatmul.f32.gmra.mxu2 %v2981_v61 }
 0x10f   : > { %1308 = vmatmul.f32.gmra.mxu1 %v2983_v50 }
 0x110   : > { %1390 = vmatmul.f32.gmra.mxu3 %v2984_v31 }
 0x111   : > { %v862_v60 = vpop.f32.mrf.mxu2 }
 0x112   : > { %v863_v8 = vadd.f32 %v862_v60, %v822_v25  ;;  %v783_v24 = vpop.f32.mrf.mxu0 }
 0x113   : > { %v784_v52 = vadd.f32 %v783_v24, %v2764_v2  ;;  %v903_v12 = vpop.f32.mrf.mxu3 }
 0x114   : > { %v2824_v45 = vadd.f32 %v903_v12, %v863_v8  ;;  %v824_v42 = vpop.f32.mrf.mxu1 }
 0x115   : > { %v825_v40 = vadd.f32 %v824_v42, %v784_v52  ;;  %1270 = vmatmul.f32.gmra.mxu0 %v2986_v34 }
 0x116   : > { %1352 = vmatmul.f32.gmra.mxu2 %v2985_v9 }
 0x117   : > { %1311 = vmatmul.f32.gmra.mxu1 %v2987_v15 }
 0x118   : > { %1393 = vmatmul.f32.gmra.mxu3 %v2988_v55 }
 0x119   : > { %v865_v5 = vpop.f32.mrf.mxu2 }
 0x11a   : > { %v866_v53 = vadd.f32 %v865_v5, %v825_v40  ;;  %v786_v39 = vpop.f32.mrf.mxu0 }
 0x11b   : > { %v787_v2 = vadd.f32 %v786_v39, %v2776_v20  ;;  %v906_v49 = vpop.f32.mrf.mxu3  ;;  %v1162_v20 = vrot.slane %v2779_v29, 1 }
 0x11c   : > { %v2833_v38 = vadd.f32 %v906_v49, %v866_v53  ;;  %v827_v14 = vpop.f32.mrf.mxu1 }
 0x11d   : > { %v828_v6 = vadd.f32 %v827_v14, %v787_v2  ;;  %1273 = vmatmul.f32.gmra.mxu0 %v2353_v35  ;;  %v1169_v35 = vrot.slane %v265_v43, 1  ;;  %v1164_v29 = vsel %vm394_vm0, %v1162_v20, %v1163_v19 }
 0x11e   : > { %1355 = vmatmul.f32.gmra.mxu2 %v2356_v48  ;;  %v1168_v48 = vrot.slane %v2783_v58, 1 }
 0x11f   : > { %1314 = vmatmul.f32.gmra.mxu1 %v2365_v26 }
 0x120   : > { %1396 = vmatmul.f32.gmra.mxu3 %v2373_v27  ;;  %v1170_v57 = vsel %vm394_vm0, %v1168_v48, %v1169_v35 }
 0x121   : > { %v868_v44 = vpop.f32.mrf.mxu2 }
 0x122   : > { %v869_v21 = vadd.f32 %v868_v44, %v828_v6  ;;  %v789_v28 = vpop.f32.mrf.mxu0 }
 0x123   : > { %v790_v32 = vadd.f32 %v789_v28, %v2789_v3  ;;  %v909_v62 = vpop.f32.mrf.mxu3 }
 0x124   : > { %v2848_v51 = vadd.f32 %v909_v62, %v869_v21  ;;  %v830_v26 = vpop.f32.mrf.mxu1 }
 0x125   : > { %v831_v27 = vadd.f32 %v830_v26, %v790_v32  ;;  %1276 = vmatmul.f32.gmra.mxu0 %v1161_v37  ;;  %v2894_v37 = vld [vmem:[%s2954_s2] ss:$0 sm:$0xff] }
 0x126   : > { %1358 = vmatmul.f32.gmra.mxu2 %v1167_v36 }
 0x127   : > { %1317 = vmatmul.f32.gmra.mxu1 %v1164_v29 }
 0x128   : > { %1399 = vmatmul.f32.gmra.mxu3 %v1170_v57 }
 0x129   : > { %v871_v58 = vpop.f32.mrf.mxu2 }
 0x12a   : > { %v872_v54 = vadd.f32 %v871_v58, %v831_v27  ;;  %v996_v1 = vpop.f32.mrf.mxu0 }
 0x12b   : > { %v912_v63 = vpop.f32.mrf.mxu3 }
 0x12c   : > { %v2852_v10 = vadd.f32 %v912_v63, %v872_v54  ;;  %v1037_v3 = vpop.f32.mrf.mxu1 }
 0x12d   : > { %v1038_v14 = vadd.f32 %v1037_v3, %v996_v1 }
 0x131   : > { %v1078_v13 = vpop.f32.mrf.mxu2 }
 0x132   : > { %v999_v4 = vpop.f32.mrf.mxu0  ;;  %v1079_v56 = vadd.f32 %v1078_v13, %v1038_v14 }
 0x133   : > { %v1119_v23 = vpop.f32.mrf.mxu3 }
 0x134   : > { %v1040_v7 = vpop.f32.mrf.mxu1  ;;  %v1120_v33 = vadd.f32 %v1119_v23, %v1079_v56 }
 0x135   : > { %v1041_v20 = vadd.f32 %v1040_v7, %v999_v4 }
 0x136   : > { %v1143_v35 = vadd.f32 %v1120_v33, %v2796_v0 }
 0x139   : > { %v1081_v16 = vpop.f32.mrf.mxu2 }
 0x13a   : > { %v1002_v25 = vpop.f32.mrf.mxu0  ;;  %v1082_v28 = vadd.f32 %v1081_v16, %v1041_v20 }
 0x13b   : > { %v1122_v61 = vpop.f32.mrf.mxu3 }
 0x13c   : > { %v1043_v22 = vpop.f32.mrf.mxu1  ;;  %v1123_v29 = vadd.f32 %v1122_v61, %v1082_v28 }
 0x13d   : > { %v1044_v27 = vadd.f32 %v1043_v22, %v1002_v25 }
 0x13e   : > { %v1144_v3 = vadd.f32 %v1123_v29, %v2803_v30 }
 0x141   : > { %v1084_v50 = vpop.f32.mrf.mxu2 }
 0x142   : > { %v1005_v31 = vpop.f32.mrf.mxu0  ;;  %v1085_v13 = vadd.f32 %v1084_v50, %v1044_v27 }
 0x143   : > { %v1125_v60 = vpop.f32.mrf.mxu3 }
 0x144   : > { %v1046_v8 = vpop.f32.mrf.mxu1  ;;  %v1126_v61 = vadd.f32 %v1125_v60, %v1085_v13 }
 0x145   : > { %v1047_v22 = vadd.f32 %v1046_v8, %v1005_v31 }
 0x146   : > { %v1145_v30 = vadd.f32 %v1126_v61, %v2810_v18 }
 0x149   : > { %v2854_v24 = vpop.f32.mrf.mxu2 }
 0x14a   : > { %v2856_v52 = vpop.f32.mrf.mxu0  ;;  %v1088_v50 = vadd.f32 %v2854_v24, %v1047_v22 }
 0x14b   : > { %v2858_v12 = vpop.f32.mrf.mxu3 }
 0x14c   : > { %v2860_v42 = vpop.f32.mrf.mxu1  ;;  %v1129_v31 = vadd.f32 %v2858_v12, %v1088_v50 }
 0x14d   : > { %v1050_v8 = vadd.f32 %v2860_v42, %v2856_v52 }
 0x151   : > { %v2862_v40 = vpop.f32.mrf.mxu2 }
 0x152   : > { %v2864_v9 = vpop.f32.mrf.mxu0 }
 0x153   : > { %v2866_v34 = vpop.f32.mrf.mxu3 }
 0x154   : > { %v2868_v15 = vpop.f32.mrf.mxu1 }
 0x155   : > { %v1053_v42 = vadd.f32 %v2868_v15, %v2864_v9 }
 0x159   : > { %v2870_v55 = vpop.f32.mrf.mxu2 }
 0x15a   : > { %v2872_v5 = vpop.f32.mrf.mxu0 }
 0x15b   : > { %v2874_v53 = vpop.f32.mrf.mxu3 }
 0x15c   : > { %v2876_v39 = vpop.f32.mrf.mxu1 }
 0x15d   : > { %v1056_v15 = vadd.f32 %v2876_v39, %v2872_v5 }
 0x161   : > { %v2878_v2 = vpop.f32.mrf.mxu2 }
 0x162   : > { %v2880_v49 = vpop.f32.mrf.mxu0 }
 0x163   : > { %v2882_v11 = vpop.f32.mrf.mxu3 }
 0x164   : > { %v2884_v17 = vpop.f32.mrf.mxu1 }
 0x165   : > { %v1059_v39 = vadd.f32 %v2884_v17, %v2880_v49 }
 0x169   : > { %v2886_v6 = vpop.f32.mrf.mxu2 }
 0x16a   : > { %v1256_v46 = vpop.f32.mrf.mxu0 }
 0x16b   : > { %v2888_v47 = vpop.f32.mrf.mxu3 }
 0x16c   : > { %v1297_v59 = vpop.f32.mrf.mxu1 }
 0x16d   : > { %v1298_v43 = vadd.f32 %v1297_v59, %v1256_v46 }
 0x171   : > { %v1338_v44 = vpop.f32.mrf.mxu2 }
 0x172   : > { %v1339_v19 = vadd.f32 %v1338_v44, %v1298_v43  ;;  %v1259_v48 = vpop.f32.mrf.mxu0 }
 0x173   : > { %v1379_v21 = vpop.f32.mrf.mxu3 }
 0x174   : > { %v1380_v36 = vadd.f32 %v1379_v21, %v1339_v19  ;;  %v1300_v32 = vpop.f32.mrf.mxu1 }
 0x175   : > { %v1301_v62 = vadd.f32 %v1300_v32, %v1259_v48  ;;  %v1146_v32 = vadd.f32 %v1129_v31, %v2817_v41 }
 0x176   : > { %v1403_v26 = vadd.f32 %v1380_v36, %v1143_v35 }
 0x178   : > { %v1415_v57 = vadd.f32 %v2894_v37, %v1403_v26 }
 0x179   : > { %v1341_v58 = vpop.f32.mrf.mxu2 }
 0x17a   : > { %v1342_v54 = vadd.f32 %v1341_v58, %v1301_v62  ;;  %vm1423_vm1 = vcmp.ge.f32.partialorder %v1415_v57, 0.0  ;;  %v1431_v0 = vmul.f32 0.2, %v1415_v57  ;;  %v1262_v1 = vpop.f32.mrf.mxu0  ;;  %v1091_v62 = vadd.f32 %v2862_v40, %v1050_v8 }
 0x17b   : > { %v1382_v63 = vpop.f32.mrf.mxu3 }
 0x17c   : > { %v1439_v4 = vsel %vm1423_vm1, %v1415_v57, %v1431_v0  ;;  %v1383_v23 = vadd.f32 %v1382_v63, %v1342_v54  ;;  %v1303_v7 = vpop.f32.mrf.mxu1  ;;  %v1132_v52 = vadd.f32 %v2866_v34, %v1091_v62 }
 0x17d   : > { %1447 = vst [vmem:[%s2901_s26] sm:$0xff] %v1439_v4  ;;  %v1304_v16 = vadd.f32 %v1303_v7, %v1262_v1 }
 0x17e   : > { %v1404_v25 = vadd.f32 %v1383_v23, %v1144_v3  ;;  %v1147_v63 = vadd.f32 %v1132_v52, %v2824_v45  ;;  %v1094_v3 = vadd.f32 %v2870_v55, %v1053_v42 }
 0x180   : > { %v1416_v14 = vadd.f32 %v2894_v37, %v1404_v25  ;;  %v1135_v9 = vadd.f32 %v2874_v53, %v1094_v3 }
 0x181   : > { %v1344_v46 = vpop.f32.mrf.mxu2 }
 0x182   : > { %v1345_v56 = vadd.f32 %v1344_v46, %v1304_v16  ;;  %vm1424_vm2 = vcmp.ge.f32.partialorder %v1416_v14, 0.0  ;;  %v1432_v59 = vmul.f32 0.2, %v1416_v14  ;;  %v1265_v43 = vpop.f32.mrf.mxu0  ;;  %v1097_v46 = vadd.f32 %v2878_v2, %v1056_v15 }
 0x183   : > { %v1385_v33 = vpop.f32.mrf.mxu3 }
 0x184   : > { %v1440_v20 = vsel %vm1424_vm2, %v1416_v14, %v1432_v59  ;;  %v1386_v44 = vadd.f32 %v1385_v33, %v1345_v56  ;;  %v1306_v19 = vpop.f32.mrf.mxu1  ;;  %v1148_v14 = vadd.f32 %v1135_v9, %v2833_v38  ;;  %v1138_v5 = vadd.f32 %v2882_v11, %v1097_v46 }
 0x185   : > { %1448 = vst [vmem:[%s2901_s26 + $0x8] sm:$0xff] %v1440_v20  ;;  %v1307_v48 = vadd.f32 %v1306_v19, %v1265_v43 }
 0x186   : > { %v1405_v60 = vadd.f32 %v1386_v44, %v1145_v30  ;;  %v1149_v19 = vadd.f32 %v1138_v5, %v2848_v51 }
 0x188   : > { %v1417_v21 = vadd.f32 %v2894_v37, %v1405_v60 }
 0x189   : > { %v1347_v35 = vpop.f32.mrf.mxu2 }
 0x18a   : > { %v1348_v28 = vadd.f32 %v1347_v35, %v1307_v48  ;;  %vm1425_vm3 = vcmp.ge.f32.partialorder %v1417_v21, 0.0  ;;  %v1433_v18 = vmul.f32 0.2, %v1417_v21  ;;  %v1268_v36 = vpop.f32.mrf.mxu0  ;;  %v1100_v48 = vadd.f32 %v2886_v6, %v1059_v39 }
 0x18b   : > { %v1388_v24 = vpop.f32.mrf.mxu3 }
 0x18c   : > { %v1441_v26 = vsel %vm1425_vm3, %v1417_v21, %v1433_v18  ;;  %v1389_v29 = vadd.f32 %v1388_v24, %v1348_v28  ;;  %v1309_v27 = vpop.f32.mrf.mxu1  ;;  %v1141_v49 = vadd.f32 %v2888_v47, %v1100_v48 }
 0x18d   : > { %1449 = vst [vmem:[%s2901_s26 + $0x10] sm:$0xff] %v1441_v26  ;;  %v1310_v12 = vadd.f32 %v1309_v27, %v1268_v36 }
 0x18e   : > { %v1406_v57 = vadd.f32 %v1389_v29, %v1146_v32  ;;  %v1150_v51 = vadd.f32 %v1141_v49, %v2852_v10 }
 0x190   : > { %v1418_v58 = vadd.f32 %v2894_v37, %v1406_v57 }
 0x191   : > { %v1350_v54 = vpop.f32.mrf.mxu2 }
 0x192   : > { %v1351_v0 = vadd.f32 %v1350_v54, %v1310_v12  ;;  %vm1426_vm4 = vcmp.ge.f32.partialorder %v1418_v58, 0.0  ;;  %v1434_v41 = vmul.f32 0.2, %v1418_v58  ;;  %v1271_v1 = vpop.f32.mrf.mxu0 }
 0x193   : > { %v1391_v40 = vpop.f32.mrf.mxu3 }
 0x194   : > { %v1442_v13 = vsel %vm1426_vm4, %v1418_v58, %v1434_v41  ;;  %v1392_v4 = vadd.f32 %v1391_v40, %v1351_v0  ;;  %v1312_v23 = vpop.f32.mrf.mxu1 }
 0x195   : > { %1450 = vst [vmem:[%s2901_s26 + $0x18] sm:$0xff] %v1442_v13  ;;  %v1313_v34 = vadd.f32 %v1312_v23, %v1271_v1 }
 0x196   : > { %v1407_v7 = vadd.f32 %v1392_v4, %v1147_v63 }
 0x198   : > { %v1419_v16 = vadd.f32 %v2894_v37, %v1407_v7 }
 0x199   : > { %v1353_v25 = vpop.f32.mrf.mxu2 }
 0x19a   : > { %v1354_v61 = vadd.f32 %v1353_v25, %v1313_v34  ;;  %vm1427_vm5 = vcmp.ge.f32.partialorder %v1419_v16, 0.0  ;;  %v1435_v45 = vmul.f32 0.2, %v1419_v16  ;;  %v1274_v22 = vpop.f32.mrf.mxu0 }
 0x19b   : > { %v1394_v55 = vpop.f32.mrf.mxu3 }
 0x19c   : > { %v1443_v56 = vsel %vm1427_vm5, %v1419_v16, %v1435_v45  ;;  %v1395_v59 = vadd.f32 %v1394_v55, %v1354_v61  ;;  %v1315_v43 = vpop.f32.mrf.mxu1 }
 0x19d   : > { %1451 = vst [vmem:[%s2901_s26 + $0x20] sm:$0xff] %v1443_v56  ;;  %v1316_v53 = vadd.f32 %v1315_v43, %v1274_v22 }
 0x19e   : > { %v1408_v33 = vadd.f32 %v1395_v59, %v1148_v14 }
 0x1a0   : > { %v1420_v30 = vadd.f32 %v2894_v37, %v1408_v33 }
 0x1a1   : > { %v1356_v50 = vpop.f32.mrf.mxu2 }
 0x1a2   : > { %v1357_v20 = vadd.f32 %v1356_v50, %v1316_v53  ;;  %vm1428_vm6 = vcmp.ge.f32.partialorder %v1420_v30, 0.0  ;;  %v1436_v38 = vmul.f32 0.2, %v1420_v30  ;;  %v1277_v44 = vpop.f32.mrf.mxu0 }
 0x1a3   : > { %v1397_v2 = vpop.f32.mrf.mxu3 }
 0x1a4   : > { %v1444_v60 = vsel %vm1428_vm6, %v1420_v30, %v1436_v38  ;;  %v1398_v31 = vadd.f32 %v1397_v2, %v1357_v20  ;;  %v1318_v8 = vpop.f32.mrf.mxu1 }
 0x1a5   : > { %1452 = vst [vmem:[%s2901_s26 + $0x28] sm:$0xff] %v1444_v60  ;;  %v1319_v11 = vadd.f32 %v1318_v8, %v1277_v44 }
 0x1a6   : > { %v1409_v21 = vadd.f32 %v1398_v31, %v1149_v19 }
 0x1a8   : > { %v1421_v17 = vadd.f32 %v2894_v37, %v1409_v21 }
 0x1a9   : > { %v1359_v35 = vpop.f32.mrf.mxu2 }
 0x1aa   : > { %v1360_v28 = vadd.f32 %v1359_v35, %v1319_v11  ;;  %vm1429_vm7 = vcmp.ge.f32.partialorder %v1421_v17, 0.0  ;;  %v1437_v18 = vmul.f32 0.2, %v1421_v17 }
 0x1ab   : > { %v1400_v36 = vpop.f32.mrf.mxu3 }
 0x1ac   : > { %v1445_v6 = vsel %vm1429_vm7, %v1421_v17, %v1437_v18  ;;  %v1401_v24 = vadd.f32 %v1400_v36, %v1360_v28 }
 0x1ad   : > { %1453 = vst [vmem:[%s2901_s26 + $0x30] sm:$0xff] %v1445_v6 }
 0x1ae   : > { %v1410_v32 = vadd.f32 %v1401_v24, %v1150_v51 }
 0x1b0   : > { %v1422_v62 = vadd.f32 %v2894_v37, %v1410_v32 }
 0x1b2   : > { %vm1430_vm8 = vcmp.ge.f32.partialorder %v1422_v62, 0.0  ;;  %v1438_v26 = vmul.f32 0.2, %v1422_v62 }
 0x1b4   : > { %v1446_v29 = vsel %vm1430_vm8, %v1422_v62, %v1438_v26 }
 0x1b5   : > { %1454 = vst [vmem:[%s2901_s26 + $0x38] sm:$0xff] %v1446_v29 }
 0x1b6 PF: > { %s13_s14 = sadd.s32 1, %s1600_s14   ;;  %s2989_s12 = smov %s1596_s13 }
 0x1b7   : > { %p10_p5 = scmp.ge.s32.totalorder %s13_s14, 4   ;;  %s2990_s13 = smov %s2992_s15 }
 0x1b9   :  { %12 = sbr.rel (!%p10_p5) target bundleno = 2 (0x2), region = 62 }

// kernel: discriminator_sep.7
= control target key start
LH: loop header
LB: loop body
LE: loop exit
PB: predicated region body
PF: predicated region fallthrough
CT: control target
= control target key end

     0   :  { %s1274_s12 = smov 0   ;;  %s1276_s13 = smov 0   ;;  %s2265_s0 = inlined_call_operand.vmem [shape: f32[2,5,5,512], index: 0, kind: input, shape index: {}]   ;;  %s2266_s1 = inlined_call_operand.vmem [shape: f32[2048,128], index: 1, kind: input, shape index: {}]   ;;  %s2267_s2 = inlined_call_operand.vmem [shape: f32[1,128], index: 2, kind: input, shape index: {}]   ;;  %s2268_s3 = inlined_call_operand.vmem [shape: f32[2,4,4,128], index: 3, kind: output, shape index: {}]  }
   0x1   :  { %s1278_s14 = smov 0  }
   0x2 LB: > { %s25_s15 = sadd.s32 1, %s1248_s13  ;;  %p1177_p0 = scmp.ge.s32.totalorder %s1252_s14, 1  ;;  %s1252_s14 = sphi %s1278_s14, %s13_s14   ;;  %s1248_s13 = sphi %s1276_s13, %s2272_s13   ;;  %s1244_s12 = sphi %s1274_s12, %s2271_s12  }
   0x3   : > { %p27_p1 = scmp.ge.s32.totalorder %s25_s15, 2  ;;  %p151_p2 = scmp.lt.s32.totalorder %s1252_s14, 3 }
   0x5   : > { %s2274_s15 = smov (%p27_p1, %s25_s15), 0  ;;  %p152_p3 = pnand %p1177_p0, %p151_p2 }
   0x6   : > { %p179_p4 = scmp.lt.s32.totalorder (!%p152_p3), %s1244_s12, 1 }
   0x7   : > { %155 = sbr.rel (%p152_p3) target bundleno = 306 (0x132), region = 32 }
   0xc   : > { %v409_v0 = vld [vmem:[%s2266_s1 + $0x378] sm:$0xff]  ;;  %v408_v1 = vld [vmem:[%s2266_s1 + $0x370] sm:$0xff]  ;;  %v407_v5 = vld [vmem:[%s2266_s1 + $0x368] sm:$0xff]  ;;  %s2276_s12 = smov (!%p179_p4, %s1244_s12), 1  ;;  %vm238_vm0 = vcmask 1043456   ;;  %vm327_vm1 = vcmask 1042432  }
   0xd   : > { %v425_v2 = vld [vmem:[%s2266_s1 + $0x3f8] sm:$0xff]  ;;  %503 = vmatpush.msra.mxu2 %v409_v0  ;;  %v424_v6 = vld [vmem:[%s2266_s1 + $0x3f0] sm:$0xff]  ;;  %v423_v9 = vld [vmem:[%s2266_s1 + $0x3e8] sm:$0xff]  ;;  %s1204_s29 = smul.u32 160, %s2276_s12  ;;  %vm328_vm2 = vcmask 1046532   ;;  %s1203_s8 = sshll.u32 %s2276_s12, 4 }
   0xe   : > { %526 = vmatpush.msra.mxu3 %v425_v2  ;;  %v377_v3 = vld [vmem:[%s2266_s1 + $0x278] sm:$0xff]  ;;  %v376_v7 = vld [vmem:[%s2266_s1 + $0x270] sm:$0xff]  ;;  %v375_v10 = vld [vmem:[%s2266_s1 + $0x268] sm:$0xff]  ;;  %s192_s10 = scalar_lea.vmem %s2268_s3, %s1203_s8 }
   0xf   : > { %v393_v4 = vld [vmem:[%s2266_s1 + $0x2f8] sm:$0xff]  ;;  %457 = vmatpush.msra.mxu0 %v377_v3  ;;  %v392_v8 = vld [vmem:[%s2266_s1 + $0x2f0] sm:$0xff]  ;;  %504 = vmatpush.msra.mxu2 %v408_v1  ;;  %v406_v11 = vld [vmem:[%s2266_s1 + $0x360] sm:$0xff]  ;;  %s1526_s30 = scalar_lea.vmem %s2265_s0, %s1204_s29 }
  0x10   : > { %480 = vmatpush.msra.mxu1 %v393_v4  ;;  %527 = vmatpush.msra.mxu3 %v424_v6  ;;  %v391_v12 = vld [vmem:[%s2266_s1 + $0x2e8] sm:$0xff]  ;;  %v422_v13 = vld [vmem:[%s2266_s1 + $0x3e0] sm:$0xff]  ;;  %v405_v16 = vld [vmem:[%s2266_s1 + $0x358] sm:$0xff] }
  0x11   : > { %458 = vmatpush.msra.mxu0 %v376_v7  ;;  %505 = vmatpush.msra.mxu2 %v407_v5  ;;  %v374_v14 = vld [vmem:[%s2266_s1 + $0x260] sm:$0xff]  ;;  %v421_v17 = vld [vmem:[%s2266_s1 + $0x3d8] sm:$0xff]  ;;  %v404_v20 = vld [vmem:[%s2266_s1 + $0x350] sm:$0xff] }
  0x12   : > { %481 = vmatpush.msra.mxu1 %v392_v8  ;;  %528 = vmatpush.msra.mxu3 %v423_v9  ;;  %v390_v15 = vld [vmem:[%s2266_s1 + $0x2e0] sm:$0xff]  ;;  %v373_v18 = vld [vmem:[%s2266_s1 + $0x258] sm:$0xff]  ;;  %v420_v21 = vld [vmem:[%s2266_s1 + $0x3d0] sm:$0xff] }
  0x13   : > { %459 = vmatpush.msra.mxu0 %v375_v10  ;;  %506 = vmatpush.msra.mxu2 %v406_v11  ;;  %v389_v19 = vld [vmem:[%s2266_s1 + $0x2d8] sm:$0xff]  ;;  %v372_v22 = vld [vmem:[%s2266_s1 + $0x250] sm:$0xff]  ;;  %v403_v24 = vld [vmem:[%s2266_s1 + $0x348] sm:$0xff] }
  0x14   : > { %482 = vmatpush.msra.mxu1 %v391_v12  ;;  %529 = vmatpush.msra.mxu3 %v422_v13  ;;  %v388_v23 = vld [vmem:[%s2266_s1 + $0x2d0] sm:$0xff]  ;;  %v419_v25 = vld [vmem:[%s2266_s1 + $0x3c8] sm:$0xff]  ;;  %v402_v28 = vld [vmem:[%s2266_s1 + $0x340] sm:$0xff] }
  0x15   : > { %460 = vmatpush.msra.mxu0 %v374_v14  ;;  %507 = vmatpush.msra.mxu2 %v405_v16  ;;  %v371_v26 = vld [vmem:[%s2266_s1 + $0x248] sm:$0xff]  ;;  %v418_v29 = vld [vmem:[%s2266_s1 + $0x3c0] sm:$0xff]  ;;  %v401_v32 = vld [vmem:[%s2266_s1 + $0x338] sm:$0xff] }
  0x16   : > { %483 = vmatpush.msra.mxu1 %v390_v15  ;;  %530 = vmatpush.msra.mxu3 %v421_v17  ;;  %v387_v27 = vld [vmem:[%s2266_s1 + $0x2c8] sm:$0xff]  ;;  %v370_v30 = vld [vmem:[%s2266_s1 + $0x240] sm:$0xff]  ;;  %v417_v33 = vld [vmem:[%s2266_s1 + $0x3b8] sm:$0xff] }
  0x17   : > { %461 = vmatpush.msra.mxu0 %v373_v18  ;;  %508 = vmatpush.msra.mxu2 %v404_v20  ;;  %v386_v31 = vld [vmem:[%s2266_s1 + $0x2c0] sm:$0xff]  ;;  %v369_v34 = vld [vmem:[%s2266_s1 + $0x238] sm:$0xff]  ;;  %v400_v36 = vld [vmem:[%s2266_s1 + $0x330] sm:$0xff] }
  0x18   : > { %484 = vmatpush.msra.mxu1 %v389_v19  ;;  %531 = vmatpush.msra.mxu3 %v420_v21  ;;  %v385_v35 = vld [vmem:[%s2266_s1 + $0x2b8] sm:$0xff]  ;;  %v416_v37 = vld [vmem:[%s2266_s1 + $0x3b0] sm:$0xff]  ;;  %v399_v40 = vld [vmem:[%s2266_s1 + $0x328] sm:$0xff] }
  0x19   : > { %462 = vmatpush.msra.mxu0 %v372_v22  ;;  %509 = vmatpush.msra.mxu2 %v403_v24  ;;  %v368_v38 = vld [vmem:[%s2266_s1 + $0x230] sm:$0xff]  ;;  %v415_v41 = vld [vmem:[%s2266_s1 + $0x3a8] sm:$0xff]  ;;  %v398_v44 = vld [vmem:[%s2266_s1 + $0x320] sm:$0xff] }
  0x1a   : > { %485 = vmatpush.msra.mxu1 %v388_v23  ;;  %532 = vmatpush.msra.mxu3 %v419_v25  ;;  %v384_v39 = vld [vmem:[%s2266_s1 + $0x2b0] sm:$0xff]  ;;  %v367_v42 = vld [vmem:[%s2266_s1 + $0x228] sm:$0xff]  ;;  %v414_v45 = vld [vmem:[%s2266_s1 + $0x3a0] sm:$0xff] }
  0x1b   : > { %463 = vmatpush.msra.mxu0 %v371_v26  ;;  %510 = vmatpush.msra.mxu2 %v402_v28  ;;  %v383_v43 = vld [vmem:[%s2266_s1 + $0x2a8] sm:$0xff]  ;;  %v366_v46 = vld [vmem:[%s2266_s1 + $0x220] sm:$0xff]  ;;  %v397_v48 = vld [vmem:[%s2266_s1 + $0x318] sm:$0xff] }
  0x1c   : > { %486 = vmatpush.msra.mxu1 %v387_v27  ;;  %533 = vmatpush.msra.mxu3 %v418_v29  ;;  %v382_v47 = vld [vmem:[%s2266_s1 + $0x2a0] sm:$0xff]  ;;  %v413_v49 = vld [vmem:[%s2266_s1 + $0x398] sm:$0xff]  ;;  %v396_v52 = vld [vmem:[%s2266_s1 + $0x310] sm:$0xff] }
  0x1d   : > { %464 = vmatpush.msra.mxu0 %v370_v30  ;;  %511 = vmatpush.msra.mxu2 %v401_v32  ;;  %v365_v50 = vld [vmem:[%s2266_s1 + $0x218] sm:$0xff]  ;;  %v412_v53 = vld [vmem:[%s2266_s1 + $0x390] sm:$0xff]  ;;  %v395_v56 = vld [vmem:[%s2266_s1 + $0x308] sm:$0xff] }
  0x1e   : > { %487 = vmatpush.msra.mxu1 %v386_v31  ;;  %534 = vmatpush.msra.mxu3 %v417_v33  ;;  %v381_v51 = vld [vmem:[%s2266_s1 + $0x298] sm:$0xff]  ;;  %v364_v54 = vld [vmem:[%s2266_s1 + $0x210] sm:$0xff]  ;;  %v411_v57 = vld [vmem:[%s2266_s1 + $0x388] sm:$0xff] }
  0x1f   : > { %465 = vmatpush.msra.mxu0 %v369_v34  ;;  %512 = vmatpush.msra.mxu2 %v400_v36  ;;  %v380_v55 = vld [vmem:[%s2266_s1 + $0x290] sm:$0xff]  ;;  %v363_v58 = vld [vmem:[%s2266_s1 + $0x208] sm:$0xff]  ;;  %v394_v60 = vld [vmem:[%s2266_s1 + $0x300] sm:$0xff] }
  0x20   : > { %488 = vmatpush.msra.mxu1 %v385_v35  ;;  %535 = vmatpush.msra.mxu3 %v416_v37  ;;  %v379_v59 = vld [vmem:[%s2266_s1 + $0x288] sm:$0xff]  ;;  %v410_v61 = vld [vmem:[%s2266_s1 + $0x380] sm:$0xff]  ;;  %v294_v62 = vld [vmem:[%s2266_s1 + $0x178] sm:$0xff] }
  0x21   : > { %466 = vmatpush.msra.mxu0 %v368_v38  ;;  %513 = vmatpush.msra.mxu2 %v399_v40  ;;  %v310_v63 = vld [vmem:[%s2266_s1 + $0x1f8] sm:$0xff]  ;;  %v362_v0 = vld [vmem:[%s2266_s1 + $0x200] sm:$0xff]  ;;  %v293_v2 = vld [vmem:[%s2266_s1 + $0x170] sm:$0xff] }
  0x22   : > { %489 = vmatpush.msra.mxu1 %v384_v39  ;;  %536 = vmatpush.msra.mxu3 %v415_v41  ;;  %v378_v1 = vld [vmem:[%s2266_s1 + $0x280] sm:$0xff]  ;;  %v262_v3 = vld [vmem:[%s2266_s1 + $0x78] sm:$0xff]  ;;  %v292_v5 = vld [vmem:[%s2266_s1 + $0x168] sm:$0xff] }
  0x23   : > { %467 = vmatpush.msra.mxu0 %v367_v42  ;;  %514 = vmatpush.msra.mxu2 %v398_v44  ;;  %v278_v4 = vld [vmem:[%s2266_s1 + $0xf8] sm:$0xff]  ;;  %v309_v6 = vld [vmem:[%s2266_s1 + $0x1f0] sm:$0xff]  ;;  %v291_v9 = vld [vmem:[%s2266_s1 + $0x160] sm:$0xff] }
  0x24   : > { %490 = vmatpush.msra.mxu1 %v383_v43  ;;  %537 = vmatpush.msra.mxu3 %v414_v45  ;;  %v261_v7 = vld [vmem:[%s2266_s1 + $0x70] sm:$0xff]  ;;  %v308_v10 = vld [vmem:[%s2266_s1 + $0x1e8] sm:$0xff]  ;;  %v290_v13 = vld [vmem:[%s2266_s1 + $0x158] sm:$0xff] }
  0x25   : > { %468 = vmatpush.msra.mxu0 %v366_v46  ;;  %515 = vmatpush.msra.mxu2 %v397_v48  ;;  %v277_v8 = vld [vmem:[%s2266_s1 + $0xf0] sm:$0xff]  ;;  %v260_v11 = vld [vmem:[%s2266_s1 + $0x68] sm:$0xff]  ;;  %v307_v14 = vld [vmem:[%s2266_s1 + $0x1e0] sm:$0xff] }
  0x26   : > { %491 = vmatpush.msra.mxu1 %v382_v47  ;;  %538 = vmatpush.msra.mxu3 %v413_v49  ;;  %v276_v12 = vld [vmem:[%s2266_s1 + $0xe8] sm:$0xff]  ;;  %v259_v15 = vld [vmem:[%s2266_s1 + $0x60] sm:$0xff]  ;;  %v196_v16 = vld [vmem:[%s1526_s30 + $0x10] sm:$0x1f] }
  0x27   : > { %469 = vmatpush.msra.mxu0 %v365_v50  ;;  %516 = vmatpush.msra.mxu2 %v396_v52  ;;  %v197_v17 = vld [vmem:[%s1526_s30 + $0x18] sm:$0x1f]  ;;  %v200_v18 = vld [vmem:[%s1526_s30 + $0x30] sm:$0x1f]  ;;  %v275_v20 = vld [vmem:[%s2266_s1 + $0xe0] sm:$0xff] }
  0x28   : > { %492 = vmatpush.msra.mxu1 %v381_v51  ;;  %539 = vmatpush.msra.mxu3 %v412_v53  ;;  %v201_v19 = vld [vmem:[%s1526_s30 + $0x38] sm:$0x1f]  ;;  %v289_v21 = vld [vmem:[%s2266_s1 + $0x150] sm:$0xff]  ;;  %v231_v23 = vrot.slane %v197_v17, 4  ;;  %vm1567_vm3 = vmor %vm327_vm1, %vm328_vm2 }
  0x29   : > { %470 = vmatpush.msra.mxu0 %v364_v54  ;;  %517 = vmatpush.msra.mxu2 %v395_v56  ;;  %v306_v22 = vld [vmem:[%s2266_s1 + $0x1d8] sm:$0xff]  ;;  %v233_v24 = vrot.slane %v201_v19, 4  ;;  %v288_v28 = vld [vmem:[%s2266_s1 + $0x148] sm:$0xff]  ;;  %v194_v32 = vld [vmem:[%s1526_s30] sm:$0x1f] }
  0x2a   : > { %493 = vmatpush.msra.mxu1 %v380_v55  ;;  %540 = vmatpush.msra.mxu3 %v411_v57  ;;  %v258_v25 = vld [vmem:[%s2266_s1 + $0x58] sm:$0xff]  ;;  %v1575_v29 = vsel %vm238_vm0, %v196_v16, %v231_v23  ;;  %v313_v31 = vsel %vm238_vm0, %v231_v23, %v196_v16  ;;  %v195_v33 = vld [vmem:[%s1526_s30 + $0x8] sm:$0x1f]  ;;  %v305_v35 = vld [vmem:[%s2266_s1 + $0x1d0] sm:$0xff] }
  0x2b   : > { %471 = vmatpush.msra.mxu0 %v363_v58  ;;  %518 = vmatpush.msra.mxu2 %v394_v60  ;;  %v274_v26 = vld [vmem:[%s2266_s1 + $0xd8] sm:$0xff]  ;;  %v1578_v30 = vsel %vm238_vm0, %v200_v18, %v233_v24  ;;  %v199_v34 = vld [vmem:[%s1526_s30 + $0x28] sm:$0x1f]  ;;  %v317_v36 = vsel %vm238_vm0, %v233_v24, %v200_v18  ;;  %v1183_v37 = vrot.slane %v1575_v29, 9  ;;  %v1184_v38 = vrot.slane %v313_v31, 9  ;;  %v257_v41 = vld [vmem:[%s2266_s1 + $0x50] sm:$0xff] }
  0x2c   : > { %494 = vmatpush.msra.mxu1 %v379_v59  ;;  %541 = vmatpush.msra.mxu3 %v410_v61  ;;  %v1187_v39 = vrot.slane %v1578_v30, 9  ;;  %v198_v40 = vld [vmem:[%s1526_s30 + $0x20] sm:$0x1f]  ;;  %v273_v42 = vld [vmem:[%s2266_s1 + $0xd0] sm:$0xff]  ;;  %v1188_v44 = vrot.slane %v317_v36, 9  ;;  %v230_v45 = vrot.slane %v195_v33, 4 }
  0x2d   : > { %626 = vmatpush.msrb.mxu2 %v294_v62  ;;  %472 = vmatpush.msra.mxu0 %v362_v0  ;;  %v287_v43 = vld [vmem:[%s2266_s1 + $0x140] sm:$0xff]  ;;  %v232_v46 = vrot.slane %v199_v34, 4  ;;  %v304_v47 = vld [vmem:[%s2266_s1 + $0x1c8] sm:$0xff]  ;;  %v337_v50 = vsel %vm1567_vm3, %v1183_v37, %v1184_v38  ;;  %v286_v51 = vld [vmem:[%s2266_s1 + $0x138] sm:$0xff] }
  0x2e   : > { %649 = vmatpush.msrb.mxu3 %v310_v63  ;;  %495 = vmatpush.msra.mxu1 %v378_v1  ;;  %v256_v48 = vld [vmem:[%s2266_s1 + $0x48] sm:$0xff]  ;;  %v303_v52 = vld [vmem:[%s2266_s1 + $0x1c0] sm:$0xff]  ;;  %v1622_v54 = vsel %vm1567_vm3, %v1187_v39, %v1188_v44  ;;  %430 = vst [vmem:[#allocation1 + $0x10] ss:$2 sm:$0xff] %v337_v50  ;;  %v1625_v55 = vsel %vm238_vm0, %v194_v32, %v230_v45  ;;  %v302_v58 = vld [vmem:[%s2266_s1 + $0x1b8] sm:$0xff] }
  0x2f   : > { %627 = vmatpush.msrb.mxu2 %v293_v2  ;;  %580 = vmatpush.msrb.mxu0 %v262_v3  ;;  %v272_v49 = vld [vmem:[%s2266_s1 + $0xc8] sm:$0xff]  ;;  %v255_v53 = vld [vmem:[%s2266_s1 + $0x40] sm:$0xff]  ;;  %v1628_v56 = vsel %vm238_vm0, %v198_v40, %v232_v46  ;;  %432 = vst [vmem:[#allocation1 + $0x11] ss:$2 sm:$0xff] %v1622_v54  ;;  %v311_v59 = vsel %vm238_vm0, %v230_v45, %v194_v32  ;;  %v1181_v61 = vrot.slane %v1625_v55, 9  ;;  %v285_v63 = vld [vmem:[%s2266_s1 + $0x130] sm:$0xff] }
  0x30   : > { %603 = vmatpush.msrb.mxu1 %v278_v4  ;;  %650 = vmatpush.msrb.mxu3 %v309_v6  ;;  %v271_v57 = vld [vmem:[%s2266_s1 + $0xc0] sm:$0xff]  ;;  %v315_v60 = vsel %vm238_vm0, %v232_v46, %v198_v40  ;;  %v1185_v62 = vrot.slane %v1628_v56, 9  ;;  %v254_v0 = vld [vmem:[%s2266_s1 + $0x38] sm:$0xff]  ;;  %v1182_v1 = vrot.slane %v311_v59, 9  ;;  %v204_v3 = vld [vmem:[%s1526_s30 + $0x50] sm:$0x1f] }
  0x31   : > { %628 = vmatpush.msrb.mxu2 %v292_v5  ;;  %581 = vmatpush.msrb.mxu0 %v261_v7  ;;  %v1186_v2 = vrot.slane %v315_v60, 9  ;;  %v205_v4 = vld [vmem:[%s1526_s30 + $0x58] sm:$0x1f]  ;;  %v208_v6 = vld [vmem:[%s1526_s30 + $0x70] sm:$0x1f]  ;;  %v252_v31 = vld [vmem:[%s2266_s1 + $0x28] sm:$0xff] }
  0x32   : > { %604 = vmatpush.msrb.mxu1 %v277_v8  ;;  %651 = vmatpush.msrb.mxu3 %v308_v10  ;;  %v270_v5 = vld [vmem:[%s2266_s1 + $0xb8] sm:$0xff]  ;;  %v235_v8 = vrot.slane %v205_v4, 4  ;;  %v301_v10 = vld [vmem:[%s2266_s1 + $0x1b0] sm:$0xff]  ;;  %v203_v19 = vld [vmem:[%s1526_s30 + $0x48] sm:$0x1f] }
  0x33   : > { %629 = vmatpush.msrb.mxu2 %v291_v9  ;;  %582 = vmatpush.msrb.mxu0 %v260_v11  ;;  %v209_v7 = vld [vmem:[%s1526_s30 + $0x78] sm:$0x1f]  ;;  %v284_v9 = vld [vmem:[%s2266_s1 + $0x128] sm:$0xff]  ;;  %v253_v11 = vld [vmem:[%s2266_s1 + $0x30] sm:$0xff]  ;;  %v234_v34 = vrot.slane %v203_v19, 4 }
  0x34   : > { %605 = vmatpush.msrb.mxu1 %v276_v12  ;;  %652 = vmatpush.msrb.mxu3 %v307_v14  ;;  %v333_v12 = vsel %vm1567_vm3, %v1181_v61, %v1182_v1  ;;  %v237_v14 = vrot.slane %v209_v7, 4  ;;  %v269_v16 = vld [vmem:[%s2266_s1 + $0xb0] sm:$0xff]  ;;  %v1674_v17 = vsel %vm238_vm0, %v204_v3, %v235_v8  ;;  %v321_v18 = vsel %vm238_vm0, %v235_v8, %v204_v3  ;;  %v268_v39 = vld [vmem:[%s2266_s1 + $0xa8] sm:$0xff]  ;;  %v250_v60 = vld [vmem:[%s2266_s1 + $0x18] sm:$0xff] }
  0x35   : > { %630 = vmatpush.msrb.mxu2 %v290_v13  ;;  %583 = vmatpush.msrb.mxu0 %v259_v15  ;;  %v1667_v13 = vsel %vm1567_vm3, %v1185_v62, %v1186_v2  ;;  %v202_v15 = vld [vmem:[%s1526_s30 + $0x40] sm:$0x1f]  ;;  %426 = vst [vmem:[#allocation1] ss:$2 sm:$0xff] %v333_v12  ;;  %v1191_v24 = vrot.slane %v1674_v17, 9  ;;  %v266_v62 = vld [vmem:[%s2266_s1 + $0x98] sm:$0xff] }
  0x36   : > { %606 = vmatpush.msrb.mxu1 %v275_v20  ;;  %653 = vmatpush.msrb.mxu3 %v306_v22  ;;  %v206_v20 = vld [vmem:[%s1526_s30 + $0x60] sm:$0x1f]  ;;  %428 = vst [vmem:[#allocation1 + $0x1] ss:$2 sm:$0xff] %v1667_v13  ;;  %v1684_v22 = vsel %vm238_vm0, %v208_v6, %v237_v14  ;;  %v325_v23 = vsel %vm238_vm0, %v237_v14, %v208_v6  ;;  %v265_v1 = vld [vmem:[%s2266_s1 + $0x90] sm:$0xff]  ;;  %v296_v3 = vld [vmem:[%s2266_s1 + $0x188] sm:$0xff] }
  0x37   : > { %631 = vmatpush.msrb.mxu2 %v289_v21  ;;  %584 = vmatpush.msrb.mxu0 %v258_v25  ;;  %v283_v21 = vld [vmem:[%s2266_s1 + $0x120] sm:$0xff]  ;;  %v1192_v25 = vrot.slane %v321_v18, 9  ;;  %v1195_v32 = vrot.slane %v1684_v22, 9  ;;  %v1196_v33 = vrot.slane %v325_v23, 9  ;;  %v319_v44 = vsel %vm238_vm0, %v234_v34, %v202_v15  ;;  %v727_v4 = vld [vmem:[%s2266_s1 + $0x578] sm:$0xff]  ;;  %v264_v6 = vld [vmem:[%s2266_s1 + $0x88] sm:$0xff] }
  0x38   : > { %607 = vmatpush.msrb.mxu1 %v274_v26  ;;  %654 = vmatpush.msrb.mxu3 %v305_v35  ;;  %v207_v26 = vld [vmem:[%s1526_s30 + $0x68] sm:$0x1f]  ;;  %v443_v36 = vld.sshfl [vmem:[#allocation1 + $0x10] sm:$0xff pattern:$0x75316420]  ;;  %v279_v2 = vld [vmem:[%s2266_s1 + $0x100] sm:$0xff] }
  0x39   : > { %632 = vmatpush.msrb.mxu2 %v288_v28  ;;  %585 = vmatpush.msrb.mxu0 %v257_v41  ;;  %v300_v28 = vld [vmem:[%s2266_s1 + $0x1a8] sm:$0xff]  ;;  %v236_v35 = vrot.slane %v207_v26, 4  ;;  %v444_v37 = vld.sshfl [vmem:[#allocation1 + $0x18] sm:$0xff pattern:$0x75316420]  ;;  %v1698_v38 = vsel %vm1567_vm3, %v1191_v24, %v1192_v25  ;;  %v1706_v40 = vsel %vm1567_vm3, %v1195_v32, %v1196_v33  ;;  %v1709_v41 = vsel %vm238_vm0, %v202_v15, %v234_v34  ;;  %v247_v15 = vld [vmem:[%s2266_s1] sm:$0xff] }
  0x3a   : > { %608 = vmatpush.msrb.mxu1 %v273_v42  ;;  %655 = vmatpush.msrb.mxu3 %v304_v47  ;;  %553 = vst [vmem:[#allocation1 + $0x10] ss:$2 sm:$0xff] %v1575_v29  ;;  %v299_v29 = vld [vmem:[%s2266_s1 + $0x1a0] sm:$0xff]  ;;  %v1189_v46 = vrot.slane %v1709_v41, 9  ;;  %v743_v14 = vld [vmem:[%s2266_s1 + $0x5f8] sm:$0xff]  ;;  %v742_v23 = vld [vmem:[%s2266_s1 + $0x5f0] sm:$0xff] }
  0x3b   : > { %633 = vmatpush.msrb.mxu2 %v287_v43  ;;  %586 = vmatpush.msrb.mxu0 %v256_v48  ;;  %v1712_v42 = vsel %vm238_vm0, %v206_v20, %v236_v35  ;;  %v282_v43 = vld [vmem:[%s2266_s1 + $0x118] sm:$0xff]  ;;  %555 = vst [vmem:[#allocation1 + $0x11] ss:$2 sm:$0xff] %v1578_v30  ;;  %v323_v45 = vsel %vm238_vm0, %v236_v35, %v206_v20  ;;  %v251_v48 = vld [vmem:[%s2266_s1 + $0x20] sm:$0xff]  ;;  %v725_v20 = vld [vmem:[%s2266_s1 + $0x568] sm:$0xff] }
  0x3c   : > { %609 = vmatpush.msrb.mxu1 %v272_v49  ;;  %656 = vmatpush.msrb.mxu3 %v303_v52  ;;  %v1193_v47 = vrot.slane %v1712_v42, 9  ;;  %438 = vst [vmem:[#allocation1 + $0x30] ss:$2 sm:$0xff] %v1698_v38  ;;  %v1190_v49 = vrot.slane %v319_v44, 9  ;;  %v1194_v50 = vrot.slane %v323_v45, 9  ;;  %v281_v52 = vld [vmem:[%s2266_s1 + $0x110] sm:$0xff] }
  0x3d   : > { %634 = vmatpush.msrb.mxu2 %v286_v51  ;;  %587 = vmatpush.msrb.mxu0 %v255_v53  ;;  %v267_v51 = vld [vmem:[%s2266_s1 + $0xa0] sm:$0xff]  ;;  %v298_v53 = vld [vmem:[%s2266_s1 + $0x198] sm:$0xff]  ;;  %440 = vst [vmem:[#allocation1 + $0x31] ss:$2 sm:$0xff] %v1706_v40  ;;  %v710_v26 = vld [vmem:[%s2266_s1 + $0x4f0] sm:$0xff] }
  0x3e   : > { %610 = vmatpush.msrb.mxu1 %v271_v57  ;;  %657 = vmatpush.msrb.mxu3 %v302_v58  ;;  %v441_v57 = vld.sshfl [vmem:[#allocation1] sm:$0xff pattern:$0x75316420]  ;;  %v442_v58 = vld.sshfl [vmem:[#allocation1 + $0x8] sm:$0xff pattern:$0x75316420]  ;;  %v1741_v59 = vsel %vm1567_vm3, %v1189_v46, %v1190_v49  ;;  %v1749_v61 = vsel %vm1567_vm3, %v1193_v47, %v1194_v50 }
  0x3f   : > { %635 = vmatpush.msrb.mxu2 %v285_v63  ;;  %588 = vmatpush.msrb.mxu0 %v254_v0  ;;  %549 = vst [vmem:[#allocation1] ss:$2 sm:$0xff] %v1625_v55  ;;  %v280_v55 = vld [vmem:[%s2266_s1 + $0x108] sm:$0xff]  ;;  %v297_v63 = vld [vmem:[%s2266_s1 + $0x190] sm:$0xff]  ;;  %v695_v18 = vld [vmem:[%s2266_s1 + $0x478] sm:$0xff] }
  0x40   : > { %611 = vmatpush.msrb.mxu1 %v270_v5  ;;  %658 = vmatpush.msrb.mxu3 %v301_v10  ;;  %551 = vst [vmem:[#allocation1 + $0x1] ss:$2 sm:$0xff] %v1628_v56  ;;  %v249_v0 = vld [vmem:[%s2266_s1 + $0x10] sm:$0xff]  ;;  %v248_v5 = vld [vmem:[%s2266_s1 + $0x8] sm:$0xff]  ;;  %v711_v19 = vld [vmem:[%s2266_s1 + $0x4f8] sm:$0xff] }
  0x41   : > { %636 = vmatpush.msrb.mxu2 %v284_v9  ;;  %589 = vmatpush.msrb.mxu0 %v253_v11  ;;  %434 = vst [vmem:[#allocation1 + $0x20] ss:$2 sm:$0xff] %v1741_v59  ;;  %v295_v9 = vld [vmem:[%s2266_s1 + $0x180] sm:$0xff]  ;;  %v726_v11 = vld [vmem:[%s2266_s1 + $0x570] sm:$0xff]  ;;  %v693_v32 = vld [vmem:[%s2266_s1 + $0x468] sm:$0xff] }
  0x42   : > { %612 = vmatpush.msrb.mxu1 %v269_v16  ;;  %659 = vmatpush.msrb.mxu3 %v300_v28  ;;  %436 = vst [vmem:[#allocation1 + $0x21] ss:$2 sm:$0xff] %v1749_v61  ;;  %v566_v10 = vld.sshfl [vmem:[#allocation1 + $0x10] sm:$0xff pattern:$0x75316420]  ;;  %v263_v16 = vld [vmem:[%s2266_s1 + $0x80] sm:$0xff] }
  0x43   : > { %637 = vmatpush.msrb.mxu2 %v283_v21  ;;  %590 = vmatpush.msrb.mxu0 %v252_v31  ;;  %v1792_v12 = vld.sshfl [vmem:[#allocation1 + $0x18] sm:$0xff pattern:$0x75316420]  ;;  %v724_v28 = vld [vmem:[%s2266_s1 + $0x560] sm:$0xff]  ;;  %v741_v31 = vld [vmem:[%s2266_s1 + $0x5e8] sm:$0xff] }
  0x44   : > { %519 = vmatmul.f32.vlgmr.msra.gmra.mxu2 %v443_v36  ;;  %613 = vmatpush.msrb.mxu1 %v268_v39  ;;  %v447_v7 = vld.sshfl [vmem:[#allocation1 + $0x30] sm:$0xff pattern:$0x75316420]  ;;  %v448_v8 = vld.sshfl [vmem:[#allocation1 + $0x38] sm:$0xff pattern:$0x75316420] }
  0x45   : > { %638 = vmatpush.msrb.mxu2 %v282_v43  ;;  %660 = vmatpush.msrb.mxu3 %v299_v29  ;;  %561 = vst [vmem:[#allocation1 + $0x30] ss:$2 sm:$0xff] %v1674_v17  ;;  %v709_v33 = vld [vmem:[%s2266_s1 + $0x4e8] sm:$0xff]  ;;  %v740_v34 = vld [vmem:[%s2266_s1 + $0x5e0] sm:$0xff]  ;;  %v212_v36 = vld [vmem:[%s1526_s30 + $0x90] sm:$0x1f] }
  0x46   : > { %473 = vmatmul.f32.vlgmr.msra.gmra.mxu0 %v441_v57  ;;  %542 = vmatmul.f32.vlgmr.msra.gmra.mxu3 %v444_v37  ;;  %563 = vst [vmem:[#allocation1 + $0x31] ss:$2 sm:$0xff] %v1684_v22  ;;  %v692_v37 = vld [vmem:[%s2266_s1 + $0x460] sm:$0xff]  ;;  %v213_v39 = vld [vmem:[%s1526_s30 + $0x98] sm:$0x1f]  ;;  %v722_v29 = vld [vmem:[%s2266_s1 + $0x550] sm:$0xff] }
  0x47   : > { %591 = vmatpush.msrb.mxu0 %v251_v48  ;;  %614 = vmatpush.msrb.mxu1 %v267_v51  ;;  %748 = vst [vmem:[#allocation1 + $0x10] ss:$2 sm:$0xff] %v1578_v30  ;;  %v564_v24 = vld.sshfl [vmem:[#allocation1] sm:$0xff pattern:$0x75316420]  ;;  %v739_v44 = vld [vmem:[%s2266_s1 + $0x5d8] sm:$0xff] }
  0x48   : > { %639 = vmatpush.msrb.mxu2 %v281_v52  ;;  %661 = vmatpush.msrb.mxu3 %v298_v53  ;;  %750 = vst [vmem:[#allocation1 + $0x11] ss:$2 sm:$0xff] %v1674_v17  ;;  %v694_v17 = vld [vmem:[%s2266_s1 + $0x470] sm:$0xff]  ;;  %v565_v25 = vld.sshfl [vmem:[#allocation1 + $0x8] sm:$0xff pattern:$0x75316420] }
  0x49   : > { %496 = vmatmul.f32.vlgmr.msra.gmra.mxu1 %v442_v58  ;;  %592 = vmatpush.msrb.mxu0 %v250_v60  ;;  %v445_v21 = vld.sshfl [vmem:[#allocation1 + $0x20] sm:$0xff pattern:$0x75316420]  ;;  %v446_v30 = vld.sshfl [vmem:[#allocation1 + $0x28] sm:$0xff pattern:$0x75316420] }
  0x4a   : > { %615 = vmatpush.msrb.mxu1 %v266_v62  ;;  %640 = vmatpush.msrb.mxu2 %v280_v55  ;;  %557 = vst [vmem:[#allocation1 + $0x20] ss:$2 sm:$0xff] %v1709_v41  ;;  %v708_v43 = vld [vmem:[%s2266_s1 + $0x4e0] sm:$0xff]  ;;  %v677_v45 = vrot.slane %v213_v39, 4  ;;  %v691_v46 = vld [vmem:[%s2266_s1 + $0x458] sm:$0xff]  ;;  %v721_v49 = vld [vmem:[%s2266_s1 + $0x548] sm:$0xff] }
  0x4b   : > { %662 = vmatpush.msrb.mxu3 %v297_v63  ;;  %593 = vmatpush.msrb.mxu0 %v249_v0  ;;  %559 = vst [vmem:[#allocation1 + $0x21] ss:$2 sm:$0xff] %v1712_v42  ;;  %v707_v47 = vld [vmem:[%s2266_s1 + $0x4d8] sm:$0xff]  ;;  %v210_v50 = vld [vmem:[%s1526_s30 + $0x80] sm:$0x1f]  ;;  %v738_v57 = vld [vmem:[%s2266_s1 + $0x5d0] sm:$0xff] }
  0x4c   : > { %616 = vmatpush.msrb.mxu1 %v265_v1  ;;  %641 = vmatpush.msrb.mxu2 %v279_v2  ;;  %744 = vst [vmem:[#allocation1] ss:$2 sm:$0xff] %v1628_v56  ;;  %v723_v56 = vld [vmem:[%s2266_s1 + $0x558] sm:$0xff]  ;;  %v211_v51 = vld [vmem:[%s1526_s30 + $0x88] sm:$0x1f]  ;;  %v690_v58 = vld [vmem:[%s2266_s1 + $0x450] sm:$0xff] }
  0x4d   : > { %663 = vmatpush.msrb.mxu3 %v296_v3  ;;  %522 = vmatmul.f32.gmra.mxu2 %v447_v7  ;;  %746 = vst [vmem:[#allocation1 + $0x1] ss:$2 sm:$0xff] %v1709_v41  ;;  %v1845_v35 = vld.sshfl [vmem:[#allocation1 + $0x30] sm:$0xff pattern:$0x75316420]  ;;  %v676_v53 = vrot.slane %v211_v51, 4  ;;  %v871_v3 = vsel %vm238_vm0, %v677_v45, %v212_v36 }
  0x4e   : > { %821 = vmatpush.msra.mxu2 %v727_v4  ;;  %594 = vmatpush.msrb.mxu0 %v248_v5  ;;  %v1852_v41 = vld.sshfl [vmem:[#allocation1 + $0x38] sm:$0xff pattern:$0x75316420]  ;;  %v706_v60 = vld [vmem:[%s2266_s1 + $0x4d0] sm:$0xff]  ;;  %v720_v62 = vld [vmem:[%s2266_s1 + $0x540] sm:$0xff] }
  0x4f   : > { %617 = vmatpush.msrb.mxu1 %v264_v6  ;;  %664 = vmatpush.msrb.mxu3 %v295_v9  ;;  %756 = vst [vmem:[#allocation1 + $0x30] ss:$2 sm:$0xff] %v1684_v22  ;;  %v1877_v22 = vsel %vm238_vm0, %v212_v36, %v677_v45  ;;  %v737_v55 = vld [vmem:[%s2266_s1 + $0x5c8] sm:$0xff]  ;;  %v1904_v0 = vsel %vm238_vm0, %v210_v50, %v676_v53  ;;  %v719_v1 = vld [vmem:[%s2266_s1 + $0x538] sm:$0xff]  ;;  %v736_v2 = vld [vmem:[%s2266_s1 + $0x5c0] sm:$0xff] }
  0x50   : > { %545 = vmatmul.f32.gmra.mxu3 %v448_v8  ;;  %822 = vmatpush.msra.mxu2 %v726_v11  ;;  %758 = vst [vmem:[#allocation1 + $0x31] ss:$2 sm:$0xff] %v1877_v22  ;;  %v689_v63 = vld [vmem:[%s2266_s1 + $0x448] sm:$0xff]  ;;  %v1917_v4 = vld.sshfl [vmem:[#allocation1 + $0x10] sm:$0xff pattern:$0x75316420] }
  0x51   : > { %476 = vmatmul.f32.gmra.mxu0 %v445_v21  ;;  %844 = vmatpush.msra.mxu3 %v743_v14  ;;  %v1919_v5 = vld.sshfl [vmem:[#allocation1 + $0x18] sm:$0xff pattern:$0x75316420]  ;;  %v688_v6 = vld [vmem:[%s2266_s1 + $0x440] sm:$0xff]  ;;  %v718_v8 = vld [vmem:[%s2266_s1 + $0x530] sm:$0xff]  ;;  %v1199_v11 = vrot.slane %v1877_v22, 9  ;;  %v869_v14 = vsel %vm238_vm0, %v676_v53, %v210_v50 }
  0x52   : > { %595 = vmatpush.msrb.mxu0 %v247_v15  ;;  %618 = vmatpush.msrb.mxu1 %v263_v16  ;;  %v1870_v48 = vld.sshfl [vmem:[#allocation1 + $0x20] sm:$0xff pattern:$0x75316420]  ;;  %v1882_v52 = vld.sshfl [vmem:[#allocation1 + $0x28] sm:$0xff pattern:$0x75316420] }
  0x53   : > { %499 = vmatmul.f32.gmra.mxu1 %v446_v30  ;;  %823 = vmatpush.msra.mxu2 %v725_v20  ;;  %752 = vst [vmem:[#allocation1 + $0x20] ss:$2 sm:$0xff] %v1712_v42  ;;  %v705_v42 = vld [vmem:[%s2266_s1 + $0x4c8] sm:$0xff]  ;;  %v704_v7 = vld [vmem:[%s2266_s1 + $0x4c0] sm:$0xff]  ;;  %v735_v9 = vld [vmem:[%s2266_s1 + $0x5b8] sm:$0xff]  ;;  %v1197_v20 = vrot.slane %v1904_v0, 9 }
  0x54   : > { %775 = vmatpush.msra.mxu0 %v695_v18  ;;  %798 = vmatpush.msra.mxu1 %v711_v19  ;;  %754 = vst [vmem:[#allocation1 + $0x21] ss:$2 sm:$0xff] %v1904_v0  ;;  %v1942_v15 = vld.sshfl [vmem:[#allocation1 + $0x8] sm:$0xff pattern:$0x75316420]  ;;  %v703_v16 = vld [vmem:[%s2266_s1 + $0x4b8] sm:$0xff] }
  0x55   : > { %845 = vmatpush.msra.mxu3 %v742_v23  ;;  %824 = vmatpush.msra.mxu2 %v724_v28  ;;  %949 = vst [vmem:[#allocation1 + $0x10] ss:$2 sm:$0xff] %v1622_v54  ;;  %v1940_v54 = vld.sshfl [vmem:[#allocation1] sm:$0xff pattern:$0x75316420]  ;;  %v717_v18 = vld [vmem:[%s2266_s1 + $0x528] sm:$0xff] }
  0x56   : > { %776 = vmatpush.msra.mxu0 %v694_v17  ;;  %799 = vmatpush.msra.mxu1 %v710_v26  ;;  %951 = vst [vmem:[#allocation1 + $0x11] ss:$2 sm:$0xff] %v1698_v38  ;;  %v734_v38 = vld [vmem:[%s2266_s1 + $0x5b0] sm:$0xff]  ;;  %v1198_v21 = vrot.slane %v869_v14, 9  ;;  %v716_v30 = vld [vmem:[%s2266_s1 + $0x520] sm:$0xff]  ;;  %v733_v23 = vld [vmem:[%s2266_s1 + $0x5a8] sm:$0xff] }
  0x57   : > { %846 = vmatpush.msra.mxu3 %v741_v31  ;;  %642 = vmatmul.f32.vlgmr.msrb.gmra.mxu2 %v566_v10  ;;  %v687_v10 = vld [vmem:[%s2266_s1 + $0x438] sm:$0xff]  ;;  %945 = vst [vmem:[#allocation1] ss:$2 sm:$0xff] %v1667_v13  ;;  %v686_v19 = vld [vmem:[%s2266_s1 + $0x430] sm:$0xff]  ;;  %v701_v26 = vld [vmem:[%s2266_s1 + $0x4a8] sm:$0xff] }
  0x58   : > { %777 = vmatpush.msra.mxu0 %v693_v32  ;;  %800 = vmatpush.msra.mxu1 %v709_v33  ;;  %947 = vst [vmem:[#allocation1 + $0x1] ss:$2 sm:$0xff] %v1741_v59  ;;  %v702_v13 = vld [vmem:[%s2266_s1 + $0x4b0] sm:$0xff]  ;;  %v1972_v17 = vld.sshfl [vmem:[#allocation1 + $0x38] sm:$0xff pattern:$0x75316420]  ;;  %v876_v33 = vsel %vm1567_vm3, %v1197_v20, %v1198_v21 }
  0x59   : > { %825 = vmatpush.msra.mxu2 %v723_v56  ;;  %847 = vmatpush.msra.mxu3 %v740_v34  ;;  %v1970_v59 = vld.sshfl [vmem:[#allocation1 + $0x30] sm:$0xff pattern:$0x75316420]  ;;  %v715_v28 = vld [vmem:[%s2266_s1 + $0x518] sm:$0xff]  ;;  %v732_v31 = vld [vmem:[%s2266_s1 + $0x5a0] sm:$0xff] }
  0x5a   : > { %596 = vmatmul.f32.vlgmr.msrb.gmra.mxu0 %v564_v24  ;;  %665 = vmatmul.f32.vlgmr.msrb.gmra.mxu3 %v1792_v12  ;;  %v1200_v12 = vrot.slane %v871_v3, 9  ;;  %957 = vst [vmem:[#allocation1 + $0x30] ss:$2 sm:$0xff] %v1706_v40  ;;  %v684_v32 = vld [vmem:[%s2266_s1 + $0x420] sm:$0xff]  ;;  %v714_v36 = vld [vmem:[%s2266_s1 + $0x510] sm:$0xff]  ;;  %v731_v27 = vld [vmem:[%s2266_s1 + $0x598] sm:$0xff] }
  0x5b   : > { %778 = vmatpush.msra.mxu0 %v692_v37  ;;  %801 = vmatpush.msra.mxu1 %v708_v43  ;;  %v1993_v40 = vld.sshfl [vmem:[#allocation1 + $0x20] sm:$0xff pattern:$0x75316420]  ;;  %v1995_v56 = vld.sshfl [vmem:[#allocation1 + $0x28] sm:$0xff pattern:$0x75316420] }
  0x5c   : > { %826 = vmatpush.msra.mxu2 %v722_v29  ;;  %848 = vmatpush.msra.mxu3 %v739_v44  ;;  %v880_v24 = vsel %vm1567_vm3, %v1199_v11, %v1200_v12  ;;  %v700_v34 = vld [vmem:[%s2266_s1 + $0x4a0] sm:$0xff]  ;;  %953 = vst [vmem:[#allocation1 + $0x20] ss:$2 sm:$0xff] %v1749_v61  ;;  %v699_v61 = vld [vmem:[%s2266_s1 + $0x498] sm:$0xff]  ;;  %v713_v37 = vld [vmem:[%s2266_s1 + $0x508] sm:$0xff] }
  0x5d   : > { %619 = vmatmul.f32.vlgmr.msrb.gmra.mxu1 %v565_v25  ;;  %779 = vmatpush.msra.mxu0 %v691_v46  ;;  %v685_v25 = vld [vmem:[%s2266_s1 + $0x428] sm:$0xff]  ;;  %959 = vst [vmem:[#allocation1 + $0x31] ss:$2 sm:$0xff] %v880_v24  ;;  %v730_v39 = vld [vmem:[%s2266_s1 + $0x590] sm:$0xff]  ;;  %v712_v29 = vld [vmem:[%s2266_s1 + $0x500] sm:$0xff] }
  0x5e   : > { %802 = vmatpush.msra.mxu1 %v707_v47  ;;  %827 = vmatpush.msra.mxu2 %v721_v49  ;;  %955 = vst [vmem:[#allocation1 + $0x21] ss:$2 sm:$0xff] %v876_v33  ;;  %v698_v43 = vld [vmem:[%s2266_s1 + $0x490] sm:$0xff]  ;;  %v729_v44 = vld [vmem:[%s2266_s1 + $0x588] sm:$0xff]  ;;  %v928_v45 = vld [vmem:[%s2266_s1 + $0x778] sm:$0xff] }
  0x5f   : > { %849 = vmatpush.msra.mxu3 %v738_v57  ;;  %780 = vmatpush.msra.mxu0 %v690_v58  ;;  %v681_v46 = vld [vmem:[%s2266_s1 + $0x408] sm:$0xff]  ;;  %v927_v49 = vld [vmem:[%s2266_s1 + $0x770] sm:$0xff]  ;;  %v944_v22 = vld [vmem:[%s2266_s1 + $0x7f8] sm:$0xff] }
  0x60   : > { %803 = vmatpush.msra.mxu1 %v706_v60  ;;  %828 = vmatpush.msra.mxu2 %v720_v62  ;;  %v697_v47 = vld [vmem:[%s2266_s1 + $0x488] sm:$0xff]  ;;  %v680_v50 = vld [vmem:[%s2266_s1 + $0x400] sm:$0xff]  ;;  %v912_v53 = vld [vmem:[%s2266_s1 + $0x6f8] sm:$0xff] }
  0x61   : > { %850 = vmatpush.msra.mxu3 %v737_v55  ;;  %781 = vmatpush.msra.mxu0 %v689_v63  ;;  %v696_v51 = vld [vmem:[%s2266_s1 + $0x480] sm:$0xff]  ;;  %v926_v57 = vld [vmem:[%s2266_s1 + $0x768] sm:$0xff]  ;;  %v943_v58 = vld [vmem:[%s2266_s1 + $0x7f0] sm:$0xff] }
  0x62   : > { %804 = vmatpush.msra.mxu1 %v705_v42  ;;  %829 = vmatpush.msra.mxu2 %v719_v1  ;;  %v895_v60 = vld [vmem:[%s2266_s1 + $0x670] sm:$0xff]  ;;  %v925_v55 = vld [vmem:[%s2266_s1 + $0x760] sm:$0xff]  ;;  %v942_v63 = vld [vmem:[%s2266_s1 + $0x7e8] sm:$0xff] }
  0x63   : > { %851 = vmatpush.msra.mxu3 %v736_v2  ;;  %782 = vmatpush.msra.mxu0 %v688_v6  ;;  %v911_v62 = vld [vmem:[%s2266_s1 + $0x6f0] sm:$0xff]  ;;  %v894_v0 = vld [vmem:[%s2266_s1 + $0x668] sm:$0xff]  ;;  %v924_v1 = vld [vmem:[%s2266_s1 + $0x758] sm:$0xff] }
  0x64   : > { %805 = vmatpush.msra.mxu1 %v704_v7  ;;  %830 = vmatpush.msra.mxu2 %v718_v8  ;;  %v910_v42 = vld [vmem:[%s2266_s1 + $0x6e8] sm:$0xff]  ;;  %v941_v2 = vld [vmem:[%s2266_s1 + $0x7e0] sm:$0xff]  ;;  %v940_v6 = vld [vmem:[%s2266_s1 + $0x7d8] sm:$0xff] }
  0x65   : > { %852 = vmatpush.msra.mxu3 %v735_v9  ;;  %783 = vmatpush.msra.mxu0 %v687_v10  ;;  %v893_v3 = vld [vmem:[%s2266_s1 + $0x660] sm:$0xff]  ;;  %v892_v7 = vld [vmem:[%s2266_s1 + $0x658] sm:$0xff]  ;;  %v922_v9 = vld [vmem:[%s2266_s1 + $0x748] sm:$0xff] }
  0x66   : > { %806 = vmatpush.msra.mxu1 %v703_v16  ;;  %831 = vmatpush.msra.mxu2 %v717_v18  ;;  %v908_v8 = vld [vmem:[%s2266_s1 + $0x6d8] sm:$0xff]  ;;  %v939_v10 = vld [vmem:[%s2266_s1 + $0x7d0] sm:$0xff]  ;;  %v921_v14 = vld [vmem:[%s2266_s1 + $0x740] sm:$0xff] }
  0x67   : > { %853 = vmatpush.msra.mxu3 %v734_v38  ;;  %784 = vmatpush.msra.mxu0 %v686_v19  ;;  %v891_v11 = vld [vmem:[%s2266_s1 + $0x650] sm:$0xff]  ;;  %v906_v16 = vld [vmem:[%s2266_s1 + $0x6c8] sm:$0xff]  ;;  %v920_v18 = vld [vmem:[%s2266_s1 + $0x738] sm:$0xff] }
  0x68   : > { %807 = vmatpush.msra.mxu1 %v702_v13  ;;  %832 = vmatpush.msra.mxu2 %v716_v30  ;;  %v907_v12 = vld [vmem:[%s2266_s1 + $0x6d0] sm:$0xff]  ;;  %v937_v38 = vld [vmem:[%s2266_s1 + $0x7c0] sm:$0xff]  ;;  %v936_v13 = vld [vmem:[%s2266_s1 + $0x7b8] sm:$0xff] }
  0x69   : > { %854 = vmatpush.msra.mxu3 %v733_v23  ;;  %645 = vmatmul.f32.gmra.mxu2 %v1845_v35  ;;  %v683_v35 = vld [vmem:[%s2266_s1 + $0x418] sm:$0xff]  ;;  %v889_v19 = vld [vmem:[%s2266_s1 + $0x640] sm:$0xff]  ;;  %v919_v21 = vld [vmem:[%s2266_s1 + $0x730] sm:$0xff] }
  0x6a   : > { %785 = vmatpush.msra.mxu0 %v685_v25  ;;  %808 = vmatpush.msra.mxu1 %v701_v26  ;;  %v905_v20 = vld [vmem:[%s2266_s1 + $0x6c0] sm:$0xff]  ;;  %v888_v30 = vld [vmem:[%s2266_s1 + $0x638] sm:$0xff]  ;;  %v918_v24 = vld [vmem:[%s2266_s1 + $0x728] sm:$0xff] }
  0x6b   : > { %833 = vmatpush.msra.mxu2 %v715_v28  ;;  %855 = vmatpush.msra.mxu3 %v732_v31  ;;  %v904_v23 = vld [vmem:[%s2266_s1 + $0x6b8] sm:$0xff]  ;;  %v903_v25 = vld [vmem:[%s2266_s1 + $0x6b0] sm:$0xff]  ;;  %v917_v26 = vld [vmem:[%s2266_s1 + $0x720] sm:$0xff] }
  0x6c   : > { %668 = vmatmul.f32.gmra.mxu3 %v1852_v41  ;;  %786 = vmatpush.msra.mxu0 %v684_v32  ;;  %v682_v41 = vld [vmem:[%s2266_s1 + $0x410] sm:$0xff]  ;;  %v934_v28 = vld [vmem:[%s2266_s1 + $0x7a8] sm:$0xff]  ;;  %v916_v33 = vld [vmem:[%s2266_s1 + $0x718] sm:$0xff] }
  0x6d   : > { %809 = vmatpush.msra.mxu1 %v700_v34  ;;  %834 = vmatpush.msra.mxu2 %v714_v36  ;;  %v886_v31 = vld [vmem:[%s2266_s1 + $0x628] sm:$0xff]  ;;  %v901_v34 = vld [vmem:[%s2266_s1 + $0x6a0] sm:$0xff]  ;;  %v915_v36 = vld [vmem:[%s2266_s1 + $0x710] sm:$0xff] }
  0x6e   : > { %856 = vmatpush.msra.mxu3 %v731_v27  ;;  %599 = vmatmul.f32.gmra.mxu0 %v1870_v48  ;;  %v728_v48 = vld [vmem:[%s2266_s1 + $0x580] sm:$0xff]  ;;  %v902_v32 = vld [vmem:[%s2266_s1 + $0x6a8] sm:$0xff]  ;;  %v932_v27 = vld [vmem:[%s2266_s1 + $0x798] sm:$0xff] }
  0x6f   : > { %622 = vmatmul.f32.gmra.mxu1 %v1882_v52  ;;  %787 = vmatpush.msra.mxu0 %v683_v35  ;;  %v896_v52 = vld [vmem:[%s2266_s1 + $0x678] sm:$0xff] }
  0x70   : > { %810 = vmatpush.msra.mxu1 %v699_v61  ;;  %835 = vmatpush.msra.mxu2 %v713_v37  ;;  %v884_v35 = vld [vmem:[%s2266_s1 + $0x618] sm:$0xff]  ;;  %v914_v37 = vld [vmem:[%s2266_s1 + $0x708] sm:$0xff] }
  0x71   : > { %857 = vmatpush.msra.mxu3 %v730_v39  ;;  %788 = vmatpush.msra.mxu0 %v682_v41  ;;  %v900_v61 = vld [vmem:[%s2266_s1 + $0x698] sm:$0xff]  ;;  %v931_v39 = vld [vmem:[%s2266_s1 + $0x790] sm:$0xff] }
  0x72   : > { %811 = vmatpush.msra.mxu1 %v698_v43  ;;  %836 = vmatpush.msra.mxu2 %v712_v29  ;;  %v883_v41 = vld [vmem:[%s2266_s1 + $0x610] sm:$0xff]  ;;  %v913_v29 = vld [vmem:[%s2266_s1 + $0x700] sm:$0xff] }
  0x73   : > { %858 = vmatpush.msra.mxu3 %v729_v44  ;;  %837 = vmatmul.f32.vlgmr.msra.gmra.mxu2 %v1917_v4  ;;  %v909_v4 = vld [vmem:[%s2266_s1 + $0x6e0] sm:$0xff]  ;;  %v899_v43 = vld [vmem:[%s2266_s1 + $0x690] sm:$0xff]  ;;  %v930_v44 = vld [vmem:[%s2266_s1 + $0x788] sm:$0xff] }
  0x74   : > { %1022 = vmatpush.msrb.mxu2 %v928_v45  ;;  %789 = vmatpush.msra.mxu0 %v681_v46  ;;  %v962_v45 = vld.sshfl [vmem:[#allocation1 + $0x10] sm:$0xff pattern:$0x75316420]  ;;  %v882_v46 = vld [vmem:[%s2266_s1 + $0x608] sm:$0xff] }
  0x75   : > { %812 = vmatpush.msra.mxu1 %v697_v47  ;;  %859 = vmatpush.msra.mxu3 %v728_v48  ;;  %v898_v47 = vld [vmem:[%s2266_s1 + $0x688] sm:$0xff]  ;;  %v929_v48 = vld [vmem:[%s2266_s1 + $0x780] sm:$0xff] }
  0x76   : > { %860 = vmatmul.f32.vlgmr.msra.gmra.mxu3 %v1919_v5  ;;  %1023 = vmatpush.msrb.mxu2 %v927_v49  ;;  %v923_v5 = vld [vmem:[%s2266_s1 + $0x750] sm:$0xff]  ;;  %v963_v49 = vld.sshfl [vmem:[#allocation1 + $0x18] sm:$0xff pattern:$0x75316420] }
  0x77   : > { %1045 = vmatpush.msrb.mxu3 %v944_v22  ;;  %790 = vmatpush.msra.mxu0 %v680_v50  ;;  %v881_v22 = vld [vmem:[%s2266_s1 + $0x600] sm:$0xff] }
  0x78   : > { %813 = vmatpush.msra.mxu1 %v696_v51  ;;  %791 = vmatmul.f32.vlgmr.msra.gmra.mxu0 %v1940_v54  ;;  %v938_v54 = vld [vmem:[%s2266_s1 + $0x7c8] sm:$0xff]  ;;  %v897_v50 = vld [vmem:[%s2266_s1 + $0x680] sm:$0xff] }
  0x79   : > { %814 = vmatmul.f32.vlgmr.msra.gmra.mxu1 %v1942_v15  ;;  %976 = vmatpush.msrb.mxu0 %v896_v52  ;;  %v890_v15 = vld [vmem:[%s2266_s1 + $0x648] sm:$0xff]  ;;  %v960_v51 = vld.sshfl [vmem:[#allocation1] sm:$0xff pattern:$0x75316420] }
  0x7a   : > { %999 = vmatpush.msrb.mxu1 %v912_v53  ;;  %1024 = vmatpush.msrb.mxu2 %v926_v57  ;;  %v961_v52 = vld.sshfl [vmem:[#allocation1 + $0x8] sm:$0xff pattern:$0x75316420]  ;;  %v966_v53 = vld.sshfl [vmem:[#allocation1 + $0x30] sm:$0xff pattern:$0x75316420] }
  0x7b   : > { %1046 = vmatpush.msrb.mxu3 %v943_v58  ;;  %977 = vmatpush.msrb.mxu0 %v895_v60  ;;  %v967_v57 = vld.sshfl [vmem:[#allocation1 + $0x38] sm:$0xff pattern:$0x75316420]  ;;  %v964_v58 = vld.sshfl [vmem:[#allocation1 + $0x20] sm:$0xff pattern:$0x75316420] }
  0x7c   : > { %1000 = vmatpush.msrb.mxu1 %v911_v62  ;;  %1025 = vmatpush.msrb.mxu2 %v925_v55  ;;  %v965_v60 = vld.sshfl [vmem:[#allocation1 + $0x28] sm:$0xff pattern:$0x75316420] }
  0x7d   : > { %1047 = vmatpush.msrb.mxu3 %v942_v63  ;;  %840 = vmatmul.f32.gmra.mxu2 %v1970_v59  ;;  %v935_v59 = vld [vmem:[%s2266_s1 + $0x7b0] sm:$0xff] }
  0x7e   : > { %978 = vmatpush.msrb.mxu0 %v894_v0  ;;  %1001 = vmatpush.msrb.mxu1 %v910_v42 }
  0x7f   : > { %1026 = vmatpush.msrb.mxu2 %v924_v1  ;;  %1048 = vmatpush.msrb.mxu3 %v941_v2 }
  0x80   : > { %863 = vmatmul.f32.gmra.mxu3 %v1972_v17  ;;  %979 = vmatpush.msrb.mxu0 %v893_v3  ;;  %v887_v17 = vld [vmem:[%s2266_s1 + $0x630] sm:$0xff] }
  0x81   : > { %1002 = vmatpush.msrb.mxu1 %v909_v4  ;;  %1027 = vmatpush.msrb.mxu2 %v923_v5 }
  0x82   : > { %1049 = vmatpush.msrb.mxu3 %v940_v6  ;;  %794 = vmatmul.f32.gmra.mxu0 %v1993_v40  ;;  %v933_v40 = vld [vmem:[%s2266_s1 + $0x7a0] sm:$0xff] }
  0x83   : > { %817 = vmatmul.f32.gmra.mxu1 %v1995_v56  ;;  %980 = vmatpush.msrb.mxu0 %v892_v7  ;;  %v885_v56 = vld [vmem:[%s2266_s1 + $0x620] sm:$0xff] }
  0x84   : > { %1003 = vmatpush.msrb.mxu1 %v908_v8  ;;  %1028 = vmatpush.msrb.mxu2 %v922_v9 }
  0x85   : > { %1050 = vmatpush.msrb.mxu3 %v939_v10  ;;  %981 = vmatpush.msrb.mxu0 %v891_v11 }
  0x86   : > { %1004 = vmatpush.msrb.mxu1 %v907_v12  ;;  %1029 = vmatpush.msrb.mxu2 %v921_v14 }
  0x87   : > { %1051 = vmatpush.msrb.mxu3 %v938_v54  ;;  %982 = vmatpush.msrb.mxu0 %v890_v15 }
  0x88   : > { %1005 = vmatpush.msrb.mxu1 %v906_v16  ;;  %1030 = vmatpush.msrb.mxu2 %v920_v18 }
  0x89   : > { %1052 = vmatpush.msrb.mxu3 %v937_v38  ;;  %983 = vmatpush.msrb.mxu0 %v889_v19 }
  0x8a   : > { %1006 = vmatpush.msrb.mxu1 %v905_v20  ;;  %1031 = vmatpush.msrb.mxu2 %v919_v21 }
  0x8b   : > { %1053 = vmatpush.msrb.mxu3 %v936_v13  ;;  %984 = vmatpush.msrb.mxu0 %v888_v30 }
  0x8c   : > { %1007 = vmatpush.msrb.mxu1 %v904_v23  ;;  %1032 = vmatpush.msrb.mxu2 %v918_v24 }
  0x8d   : > { %1054 = vmatpush.msrb.mxu3 %v935_v59  ;;  %985 = vmatpush.msrb.mxu0 %v887_v17 }
  0x8e   : > { %1008 = vmatpush.msrb.mxu1 %v903_v25  ;;  %1033 = vmatpush.msrb.mxu2 %v917_v26 }
  0x8f   : > { %1055 = vmatpush.msrb.mxu3 %v934_v28  ;;  %986 = vmatpush.msrb.mxu0 %v886_v31 }
  0x90   : > { %1009 = vmatpush.msrb.mxu1 %v902_v32  ;;  %1034 = vmatpush.msrb.mxu2 %v916_v33 }
  0x91   : > { %1056 = vmatpush.msrb.mxu3 %v933_v40  ;;  %987 = vmatpush.msrb.mxu0 %v885_v56 }
  0x92   : > { %1010 = vmatpush.msrb.mxu1 %v901_v34  ;;  %1035 = vmatpush.msrb.mxu2 %v915_v36 }
  0x93   : > { %1057 = vmatpush.msrb.mxu3 %v932_v27  ;;  %988 = vmatpush.msrb.mxu0 %v884_v35 }
  0x94   : > { %1011 = vmatpush.msrb.mxu1 %v900_v61  ;;  %1036 = vmatpush.msrb.mxu2 %v914_v37 }
  0x95   : > { %1058 = vmatpush.msrb.mxu3 %v931_v39  ;;  %989 = vmatpush.msrb.mxu0 %v883_v41 }
  0x96   : > { %1012 = vmatpush.msrb.mxu1 %v899_v43  ;;  %1037 = vmatpush.msrb.mxu2 %v913_v29  ;;  %v1229_v29 = vld [vmem:[%s2267_s2] ss:$0 sm:$0xff] }
  0x97   : > { %1059 = vmatpush.msrb.mxu3 %v930_v44  ;;  %1038 = vmatmul.f32.vlgmr.msrb.gmra.mxu2 %v962_v45 }
  0x98   : > { %990 = vmatpush.msrb.mxu0 %v882_v46  ;;  %1013 = vmatpush.msrb.mxu1 %v898_v47 }
  0x99   : > { %1060 = vmatpush.msrb.mxu3 %v929_v48 }
  0x9a   : > { %1061 = vmatmul.f32.vlgmr.msrb.gmra.mxu3 %v963_v49  ;;  %991 = vmatpush.msrb.mxu0 %v881_v22 }
  0x9b   : > { %1014 = vmatpush.msrb.mxu1 %v897_v50  ;;  %992 = vmatmul.f32.vlgmr.msrb.gmra.mxu0 %v960_v51 }
  0x9c   : > { %1015 = vmatmul.f32.vlgmr.msrb.gmra.mxu1 %v961_v52 }
  0x9f   : > { %1041 = vmatmul.f32.gmra.mxu2 %v966_v53 }
  0xa2   : > { %1064 = vmatmul.f32.gmra.mxu3 %v967_v57 }
  0xa3   : > { %995 = vmatmul.f32.gmra.mxu0 %v964_v58 }
  0xa4   : > { %1018 = vmatmul.f32.gmra.mxu1 %v965_v60 }
  0xc3   : > { %v474_v62 = vpop.f32.mrf.mxu0 }
  0xc6   : > { %v497_v55 = vpop.f32.mrf.mxu1 }
  0xc7   : > { %v520_v63 = vpop.f32.mrf.mxu2  ;;  %v498_v12 = vadd.f32 %v497_v55, %v474_v62 }
  0xc9   : > { %v543_v0 = vpop.f32.mrf.mxu3  ;;  %v521_v15 = vadd.f32 %v520_v63, %v498_v12 }
  0xcb   : > { %v544_v38 = vadd.f32 %v543_v0, %v521_v15 }
  0xce   : > { %v477_v42 = vpop.f32.mrf.mxu0 }
  0xd0   : > { %v500_v1 = vpop.f32.mrf.mxu1  ;;  %v523_v2 = vpop.f32.mrf.mxu2 }
  0xd1   : > { %v501_v19 = vadd.f32 %v500_v1, %v477_v42 }
  0xd3   : > { %v546_v3 = vpop.f32.mrf.mxu3  ;;  %v524_v20 = vadd.f32 %v523_v2, %v501_v19 }
  0xd5   : > { %v547_v59 = vadd.f32 %v546_v3, %v524_v20 }
  0xd7   : > { %v597_v4 = vpop.f32.mrf.mxu0 }
  0xd8   : > { %v598_v21 = vadd.f32 %v597_v4, %v544_v38 }
  0xda   : > { %v620_v5 = vpop.f32.mrf.mxu1  ;;  %v643_v6 = vpop.f32.mrf.mxu2 }
  0xdb   : > { %v621_v17 = vadd.f32 %v620_v5, %v598_v21 }
  0xdd   : > { %v666_v7 = vpop.f32.mrf.mxu3  ;;  %v644_v28 = vadd.f32 %v643_v6, %v621_v17 }
  0xdf   : > { %v667_v27 = vadd.f32 %v666_v7, %v644_v28 }
  0xeb   : > { %v600_v8 = vpop.f32.mrf.mxu0 }
  0xec   : > { %v623_v9 = vpop.f32.mrf.mxu1  ;;  %v646_v10 = vpop.f32.mrf.mxu2  ;;  %v601_v31 = vadd.f32 %v600_v8, %v547_v59 }
  0xee   : > { %v624_v35 = vadd.f32 %v623_v9, %v601_v31 }
  0xef   : > { %v669_v11 = vpop.f32.mrf.mxu3 }
  0xf0   : > { %v647_v44 = vadd.f32 %v646_v10, %v624_v35 }
  0xf2   : > { %v670_v51 = vadd.f32 %v669_v11, %v647_v44 }
  0xf5   : > { %v792_v14 = vpop.f32.mrf.mxu0 }
  0xf6   : > { %v815_v54 = vpop.f32.mrf.mxu1  ;;  %v838_v16 = vpop.f32.mrf.mxu2 }
  0xf7   : > { %v816_v23 = vadd.f32 %v815_v54, %v792_v14 }
  0xf9   : > { %v861_v18 = vpop.f32.mrf.mxu3  ;;  %v839_v26 = vadd.f32 %v838_v16, %v816_v23 }
  0xfb   : > { %v862_v40 = vadd.f32 %v861_v18, %v839_v26 }
  0xfd   : > { %v867_v39 = vadd.f32 %v862_v40, %v667_v27 }
  0xff   : > { %v795_v13 = vpop.f32.mrf.mxu0 }
 0x100   : > { %v818_v30 = vpop.f32.mrf.mxu1  ;;  %v841_v24 = vpop.f32.mrf.mxu2 }
 0x101   : > { %v819_v56 = vadd.f32 %v818_v30, %v795_v13 }
 0x103   : > { %v864_v25 = vpop.f32.mrf.mxu3  ;;  %v842_v41 = vadd.f32 %v841_v24, %v819_v56 }
 0x105   : > { %v865_v48 = vadd.f32 %v864_v25, %v842_v41 }
 0x107   : > { %v868_v58 = vadd.f32 %v865_v48, %v670_v51 }
 0x118   : > { %v993_v32 = vpop.f32.mrf.mxu0 }
 0x119   : > { %v1016_v33 = vpop.f32.mrf.mxu1 }
 0x11a   : > { %v1017_v34 = vadd.f32 %v1016_v33, %v993_v32  ;;  %v1039_v36 = vpop.f32.mrf.mxu2 }
 0x11c   : > { %v1040_v61 = vadd.f32 %v1039_v36, %v1017_v34 }
 0x11d   : > { %v1062_v37 = vpop.f32.mrf.mxu3 }
 0x11e   : > { %v1063_v43 = vadd.f32 %v1062_v37, %v1040_v61 }
 0x120   : > { %v1068_v45 = vadd.f32 %v1063_v43, %v867_v39  ;;  %v996_v46 = vpop.f32.mrf.mxu0 }
 0x121   : > { %v1019_v47 = vpop.f32.mrf.mxu1 }
 0x122   : > { %v1074_v49 = vadd.f32 %v1229_v29, %v1068_v45  ;;  %v1020_v22 = vadd.f32 %v1019_v47, %v996_v46  ;;  %v1042_v50 = vpop.f32.mrf.mxu2 }
 0x124   : > { %vm1076_vm4 = vcmp.ge.f32.partialorder %v1074_v49, 0.0  ;;  %v1078_v52 = vmul.f32 0.2, %v1074_v49  ;;  %v1043_v53 = vadd.f32 %v1042_v50, %v1020_v22 }
 0x125   : > { %v1065_v57 = vpop.f32.mrf.mxu3 }
 0x126   : > { %v1080_v60 = vsel %vm1076_vm4, %v1074_v49, %v1078_v52  ;;  %v1066_v62 = vadd.f32 %v1065_v57, %v1043_v53 }
 0x127   : > { %v1084_v55 = vrot.slane %v1080_v60, 4  ;;  %1088 = vst [vmem:[%s192_s10] sm:$0xf] %v1080_v60 }
 0x128   : > { %v1069_v63 = vadd.f32 %v1066_v62, %v868_v58 }
 0x129   : > { %1089 = vst [vmem:[%s192_s10 + $0x4] sm:$0xf] %v1084_v55 }
 0x12a   : > { %v1075_v0 = vadd.f32 %v1229_v29, %v1069_v63 }
 0x12c   : > { %vm1077_vm5 = vcmp.ge.f32.partialorder %v1075_v0, 0.0  ;;  %v1079_v42 = vmul.f32 0.2, %v1075_v0 }
 0x12e   : > { %v1081_v1 = vsel %vm1077_vm5, %v1075_v0, %v1079_v42 }
 0x12f   : > { %v1085_v2 = vrot.slane %v1081_v1, 4  ;;  %1090 = vst [vmem:[%s192_s10 + $0x8] sm:$0xf] %v1081_v1 }
 0x131   : > { %1091 = vst [vmem:[%s192_s10 + $0xc] sm:$0xf] %v1085_v2 }
 0x132 PF: > { %s13_s14 = sadd.s32 1, %s1252_s14   ;;  %s2271_s12 = smov %s1248_s13 }
 0x133   : > { %p10_p5 = scmp.ge.s32.totalorder %s13_s14, 4   ;;  %s2272_s13 = smov %s2274_s15 }
 0x135   :  { %12 = sbr.rel (!%p10_p5) target bundleno = 2 (0x2), region = 90 }

// kernel: discriminator_sep.8
= control target key start
LH: loop header
LB: loop body
LE: loop exit
PB: predicated region body
PF: predicated region fallthrough
CT: control target
= control target key end

     0   :  { %s1064_s12 = smov 0   ;;  %s1066_s13 = smov 0   ;;  %s1955_s0 = inlined_call_operand.vmem [shape: f32[2,3,3,512], index: 0, kind: input, shape index: {}]   ;;  %s1956_s1 = inlined_call_operand.vmem [shape: f32[2048,128], index: 1, kind: input, shape index: {}]   ;;  %s1957_s2 = inlined_call_operand.vmem [shape: f32[1,128], index: 2, kind: input, shape index: {}]   ;;  %s1958_s3 = inlined_call_operand.vmem [shape: f32[2,2,2,128], index: 3, kind: output, shape index: {}]  }
   0x1   :  { %s1068_s14 = smov 0  }
   0x2 LB: > { %s25_s15 = sadd.s32 1, %s1038_s13  ;;  %p981_p0 = scmp.ge.s32.totalorder %s1042_s14, 1  ;;  %s1042_s14 = sphi %s1068_s14, %s13_s14   ;;  %s1038_s13 = sphi %s1066_s13, %s1966_s13   ;;  %s1034_s12 = sphi %s1064_s12, %s1965_s12  }
   0x3   : > { %p27_p1 = scmp.ge.s32.totalorder %s25_s15, 2  ;;  %p151_p2 = scmp.lt.s32.totalorder %s1042_s14, 3 }
   0x5   : > { %s1968_s15 = smov (%p27_p1, %s25_s15), 0  ;;  %p152_p3 = pnand %p981_p0, %p151_p2 }
   0x6   : > { %p179_p4 = scmp.lt.s32.totalorder (!%p152_p3), %s1034_s12, 1 }
   0x7   : > { %155 = sbr.rel (%p152_p3) target bundleno = 292 (0x124), region = 32 }
   0xc   : > { %v356_v0 = vld [vmem:[%s1956_s1 + $0x378] sm:$0xff]  ;;  %v355_v1 = vld [vmem:[%s1956_s1 + $0x370] sm:$0xff]  ;;  %v354_v5 = vld [vmem:[%s1956_s1 + $0x368] sm:$0xff]  ;;  %s1970_s12 = smov (!%p179_p4, %s1034_s12), 1  ;;  %vm210_vm0 = vcmask 1041408   ;;  %vm212_vm1 = vcmask 1045508  }
   0xd   : > { %v372_v2 = vld [vmem:[%s1956_s1 + $0x3f8] sm:$0xff]  ;;  %424 = vmatpush.msra.mxu2 %v356_v0  ;;  %v371_v6 = vld [vmem:[%s1956_s1 + $0x3f0] sm:$0xff]  ;;  %v370_v9 = vld [vmem:[%s1956_s1 + $0x3e8] sm:$0xff]  ;;  %s994_s26 = smul.u32 48, %s1970_s12  ;;  %vm283_vm2 = vcmask 1043458   ;;  %vm294_vm3 = vcmask 1040384  }
   0xe   : > { %444 = vmatpush.msra.mxu3 %v372_v2  ;;  %v324_v3 = vld [vmem:[%s1956_s1 + $0x278] sm:$0xff]  ;;  %v323_v7 = vld [vmem:[%s1956_s1 + $0x270] sm:$0xff]  ;;  %v322_v10 = vld [vmem:[%s1956_s1 + $0x268] sm:$0xff]  ;;  %vm295_vm4 = vcmask 1042434   ;;  %vm214_vm5 = vcmask 1043456   ;;  %vm297_vm6 = vcmask 1044484  }
   0xf   : > { %v340_v4 = vld [vmem:[%s1956_s1 + $0x2f8] sm:$0xff]  ;;  %384 = vmatpush.msra.mxu0 %v324_v3  ;;  %v339_v8 = vld [vmem:[%s1956_s1 + $0x2f0] sm:$0xff]  ;;  %425 = vmatpush.msra.mxu2 %v355_v1  ;;  %v353_v11 = vld [vmem:[%s1956_s1 + $0x360] sm:$0xff]  ;;  %s1340_s22 = scalar_lea.vmem %s1955_s0, %s994_s26  ;;  %vm285_vm8 = vcmask 1045504   ;;  %vm287_vm9 = vcmask 1045506   ;;  %vm299_vm11 = vcmask 1046534  }
  0x10   : > { %404 = vmatpush.msra.mxu1 %v340_v4  ;;  %445 = vmatpush.msra.mxu3 %v371_v6  ;;  %v338_v12 = vld [vmem:[%s1956_s1 + $0x2e8] sm:$0xff]  ;;  %v369_v13 = vld [vmem:[%s1956_s1 + $0x3e0] sm:$0xff]  ;;  %v352_v16 = vld [vmem:[%s1956_s1 + $0x358] sm:$0xff]  ;;  %s993_s4 = sshll.u32 %s1970_s12, 2 }
  0x11   : > { %385 = vmatpush.msra.mxu0 %v323_v7  ;;  %426 = vmatpush.msra.mxu2 %v354_v5  ;;  %v321_v14 = vld [vmem:[%s1956_s1 + $0x260] sm:$0xff]  ;;  %v368_v17 = vld [vmem:[%s1956_s1 + $0x3d8] sm:$0xff]  ;;  %v351_v20 = vld [vmem:[%s1956_s1 + $0x350] sm:$0xff]  ;;  %s192_s7 = scalar_lea.vmem %s1958_s3, %s993_s4 }
  0x12   : > { %405 = vmatpush.msra.mxu1 %v339_v8  ;;  %446 = vmatpush.msra.mxu3 %v370_v9  ;;  %v337_v15 = vld [vmem:[%s1956_s1 + $0x2e0] sm:$0xff]  ;;  %v320_v18 = vld [vmem:[%s1956_s1 + $0x258] sm:$0xff]  ;;  %v367_v21 = vld [vmem:[%s1956_s1 + $0x3d0] sm:$0xff] }
  0x13   : > { %386 = vmatpush.msra.mxu0 %v322_v10  ;;  %427 = vmatpush.msra.mxu2 %v353_v11  ;;  %v336_v19 = vld [vmem:[%s1956_s1 + $0x2d8] sm:$0xff]  ;;  %v319_v22 = vld [vmem:[%s1956_s1 + $0x250] sm:$0xff]  ;;  %v350_v24 = vld [vmem:[%s1956_s1 + $0x348] sm:$0xff] }
  0x14   : > { %406 = vmatpush.msra.mxu1 %v338_v12  ;;  %447 = vmatpush.msra.mxu3 %v369_v13  ;;  %v335_v23 = vld [vmem:[%s1956_s1 + $0x2d0] sm:$0xff]  ;;  %v366_v25 = vld [vmem:[%s1956_s1 + $0x3c8] sm:$0xff]  ;;  %v349_v28 = vld [vmem:[%s1956_s1 + $0x340] sm:$0xff] }
  0x15   : > { %387 = vmatpush.msra.mxu0 %v321_v14  ;;  %428 = vmatpush.msra.mxu2 %v352_v16  ;;  %v318_v26 = vld [vmem:[%s1956_s1 + $0x248] sm:$0xff]  ;;  %v365_v29 = vld [vmem:[%s1956_s1 + $0x3c0] sm:$0xff]  ;;  %v348_v32 = vld [vmem:[%s1956_s1 + $0x338] sm:$0xff] }
  0x16   : > { %407 = vmatpush.msra.mxu1 %v337_v15  ;;  %448 = vmatpush.msra.mxu3 %v368_v17  ;;  %v334_v27 = vld [vmem:[%s1956_s1 + $0x2c8] sm:$0xff]  ;;  %v317_v30 = vld [vmem:[%s1956_s1 + $0x240] sm:$0xff]  ;;  %v364_v33 = vld [vmem:[%s1956_s1 + $0x3b8] sm:$0xff] }
  0x17   : > { %388 = vmatpush.msra.mxu0 %v320_v18  ;;  %429 = vmatpush.msra.mxu2 %v351_v20  ;;  %v333_v31 = vld [vmem:[%s1956_s1 + $0x2c0] sm:$0xff]  ;;  %v316_v34 = vld [vmem:[%s1956_s1 + $0x238] sm:$0xff]  ;;  %v347_v36 = vld [vmem:[%s1956_s1 + $0x330] sm:$0xff] }
  0x18   : > { %408 = vmatpush.msra.mxu1 %v336_v19  ;;  %449 = vmatpush.msra.mxu3 %v367_v21  ;;  %v332_v35 = vld [vmem:[%s1956_s1 + $0x2b8] sm:$0xff]  ;;  %v363_v37 = vld [vmem:[%s1956_s1 + $0x3b0] sm:$0xff]  ;;  %v346_v40 = vld [vmem:[%s1956_s1 + $0x328] sm:$0xff] }
  0x19   : > { %389 = vmatpush.msra.mxu0 %v319_v22  ;;  %430 = vmatpush.msra.mxu2 %v350_v24  ;;  %v315_v38 = vld [vmem:[%s1956_s1 + $0x230] sm:$0xff]  ;;  %v362_v41 = vld [vmem:[%s1956_s1 + $0x3a8] sm:$0xff]  ;;  %v345_v44 = vld [vmem:[%s1956_s1 + $0x320] sm:$0xff] }
  0x1a   : > { %409 = vmatpush.msra.mxu1 %v335_v23  ;;  %450 = vmatpush.msra.mxu3 %v366_v25  ;;  %v331_v39 = vld [vmem:[%s1956_s1 + $0x2b0] sm:$0xff]  ;;  %v314_v42 = vld [vmem:[%s1956_s1 + $0x228] sm:$0xff]  ;;  %v361_v45 = vld [vmem:[%s1956_s1 + $0x3a0] sm:$0xff] }
  0x1b   : > { %390 = vmatpush.msra.mxu0 %v318_v26  ;;  %431 = vmatpush.msra.mxu2 %v349_v28  ;;  %v330_v43 = vld [vmem:[%s1956_s1 + $0x2a8] sm:$0xff]  ;;  %v313_v46 = vld [vmem:[%s1956_s1 + $0x220] sm:$0xff]  ;;  %v344_v48 = vld [vmem:[%s1956_s1 + $0x318] sm:$0xff] }
  0x1c   : > { %410 = vmatpush.msra.mxu1 %v334_v27  ;;  %451 = vmatpush.msra.mxu3 %v365_v29  ;;  %v329_v47 = vld [vmem:[%s1956_s1 + $0x2a0] sm:$0xff]  ;;  %v360_v49 = vld [vmem:[%s1956_s1 + $0x398] sm:$0xff]  ;;  %v343_v52 = vld [vmem:[%s1956_s1 + $0x310] sm:$0xff] }
  0x1d   : > { %391 = vmatpush.msra.mxu0 %v317_v30  ;;  %432 = vmatpush.msra.mxu2 %v348_v32  ;;  %v312_v50 = vld [vmem:[%s1956_s1 + $0x218] sm:$0xff]  ;;  %v359_v53 = vld [vmem:[%s1956_s1 + $0x390] sm:$0xff]  ;;  %v342_v56 = vld [vmem:[%s1956_s1 + $0x308] sm:$0xff] }
  0x1e   : > { %411 = vmatpush.msra.mxu1 %v333_v31  ;;  %452 = vmatpush.msra.mxu3 %v364_v33  ;;  %v328_v51 = vld [vmem:[%s1956_s1 + $0x298] sm:$0xff]  ;;  %v311_v54 = vld [vmem:[%s1956_s1 + $0x210] sm:$0xff]  ;;  %v358_v57 = vld [vmem:[%s1956_s1 + $0x388] sm:$0xff] }
  0x1f   : > { %392 = vmatpush.msra.mxu0 %v316_v34  ;;  %433 = vmatpush.msra.mxu2 %v347_v36  ;;  %v327_v55 = vld [vmem:[%s1956_s1 + $0x290] sm:$0xff]  ;;  %v310_v58 = vld [vmem:[%s1956_s1 + $0x208] sm:$0xff]  ;;  %v341_v60 = vld [vmem:[%s1956_s1 + $0x300] sm:$0xff] }
  0x20   : > { %412 = vmatpush.msra.mxu1 %v332_v35  ;;  %453 = vmatpush.msra.mxu3 %v363_v37  ;;  %v326_v59 = vld [vmem:[%s1956_s1 + $0x288] sm:$0xff]  ;;  %v357_v61 = vld [vmem:[%s1956_s1 + $0x380] sm:$0xff]  ;;  %v266_v62 = vld [vmem:[%s1956_s1 + $0x178] sm:$0xff] }
  0x21   : > { %393 = vmatpush.msra.mxu0 %v315_v38  ;;  %434 = vmatpush.msra.mxu2 %v346_v40  ;;  %v282_v63 = vld [vmem:[%s1956_s1 + $0x1f8] sm:$0xff]  ;;  %v309_v0 = vld [vmem:[%s1956_s1 + $0x200] sm:$0xff]  ;;  %v265_v2 = vld [vmem:[%s1956_s1 + $0x170] sm:$0xff] }
  0x22   : > { %413 = vmatpush.msra.mxu1 %v331_v39  ;;  %454 = vmatpush.msra.mxu3 %v362_v41  ;;  %v325_v1 = vld [vmem:[%s1956_s1 + $0x280] sm:$0xff]  ;;  %v234_v3 = vld [vmem:[%s1956_s1 + $0x78] sm:$0xff]  ;;  %v281_v5 = vld [vmem:[%s1956_s1 + $0x1f0] sm:$0xff] }
  0x23   : > { %394 = vmatpush.msra.mxu0 %v314_v42  ;;  %435 = vmatpush.msra.mxu2 %v345_v44  ;;  %v250_v4 = vld [vmem:[%s1956_s1 + $0xf8] sm:$0xff]  ;;  %v264_v6 = vld [vmem:[%s1956_s1 + $0x168] sm:$0xff]  ;;  %v233_v7 = vld [vmem:[%s1956_s1 + $0x70] sm:$0xff] }
  0x24   : > { %414 = vmatpush.msra.mxu1 %v330_v43  ;;  %455 = vmatpush.msra.mxu3 %v361_v45  ;;  %v249_v8 = vld [vmem:[%s1956_s1 + $0xf0] sm:$0xff]  ;;  %v280_v9 = vld [vmem:[%s1956_s1 + $0x1e8] sm:$0xff]  ;;  %v263_v10 = vld [vmem:[%s1956_s1 + $0x160] sm:$0xff] }
  0x25   : > { %395 = vmatpush.msra.mxu0 %v313_v46  ;;  %436 = vmatpush.msra.mxu2 %v344_v48  ;;  %v232_v11 = vld [vmem:[%s1956_s1 + $0x68] sm:$0xff]  ;;  %v279_v13 = vld [vmem:[%s1956_s1 + $0x1e0] sm:$0xff]  ;;  %v262_v14 = vld [vmem:[%s1956_s1 + $0x158] sm:$0xff] }
  0x26   : > { %415 = vmatpush.msra.mxu1 %v329_v47  ;;  %456 = vmatpush.msra.mxu3 %v360_v49  ;;  %v248_v12 = vld [vmem:[%s1956_s1 + $0xe8] sm:$0xff]  ;;  %v231_v15 = vld [vmem:[%s1956_s1 + $0x60] sm:$0xff]  ;;  %v278_v17 = vld [vmem:[%s1956_s1 + $0x1d8] sm:$0xff] }
  0x27   : > { %396 = vmatpush.msra.mxu0 %v312_v50  ;;  %437 = vmatpush.msra.mxu2 %v343_v52  ;;  %v247_v16 = vld [vmem:[%s1956_s1 + $0xe0] sm:$0xff]  ;;  %v261_v18 = vld [vmem:[%s1956_s1 + $0x150] sm:$0xff]  ;;  %v230_v19 = vld [vmem:[%s1956_s1 + $0x58] sm:$0xff] }
  0x28   : > { %416 = vmatpush.msra.mxu1 %v328_v51  ;;  %457 = vmatpush.msra.mxu3 %v359_v53  ;;  %v246_v20 = vld [vmem:[%s1956_s1 + $0xd8] sm:$0xff]  ;;  %v260_v21 = vld [vmem:[%s1956_s1 + $0x148] sm:$0xff]  ;;  %v277_v22 = vld [vmem:[%s1956_s1 + $0x1d0] sm:$0xff] }
  0x29   : > { %397 = vmatpush.msra.mxu0 %v311_v54  ;;  %438 = vmatpush.msra.mxu2 %v342_v56  ;;  %v229_v23 = vld [vmem:[%s1956_s1 + $0x50] sm:$0xff]  ;;  %v194_v24 = vld [vmem:[%s1340_s22] sm:$0x77]  ;;  %v195_v25 = vld [vmem:[%s1340_s22 + $0x8] sm:$0x77] }
  0x2a   : > { %417 = vmatpush.msra.mxu1 %v327_v55  ;;  %458 = vmatpush.msra.mxu3 %v358_v57  ;;  %v196_v26 = vld [vmem:[%s1340_s22 + $0x10] sm:$0x77]  ;;  %v276_v28 = vld [vmem:[%s1956_s1 + $0x1c8] sm:$0xff]  ;;  %v197_v29 = vld [vmem:[%s1340_s22 + $0x18] sm:$0x77]  ;;  %v204_v32 = vrot.slane %v194_v24, 2 }
  0x2b   : > { %398 = vmatpush.msra.mxu0 %v310_v58  ;;  %439 = vmatpush.msra.mxu2 %v341_v60  ;;  %v245_v27 = vld [vmem:[%s1956_s1 + $0xd0] sm:$0xff]  ;;  %v259_v30 = vld [vmem:[%s1956_s1 + $0x140] sm:$0xff]  ;;  %v228_v31 = vld [vmem:[%s1956_s1 + $0x48] sm:$0xff]  ;;  %v205_v33 = vrot.slane %v195_v25, 4  ;;  %v206_v34 = vrot.slane %v195_v25, 6  ;;  %v207_v35 = vrot.slane %v196_v26, 2 }
  0x2c   : > { %418 = vmatpush.msra.mxu1 %v326_v59  ;;  %459 = vmatpush.msra.mxu3 %v357_v61  ;;  %vm1378_vm7 = vmor %vm294_vm3, %vm295_vm4  ;;  %v244_v37 = vld [vmem:[%s1956_s1 + $0xc8] sm:$0xff]  ;;  %v275_v38 = vld [vmem:[%s1956_s1 + $0x1c0] sm:$0xff]  ;;  %v208_v39 = vrot.slane %v197_v29, 4  ;;  %v209_v40 = vrot.slane %v197_v29, 6  ;;  %v211_v43 = vsel %vm210_vm0, %v194_v24, %v204_v32  ;;  %v284_v51 = vsel %vm283_vm2, %v194_v24, %v204_v32 }
  0x2d   : > { %515 = vmatpush.msrb.mxu2 %v266_v62  ;;  %399 = vmatpush.msra.mxu0 %v309_v0  ;;  %v258_v41 = vld [vmem:[%s1956_s1 + $0x138] sm:$0xff]  ;;  %v227_v42 = vld [vmem:[%s1956_s1 + $0x40] sm:$0xff]  ;;  %v213_v44 = vsel %vm212_vm1, %v205_v33, %v206_v34  ;;  %v216_v45 = vsel %vm210_vm0, %v196_v26, %v207_v35  ;;  %vm1400_vm10 = vmor %vm1378_vm7, %vm297_vm6  ;;  %v286_v55 = vsel %vm285_vm8, %v206_v34, %v205_v33 }
  0x2e   : > { %535 = vmatpush.msrb.mxu3 %v282_v63  ;;  %419 = vmatpush.msra.mxu1 %v325_v1  ;;  %v243_v47 = vld [vmem:[%s1956_s1 + $0xc0] sm:$0xff]  ;;  %v274_v48 = vld [vmem:[%s1956_s1 + $0x1b8] sm:$0xff]  ;;  %v1411_v49 = vsel %vm214_vm5, %v211_v43, %v213_v44  ;;  %v217_v50 = vsel %vm212_vm1, %v208_v39, %v209_v40  ;;  %v257_v52 = vld [vmem:[%s1956_s1 + $0x130] sm:$0xff]  ;;  %v290_v56 = vsel %vm283_vm2, %v196_v26, %v207_v35 }
  0x2f   : > { %516 = vmatpush.msrb.mxu2 %v265_v2  ;;  %475 = vmatpush.msrb.mxu0 %v234_v3  ;;  %v226_v53 = vld [vmem:[%s1956_s1 + $0x38] sm:$0xff]  ;;  %v1422_v54 = vsel %vm214_vm5, %v216_v45, %v217_v50  ;;  %v985_v57 = vrot.slane %v1411_v49, 9  ;;  %v273_v59 = vld [vmem:[%s1956_s1 + $0x1b0] sm:$0xff]  ;;  %v288_v60 = vsel %vm287_vm9, %v284_v51, %v286_v55  ;;  %v291_v61 = vsel %vm285_vm8, %v209_v40, %v208_v39  ;;  %vm1438_vm12 = vmor %vm1400_vm10, %vm299_vm11 }
  0x30   : > { %495 = vmatpush.msrb.mxu1 %v250_v4  ;;  %536 = vmatpush.msrb.mxu3 %v281_v5  ;;  %v242_v58 = vld [vmem:[%s1956_s1 + $0xb8] sm:$0xff]  ;;  %v987_v63 = vrot.slane %v1422_v54, 9  ;;  %v256_v0 = vld [vmem:[%s1956_s1 + $0x128] sm:$0xff]  ;;  %v225_v1 = vld [vmem:[%s1956_s1 + $0x30] sm:$0xff]  ;;  %v292_v2 = vsel %vm287_vm9, %v290_v56, %v291_v61  ;;  %v986_v3 = vrot.slane %v288_v60, 9 }
  0x31   : > { %517 = vmatpush.msrb.mxu2 %v264_v6  ;;  %476 = vmatpush.msrb.mxu0 %v233_v7  ;;  %v241_v4 = vld [vmem:[%s1956_s1 + $0xb0] sm:$0xff]  ;;  %v272_v5 = vld [vmem:[%s1956_s1 + $0x1a8] sm:$0xff]  ;;  %v988_v6 = vrot.slane %v292_v2, 9  ;;  %v255_v7 = vld [vmem:[%s1956_s1 + $0x120] sm:$0xff] }
  0x32   : > { %496 = vmatpush.msrb.mxu1 %v249_v8  ;;  %537 = vmatpush.msrb.mxu3 %v280_v9  ;;  %v224_v8 = vld [vmem:[%s1956_s1 + $0x28] sm:$0xff]  ;;  %v304_v9 = vsel %vm1438_vm12, %v985_v57, %v986_v3  ;;  %v251_v24 = vld [vmem:[%s1956_s1 + $0x100] sm:$0xff]  ;;  %v609_v39 = vld [vmem:[%s1956_s1 + $0x570] sm:$0xff] }
  0x33   : > { %518 = vmatpush.msrb.mxu2 %v263_v10  ;;  %477 = vmatpush.msrb.mxu0 %v232_v11  ;;  %v240_v10 = vld [vmem:[%s1956_s1 + $0xa8] sm:$0xff]  ;;  %v271_v11 = vld [vmem:[%s1956_s1 + $0x1a0] sm:$0xff]  ;;  %373 = vst [vmem:[#allocation1] ss:$4 sm:$0xff] %v304_v9  ;;  %v626_v40 = vld [vmem:[%s1956_s1 + $0x5f8] sm:$0xff] }
  0x34   : > { %497 = vmatpush.msrb.mxu1 %v248_v12  ;;  %538 = vmatpush.msrb.mxu3 %v279_v13  ;;  %v1472_v12 = vsel %vm1438_vm12, %v987_v63, %v988_v6  ;;  %v254_v13 = vld [vmem:[%s1956_s1 + $0x118] sm:$0xff]  ;;  %v268_v25 = vld [vmem:[%s1956_s1 + $0x188] sm:$0xff]  ;;  %v198_v26 = vld [vmem:[%s1340_s22 + $0x20] sm:$0x77] }
  0x35   : > { %519 = vmatpush.msrb.mxu2 %v262_v14  ;;  %478 = vmatpush.msrb.mxu0 %v231_v15  ;;  %v223_v14 = vld [vmem:[%s1956_s1 + $0x20] sm:$0xff]  ;;  %375 = vst [vmem:[#allocation1 + $0x1] ss:$4 sm:$0xff] %v1472_v12  ;;  %v220_v29 = vld [vmem:[%s1956_s1 + $0x8] sm:$0xff]  ;;  %v557_v36 = vrot.slane %v198_v26, 2  ;;  %v578_v43 = vld [vmem:[%s1956_s1 + $0x478] sm:$0xff] }
  0x36   : > { %498 = vmatpush.msrb.mxu1 %v247_v16  ;;  %539 = vmatpush.msrb.mxu3 %v278_v17  ;;  %v239_v15 = vld [vmem:[%s1956_s1 + $0xa0] sm:$0xff]  ;;  %v270_v16 = vld [vmem:[%s1956_s1 + $0x198] sm:$0xff]  ;;  %v253_v17 = vld [vmem:[%s1956_s1 + $0x110] sm:$0xff] }
  0x37   : > { %520 = vmatpush.msrb.mxu2 %v261_v18  ;;  %479 = vmatpush.msrb.mxu0 %v230_v19  ;;  %v222_v18 = vld [vmem:[%s1956_s1 + $0x18] sm:$0xff]  ;;  %v608_v45 = vld [vmem:[%s1956_s1 + $0x568] sm:$0xff]  ;;  %v625_v46 = vld [vmem:[%s1956_s1 + $0x5f0] sm:$0xff] }
  0x38   : > { %499 = vmatpush.msrb.mxu1 %v246_v20  ;;  %540 = vmatpush.msrb.mxu3 %v277_v22  ;;  %v238_v19 = vld [vmem:[%s1956_s1 + $0x98] sm:$0xff]  ;;  %v252_v20 = vld [vmem:[%s1956_s1 + $0x108] sm:$0xff]  ;;  %v221_v22 = vld [vmem:[%s1956_s1 + $0x10] sm:$0xff] }
  0x39   : > { %521 = vmatpush.msrb.mxu2 %v260_v21  ;;  %480 = vmatpush.msrb.mxu0 %v229_v23  ;;  %v269_v21 = vld [vmem:[%s1956_s1 + $0x190] sm:$0xff]  ;;  %v594_v44 = vld [vmem:[%s1956_s1 + $0x4f8] sm:$0xff]  ;;  %v607_v51 = vld [vmem:[%s1956_s1 + $0x560] sm:$0xff] }
  0x3a   : > { %500 = vmatpush.msrb.mxu1 %v245_v27  ;;  %541 = vmatpush.msrb.mxu3 %v276_v28  ;;  %v237_v23 = vld [vmem:[%s1956_s1 + $0x90] sm:$0xff]  ;;  %v199_v27 = vld [vmem:[%s1340_s22 + $0x28] sm:$0x77]  ;;  %v610_v28 = vld [vmem:[%s1956_s1 + $0x578] sm:$0xff] }
  0x3b   : > { %522 = vmatpush.msrb.mxu2 %v259_v30  ;;  %481 = vmatpush.msrb.mxu0 %v228_v31  ;;  %v236_v30 = vld [vmem:[%s1956_s1 + $0x88] sm:$0xff]  ;;  %v267_v31 = vld [vmem:[%s1956_s1 + $0x180] sm:$0xff]  ;;  %v593_v50 = vld [vmem:[%s1956_s1 + $0x4f0] sm:$0xff] }
  0x3c   : > { %501 = vmatpush.msrb.mxu1 %v244_v37  ;;  %542 = vmatpush.msrb.mxu3 %v275_v38  ;;  %v378_v32 = vld.sshfl [vmem:[#allocation1 + $0x10] sm:$0xff pattern:$0x73625140]  ;;  %v376_v33 = vld.sshfl [vmem:[#allocation1] sm:$0xff pattern:$0x73625140] }
  0x3d   : > { %523 = vmatpush.msrb.mxu2 %v258_v41  ;;  %482 = vmatpush.msrb.mxu0 %v227_v42  ;;  %v379_v34 = vld.sshfl [vmem:[#allocation1 + $0x18] sm:$0xff pattern:$0x73625140]  ;;  %v377_v35 = vld.sshfl [vmem:[#allocation1 + $0x8] sm:$0xff pattern:$0x73625140] }
  0x3e   : > { %502 = vmatpush.msrb.mxu1 %v243_v47  ;;  %543 = vmatpush.msrb.mxu3 %v274_v48  ;;  %464 = vst [vmem:[#allocation1] ss:$4 sm:$0xff] %v1411_v49  ;;  %v558_v37 = vrot.slane %v199_v27, 4  ;;  %v559_v38 = vrot.slane %v199_v27, 6  ;;  %v219_v41 = vld [vmem:[%s1956_s1] sm:$0xff]  ;;  %v560_v47 = vsel %vm210_vm0, %v198_v26, %v557_v36  ;;  %v577_v49 = vld [vmem:[%s1956_s1 + $0x470] sm:$0xff] }
  0x3f   : > { %524 = vmatpush.msrb.mxu2 %v257_v52  ;;  %483 = vmatpush.msrb.mxu0 %v226_v53  ;;  %466 = vst [vmem:[#allocation1 + $0x1] ss:$4 sm:$0xff] %v1422_v54  ;;  %v235_v42 = vld [vmem:[%s1956_s1 + $0x80] sm:$0xff]  ;;  %v624_v52 = vld [vmem:[%s1956_s1 + $0x5e8] sm:$0xff]  ;;  %v606_v56 = vld [vmem:[%s1956_s1 + $0x558] sm:$0xff] }
  0x40   : > { %503 = vmatpush.msrb.mxu1 %v242_v58  ;;  %544 = vmatpush.msrb.mxu3 %v273_v59  ;;  %v561_v48 = vsel %vm212_vm1, %v558_v37, %v559_v38  ;;  %v576_v53 = vld [vmem:[%s1956_s1 + $0x468] sm:$0xff]  ;;  %v623_v57 = vld [vmem:[%s1956_s1 + $0x5e0] sm:$0xff]  ;;  %v719_v59 = vsel %vm283_vm2, %v198_v26, %v557_v36  ;;  %v720_v60 = vsel %vm285_vm8, %v559_v38, %v558_v37  ;;  %v574_v6 = vld [vmem:[%s1956_s1 + $0x458] sm:$0xff] }
  0x41   : > { %525 = vmatpush.msrb.mxu2 %v256_v0  ;;  %484 = vmatpush.msrb.mxu0 %v225_v1  ;;  %v592_v55 = vld [vmem:[%s1956_s1 + $0x4e8] sm:$0xff]  ;;  %v562_v58 = vsel %vm214_vm5, %v560_v47, %v561_v48  ;;  %v721_v2 = vsel %vm287_vm9, %v719_v59, %v720_v60  ;;  %v575_v3 = vld [vmem:[%s1956_s1 + $0x460] sm:$0xff]  ;;  %v590_v9 = vld [vmem:[%s1956_s1 + $0x4d8] sm:$0xff] }
  0x42   : > { %504 = vmatpush.msrb.mxu1 %v241_v4  ;;  %545 = vmatpush.msrb.mxu3 %v272_v5  ;;  %v591_v4 = vld [vmem:[%s1956_s1 + $0x4e0] sm:$0xff]  ;;  %v605_v5 = vld [vmem:[%s1956_s1 + $0x550] sm:$0xff]  ;;  %v568_v36 = vld [vmem:[%s1956_s1 + $0x428] sm:$0xff] }
  0x43   : > { %526 = vmatpush.msrb.mxu2 %v255_v7  ;;  %485 = vmatpush.msrb.mxu0 %v224_v8  ;;  %v989_v7 = vrot.slane %v562_v58, 9  ;;  %v990_v8 = vrot.slane %v721_v2, 9  ;;  %v587_v27 = vld [vmem:[%s1956_s1 + $0x4c0] sm:$0xff]  ;;  %v601_v62 = vld [vmem:[%s1956_s1 + $0x530] sm:$0xff]  ;;  %v584_v37 = vld [vmem:[%s1956_s1 + $0x4a8] sm:$0xff] }
  0x44   : > { %505 = vmatpush.msrb.mxu1 %v240_v10  ;;  %546 = vmatpush.msrb.mxu3 %v271_v11  ;;  %v604_v10 = vld [vmem:[%s1956_s1 + $0x548] sm:$0xff]  ;;  %v621_v11 = vld [vmem:[%s1956_s1 + $0x5d0] sm:$0xff]  ;;  %v598_v38 = vld [vmem:[%s1956_s1 + $0x518] sm:$0xff] }
  0x45   : > { %527 = vmatpush.msrb.mxu2 %v254_v13  ;;  %486 = vmatpush.msrb.mxu0 %v223_v14  ;;  %v573_v13 = vld [vmem:[%s1956_s1 + $0x450] sm:$0xff]  ;;  %v563_v59 = vld [vmem:[%s1956_s1 + $0x400] sm:$0xff] }
  0x46   : > { %506 = vmatpush.msrb.mxu1 %v239_v15  ;;  %547 = vmatpush.msrb.mxu3 %v270_v16  ;;  %v469_v61 = vld.sshfl [vmem:[#allocation1 + $0x10] sm:$0xff pattern:$0x73625140]  ;;  %v467_v63 = vld.sshfl [vmem:[#allocation1] sm:$0xff pattern:$0x73625140] }
  0x47   : > { %528 = vmatpush.msrb.mxu2 %v253_v17  ;;  %487 = vmatpush.msrb.mxu0 %v222_v18  ;;  %v470_v0 = vld.sshfl [vmem:[#allocation1 + $0x18] sm:$0xff pattern:$0x73625140]  ;;  %v468_v1 = vld.sshfl [vmem:[#allocation1 + $0x8] sm:$0xff pattern:$0x73625140] }
  0x48   : > { %507 = vmatpush.msrb.mxu1 %v238_v19  ;;  %548 = vmatpush.msrb.mxu3 %v269_v21  ;;  %627 = vst [vmem:[#allocation1] ss:$4 sm:$0xff] %v1422_v54  ;;  %v622_v54 = vld [vmem:[%s1956_s1 + $0x5d8] sm:$0xff]  ;;  %v589_v14 = vld [vmem:[%s1956_s1 + $0x4d0] sm:$0xff]  ;;  %v603_v15 = vld [vmem:[%s1956_s1 + $0x540] sm:$0xff] }
  0x49   : > { %529 = vmatpush.msrb.mxu2 %v252_v20  ;;  %488 = vmatpush.msrb.mxu0 %v221_v22  ;;  %629 = vst [vmem:[#allocation1 + $0x1] ss:$4 sm:$0xff] %v562_v58  ;;  %v620_v16 = vld [vmem:[%s1956_s1 + $0x5c8] sm:$0xff]  ;;  %v602_v19 = vld [vmem:[%s1956_s1 + $0x538] sm:$0xff]  ;;  %v619_v20 = vld [vmem:[%s1956_s1 + $0x5c0] sm:$0xff]  ;;  %v726_v22 = vsel %vm1438_vm12, %v989_v7, %v990_v8 }
  0x4a   : > { %508 = vmatpush.msrb.mxu1 %v237_v23  ;;  %549 = vmatpush.msrb.mxu3 %v268_v25  ;;  %v572_v17 = vld [vmem:[%s1956_s1 + $0x448] sm:$0xff]  ;;  %v571_v21 = vld [vmem:[%s1956_s1 + $0x440] sm:$0xff]  ;;  %v613_v47 = vld [vmem:[%s1956_s1 + $0x590] sm:$0xff] }
  0x4b   : > { %530 = vmatpush.msrb.mxu2 %v251_v24  ;;  %489 = vmatpush.msrb.mxu0 %v220_v29  ;;  %v588_v18 = vld [vmem:[%s1956_s1 + $0x4c8] sm:$0xff]  ;;  %v570_v29 = vld [vmem:[%s1956_s1 + $0x438] sm:$0xff]  ;;  %v565_v48 = vld [vmem:[%s1956_s1 + $0x410] sm:$0xff] }
  0x4c   : > { %440 = vmatmul.f32.vlgmr.msra.gmra.mxu2 %v378_v32  ;;  %509 = vmatpush.msrb.mxu1 %v236_v30  ;;  %v586_v30 = vld [vmem:[%s1956_s1 + $0x4b8] sm:$0xff]  ;;  %v569_v32 = vld [vmem:[%s1956_s1 + $0x430] sm:$0xff]  ;;  %v579_v60 = vld [vmem:[%s1956_s1 + $0x480] sm:$0xff] }
  0x4d   : > { %678 = vmatpush.msra.mxu2 %v610_v28  ;;  %550 = vmatpush.msrb.mxu3 %v267_v31  ;;  %v618_v28 = vld [vmem:[%s1956_s1 + $0x5b8] sm:$0xff]  ;;  %v617_v31 = vld [vmem:[%s1956_s1 + $0x5b0] sm:$0xff]  ;;  %v787_v8 = vld [vmem:[%s1956_s1 + $0x7e0] sm:$0xff] }
  0x4e   : > { %400 = vmatmul.f32.vlgmr.msra.gmra.mxu0 %v376_v33  ;;  %460 = vmatmul.f32.vlgmr.msra.gmra.mxu3 %v379_v34  ;;  %v585_v33 = vld [vmem:[%s1956_s1 + $0x4b0] sm:$0xff]  ;;  %v599_v34 = vld [vmem:[%s1956_s1 + $0x520] sm:$0xff]  ;;  %v790_v58 = vld [vmem:[%s1956_s1 + $0x7f8] sm:$0xff] }
  0x4f   : > { %679 = vmatpush.msra.mxu2 %v609_v39  ;;  %698 = vmatpush.msra.mxu3 %v626_v40  ;;  %v615_v39 = vld [vmem:[%s1956_s1 + $0x5a0] sm:$0xff]  ;;  %v741_v2 = vld [vmem:[%s1956_s1 + $0x670] sm:$0xff]  ;;  %v770_v7 = vld [vmem:[%s1956_s1 + $0x758] sm:$0xff] }
  0x50   : > { %490 = vmatpush.msrb.mxu0 %v219_v41  ;;  %510 = vmatpush.msrb.mxu1 %v235_v42  ;;  %v1638_v23 = vld.sshfl [vmem:[#allocation1 + $0x10] sm:$0xff pattern:$0x73625140]  ;;  %v1640_v24 = vld.sshfl [vmem:[#allocation1 + $0x18] sm:$0xff pattern:$0x73625140] }
  0x51   : > { %420 = vmatmul.f32.vlgmr.msra.gmra.mxu1 %v377_v35  ;;  %680 = vmatpush.msra.mxu2 %v608_v45  ;;  %v1642_v25 = vld.sshfl [vmem:[#allocation1] sm:$0xff pattern:$0x73625140]  ;;  %v1644_v26 = vld.sshfl [vmem:[#allocation1 + $0x8] sm:$0xff pattern:$0x73625140] }
  0x52   : > { %638 = vmatpush.msra.mxu0 %v578_v43  ;;  %658 = vmatpush.msra.mxu1 %v594_v44  ;;  %791 = vst [vmem:[#allocation1] ss:$4 sm:$0xff] %v1472_v12  ;;  %v600_v12 = vld [vmem:[%s1956_s1 + $0x528] sm:$0xff]  ;;  %v567_v40 = vld [vmem:[%s1956_s1 + $0x420] sm:$0xff]  ;;  %v597_v42 = vld [vmem:[%s1956_s1 + $0x510] sm:$0xff] }
  0x53   : > { %699 = vmatpush.msra.mxu3 %v625_v46  ;;  %681 = vmatpush.msra.mxu2 %v607_v51  ;;  %793 = vst [vmem:[#allocation1 + $0x1] ss:$4 sm:$0xff] %v726_v22  ;;  %v616_v35 = vld [vmem:[%s1956_s1 + $0x5a8] sm:$0xff]  ;;  %v583_v41 = vld [vmem:[%s1956_s1 + $0x4a0] sm:$0xff]  ;;  %v614_v43 = vld [vmem:[%s1956_s1 + $0x598] sm:$0xff] }
  0x54   : > { %639 = vmatpush.msra.mxu0 %v577_v49  ;;  %659 = vmatpush.msra.mxu1 %v593_v50  ;;  %v566_v44 = vld [vmem:[%s1956_s1 + $0x418] sm:$0xff]  ;;  %v596_v46 = vld [vmem:[%s1956_s1 + $0x508] sm:$0xff]  ;;  %v581_v49 = vld [vmem:[%s1956_s1 + $0x490] sm:$0xff] }
  0x55   : > { %700 = vmatpush.msra.mxu3 %v624_v52  ;;  %531 = vmatmul.f32.vlgmr.msrb.gmra.mxu2 %v469_v61  ;;  %v582_v45 = vld [vmem:[%s1956_s1 + $0x498] sm:$0xff]  ;;  %v595_v50 = vld [vmem:[%s1956_s1 + $0x500] sm:$0xff]  ;;  %v612_v51 = vld [vmem:[%s1956_s1 + $0x588] sm:$0xff] }
  0x56   : > { %640 = vmatpush.msra.mxu0 %v576_v53  ;;  %660 = vmatpush.msra.mxu1 %v592_v55  ;;  %v774_v52 = vld [vmem:[%s1956_s1 + $0x778] sm:$0xff]  ;;  %v564_v53 = vld [vmem:[%s1956_s1 + $0x408] sm:$0xff] }
  0x57   : > { %682 = vmatpush.msra.mxu2 %v606_v56  ;;  %701 = vmatpush.msra.mxu3 %v623_v57  ;;  %v580_v55 = vld [vmem:[%s1956_s1 + $0x488] sm:$0xff]  ;;  %v611_v56 = vld [vmem:[%s1956_s1 + $0x580] sm:$0xff]  ;;  %v773_v57 = vld [vmem:[%s1956_s1 + $0x770] sm:$0xff] }
  0x58   : > { %491 = vmatmul.f32.vlgmr.msrb.gmra.mxu0 %v467_v63  ;;  %551 = vmatmul.f32.vlgmr.msrb.gmra.mxu3 %v470_v0  ;;  %v742_v61 = vld [vmem:[%s1956_s1 + $0x678] sm:$0xff]  ;;  %v772_v0 = vld [vmem:[%s1956_s1 + $0x768] sm:$0xff] }
  0x59   : > { %641 = vmatpush.msra.mxu0 %v575_v3  ;;  %661 = vmatpush.msra.mxu1 %v591_v4  ;;  %v758_v63 = vld [vmem:[%s1956_s1 + $0x6f8] sm:$0xff]  ;;  %v757_v3 = vld [vmem:[%s1956_s1 + $0x6f0] sm:$0xff]  ;;  %v771_v4 = vld [vmem:[%s1956_s1 + $0x760] sm:$0xff] }
  0x5a   : > { %683 = vmatpush.msra.mxu2 %v605_v5  ;;  %702 = vmatpush.msra.mxu3 %v622_v54  ;;  %v788_v5 = vld [vmem:[%s1956_s1 + $0x7e8] sm:$0xff] }
  0x5b   : > { %511 = vmatmul.f32.vlgmr.msrb.gmra.mxu1 %v468_v1  ;;  %642 = vmatpush.msra.mxu0 %v574_v6  ;;  %v789_v1 = vld [vmem:[%s1956_s1 + $0x7f0] sm:$0xff]  ;;  %v740_v54 = vld [vmem:[%s1956_s1 + $0x668] sm:$0xff] }
  0x5c   : > { %662 = vmatpush.msra.mxu1 %v590_v9  ;;  %684 = vmatpush.msra.mxu2 %v604_v10  ;;  %v756_v6 = vld [vmem:[%s1956_s1 + $0x6e8] sm:$0xff]  ;;  %v739_v9 = vld [vmem:[%s1956_s1 + $0x660] sm:$0xff] }
  0x5d   : > { %703 = vmatpush.msra.mxu3 %v621_v11  ;;  %643 = vmatpush.msra.mxu0 %v573_v13  ;;  %v755_v10 = vld [vmem:[%s1956_s1 + $0x6e0] sm:$0xff]  ;;  %v769_v11 = vld [vmem:[%s1956_s1 + $0x750] sm:$0xff]  ;;  %v786_v13 = vld [vmem:[%s1956_s1 + $0x7d8] sm:$0xff] }
  0x5e   : > { %663 = vmatpush.msra.mxu1 %v589_v14  ;;  %685 = vmatpush.msra.mxu2 %v603_v15  ;;  %v738_v14 = vld [vmem:[%s1956_s1 + $0x658] sm:$0xff]  ;;  %v736_v22 = vld [vmem:[%s1956_s1 + $0x648] sm:$0xff] }
  0x5f   : > { %704 = vmatpush.msra.mxu3 %v620_v16  ;;  %644 = vmatpush.msra.mxu0 %v572_v17  ;;  %v754_v15 = vld [vmem:[%s1956_s1 + $0x6d8] sm:$0xff]  ;;  %v768_v16 = vld [vmem:[%s1956_s1 + $0x748] sm:$0xff]  ;;  %v785_v17 = vld [vmem:[%s1956_s1 + $0x7d0] sm:$0xff] }
  0x60   : > { %664 = vmatpush.msra.mxu1 %v588_v18  ;;  %686 = vmatpush.msra.mxu2 %v602_v19  ;;  %v737_v18 = vld [vmem:[%s1956_s1 + $0x650] sm:$0xff] }
  0x61   : > { %705 = vmatpush.msra.mxu3 %v619_v20  ;;  %645 = vmatpush.msra.mxu0 %v571_v21  ;;  %v753_v19 = vld [vmem:[%s1956_s1 + $0x6d0] sm:$0xff]  ;;  %v767_v20 = vld [vmem:[%s1956_s1 + $0x740] sm:$0xff]  ;;  %v784_v21 = vld [vmem:[%s1956_s1 + $0x7c8] sm:$0xff] }
  0x62   : > { %665 = vmatpush.msra.mxu1 %v587_v27  ;;  %687 = vmatpush.msra.mxu2 %v601_v62  ;;  %v751_v27 = vld [vmem:[%s1956_s1 + $0x6c0] sm:$0xff]  ;;  %v765_v62 = vld [vmem:[%s1956_s1 + $0x730] sm:$0xff] }
  0x63   : > { %706 = vmatpush.msra.mxu3 %v618_v28  ;;  %646 = vmatpush.msra.mxu0 %v570_v29  ;;  %v782_v28 = vld [vmem:[%s1956_s1 + $0x7b8] sm:$0xff] }
  0x64   : > { %666 = vmatpush.msra.mxu1 %v586_v30  ;;  %688 = vmatpush.msra.mxu2 %v600_v12  ;;  %v734_v29 = vld [vmem:[%s1956_s1 + $0x638] sm:$0xff]  ;;  %v764_v12 = vld [vmem:[%s1956_s1 + $0x728] sm:$0xff] }
  0x65   : > { %707 = vmatpush.msra.mxu3 %v617_v31  ;;  %647 = vmatpush.msra.mxu0 %v569_v32  ;;  %v750_v30 = vld [vmem:[%s1956_s1 + $0x6b8] sm:$0xff]  ;;  %v781_v31 = vld [vmem:[%s1956_s1 + $0x7b0] sm:$0xff] }
  0x66   : > { %667 = vmatpush.msra.mxu1 %v585_v33  ;;  %689 = vmatpush.msra.mxu2 %v599_v34  ;;  %v733_v32 = vld [vmem:[%s1956_s1 + $0x630] sm:$0xff]  ;;  %v763_v34 = vld [vmem:[%s1956_s1 + $0x720] sm:$0xff] }
  0x67   : > { %708 = vmatpush.msra.mxu3 %v616_v35  ;;  %648 = vmatpush.msra.mxu0 %v568_v36  ;;  %v749_v33 = vld [vmem:[%s1956_s1 + $0x6b0] sm:$0xff]  ;;  %v780_v35 = vld [vmem:[%s1956_s1 + $0x7a8] sm:$0xff] }
  0x68   : > { %668 = vmatpush.msra.mxu1 %v584_v37  ;;  %690 = vmatpush.msra.mxu2 %v598_v38  ;;  %v732_v36 = vld [vmem:[%s1956_s1 + $0x628] sm:$0xff]  ;;  %v762_v38 = vld [vmem:[%s1956_s1 + $0x718] sm:$0xff] }
  0x69   : > { %709 = vmatpush.msra.mxu3 %v615_v39  ;;  %649 = vmatpush.msra.mxu0 %v567_v40  ;;  %v748_v37 = vld [vmem:[%s1956_s1 + $0x6a8] sm:$0xff]  ;;  %v779_v39 = vld [vmem:[%s1956_s1 + $0x7a0] sm:$0xff] }
  0x6a   : > { %669 = vmatpush.msra.mxu1 %v583_v41  ;;  %691 = vmatpush.msra.mxu2 %v597_v42  ;;  %v731_v40 = vld [vmem:[%s1956_s1 + $0x620] sm:$0xff]  ;;  %v761_v42 = vld [vmem:[%s1956_s1 + $0x710] sm:$0xff] }
  0x6b   : > { %710 = vmatpush.msra.mxu3 %v614_v43  ;;  %650 = vmatpush.msra.mxu0 %v566_v44  ;;  %v747_v41 = vld [vmem:[%s1956_s1 + $0x6a0] sm:$0xff]  ;;  %v778_v43 = vld [vmem:[%s1956_s1 + $0x798] sm:$0xff] }
  0x6c   : > { %670 = vmatpush.msra.mxu1 %v582_v45  ;;  %692 = vmatpush.msra.mxu2 %v596_v46  ;;  %v730_v44 = vld [vmem:[%s1956_s1 + $0x618] sm:$0xff]  ;;  %v760_v46 = vld [vmem:[%s1956_s1 + $0x708] sm:$0xff] }
  0x6d   : > { %711 = vmatpush.msra.mxu3 %v613_v47  ;;  %651 = vmatpush.msra.mxu0 %v565_v48  ;;  %v746_v45 = vld [vmem:[%s1956_s1 + $0x698] sm:$0xff]  ;;  %v777_v47 = vld [vmem:[%s1956_s1 + $0x790] sm:$0xff] }
  0x6e   : > { %671 = vmatpush.msra.mxu1 %v581_v49  ;;  %693 = vmatpush.msra.mxu2 %v595_v50  ;;  %v729_v48 = vld [vmem:[%s1956_s1 + $0x610] sm:$0xff]  ;;  %v759_v50 = vld [vmem:[%s1956_s1 + $0x700] sm:$0xff] }
  0x6f   : > { %712 = vmatpush.msra.mxu3 %v612_v51  ;;  %694 = vmatmul.f32.vlgmr.msra.gmra.mxu2 %v1638_v23  ;;  %v752_v23 = vld [vmem:[%s1956_s1 + $0x6c8] sm:$0xff]  ;;  %v745_v49 = vld [vmem:[%s1956_s1 + $0x690] sm:$0xff] }
  0x70   : > { %842 = vmatpush.msrb.mxu2 %v774_v52  ;;  %652 = vmatpush.msra.mxu0 %v564_v53  ;;  %v776_v51 = vld [vmem:[%s1956_s1 + $0x788] sm:$0xff]  ;;  %v796_v52 = vld.sshfl [vmem:[#allocation1 + $0x10] sm:$0xff pattern:$0x73625140] }
  0x71   : > { %672 = vmatpush.msra.mxu1 %v580_v55  ;;  %713 = vmatpush.msra.mxu3 %v611_v56  ;;  %v728_v53 = vld [vmem:[%s1956_s1 + $0x608] sm:$0xff]  ;;  %v775_v56 = vld [vmem:[%s1956_s1 + $0x780] sm:$0xff] }
  0x72   : > { %714 = vmatmul.f32.vlgmr.msra.gmra.mxu3 %v1640_v24  ;;  %843 = vmatpush.msrb.mxu2 %v773_v57  ;;  %v766_v24 = vld [vmem:[%s1956_s1 + $0x738] sm:$0xff]  ;;  %v744_v55 = vld [vmem:[%s1956_s1 + $0x688] sm:$0xff] }
  0x73   : > { %862 = vmatpush.msrb.mxu3 %v790_v58  ;;  %653 = vmatpush.msra.mxu0 %v563_v59  ;;  %v797_v57 = vld.sshfl [vmem:[#allocation1 + $0x18] sm:$0xff pattern:$0x73625140]  ;;  %v727_v58 = vld [vmem:[%s1956_s1 + $0x600] sm:$0xff] }
  0x74   : > { %673 = vmatpush.msra.mxu1 %v579_v60  ;;  %654 = vmatmul.f32.vlgmr.msra.gmra.mxu0 %v1642_v25  ;;  %v783_v25 = vld [vmem:[%s1956_s1 + $0x7c0] sm:$0xff] }
  0x75   : > { %674 = vmatmul.f32.vlgmr.msra.gmra.mxu1 %v1644_v26  ;;  %802 = vmatpush.msrb.mxu0 %v742_v61  ;;  %v735_v26 = vld [vmem:[%s1956_s1 + $0x640] sm:$0xff]  ;;  %v795_v61 = vld.sshfl [vmem:[#allocation1 + $0x8] sm:$0xff pattern:$0x73625140] }
  0x76   : > { %822 = vmatpush.msrb.mxu1 %v758_v63  ;;  %844 = vmatpush.msrb.mxu2 %v772_v0  ;;  %v743_v59 = vld [vmem:[%s1956_s1 + $0x680] sm:$0xff] }
  0x77   : > { %863 = vmatpush.msrb.mxu3 %v789_v1  ;;  %803 = vmatpush.msrb.mxu0 %v741_v2  ;;  %v794_v60 = vld.sshfl [vmem:[#allocation1] sm:$0xff pattern:$0x73625140] }
  0x78   : > { %823 = vmatpush.msrb.mxu1 %v757_v3  ;;  %845 = vmatpush.msrb.mxu2 %v771_v4 }
  0x79   : > { %864 = vmatpush.msrb.mxu3 %v788_v5  ;;  %804 = vmatpush.msrb.mxu0 %v740_v54 }
  0x7a   : > { %824 = vmatpush.msrb.mxu1 %v756_v6  ;;  %846 = vmatpush.msrb.mxu2 %v770_v7 }
  0x7b   : > { %865 = vmatpush.msrb.mxu3 %v787_v8  ;;  %805 = vmatpush.msrb.mxu0 %v739_v9 }
  0x7c   : > { %825 = vmatpush.msrb.mxu1 %v755_v10  ;;  %847 = vmatpush.msrb.mxu2 %v769_v11 }
  0x7d   : > { %866 = vmatpush.msrb.mxu3 %v786_v13  ;;  %806 = vmatpush.msrb.mxu0 %v738_v14 }
  0x7e   : > { %826 = vmatpush.msrb.mxu1 %v754_v15  ;;  %848 = vmatpush.msrb.mxu2 %v768_v16 }
  0x7f   : > { %867 = vmatpush.msrb.mxu3 %v785_v17  ;;  %807 = vmatpush.msrb.mxu0 %v737_v18 }
  0x80   : > { %827 = vmatpush.msrb.mxu1 %v753_v19  ;;  %849 = vmatpush.msrb.mxu2 %v767_v20 }
  0x81   : > { %868 = vmatpush.msrb.mxu3 %v784_v21  ;;  %808 = vmatpush.msrb.mxu0 %v736_v22 }
  0x82   : > { %828 = vmatpush.msrb.mxu1 %v752_v23  ;;  %850 = vmatpush.msrb.mxu2 %v766_v24 }
  0x83   : > { %869 = vmatpush.msrb.mxu3 %v783_v25  ;;  %809 = vmatpush.msrb.mxu0 %v735_v26 }
  0x84   : > { %829 = vmatpush.msrb.mxu1 %v751_v27  ;;  %851 = vmatpush.msrb.mxu2 %v765_v62 }
  0x85   : > { %870 = vmatpush.msrb.mxu3 %v782_v28  ;;  %810 = vmatpush.msrb.mxu0 %v734_v29  ;;  %v1019_v28 = vld [vmem:[%s1957_s2] ss:$0 sm:$0xff] }
  0x86   : > { %830 = vmatpush.msrb.mxu1 %v750_v30  ;;  %852 = vmatpush.msrb.mxu2 %v764_v12 }
  0x87   : > { %871 = vmatpush.msrb.mxu3 %v781_v31  ;;  %811 = vmatpush.msrb.mxu0 %v733_v32 }
  0x88   : > { %831 = vmatpush.msrb.mxu1 %v749_v33  ;;  %853 = vmatpush.msrb.mxu2 %v763_v34 }
  0x89   : > { %872 = vmatpush.msrb.mxu3 %v780_v35  ;;  %812 = vmatpush.msrb.mxu0 %v732_v36 }
  0x8a   : > { %832 = vmatpush.msrb.mxu1 %v748_v37  ;;  %854 = vmatpush.msrb.mxu2 %v762_v38 }
  0x8b   : > { %873 = vmatpush.msrb.mxu3 %v779_v39  ;;  %813 = vmatpush.msrb.mxu0 %v731_v40 }
  0x8c   : > { %833 = vmatpush.msrb.mxu1 %v747_v41  ;;  %855 = vmatpush.msrb.mxu2 %v761_v42 }
  0x8d   : > { %874 = vmatpush.msrb.mxu3 %v778_v43  ;;  %814 = vmatpush.msrb.mxu0 %v730_v44 }
  0x8e   : > { %834 = vmatpush.msrb.mxu1 %v746_v45  ;;  %856 = vmatpush.msrb.mxu2 %v760_v46 }
  0x8f   : > { %875 = vmatpush.msrb.mxu3 %v777_v47  ;;  %815 = vmatpush.msrb.mxu0 %v729_v48 }
  0x90   : > { %835 = vmatpush.msrb.mxu1 %v745_v49  ;;  %857 = vmatpush.msrb.mxu2 %v759_v50 }
  0x91   : > { %876 = vmatpush.msrb.mxu3 %v776_v51  ;;  %858 = vmatmul.f32.vlgmr.msrb.gmra.mxu2 %v796_v52 }
  0x92   : > { %816 = vmatpush.msrb.mxu0 %v728_v53  ;;  %836 = vmatpush.msrb.mxu1 %v744_v55 }
  0x93   : > { %877 = vmatpush.msrb.mxu3 %v775_v56 }
  0x94   : > { %878 = vmatmul.f32.vlgmr.msrb.gmra.mxu3 %v797_v57  ;;  %817 = vmatpush.msrb.mxu0 %v727_v58 }
  0x95   : > { %837 = vmatpush.msrb.mxu1 %v743_v59  ;;  %818 = vmatmul.f32.vlgmr.msrb.gmra.mxu0 %v794_v60 }
  0x96   : > { %838 = vmatmul.f32.vlgmr.msrb.gmra.mxu1 %v795_v61 }
  0xcb   : > { %v401_v63 = vpop.f32.mrf.mxu0 }
  0xce   : > { %v421_v0 = vpop.f32.mrf.mxu1 }
  0xcf   : > { %v441_v1 = vpop.f32.mrf.mxu2  ;;  %v422_v3 = vadd.f32 %v421_v0, %v401_v63 }
  0xd1   : > { %v461_v2 = vpop.f32.mrf.mxu3  ;;  %v442_v54 = vadd.f32 %v441_v1, %v422_v3 }
  0xd3   : > { %v462_v7 = vadd.f32 %v461_v2, %v442_v54 }
  0xd5   : > { %v492_v4 = vpop.f32.mrf.mxu0 }
  0xd6   : > { %v493_v11 = vadd.f32 %v492_v4, %v462_v7 }
  0xd8   : > { %v512_v5 = vpop.f32.mrf.mxu1  ;;  %v532_v6 = vpop.f32.mrf.mxu2 }
  0xd9   : > { %v513_v15 = vadd.f32 %v512_v5, %v493_v11 }
  0xdb   : > { %v552_v8 = vpop.f32.mrf.mxu3  ;;  %v533_v18 = vadd.f32 %v532_v6, %v513_v15 }
  0xdd   : > { %v553_v24 = vadd.f32 %v552_v8, %v533_v18 }
  0xf1   : > { %v655_v9 = vpop.f32.mrf.mxu0 }
  0xf2   : > { %v675_v10 = vpop.f32.mrf.mxu1  ;;  %v695_v14 = vpop.f32.mrf.mxu2 }
  0xf3   : > { %v676_v13 = vadd.f32 %v675_v10, %v655_v9 }
  0xf5   : > { %v715_v16 = vpop.f32.mrf.mxu3  ;;  %v696_v17 = vadd.f32 %v695_v14, %v676_v13 }
  0xf7   : > { %v716_v21 = vadd.f32 %v715_v16, %v696_v17 }
  0xf9   : > { %v718_v27 = vadd.f32 %v716_v21, %v553_v24 }
 0x112   : > { %v819_v19 = vpop.f32.mrf.mxu0 }
 0x113   : > { %v839_v20 = vpop.f32.mrf.mxu1 }
 0x114   : > { %v840_v22 = vadd.f32 %v839_v20, %v819_v19  ;;  %v859_v23 = vpop.f32.mrf.mxu2 }
 0x116   : > { %v860_v25 = vadd.f32 %v859_v23, %v840_v22 }
 0x117   : > { %v879_v26 = vpop.f32.mrf.mxu3 }
 0x118   : > { %v880_v62 = vadd.f32 %v879_v26, %v860_v25 }
 0x11a   : > { %v882_v29 = vadd.f32 %v880_v62, %v718_v27 }
 0x11c   : > { %v887_v30 = vadd.f32 %v1019_v28, %v882_v29 }
 0x11e   : > { %vm888_vm13 = vcmp.ge.f32.partialorder %v887_v30, 0.0  ;;  %v889_v12 = vmul.f32 0.2, %v887_v30 }
 0x120   : > { %v890_v31 = vsel %vm888_vm13, %v887_v30, %v889_v12 }
 0x121   : > { %v892_v32 = vrot.slane %v890_v31, 2  ;;  %894 = vst [vmem:[%s192_s7] sm:$0x3] %v890_v31 }
 0x123   : > { %895 = vst [vmem:[%s192_s7 + $0x2] sm:$0x3] %v892_v32 }
 0x124 PF: > { %s13_s14 = sadd.s32 1, %s1042_s14   ;;  %s1965_s12 = smov %s1038_s13 }
 0x125   : > { %p10_p5 = scmp.ge.s32.totalorder %s13_s14, 4   ;;  %s1966_s13 = smov %s1968_s15 }
 0x127   :  { %12 = sbr.rel (!%p10_p5) target bundleno = 2 (0x2), region = 66 }

// kernel: discriminator_sep.9
= control target key start
LH: loop header
LB: loop body
LE: loop exit
PB: predicated region body
PF: predicated region fallthrough
CT: control target
= control target key end

     0   :  { %s947_s12 = smov 0   ;;  %s949_s13 = smov 0   ;;  %s1785_s0 = inlined_call_operand.vmem [shape: f32[2,2,2,512], index: 0, kind: input, shape index: {}]   ;;  %s1786_s1 = inlined_call_operand.vmem [shape: f32[2048,128], index: 1, kind: input, shape index: {}]   ;;  %s1787_s2 = inlined_call_operand.vmem [shape: f32[1,128], index: 2, kind: input, shape index: {}]   ;;  %s1788_s3 = inlined_call_operand.vmem [shape: f32[2,1,1,128], index: 3, kind: output, shape index: {}]  }
   0x1   :  { %s951_s14 = smov 0  }
   0x2 LB: > { %s25_s15 = sadd.s32 1, %s921_s13  ;;  %p873_p0 = scmp.ge.s32.totalorder %s925_s14, 1  ;;  %s925_s14 = sphi %s951_s14, %s13_s14   ;;  %s921_s13 = sphi %s949_s13, %s1790_s13   ;;  %s917_s12 = sphi %s947_s12, %s1789_s12  }
   0x3   : > { %p27_p1 = scmp.ge.s32.totalorder %s25_s15, 2  ;;  %p151_p2 = scmp.lt.s32.totalorder %s925_s14, 3 }
   0x5   : > { %s1792_s15 = smov (%p27_p1, %s25_s15), 0  ;;  %p152_p3 = pnand %p873_p0, %p151_p2 }
   0x6   : > { %p176_p4 = scmp.lt.s32.totalorder (!%p152_p3), %s917_s12, 1 }
   0x7   : > { %155 = sbr.rel (%p152_p3) target bundleno = 287 (0x11f), region = 32 }
   0xc   : > { %v300_v0 = vld [vmem:[%s1786_s1 + $0x378] sm:$0xff]  ;;  %v299_v1 = vld [vmem:[%s1786_s1 + $0x370] sm:$0xff]  ;;  %v298_v5 = vld [vmem:[%s1786_s1 + $0x368] sm:$0xff]  ;;  %s1794_s12 = smov (!%p176_p4, %s917_s12), 1 }
   0xd   : > { %v316_v2 = vld [vmem:[%s1786_s1 + $0x3f8] sm:$0xff]  ;;  %366 = vmatpush.msra.mxu2 %v300_v0  ;;  %v315_v6 = vld [vmem:[%s1786_s1 + $0x3f0] sm:$0xff]  ;;  %v314_v9 = vld [vmem:[%s1786_s1 + $0x3e8] sm:$0xff]  ;;  %s878_s21 = sshll.u32 %s1794_s12, 4  ;;  %s186_s8 = scalar_lea.vmem %s1788_s3, %s1794_s12 }
   0xe   : > { %386 = vmatpush.msra.mxu3 %v316_v2  ;;  %v268_v3 = vld [vmem:[%s1786_s1 + $0x278] sm:$0xff]  ;;  %v267_v7 = vld [vmem:[%s1786_s1 + $0x270] sm:$0xff]  ;;  %v266_v10 = vld [vmem:[%s1786_s1 + $0x268] sm:$0xff]  ;;  %s1313_s9 = scalar_lea.vmem %s1785_s0, %s878_s21 }
   0xf   : > { %v284_v4 = vld [vmem:[%s1786_s1 + $0x2f8] sm:$0xff]  ;;  %326 = vmatpush.msra.mxu0 %v268_v3  ;;  %v283_v8 = vld [vmem:[%s1786_s1 + $0x2f0] sm:$0xff]  ;;  %367 = vmatpush.msra.mxu2 %v299_v1  ;;  %v297_v11 = vld [vmem:[%s1786_s1 + $0x360] sm:$0xff] }
  0x10   : > { %346 = vmatpush.msra.mxu1 %v284_v4  ;;  %387 = vmatpush.msra.mxu3 %v315_v6  ;;  %v282_v12 = vld [vmem:[%s1786_s1 + $0x2e8] sm:$0xff]  ;;  %v313_v13 = vld [vmem:[%s1786_s1 + $0x3e0] sm:$0xff]  ;;  %v296_v16 = vld [vmem:[%s1786_s1 + $0x358] sm:$0xff] }
  0x11   : > { %327 = vmatpush.msra.mxu0 %v267_v7  ;;  %368 = vmatpush.msra.mxu2 %v298_v5  ;;  %v265_v14 = vld [vmem:[%s1786_s1 + $0x260] sm:$0xff]  ;;  %v312_v17 = vld [vmem:[%s1786_s1 + $0x3d8] sm:$0xff]  ;;  %v295_v20 = vld [vmem:[%s1786_s1 + $0x350] sm:$0xff] }
  0x12   : > { %347 = vmatpush.msra.mxu1 %v283_v8  ;;  %388 = vmatpush.msra.mxu3 %v314_v9  ;;  %v281_v15 = vld [vmem:[%s1786_s1 + $0x2e0] sm:$0xff]  ;;  %v264_v18 = vld [vmem:[%s1786_s1 + $0x258] sm:$0xff]  ;;  %v311_v21 = vld [vmem:[%s1786_s1 + $0x3d0] sm:$0xff] }
  0x13   : > { %328 = vmatpush.msra.mxu0 %v266_v10  ;;  %369 = vmatpush.msra.mxu2 %v297_v11  ;;  %v280_v19 = vld [vmem:[%s1786_s1 + $0x2d8] sm:$0xff]  ;;  %v263_v22 = vld [vmem:[%s1786_s1 + $0x250] sm:$0xff]  ;;  %v294_v24 = vld [vmem:[%s1786_s1 + $0x348] sm:$0xff] }
  0x14   : > { %348 = vmatpush.msra.mxu1 %v282_v12  ;;  %389 = vmatpush.msra.mxu3 %v313_v13  ;;  %v279_v23 = vld [vmem:[%s1786_s1 + $0x2d0] sm:$0xff]  ;;  %v310_v25 = vld [vmem:[%s1786_s1 + $0x3c8] sm:$0xff]  ;;  %v293_v28 = vld [vmem:[%s1786_s1 + $0x340] sm:$0xff] }
  0x15   : > { %329 = vmatpush.msra.mxu0 %v265_v14  ;;  %370 = vmatpush.msra.mxu2 %v296_v16  ;;  %v262_v26 = vld [vmem:[%s1786_s1 + $0x248] sm:$0xff]  ;;  %v309_v29 = vld [vmem:[%s1786_s1 + $0x3c0] sm:$0xff]  ;;  %v292_v32 = vld [vmem:[%s1786_s1 + $0x338] sm:$0xff] }
  0x16   : > { %349 = vmatpush.msra.mxu1 %v281_v15  ;;  %390 = vmatpush.msra.mxu3 %v312_v17  ;;  %v278_v27 = vld [vmem:[%s1786_s1 + $0x2c8] sm:$0xff]  ;;  %v261_v30 = vld [vmem:[%s1786_s1 + $0x240] sm:$0xff]  ;;  %v308_v33 = vld [vmem:[%s1786_s1 + $0x3b8] sm:$0xff] }
  0x17   : > { %330 = vmatpush.msra.mxu0 %v264_v18  ;;  %371 = vmatpush.msra.mxu2 %v295_v20  ;;  %v277_v31 = vld [vmem:[%s1786_s1 + $0x2c0] sm:$0xff]  ;;  %v260_v34 = vld [vmem:[%s1786_s1 + $0x238] sm:$0xff]  ;;  %v291_v36 = vld [vmem:[%s1786_s1 + $0x330] sm:$0xff] }
  0x18   : > { %350 = vmatpush.msra.mxu1 %v280_v19  ;;  %391 = vmatpush.msra.mxu3 %v311_v21  ;;  %v276_v35 = vld [vmem:[%s1786_s1 + $0x2b8] sm:$0xff]  ;;  %v307_v37 = vld [vmem:[%s1786_s1 + $0x3b0] sm:$0xff]  ;;  %v290_v40 = vld [vmem:[%s1786_s1 + $0x328] sm:$0xff] }
  0x19   : > { %331 = vmatpush.msra.mxu0 %v263_v22  ;;  %372 = vmatpush.msra.mxu2 %v294_v24  ;;  %v259_v38 = vld [vmem:[%s1786_s1 + $0x230] sm:$0xff]  ;;  %v306_v41 = vld [vmem:[%s1786_s1 + $0x3a8] sm:$0xff]  ;;  %v289_v44 = vld [vmem:[%s1786_s1 + $0x320] sm:$0xff] }
  0x1a   : > { %351 = vmatpush.msra.mxu1 %v279_v23  ;;  %392 = vmatpush.msra.mxu3 %v310_v25  ;;  %v275_v39 = vld [vmem:[%s1786_s1 + $0x2b0] sm:$0xff]  ;;  %v258_v42 = vld [vmem:[%s1786_s1 + $0x228] sm:$0xff]  ;;  %v305_v45 = vld [vmem:[%s1786_s1 + $0x3a0] sm:$0xff] }
  0x1b   : > { %332 = vmatpush.msra.mxu0 %v262_v26  ;;  %373 = vmatpush.msra.mxu2 %v293_v28  ;;  %v274_v43 = vld [vmem:[%s1786_s1 + $0x2a8] sm:$0xff]  ;;  %v257_v46 = vld [vmem:[%s1786_s1 + $0x220] sm:$0xff]  ;;  %v288_v48 = vld [vmem:[%s1786_s1 + $0x318] sm:$0xff] }
  0x1c   : > { %352 = vmatpush.msra.mxu1 %v278_v27  ;;  %393 = vmatpush.msra.mxu3 %v309_v29  ;;  %v273_v47 = vld [vmem:[%s1786_s1 + $0x2a0] sm:$0xff]  ;;  %v304_v49 = vld [vmem:[%s1786_s1 + $0x398] sm:$0xff]  ;;  %v287_v52 = vld [vmem:[%s1786_s1 + $0x310] sm:$0xff] }
  0x1d   : > { %333 = vmatpush.msra.mxu0 %v261_v30  ;;  %374 = vmatpush.msra.mxu2 %v292_v32  ;;  %v256_v50 = vld [vmem:[%s1786_s1 + $0x218] sm:$0xff]  ;;  %v303_v53 = vld [vmem:[%s1786_s1 + $0x390] sm:$0xff]  ;;  %v286_v56 = vld [vmem:[%s1786_s1 + $0x308] sm:$0xff] }
  0x1e   : > { %353 = vmatpush.msra.mxu1 %v277_v31  ;;  %394 = vmatpush.msra.mxu3 %v308_v33  ;;  %v272_v51 = vld [vmem:[%s1786_s1 + $0x298] sm:$0xff]  ;;  %v255_v54 = vld [vmem:[%s1786_s1 + $0x210] sm:$0xff]  ;;  %v302_v57 = vld [vmem:[%s1786_s1 + $0x388] sm:$0xff] }
  0x1f   : > { %334 = vmatpush.msra.mxu0 %v260_v34  ;;  %375 = vmatpush.msra.mxu2 %v291_v36  ;;  %v271_v55 = vld [vmem:[%s1786_s1 + $0x290] sm:$0xff]  ;;  %v254_v58 = vld [vmem:[%s1786_s1 + $0x208] sm:$0xff]  ;;  %v285_v60 = vld [vmem:[%s1786_s1 + $0x300] sm:$0xff] }
  0x20   : > { %354 = vmatpush.msra.mxu1 %v276_v35  ;;  %395 = vmatpush.msra.mxu3 %v307_v37  ;;  %v270_v59 = vld [vmem:[%s1786_s1 + $0x288] sm:$0xff]  ;;  %v301_v61 = vld [vmem:[%s1786_s1 + $0x380] sm:$0xff]  ;;  %v236_v62 = vld [vmem:[%s1786_s1 + $0x178] sm:$0xff] }
  0x21   : > { %335 = vmatpush.msra.mxu0 %v259_v38  ;;  %376 = vmatpush.msra.mxu2 %v290_v40  ;;  %v252_v63 = vld [vmem:[%s1786_s1 + $0x1f8] sm:$0xff]  ;;  %v253_v0 = vld [vmem:[%s1786_s1 + $0x200] sm:$0xff]  ;;  %v235_v2 = vld [vmem:[%s1786_s1 + $0x170] sm:$0xff] }
  0x22   : > { %355 = vmatpush.msra.mxu1 %v275_v39  ;;  %396 = vmatpush.msra.mxu3 %v306_v41  ;;  %v269_v1 = vld [vmem:[%s1786_s1 + $0x280] sm:$0xff]  ;;  %v204_v3 = vld [vmem:[%s1786_s1 + $0x78] sm:$0xff]  ;;  %v251_v5 = vld [vmem:[%s1786_s1 + $0x1f0] sm:$0xff] }
  0x23   : > { %336 = vmatpush.msra.mxu0 %v258_v42  ;;  %377 = vmatpush.msra.mxu2 %v289_v44  ;;  %v220_v4 = vld [vmem:[%s1786_s1 + $0xf8] sm:$0xff]  ;;  %v234_v6 = vld [vmem:[%s1786_s1 + $0x168] sm:$0xff]  ;;  %v203_v7 = vld [vmem:[%s1786_s1 + $0x70] sm:$0xff] }
  0x24   : > { %356 = vmatpush.msra.mxu1 %v274_v43  ;;  %397 = vmatpush.msra.mxu3 %v305_v45  ;;  %v219_v8 = vld [vmem:[%s1786_s1 + $0xf0] sm:$0xff]  ;;  %v250_v9 = vld [vmem:[%s1786_s1 + $0x1e8] sm:$0xff]  ;;  %v233_v10 = vld [vmem:[%s1786_s1 + $0x160] sm:$0xff] }
  0x25   : > { %337 = vmatpush.msra.mxu0 %v257_v46  ;;  %378 = vmatpush.msra.mxu2 %v288_v48  ;;  %v202_v11 = vld [vmem:[%s1786_s1 + $0x68] sm:$0xff]  ;;  %v249_v13 = vld [vmem:[%s1786_s1 + $0x1e0] sm:$0xff]  ;;  %v232_v14 = vld [vmem:[%s1786_s1 + $0x158] sm:$0xff] }
  0x26   : > { %357 = vmatpush.msra.mxu1 %v273_v47  ;;  %398 = vmatpush.msra.mxu3 %v304_v49  ;;  %v218_v12 = vld [vmem:[%s1786_s1 + $0xe8] sm:$0xff]  ;;  %v201_v15 = vld [vmem:[%s1786_s1 + $0x60] sm:$0xff]  ;;  %v248_v17 = vld [vmem:[%s1786_s1 + $0x1d8] sm:$0xff] }
  0x27   : > { %338 = vmatpush.msra.mxu0 %v256_v50  ;;  %379 = vmatpush.msra.mxu2 %v287_v52  ;;  %v217_v16 = vld [vmem:[%s1786_s1 + $0xe0] sm:$0xff]  ;;  %v231_v18 = vld [vmem:[%s1786_s1 + $0x150] sm:$0xff]  ;;  %v200_v19 = vld [vmem:[%s1786_s1 + $0x58] sm:$0xff] }
  0x28   : > { %358 = vmatpush.msra.mxu1 %v272_v51  ;;  %399 = vmatpush.msra.mxu3 %v303_v53  ;;  %v216_v20 = vld [vmem:[%s1786_s1 + $0xd8] sm:$0xff]  ;;  %v247_v21 = vld [vmem:[%s1786_s1 + $0x1d0] sm:$0xff]  ;;  %v230_v22 = vld [vmem:[%s1786_s1 + $0x148] sm:$0xff] }
  0x29   : > { %339 = vmatpush.msra.mxu0 %v255_v54  ;;  %380 = vmatpush.msra.mxu2 %v286_v56  ;;  %v199_v23 = vld [vmem:[%s1786_s1 + $0x50] sm:$0xff]  ;;  %v246_v25 = vld [vmem:[%s1786_s1 + $0x1c8] sm:$0xff]  ;;  %v229_v26 = vld [vmem:[%s1786_s1 + $0x140] sm:$0xff] }
  0x2a   : > { %359 = vmatpush.msra.mxu1 %v271_v55  ;;  %400 = vmatpush.msra.mxu3 %v302_v57  ;;  %v215_v24 = vld [vmem:[%s1786_s1 + $0xd0] sm:$0xff]  ;;  %v198_v27 = vld [vmem:[%s1786_s1 + $0x48] sm:$0xff]  ;;  %v245_v29 = vld [vmem:[%s1786_s1 + $0x1c0] sm:$0xff] }
  0x2b   : > { %340 = vmatpush.msra.mxu0 %v254_v58  ;;  %381 = vmatpush.msra.mxu2 %v285_v60  ;;  %v214_v28 = vld [vmem:[%s1786_s1 + $0xc8] sm:$0xff]  ;;  %v228_v30 = vld [vmem:[%s1786_s1 + $0x138] sm:$0xff]  ;;  %v197_v31 = vld [vmem:[%s1786_s1 + $0x40] sm:$0xff] }
  0x2c   : > { %360 = vmatpush.msra.mxu1 %v270_v59  ;;  %401 = vmatpush.msra.mxu3 %v301_v61  ;;  %v213_v32 = vld [vmem:[%s1786_s1 + $0xc0] sm:$0xff]  ;;  %v244_v33 = vld [vmem:[%s1786_s1 + $0x1b8] sm:$0xff]  ;;  %v227_v34 = vld [vmem:[%s1786_s1 + $0x130] sm:$0xff] }
  0x2d   : > { %454 = vmatpush.msrb.mxu2 %v236_v62  ;;  %341 = vmatpush.msra.mxu0 %v253_v0  ;;  %v196_v35 = vld [vmem:[%s1786_s1 + $0x38] sm:$0xff]  ;;  %v243_v37 = vld [vmem:[%s1786_s1 + $0x1b0] sm:$0xff]  ;;  %v226_v38 = vld [vmem:[%s1786_s1 + $0x128] sm:$0xff] }
  0x2e   : > { %474 = vmatpush.msrb.mxu3 %v252_v63  ;;  %361 = vmatpush.msra.mxu1 %v269_v1  ;;  %v212_v36 = vld [vmem:[%s1786_s1 + $0xb8] sm:$0xff]  ;;  %v195_v39 = vld [vmem:[%s1786_s1 + $0x30] sm:$0xff]  ;;  %v242_v41 = vld [vmem:[%s1786_s1 + $0x1a8] sm:$0xff] }
  0x2f   : > { %455 = vmatpush.msrb.mxu2 %v235_v2  ;;  %414 = vmatpush.msrb.mxu0 %v204_v3  ;;  %v211_v40 = vld [vmem:[%s1786_s1 + $0xb0] sm:$0xff]  ;;  %v225_v42 = vld [vmem:[%s1786_s1 + $0x120] sm:$0xff]  ;;  %v194_v43 = vld [vmem:[%s1786_s1 + $0x28] sm:$0xff] }
  0x30   : > { %434 = vmatpush.msrb.mxu1 %v220_v4  ;;  %475 = vmatpush.msrb.mxu3 %v251_v5  ;;  %v210_v44 = vld [vmem:[%s1786_s1 + $0xa8] sm:$0xff]  ;;  %v241_v45 = vld [vmem:[%s1786_s1 + $0x1a0] sm:$0xff]  ;;  %v224_v46 = vld [vmem:[%s1786_s1 + $0x118] sm:$0xff] }
  0x31   : > { %456 = vmatpush.msrb.mxu2 %v234_v6  ;;  %415 = vmatpush.msrb.mxu0 %v203_v7  ;;  %v193_v47 = vld [vmem:[%s1786_s1 + $0x20] sm:$0xff]  ;;  %v240_v49 = vld [vmem:[%s1786_s1 + $0x198] sm:$0xff]  ;;  %v223_v50 = vld [vmem:[%s1786_s1 + $0x110] sm:$0xff] }
  0x32   : > { %435 = vmatpush.msrb.mxu1 %v219_v8  ;;  %476 = vmatpush.msrb.mxu3 %v250_v9  ;;  %v209_v48 = vld [vmem:[%s1786_s1 + $0xa0] sm:$0xff]  ;;  %v192_v51 = vld [vmem:[%s1786_s1 + $0x18] sm:$0xff]  ;;  %v239_v53 = vld [vmem:[%s1786_s1 + $0x190] sm:$0xff] }
  0x33   : > { %457 = vmatpush.msrb.mxu2 %v233_v10  ;;  %416 = vmatpush.msrb.mxu0 %v202_v11  ;;  %v208_v52 = vld [vmem:[%s1786_s1 + $0x98] sm:$0xff]  ;;  %v1334_v54 = vld [vmem:[%s1313_s9] sm:$0xff]  ;;  %v222_v55 = vld [vmem:[%s1786_s1 + $0x108] sm:$0xff] }
  0x34   : > { %436 = vmatpush.msrb.mxu1 %v218_v12  ;;  %477 = vmatpush.msrb.mxu3 %v249_v13  ;;  %v191_v56 = vld [vmem:[%s1786_s1 + $0x10] sm:$0xff]  ;;  %v238_v58 = vld [vmem:[%s1786_s1 + $0x188] sm:$0xff]  ;;  %v221_v59 = vld [vmem:[%s1786_s1 + $0x100] sm:$0xff]  ;;  %v320_v60 = vperm.slane %v1334_v54, 5  ;;  %v318_v1 = vperm.slane %v1334_v54, 1  ;;  %v321_v2 = vperm.slane %v1334_v54, 7 }
  0x35   : > { %458 = vmatpush.msrb.mxu2 %v232_v14  ;;  %417 = vmatpush.msrb.mxu0 %v201_v15  ;;  %v207_v57 = vld [vmem:[%s1786_s1 + $0x90] sm:$0xff]  ;;  %v190_v61 = vld [vmem:[%s1786_s1 + $0x8] sm:$0xff]  ;;  %v541_v63 = vld [vmem:[%s1786_s1 + $0x578] sm:$0xff]  ;;  %v319_v7 = vperm.slane %v1334_v54, 3  ;;  %v408_v15 = vperm.slane %v1334_v54, 4 }
  0x36   : > { %437 = vmatpush.msrb.mxu1 %v217_v16  ;;  %478 = vmatpush.msrb.mxu3 %v248_v17  ;;  %v206_v62 = vld [vmem:[%s1786_s1 + $0x88] sm:$0xff]  ;;  %v237_v0 = vld [vmem:[%s1786_s1 + $0x180] sm:$0xff]  ;;  %v540_v3 = vld [vmem:[%s1786_s1 + $0x570] sm:$0xff] }
  0x37   : > { %459 = vmatpush.msrb.mxu2 %v231_v18  ;;  %418 = vmatpush.msrb.mxu0 %v200_v19  ;;  %v557_v4 = vld [vmem:[%s1786_s1 + $0x5f8] sm:$0xff]  ;;  %v189_v5 = vld [vmem:[%s1786_s1] sm:$0xff]  ;;  %v539_v10 = vld [vmem:[%s1786_s1 + $0x568] sm:$0xff] }
  0x38   : > { %438 = vmatpush.msrb.mxu1 %v216_v20  ;;  %479 = vmatpush.msrb.mxu3 %v247_v21  ;;  %v205_v6 = vld [vmem:[%s1786_s1 + $0x80] sm:$0xff]  ;;  %v509_v8 = vld [vmem:[%s1786_s1 + $0x478] sm:$0xff]  ;;  %v556_v11 = vld [vmem:[%s1786_s1 + $0x5f0] sm:$0xff]  ;;  %v406_v21 = vperm.slane %v1334_v54, 0 }
  0x39   : > { %460 = vmatpush.msrb.mxu2 %v230_v22  ;;  %419 = vmatpush.msrb.mxu0 %v199_v23  ;;  %v525_v9 = vld [vmem:[%s1786_s1 + $0x4f8] sm:$0xff]  ;;  %v508_v12 = vld [vmem:[%s1786_s1 + $0x470] sm:$0xff]  ;;  %v538_v14 = vld [vmem:[%s1786_s1 + $0x560] sm:$0xff]  ;;  %v409_v22 = vperm.slane %v1334_v54, 6 }
  0x3a   : > { %439 = vmatpush.msrb.mxu1 %v215_v24  ;;  %480 = vmatpush.msrb.mxu3 %v246_v25  ;;  %v524_v13 = vld [vmem:[%s1786_s1 + $0x4f0] sm:$0xff]  ;;  %v555_v16 = vld [vmem:[%s1786_s1 + $0x5e8] sm:$0xff]  ;;  %v537_v19 = vld [vmem:[%s1786_s1 + $0x558] sm:$0xff] }
  0x3b   : > { %461 = vmatpush.msrb.mxu2 %v229_v26  ;;  %420 = vmatpush.msrb.mxu0 %v198_v27  ;;  %v507_v17 = vld [vmem:[%s1786_s1 + $0x468] sm:$0xff]  ;;  %v554_v20 = vld [vmem:[%s1786_s1 + $0x5e0] sm:$0xff]  ;;  %v536_v25 = vld [vmem:[%s1786_s1 + $0x550] sm:$0xff]  ;;  %v407_v27 = vperm.slane %v1334_v54, 2 }
  0x3c   : > { %440 = vmatpush.msrb.mxu1 %v214_v28  ;;  %481 = vmatpush.msrb.mxu3 %v245_v29  ;;  %v523_v18 = vld [vmem:[%s1786_s1 + $0x4e8] sm:$0xff]  ;;  %v506_v23 = vld [vmem:[%s1786_s1 + $0x460] sm:$0xff]  ;;  %v553_v26 = vld [vmem:[%s1786_s1 + $0x5d8] sm:$0xff] }
  0x3d   : > { %462 = vmatpush.msrb.mxu2 %v228_v30  ;;  %421 = vmatpush.msrb.mxu0 %v197_v31  ;;  %v522_v24 = vld [vmem:[%s1786_s1 + $0x4e0] sm:$0xff]  ;;  %v505_v28 = vld [vmem:[%s1786_s1 + $0x458] sm:$0xff]  ;;  %v535_v30 = vld [vmem:[%s1786_s1 + $0x548] sm:$0xff] }
  0x3e   : > { %441 = vmatpush.msrb.mxu1 %v213_v32  ;;  %482 = vmatpush.msrb.mxu3 %v244_v33  ;;  %v521_v29 = vld [vmem:[%s1786_s1 + $0x4d8] sm:$0xff]  ;;  %v552_v31 = vld [vmem:[%s1786_s1 + $0x5d0] sm:$0xff] }
  0x3f   : > { %463 = vmatpush.msrb.mxu2 %v227_v34  ;;  %422 = vmatpush.msrb.mxu0 %v196_v35  ;;  %v504_v32 = vld [vmem:[%s1786_s1 + $0x450] sm:$0xff]  ;;  %v534_v34 = vld [vmem:[%s1786_s1 + $0x540] sm:$0xff]  ;;  %v551_v35 = vld [vmem:[%s1786_s1 + $0x5c8] sm:$0xff] }
  0x40   : > { %442 = vmatpush.msrb.mxu1 %v212_v36  ;;  %483 = vmatpush.msrb.mxu3 %v243_v37  ;;  %v520_v33 = vld [vmem:[%s1786_s1 + $0x4d0] sm:$0xff]  ;;  %v503_v36 = vld [vmem:[%s1786_s1 + $0x448] sm:$0xff]  ;;  %v529_v54 = vld [vmem:[%s1786_s1 + $0x518] sm:$0xff] }
  0x41   : > { %464 = vmatpush.msrb.mxu2 %v226_v38  ;;  %423 = vmatpush.msrb.mxu0 %v195_v39  ;;  %v519_v37 = vld [vmem:[%s1786_s1 + $0x4c8] sm:$0xff]  ;;  %v533_v38 = vld [vmem:[%s1786_s1 + $0x538] sm:$0xff]  ;;  %v550_v39 = vld [vmem:[%s1786_s1 + $0x5c0] sm:$0xff] }
  0x42   : > { %443 = vmatpush.msrb.mxu1 %v211_v40  ;;  %484 = vmatpush.msrb.mxu3 %v242_v41  ;;  %v502_v40 = vld [vmem:[%s1786_s1 + $0x440] sm:$0xff] }
  0x43   : > { %465 = vmatpush.msrb.mxu2 %v225_v42  ;;  %424 = vmatpush.msrb.mxu0 %v194_v43  ;;  %v518_v41 = vld [vmem:[%s1786_s1 + $0x4c0] sm:$0xff]  ;;  %v532_v42 = vld [vmem:[%s1786_s1 + $0x530] sm:$0xff]  ;;  %v549_v43 = vld [vmem:[%s1786_s1 + $0x5b8] sm:$0xff] }
  0x44   : > { %444 = vmatpush.msrb.mxu1 %v210_v44  ;;  %485 = vmatpush.msrb.mxu3 %v241_v45  ;;  %v501_v44 = vld [vmem:[%s1786_s1 + $0x438] sm:$0xff] }
  0x45   : > { %466 = vmatpush.msrb.mxu2 %v224_v46  ;;  %425 = vmatpush.msrb.mxu0 %v193_v47  ;;  %v517_v45 = vld [vmem:[%s1786_s1 + $0x4b8] sm:$0xff]  ;;  %v531_v46 = vld [vmem:[%s1786_s1 + $0x528] sm:$0xff]  ;;  %v548_v47 = vld [vmem:[%s1786_s1 + $0x5b0] sm:$0xff] }
  0x46   : > { %445 = vmatpush.msrb.mxu1 %v209_v48  ;;  %486 = vmatpush.msrb.mxu3 %v240_v49  ;;  %v500_v48 = vld [vmem:[%s1786_s1 + $0x430] sm:$0xff] }
  0x47   : > { %467 = vmatpush.msrb.mxu2 %v223_v50  ;;  %426 = vmatpush.msrb.mxu0 %v192_v51  ;;  %v516_v49 = vld [vmem:[%s1786_s1 + $0x4b0] sm:$0xff]  ;;  %v530_v50 = vld [vmem:[%s1786_s1 + $0x520] sm:$0xff]  ;;  %v547_v51 = vld [vmem:[%s1786_s1 + $0x5a8] sm:$0xff] }
  0x48   : > { %446 = vmatpush.msrb.mxu1 %v208_v52  ;;  %487 = vmatpush.msrb.mxu3 %v239_v53  ;;  %v499_v52 = vld [vmem:[%s1786_s1 + $0x428] sm:$0xff] }
  0x49   : > { %468 = vmatpush.msrb.mxu2 %v222_v55  ;;  %427 = vmatpush.msrb.mxu0 %v191_v56  ;;  %v515_v53 = vld [vmem:[%s1786_s1 + $0x4a8] sm:$0xff]  ;;  %v546_v55 = vld [vmem:[%s1786_s1 + $0x5a0] sm:$0xff] }
  0x4a   : > { %447 = vmatpush.msrb.mxu1 %v207_v57  ;;  %488 = vmatpush.msrb.mxu3 %v238_v58  ;;  %v498_v56 = vld [vmem:[%s1786_s1 + $0x420] sm:$0xff]  ;;  %v528_v58 = vld [vmem:[%s1786_s1 + $0x510] sm:$0xff] }
  0x4b   : > { %469 = vmatpush.msrb.mxu2 %v221_v59  ;;  %428 = vmatpush.msrb.mxu0 %v190_v61  ;;  %v514_v57 = vld [vmem:[%s1786_s1 + $0x4a0] sm:$0xff]  ;;  %v1525_v59 = vld [vmem:[%s1313_s9 + $0x8] sm:$0xff]  ;;  %v497_v61 = vld [vmem:[%s1786_s1 + $0x418] sm:$0xff] }
  0x4c   : > { %382 = vmatmul.f32.vlgmr.msra.gmra.mxu2 %v320_v60  ;;  %448 = vmatpush.msrb.mxu1 %v206_v62  ;;  %v545_v60 = vld [vmem:[%s1786_s1 + $0x598] sm:$0xff] }
  0x4d   : > { %607 = vmatpush.msra.mxu2 %v541_v63  ;;  %489 = vmatpush.msrb.mxu3 %v237_v0  ;;  %v513_v62 = vld [vmem:[%s1786_s1 + $0x498] sm:$0xff]  ;;  %v527_v63 = vld [vmem:[%s1786_s1 + $0x508] sm:$0xff]  ;;  %v544_v0 = vld [vmem:[%s1786_s1 + $0x590] sm:$0xff] }
  0x4e   : > { %342 = vmatmul.f32.vlgmr.msra.gmra.mxu0 %v318_v1  ;;  %402 = vmatmul.f32.vlgmr.msra.gmra.mxu3 %v321_v2  ;;  %v496_v1 = vld [vmem:[%s1786_s1 + $0x410] sm:$0xff] }
  0x4f   : > { %608 = vmatpush.msra.mxu2 %v540_v3  ;;  %627 = vmatpush.msra.mxu3 %v557_v4  ;;  %v512_v2 = vld [vmem:[%s1786_s1 + $0x490] sm:$0xff]  ;;  %v526_v3 = vld [vmem:[%s1786_s1 + $0x500] sm:$0xff]  ;;  %v561_v4 = vperm.slane %v1525_v59, 4 }
  0x50   : > { %429 = vmatpush.msrb.mxu0 %v189_v5  ;;  %449 = vmatpush.msrb.mxu1 %v205_v6  ;;  %v543_v5 = vld [vmem:[%s1786_s1 + $0x588] sm:$0xff]  ;;  %v695_v6 = vld [vmem:[%s1786_s1 + $0x778] sm:$0xff] }
  0x51   : > { %362 = vmatmul.f32.vlgmr.msra.gmra.mxu1 %v319_v7  ;;  %609 = vmatpush.msra.mxu2 %v539_v10  ;;  %v495_v7 = vld [vmem:[%s1786_s1 + $0x408] sm:$0xff]  ;;  %v562_v10 = vperm.slane %v1525_v59, 6 }
  0x52   : > { %567 = vmatpush.msra.mxu0 %v509_v8  ;;  %587 = vmatpush.msra.mxu1 %v525_v9  ;;  %v511_v8 = vld [vmem:[%s1786_s1 + $0x488] sm:$0xff]  ;;  %v542_v9 = vld [vmem:[%s1786_s1 + $0x580] sm:$0xff] }
  0x53   : > { %628 = vmatpush.msra.mxu3 %v556_v11  ;;  %610 = vmatpush.msra.mxu2 %v538_v14  ;;  %v694_v11 = vld [vmem:[%s1786_s1 + $0x770] sm:$0xff]  ;;  %v559_v14 = vperm.slane %v1525_v59, 0 }
  0x54   : > { %568 = vmatpush.msra.mxu0 %v508_v12  ;;  %588 = vmatpush.msra.mxu1 %v524_v13  ;;  %v711_v12 = vld [vmem:[%s1786_s1 + $0x7f8] sm:$0xff]  ;;  %v494_v13 = vld [vmem:[%s1786_s1 + $0x400] sm:$0xff] }
  0x55   : > { %629 = vmatpush.msra.mxu3 %v555_v16  ;;  %470 = vmatmul.f32.vlgmr.msrb.gmra.mxu2 %v408_v15  ;;  %v510_v15 = vld [vmem:[%s1786_s1 + $0x480] sm:$0xff]  ;;  %v560_v16 = vperm.slane %v1525_v59, 2 }
  0x56   : > { %569 = vmatpush.msra.mxu0 %v507_v17  ;;  %589 = vmatpush.msra.mxu1 %v523_v18  ;;  %v663_v17 = vld [vmem:[%s1786_s1 + $0x678] sm:$0xff] }
  0x57   : > { %611 = vmatpush.msra.mxu2 %v537_v19  ;;  %630 = vmatpush.msra.mxu3 %v554_v20  ;;  %v679_v18 = vld [vmem:[%s1786_s1 + $0x6f8] sm:$0xff]  ;;  %v693_v19 = vld [vmem:[%s1786_s1 + $0x768] sm:$0xff]  ;;  %v710_v20 = vld [vmem:[%s1786_s1 + $0x7f0] sm:$0xff] }
  0x58   : > { %430 = vmatmul.f32.vlgmr.msrb.gmra.mxu0 %v406_v21  ;;  %490 = vmatmul.f32.vlgmr.msrb.gmra.mxu3 %v409_v22  ;;  %v662_v21 = vld [vmem:[%s1786_s1 + $0x670] sm:$0xff] }
  0x59   : > { %570 = vmatpush.msra.mxu0 %v506_v23  ;;  %590 = vmatpush.msra.mxu1 %v522_v24  ;;  %v678_v22 = vld [vmem:[%s1786_s1 + $0x6f0] sm:$0xff]  ;;  %v692_v23 = vld [vmem:[%s1786_s1 + $0x760] sm:$0xff]  ;;  %v709_v24 = vld [vmem:[%s1786_s1 + $0x7e8] sm:$0xff] }
  0x5a   : > { %612 = vmatpush.msra.mxu2 %v536_v25  ;;  %631 = vmatpush.msra.mxu3 %v553_v26  ;;  %v661_v25 = vld [vmem:[%s1786_s1 + $0x668] sm:$0xff] }
  0x5b   : > { %450 = vmatmul.f32.vlgmr.msrb.gmra.mxu1 %v407_v27  ;;  %571 = vmatpush.msra.mxu0 %v505_v28  ;;  %v677_v26 = vld [vmem:[%s1786_s1 + $0x6e8] sm:$0xff]  ;;  %v691_v27 = vld [vmem:[%s1786_s1 + $0x758] sm:$0xff]  ;;  %v708_v28 = vld [vmem:[%s1786_s1 + $0x7e0] sm:$0xff] }
  0x5c   : > { %591 = vmatpush.msra.mxu1 %v521_v29  ;;  %613 = vmatpush.msra.mxu2 %v535_v30  ;;  %v660_v29 = vld [vmem:[%s1786_s1 + $0x660] sm:$0xff] }
  0x5d   : > { %632 = vmatpush.msra.mxu3 %v552_v31  ;;  %572 = vmatpush.msra.mxu0 %v504_v32  ;;  %v676_v30 = vld [vmem:[%s1786_s1 + $0x6e0] sm:$0xff]  ;;  %v690_v31 = vld [vmem:[%s1786_s1 + $0x750] sm:$0xff]  ;;  %v707_v32 = vld [vmem:[%s1786_s1 + $0x7d8] sm:$0xff] }
  0x5e   : > { %592 = vmatpush.msra.mxu1 %v520_v33  ;;  %614 = vmatpush.msra.mxu2 %v534_v34  ;;  %v659_v33 = vld [vmem:[%s1786_s1 + $0x658] sm:$0xff] }
  0x5f   : > { %633 = vmatpush.msra.mxu3 %v551_v35  ;;  %573 = vmatpush.msra.mxu0 %v503_v36  ;;  %v675_v34 = vld [vmem:[%s1786_s1 + $0x6d8] sm:$0xff]  ;;  %v689_v35 = vld [vmem:[%s1786_s1 + $0x748] sm:$0xff]  ;;  %v706_v36 = vld [vmem:[%s1786_s1 + $0x7d0] sm:$0xff] }
  0x60   : > { %593 = vmatpush.msra.mxu1 %v519_v37  ;;  %615 = vmatpush.msra.mxu2 %v533_v38  ;;  %v658_v37 = vld [vmem:[%s1786_s1 + $0x650] sm:$0xff] }
  0x61   : > { %634 = vmatpush.msra.mxu3 %v550_v39  ;;  %574 = vmatpush.msra.mxu0 %v502_v40  ;;  %v674_v38 = vld [vmem:[%s1786_s1 + $0x6d0] sm:$0xff]  ;;  %v688_v39 = vld [vmem:[%s1786_s1 + $0x740] sm:$0xff]  ;;  %v705_v40 = vld [vmem:[%s1786_s1 + $0x7c8] sm:$0xff] }
  0x62   : > { %594 = vmatpush.msra.mxu1 %v518_v41  ;;  %616 = vmatpush.msra.mxu2 %v532_v42  ;;  %v657_v41 = vld [vmem:[%s1786_s1 + $0x648] sm:$0xff] }
  0x63   : > { %635 = vmatpush.msra.mxu3 %v549_v43  ;;  %575 = vmatpush.msra.mxu0 %v501_v44  ;;  %v673_v42 = vld [vmem:[%s1786_s1 + $0x6c8] sm:$0xff]  ;;  %v687_v43 = vld [vmem:[%s1786_s1 + $0x738] sm:$0xff]  ;;  %v704_v44 = vld [vmem:[%s1786_s1 + $0x7c0] sm:$0xff] }
  0x64   : > { %595 = vmatpush.msra.mxu1 %v517_v45  ;;  %617 = vmatpush.msra.mxu2 %v531_v46  ;;  %v656_v45 = vld [vmem:[%s1786_s1 + $0x640] sm:$0xff] }
  0x65   : > { %636 = vmatpush.msra.mxu3 %v548_v47  ;;  %576 = vmatpush.msra.mxu0 %v500_v48  ;;  %v672_v46 = vld [vmem:[%s1786_s1 + $0x6c0] sm:$0xff]  ;;  %v686_v47 = vld [vmem:[%s1786_s1 + $0x730] sm:$0xff]  ;;  %v703_v48 = vld [vmem:[%s1786_s1 + $0x7b8] sm:$0xff] }
  0x66   : > { %596 = vmatpush.msra.mxu1 %v516_v49  ;;  %618 = vmatpush.msra.mxu2 %v530_v50  ;;  %v655_v49 = vld [vmem:[%s1786_s1 + $0x638] sm:$0xff] }
  0x67   : > { %637 = vmatpush.msra.mxu3 %v547_v51  ;;  %577 = vmatpush.msra.mxu0 %v499_v52  ;;  %v671_v50 = vld [vmem:[%s1786_s1 + $0x6b8] sm:$0xff]  ;;  %v685_v51 = vld [vmem:[%s1786_s1 + $0x728] sm:$0xff]  ;;  %v702_v52 = vld [vmem:[%s1786_s1 + $0x7b0] sm:$0xff] }
  0x68   : > { %597 = vmatpush.msra.mxu1 %v515_v53  ;;  %619 = vmatpush.msra.mxu2 %v529_v54  ;;  %v654_v53 = vld [vmem:[%s1786_s1 + $0x630] sm:$0xff] }
  0x69   : > { %638 = vmatpush.msra.mxu3 %v546_v55  ;;  %578 = vmatpush.msra.mxu0 %v498_v56  ;;  %v670_v54 = vld [vmem:[%s1786_s1 + $0x6b0] sm:$0xff]  ;;  %v684_v55 = vld [vmem:[%s1786_s1 + $0x720] sm:$0xff]  ;;  %v701_v56 = vld [vmem:[%s1786_s1 + $0x7a8] sm:$0xff] }
  0x6a   : > { %598 = vmatpush.msra.mxu1 %v514_v57  ;;  %620 = vmatpush.msra.mxu2 %v528_v58  ;;  %v653_v57 = vld [vmem:[%s1786_s1 + $0x628] sm:$0xff] }
  0x6b   : > { %639 = vmatpush.msra.mxu3 %v545_v60  ;;  %579 = vmatpush.msra.mxu0 %v497_v61  ;;  %v669_v58 = vld [vmem:[%s1786_s1 + $0x6a8] sm:$0xff]  ;;  %v683_v60 = vld [vmem:[%s1786_s1 + $0x718] sm:$0xff]  ;;  %v700_v61 = vld [vmem:[%s1786_s1 + $0x7a0] sm:$0xff] }
  0x6c   : > { %599 = vmatpush.msra.mxu1 %v513_v62  ;;  %621 = vmatpush.msra.mxu2 %v527_v63  ;;  %v652_v62 = vld [vmem:[%s1786_s1 + $0x620] sm:$0xff] }
  0x6d   : > { %640 = vmatpush.msra.mxu3 %v544_v0  ;;  %580 = vmatpush.msra.mxu0 %v496_v1  ;;  %v668_v63 = vld [vmem:[%s1786_s1 + $0x6a0] sm:$0xff]  ;;  %v682_v0 = vld [vmem:[%s1786_s1 + $0x710] sm:$0xff]  ;;  %v699_v1 = vld [vmem:[%s1786_s1 + $0x798] sm:$0xff] }
  0x6e   : > { %600 = vmatpush.msra.mxu1 %v512_v2  ;;  %622 = vmatpush.msra.mxu2 %v526_v3  ;;  %v651_v2 = vld [vmem:[%s1786_s1 + $0x618] sm:$0xff] }
  0x6f   : > { %641 = vmatpush.msra.mxu3 %v543_v5  ;;  %623 = vmatmul.f32.vlgmr.msra.gmra.mxu2 %v561_v4  ;;  %v667_v3 = vld [vmem:[%s1786_s1 + $0x698] sm:$0xff]  ;;  %v681_v4 = vld [vmem:[%s1786_s1 + $0x708] sm:$0xff]  ;;  %v698_v5 = vld [vmem:[%s1786_s1 + $0x790] sm:$0xff] }
  0x70   : > { %760 = vmatpush.msrb.mxu2 %v695_v6  ;;  %581 = vmatpush.msra.mxu0 %v495_v7  ;;  %v650_v6 = vld [vmem:[%s1786_s1 + $0x610] sm:$0xff] }
  0x71   : > { %601 = vmatpush.msra.mxu1 %v511_v8  ;;  %642 = vmatpush.msra.mxu3 %v542_v9  ;;  %v666_v7 = vld [vmem:[%s1786_s1 + $0x690] sm:$0xff]  ;;  %v680_v8 = vld [vmem:[%s1786_s1 + $0x700] sm:$0xff]  ;;  %v714_v9 = vperm.slane %v1525_v59, 5 }
  0x72   : > { %643 = vmatmul.f32.vlgmr.msra.gmra.mxu3 %v562_v10  ;;  %761 = vmatpush.msrb.mxu2 %v694_v11  ;;  %v697_v10 = vld [vmem:[%s1786_s1 + $0x788] sm:$0xff] }
  0x73   : > { %780 = vmatpush.msrb.mxu3 %v711_v12  ;;  %582 = vmatpush.msra.mxu0 %v494_v13  ;;  %v649_v11 = vld [vmem:[%s1786_s1 + $0x608] sm:$0xff]  ;;  %v696_v13 = vld [vmem:[%s1786_s1 + $0x780] sm:$0xff] }
  0x74   : > { %602 = vmatpush.msra.mxu1 %v510_v15  ;;  %583 = vmatmul.f32.vlgmr.msra.gmra.mxu0 %v559_v14  ;;  %v665_v12 = vld [vmem:[%s1786_s1 + $0x688] sm:$0xff]  ;;  %v715_v14 = vperm.slane %v1525_v59, 7  ;;  %v648_v15 = vld [vmem:[%s1786_s1 + $0x600] sm:$0xff] }
  0x75   : > { %603 = vmatmul.f32.vlgmr.msra.gmra.mxu1 %v560_v16  ;;  %720 = vmatpush.msrb.mxu0 %v663_v17  ;;  %v712_v16 = vperm.slane %v1525_v59, 1  ;;  %v664_v17 = vld [vmem:[%s1786_s1 + $0x680] sm:$0xff] }
  0x76   : > { %740 = vmatpush.msrb.mxu1 %v679_v18  ;;  %762 = vmatpush.msrb.mxu2 %v693_v19  ;;  %v713_v18 = vperm.slane %v1525_v59, 3 }
  0x77   : > { %781 = vmatpush.msrb.mxu3 %v710_v20  ;;  %721 = vmatpush.msrb.mxu0 %v662_v21 }
  0x78   : > { %741 = vmatpush.msrb.mxu1 %v678_v22  ;;  %763 = vmatpush.msrb.mxu2 %v692_v23 }
  0x79   : > { %782 = vmatpush.msrb.mxu3 %v709_v24  ;;  %722 = vmatpush.msrb.mxu0 %v661_v25 }
  0x7a   : > { %742 = vmatpush.msrb.mxu1 %v677_v26  ;;  %764 = vmatpush.msrb.mxu2 %v691_v27 }
  0x7b   : > { %783 = vmatpush.msrb.mxu3 %v708_v28  ;;  %723 = vmatpush.msrb.mxu0 %v660_v29 }
  0x7c   : > { %743 = vmatpush.msrb.mxu1 %v676_v30  ;;  %765 = vmatpush.msrb.mxu2 %v690_v31 }
  0x7d   : > { %784 = vmatpush.msrb.mxu3 %v707_v32  ;;  %724 = vmatpush.msrb.mxu0 %v659_v33 }
  0x7e   : > { %744 = vmatpush.msrb.mxu1 %v675_v34  ;;  %766 = vmatpush.msrb.mxu2 %v689_v35 }
  0x7f   : > { %785 = vmatpush.msrb.mxu3 %v706_v36  ;;  %725 = vmatpush.msrb.mxu0 %v658_v37 }
  0x80   : > { %745 = vmatpush.msrb.mxu1 %v674_v38  ;;  %767 = vmatpush.msrb.mxu2 %v688_v39 }
  0x81   : > { %786 = vmatpush.msrb.mxu3 %v705_v40  ;;  %726 = vmatpush.msrb.mxu0 %v657_v41 }
  0x82   : > { %746 = vmatpush.msrb.mxu1 %v673_v42  ;;  %768 = vmatpush.msrb.mxu2 %v687_v43 }
  0x83   : > { %787 = vmatpush.msrb.mxu3 %v704_v44  ;;  %727 = vmatpush.msrb.mxu0 %v656_v45 }
  0x84   : > { %747 = vmatpush.msrb.mxu1 %v672_v46  ;;  %769 = vmatpush.msrb.mxu2 %v686_v47 }
  0x85   : > { %788 = vmatpush.msrb.mxu3 %v703_v48  ;;  %728 = vmatpush.msrb.mxu0 %v655_v49  ;;  %v801_v48 = vld [vmem:[%s1787_s2] sm:$0x1] }
  0x86   : > { %748 = vmatpush.msrb.mxu1 %v671_v50  ;;  %770 = vmatpush.msrb.mxu2 %v685_v51 }
  0x87   : > { %789 = vmatpush.msrb.mxu3 %v702_v52  ;;  %729 = vmatpush.msrb.mxu0 %v654_v53 }
  0x88   : > { %749 = vmatpush.msrb.mxu1 %v670_v54  ;;  %771 = vmatpush.msrb.mxu2 %v684_v55 }
  0x89   : > { %790 = vmatpush.msrb.mxu3 %v701_v56  ;;  %730 = vmatpush.msrb.mxu0 %v653_v57 }
  0x8a   : > { %750 = vmatpush.msrb.mxu1 %v669_v58  ;;  %772 = vmatpush.msrb.mxu2 %v683_v60 }
  0x8b   : > { %791 = vmatpush.msrb.mxu3 %v700_v61  ;;  %731 = vmatpush.msrb.mxu0 %v652_v62 }
  0x8c   : > { %751 = vmatpush.msrb.mxu1 %v668_v63  ;;  %773 = vmatpush.msrb.mxu2 %v682_v0 }
  0x8d   : > { %792 = vmatpush.msrb.mxu3 %v699_v1  ;;  %732 = vmatpush.msrb.mxu0 %v651_v2 }
  0x8e   : > { %752 = vmatpush.msrb.mxu1 %v667_v3  ;;  %774 = vmatpush.msrb.mxu2 %v681_v4 }
  0x8f   : > { %793 = vmatpush.msrb.mxu3 %v698_v5  ;;  %733 = vmatpush.msrb.mxu0 %v650_v6 }
  0x90   : > { %753 = vmatpush.msrb.mxu1 %v666_v7  ;;  %775 = vmatpush.msrb.mxu2 %v680_v8 }
  0x91   : > { %794 = vmatpush.msrb.mxu3 %v697_v10  ;;  %776 = vmatmul.f32.vlgmr.msrb.gmra.mxu2 %v714_v9 }
  0x92   : > { %734 = vmatpush.msrb.mxu0 %v649_v11  ;;  %754 = vmatpush.msrb.mxu1 %v665_v12 }
  0x93   : > { %795 = vmatpush.msrb.mxu3 %v696_v13 }
  0x94   : > { %796 = vmatmul.f32.vlgmr.msrb.gmra.mxu3 %v715_v14  ;;  %735 = vmatpush.msrb.mxu0 %v648_v15 }
  0x95   : > { %755 = vmatpush.msrb.mxu1 %v664_v17  ;;  %736 = vmatmul.f32.vlgmr.msrb.gmra.mxu0 %v712_v16 }
  0x96   : > { %756 = vmatmul.f32.vlgmr.msrb.gmra.mxu1 %v713_v18 }
  0xcb   : > { %v343_v19 = vpop.f32.mrf.mxu0 }
  0xce   : > { %v363_v20 = vpop.f32.mrf.mxu1 }
  0xcf   : > { %v383_v21 = vpop.f32.mrf.mxu2  ;;  %v364_v23 = vadd.f32 %v363_v20, %v343_v19 }
  0xd1   : > { %v403_v22 = vpop.f32.mrf.mxu3  ;;  %v384_v26 = vadd.f32 %v383_v21, %v364_v23 }
  0xd3   : > { %v404_v28 = vadd.f32 %v403_v22, %v384_v26 }
  0xd5   : > { %v431_v24 = vpop.f32.mrf.mxu0 }
  0xd6   : > { %v432_v59 = vadd.f32 %v431_v24, %v404_v28 }
  0xd8   : > { %v451_v25 = vpop.f32.mrf.mxu1  ;;  %v471_v27 = vpop.f32.mrf.mxu2 }
  0xd9   : > { %v452_v34 = vadd.f32 %v451_v25, %v432_v59 }
  0xdb   : > { %v491_v29 = vpop.f32.mrf.mxu3  ;;  %v472_v37 = vadd.f32 %v471_v27, %v452_v34 }
  0xdd   : > { %v492_v43 = vadd.f32 %v491_v29, %v472_v37 }
  0xf1   : > { %v584_v30 = vpop.f32.mrf.mxu0 }
  0xf2   : > { %v604_v31 = vpop.f32.mrf.mxu1  ;;  %v624_v33 = vpop.f32.mrf.mxu2 }
  0xf3   : > { %v605_v32 = vadd.f32 %v604_v31, %v584_v30 }
  0xf5   : > { %v644_v35 = vpop.f32.mrf.mxu3  ;;  %v625_v36 = vadd.f32 %v624_v33, %v605_v32 }
  0xf7   : > { %v645_v40 = vadd.f32 %v644_v35, %v625_v36 }
  0xf9   : > { %v647_v46 = vadd.f32 %v645_v40, %v492_v43 }
 0x112   : > { %v737_v38 = vpop.f32.mrf.mxu0 }
 0x113   : > { %v757_v39 = vpop.f32.mrf.mxu1 }
 0x114   : > { %v758_v41 = vadd.f32 %v757_v39, %v737_v38  ;;  %v777_v42 = vpop.f32.mrf.mxu2 }
 0x116   : > { %v778_v44 = vadd.f32 %v777_v42, %v758_v41 }
 0x117   : > { %v797_v45 = vpop.f32.mrf.mxu3 }
 0x118   : > { %v798_v47 = vadd.f32 %v797_v45, %v778_v44 }
 0x11a   : > { %v800_v49 = vadd.f32 %v798_v47, %v647_v46 }
 0x11c   : > { %v802_v50 = vadd.f32 %v801_v48, %v800_v49 }
 0x11e   : > { %803 = vst [vmem:[%s186_s8] sm:$0x1] %v802_v50 }
 0x11f PF: > { %s13_s14 = sadd.s32 1, %s925_s14   ;;  %s1789_s12 = smov %s921_s13 }
 0x120   : > { %p10_p5 = scmp.ge.s32.totalorder %s13_s14, 4   ;;  %s1790_s13 = smov %s1792_s15 }
 0x122   :  { %12 = sbr.rel (!%p10_p5) target bundleno = 2 (0x2), region = 62 }

</bundles_post_ra>
